<compile_context>
chip_gen: v6e
topology: v6e:2x2x1
jax: 0.10.0
libtpu: 0.0.40
codegen_flags: <defaults>
</compile_context>

<pallas_src>
import functools
import math

import jax
import jax.numpy as jnp
from jax.experimental import pallas as pl
from jax.experimental.pallas import tpu as pltpu

_EPS = 1e-5  # PyTorch InstanceNorm2d default


def _resblock_kernel(x_ref, w1_ref, b1_ref, w2_ref, b2_ref, mask_ref,
                     o_ref, buf_ref, col_ref, *, H, W, C, Bt, Npad, eps):
    """Fused Resblock for a tile of Bt samples.

    x_ref   : (Bt, Npad, C) f32   zero-padded NHWC-flat activations
                                  (Npad = round_up((H+2)*(W+2), 8))
    w*_ref  : (9*C, C)      bf16  conv taps, row k*C+cin -> cout (k = ky*3+kx)
    b*_ref  : (1, C)        f32   conv bias
    mask_ref: (Npad, 1)     f32   1.0 at interior spatial rows, 0.0 elsewhere
    o_ref   : (Bt, Npad, C) f32   output, same padded layout (pad rows = 0)
    buf_ref : (2*S + Bt*Npad, C)  bf16 staging buffer with S-row halos
    col_ref : (Bt*Npad, 9*C)      bf16 im2col (tap-concatenated K) scratch
    """
    Wp = W + 2
    S = Wp + 1                      # max |flat tap offset| = Wp + 1
    M = Bt * Npad
    inv_n = 1.0 / (H * W)
    taps = [(dy, dx) for dy in (-1, 0, 1) for dx in (-1, 0, 1)]

    # Hoist the mask broadcast: one (Npad,1)->(Npad,C) lane broadcast, reused.
    mask3 = jnp.broadcast_to(mask_ref[...], (Npad, C))[None]   # (1, Npad, C)

    x3 = x_ref[...]                                            # (Bt, Npad, C)
    x2d = x3.reshape(M, C)                                     # Npad % 8 == 0 -> free

    # Stage activations in bf16.  Zero only the halo rows; the interior is
    # fully overwritten right below.  (Kept per-iteration, NOT program_id
    # gated, so it stays correct with dimension_semantics="parallel".)
    zhalo = jnp.zeros((S, C), jnp.bfloat16)
    buf_ref[pl.ds(0, S), :] = zhalo
    buf_ref[pl.ds(S + M, S), :] = zhalo
    buf_ref[pl.ds(S, M), :] = x2d.astype(jnp.bfloat16)

    def im2col():
        # 9 shifted slabs concatenated along K -> one (M, 9C) bf16 operand.
        # Interior output rows only ever read rows of their own sample's
        # Npad-row segment; pad/filler rows may bleed but are masked out.
        for k, (dy, dx) in enumerate(taps):
            off = S + dy * Wp + dx
            col_ref[:, k * C:(k + 1) * C] = buf_ref[pl.ds(off, M), :]

    def conv(w_ref, b_ref):
        # One streaming-K MXU matmul per conv, f32 accumulation on the MXU path.
        y = jnp.dot(col_ref[...], w_ref[...],
                    preferred_element_type=jnp.float32) + b_ref[...]
        return y.reshape(Bt, Npad, C)                          # per-sample view

    def inst_norm(y3):
        # Single-pass, mask-weighted, per-sample per-channel stats (biased var,
        # counted over the H*W interior positions only).
        ym = y3 * mask3
        mean = jnp.sum(ym, axis=1, keepdims=True) * inv_n      # (Bt, 1, C)
        ex2 = jnp.sum(ym * y3, axis=1, keepdims=True) * inv_n  # (Bt, 1, C)
        inv_std = jax.lax.rsqrt(ex2 - mean * mean + eps)
        return (y3 - mean) * inv_std

    im2col()
    a1 = jnp.maximum(inst_norm(conv(w1_ref, b1_ref)), 0.0) * mask3
    buf_ref[pl.ds(S, M), :] = a1.reshape(M, C).astype(jnp.bfloat16)
    im2col()
    z2 = inst_norm(conv(w2_ref, b2_ref))
    # Mask the output so the padded-layout result is exactly zero at pad/filler
    # rows -> the padded layout composes across stacked Resblocks.
    o_ref[...] = jnp.maximum(z2 + x3, 0.0) * mask3


# ----------------------------------------------------------------------------
# Host-side wrappers
# ----------------------------------------------------------------------------

def resblock_prepare_params(w1, b1, w2, b2):
    """One-time weight layout prep (call at model init, not per forward call)."""
    C = w1.shape[0]

    def prep_w(w):  # OIHW (Cout, Cin, 3, 3) -> (9*Cin, Cout) bf16, tap-major
        return jnp.transpose(w, (2, 3, 1, 0)).reshape(9 * C, C).astype(jnp.bfloat16)

    return (prep_w(w1), b1.reshape(1, C).astype(jnp.float32),
            prep_w(w2), b2.reshape(1, C).astype(jnp.float32))


def _batch_tile(B, Npad, target_rows=256):
    """Pick Bt so M = Bt*Npad is near a full 256-row MXU pass (v6e/v7x) while
    balancing grid steps and minimizing batch padding."""
    per_tile = max(1, -(-target_rows // Npad))
    G = max(1, -(-B // per_tile))
    Bt = -(-B // G)
    return Bt, G


def nchw_to_padded(x_nchw):
    """(B, C, H, W) -> lane-dense padded NHWC-flat (B, Npad, C), zero pad rows."""
    B, C, H, W = x_nchw.shape
    Hp, Wp = H + 2, W + 2
    Np = Hp * Wp
    Npad = -(-Np // 8) * 8
    x = jnp.transpose(x_nchw, (0, 2, 3, 1)).astype(jnp.float32)
    x = jnp.pad(x, ((0, 0), (1, 1), (1, 1), (0, 0))).reshape(B, Np, C)
    return jnp.pad(x, ((0, 0), (0, Npad - Np), (0, 0)))


def padded_to_nchw(y_pad, H, W):
    B, Npad, C = y_pad.shape
    Hp, Wp = H + 2, W + 2
    Np = Hp * Wp
    y = y_pad[:, :Np, :].reshape(B, Hp, Wp, C)[:, 1:1 + H, 1:1 + W, :]
    return jnp.transpose(y, (0, 3, 1, 2))


def resblock_apply_padded(x_pad, params, *, H, W, eps=_EPS):
    """Hot path: input/output stay in padded NHWC-flat (B, Npad, C) layout.

    When stacking Resblocks, chain this function so NCHW<->NHWC transposes and
    pad/unpad happen only at the stack boundary.
    """
    w1p, b1p, w2p, b2p = params
    B, Npad, C = x_pad.shape
    Hp, Wp = H + 2, W + 2
    Np = Hp * Wp
    assert Npad == -(-Np // 8) * 8, "x_pad has wrong padded spatial length"
    assert C % 128 == 0, "lane-dense layout assumes channels are a multiple of 128"
    S = Wp + 1

    Bt, G = _batch_tile(B, Npad)
    Bpad = G * Bt
    if Bpad != B:
        x_pad = jnp.pad(x_pad, ((0, Bpad - B), (0, 0), (0, 0)))
    M = Bt * Npad

    # Interior-position mask (constant-folded under jit).
    hh = jnp.arange(Hp)
    ww = jnp.arange(Wp)
    interior = ((hh[:, None] >= 1) & (hh[:, None] <= H)
                & (ww[None, :] >= 1) & (ww[None, :] <= W))
    mask = jnp.pad(interior.reshape(Np).astype(jnp.float32), (0, Npad - Np))
    mask = mask.reshape(Npad, 1)

    out = pl.pallas_call(
        functools.partial(_resblock_kernel, H=H, W=W, C=C, Bt=Bt, Npad=Npad,
                          eps=eps),
        out_shape=jax.ShapeDtypeStruct((Bpad, Npad, C), jnp.float32),
        grid_spec=pltpu.PrefetchScalarGridSpec(
            num_scalar_prefetch=0,
            grid=(G,),
            in_specs=[
                pl.BlockSpec((Bt, Npad, C), lambda g: (g, 0, 0)),
                pl.BlockSpec((9 * C, C), lambda g: (0, 0)),
                pl.BlockSpec((1, C), lambda g: (0, 0)),
                pl.BlockSpec((9 * C, C), lambda g: (0, 0)),
                pl.BlockSpec((1, C), lambda g: (0, 0)),
                pl.BlockSpec((Npad, 1), lambda g: (0, 0)),
            ],
            out_specs=pl.BlockSpec((Bt, Npad, C), lambda g: (g, 0, 0)),
            scratch_shapes=[
                pltpu.VMEM((2 * S + M, C), jnp.bfloat16),   # halo'ed staging buf
                pltpu.VMEM((M, 9 * C), jnp.bfloat16),       # im2col (K-concat)
            ],
        ),
        compiler_params=pltpu.CompilerParams(
            dimension_semantics=("parallel",),
        ),
    )(x_pad, w1p, b1p, w2p, b2p, mask)
    return out[:B]


def resblock_apply(x_nchw, params, eps=_EPS):
    """Convenience entry: NCHW in, NCHW out (layout conversion at the edges)."""
    _, _, H, W = x_nchw.shape
    x_pad = nchw_to_padded(x_nchw)
    y_pad = resblock_apply_padded(x_pad, params, H=H, W=W, eps=eps)
    return padded_to_nchw(y_pad, H, W)


def resblock_pallas(x_nchw, w1, b1, w2, b2, *, eps=_EPS):
    """Full convenience wrapper (prep + apply).  Prefer hoisting the prep."""
    return resblock_apply(x_nchw, resblock_prepare_params(w1, b1, w2, b2), eps=eps)


# ----------------------------------------------------------------------------
# Plain-JAX reference (PyTorch semantics: Conv2d -> InstanceNorm2d(affine=False)
# -> ReLU -> Conv2d -> InstanceNorm2d -> +residual -> ReLU)
# ----------------------------------------------------------------------------

def resblock_reference(x, w1, b1, w2, b2, eps=_EPS):
    def conv(x, w, b):
        y = jax.lax.conv_general_dilated(
            x, w, window_strides=(1, 1), padding=((1, 1), (1, 1)),
            dimension_numbers=("NCHW", "OIHW", "NCHW"))
        return y + b.reshape(1, -1, 1, 1)

    def inorm(y):
        m = jnp.mean(y, axis=(2, 3), keepdims=True)
        v = jnp.mean(jnp.square(y - m), axis=(2, 3), keepdims=True)
        return (y - m) * jax.lax.rsqrt(v + eps)

    y = jnp.maximum(inorm(conv(x, w1, b1)), 0.0)
    y = inorm(conv(y, w2, b2))
    return jnp.maximum(y + x, 0.0)


if __name__ == "__main__":
    # Resblock(128) on 5x5 feature maps; batch 8 exercises batch-folding into M
    # and a multi-step "parallel" grid.
    B, C, H, W = 8, 128, 5, 5
    key = jax.random.PRNGKey(0)
    kx, kw1, kb1, kw2, kb2 = jax.random.split(key, 5)

    bound = 1.0 / math.sqrt(C * 9)
    x = jax.random.normal(kx, (B, C, H, W), jnp.float32)
    w1 = jax.random.uniform(kw1, (C, C, 3, 3), jnp.float32, -bound, bound)
    b1 = jax.random.uniform(kb1, (C,), jnp.float32, -bound, bound)
    w2 = jax.random.uniform(kw2, (C, C, 3, 3), jnp.float32, -bound, bound)
    b2 = jax.random.uniform(kb2, (C,), jnp.float32, -bound, bound)

    # Weight layout prep hoisted out of the per-call path (done once at init).
    params = resblock_prepare_params(w1, b1, w2, b2)

    fwd = jax.jit(resblock_apply)
    out = jax.block_until_ready(fwd(x, params))
    assert out.shape == (B, C, H, W) and out.dtype == jnp.float32
    assert bool(jnp.all(jnp.isfinite(out)))

    ref = resblock_reference(x, w1, b1, w2, b2)
    err = jnp.abs(out - ref)
    max_err = float(jnp.max(err))
    mean_err = float(jnp.mean(err))
    # bf16 MXU operands with f32 accumulation -> small numeric drift vs f32 ref.
    assert max_err < 1e-1, f"max |pallas - ref| = {max_err}"
    assert mean_err < 2e-2, f"mean |pallas - ref| = {mean_err}"
    print("KERNEL_OK")
</pallas_src>

<mosaic_0001>
module attributes {stable_mosaic.version = 11 : i64} {
  func.func @_resblock_kernel(%arg0: i32, %arg1: memref<4x56x128xf32, #tpu.memory_space<vmem>>, %arg2: memref<1152x128xbf16, #tpu.memory_space<vmem>>, %arg3: memref<1x128xf32, #tpu.memory_space<vmem>>, %arg4: memref<1152x128xbf16, #tpu.memory_space<vmem>>, %arg5: memref<1x128xf32, #tpu.memory_space<vmem>>, %arg6: memref<56x1xf32, #tpu.memory_space<vmem>>, %arg7: memref<4x56x128xf32, #tpu.memory_space<vmem>>, %arg8: memref<240x128xbf16, #tpu.memory_space<vmem>>, %arg9: memref<224x1152xbf16, #tpu.memory_space<vmem>>) attributes {dimension_semantics = [#tpu.dimension_semantics<parallel>], iteration_bounds = array<i64: 2>, scalar_prefetch = 0 : i64, scratch_operands = 2 : i64, tpu.core_type = #tpu.core_type<tc>, window_params = [{transform_indices = @transform_0, window_bounds = array<i64: 4, 56, 128>}, {pipeline_mode = #tpu.pipeline_mode<synchronous>, transform_indices = @transform_1, window_bounds = array<i64: 1152, 128>}, {pipeline_mode = #tpu.pipeline_mode<synchronous>, transform_indices = @transform_2, window_bounds = array<i64: 1, 128>}, {pipeline_mode = #tpu.pipeline_mode<synchronous>, transform_indices = @transform_3, window_bounds = array<i64: 1152, 128>}, {pipeline_mode = #tpu.pipeline_mode<synchronous>, transform_indices = @transform_4, window_bounds = array<i64: 1, 128>}, {pipeline_mode = #tpu.pipeline_mode<synchronous>, transform_indices = @transform_5, window_bounds = array<i64: 56, 1>}, {transform_indices = @transform_6, window_bounds = array<i64: 4, 56, 128>}]} {
    %c0 = arith.constant 0 : index
    %c0_0 = arith.constant 0 : index
    %0 = vector.load %arg6[%c0, %c0_0] : memref<56x1xf32, #tpu.memory_space<vmem>>, vector<56x1xf32>
    %1 = vector.shape_cast %0 : vector<56x1xf32> to vector<56x1xf32>
    %2 = vector.broadcast %1 : vector<56x1xf32> to vector<56x128xf32>
    %3 = vector.shape_cast %2 : vector<56x128xf32> to vector<1x56x128xf32>
    %c0_1 = arith.constant 0 : index
    %c0_2 = arith.constant 0 : index
    %c0_3 = arith.constant 0 : index
    %4 = vector.load %arg1[%c0_1, %c0_2, %c0_3] : memref<4x56x128xf32, #tpu.memory_space<vmem>>, vector<4x56x128xf32>
    %5 = vector.shape_cast %4 : vector<4x56x128xf32> to vector<224x128xf32>
    %cst = arith.constant 0.000000e+00 : bf16
    %6 = vector.broadcast %cst : bf16 to vector<8x128xbf16>
    %c0_4 = arith.constant 0 : index
    %c0_5 = arith.constant 0 : index
    %7 = vector.load %arg8[%c0_4, %c0_5] : memref<240x128xbf16, #tpu.memory_space<vmem>>, vector<8x128xbf16>
    tpu.vector_store %arg8[%c0_4, %c0_5], %6 {strides = array<i32>} : memref<240x128xbf16, #tpu.memory_space<vmem>>, vector<8x128xbf16>,
    %c232 = arith.constant 232 : index
    %c0_6 = arith.constant 0 : index
    %8 = vector.load %arg8[%c232, %c0_6] : memref<240x128xbf16, #tpu.memory_space<vmem>>, vector<8x128xbf16>
    tpu.vector_store %arg8[%c232, %c0_6], %6 {strides = array<i32>} : memref<240x128xbf16, #tpu.memory_space<vmem>>, vector<8x128xbf16>,
    %9 = arith.truncf %5 : vector<224x128xf32> to vector<224x128xbf16>
    %c8 = arith.constant 8 : index
    %c0_7 = arith.constant 0 : index
    %10 = vector.load %arg8[%c8, %c0_7] : memref<240x128xbf16, #tpu.memory_space<vmem>>, vector<224x128xbf16>
    tpu.vector_store %arg8[%c8, %c0_7], %9 {strides = array<i32>} : memref<240x128xbf16, #tpu.memory_space<vmem>>, vector<224x128xbf16>,
    %c0_8 = arith.constant 0 : index
    %c0_9 = arith.constant 0 : index
    %11 = vector.load %arg8[%c0_8, %c0_9] : memref<240x128xbf16, #tpu.memory_space<vmem>>, vector<224x128xbf16>
    %c0_10 = arith.constant 0 : index
    %c0_11 = arith.constant 0 : index
    %12 = vector.load %arg9[%c0_10, %c0_11] : memref<224x1152xbf16, #tpu.memory_space<vmem>>, vector<224x128xbf16>
    tpu.vector_store %arg9[%c0_10, %c0_11], %11 {strides = array<i32>} : memref<224x1152xbf16, #tpu.memory_space<vmem>>, vector<224x128xbf16>,
    %c1 = arith.constant 1 : index
    %c0_12 = arith.constant 0 : index
    %13 = vector.load %arg8[%c1, %c0_12] : memref<240x128xbf16, #tpu.memory_space<vmem>>, vector<224x128xbf16>
    %c0_13 = arith.constant 0 : index
    %c128 = arith.constant 128 : index
    %14 = vector.load %arg9[%c0_13, %c128] : memref<224x1152xbf16, #tpu.memory_space<vmem>>, vector<224x128xbf16>
    tpu.vector_store %arg9[%c0_13, %c128], %13 {strides = array<i32>} : memref<224x1152xbf16, #tpu.memory_space<vmem>>, vector<224x128xbf16>,
    %c2 = arith.constant 2 : index
    %c0_14 = arith.constant 0 : index
    %15 = vector.load %arg8[%c2, %c0_14] : memref<240x128xbf16, #tpu.memory_space<vmem>>, vector<224x128xbf16>
    %c0_15 = arith.constant 0 : index
    %c256 = arith.constant 256 : index
    %16 = vector.load %arg9[%c0_15, %c256] : memref<224x1152xbf16, #tpu.memory_space<vmem>>, vector<224x128xbf16>
    tpu.vector_store %arg9[%c0_15, %c256], %15 {strides = array<i32>} : memref<224x1152xbf16, #tpu.memory_space<vmem>>, vector<224x128xbf16>,
    %c7 = arith.constant 7 : index
    %c0_16 = arith.constant 0 : index
    %17 = vector.load %arg8[%c7, %c0_16] : memref<240x128xbf16, #tpu.memory_space<vmem>>, vector<224x128xbf16>
    %c0_17 = arith.constant 0 : index
    %c384 = arith.constant 384 : index
    %18 = vector.load %arg9[%c0_17, %c384] : memref<224x1152xbf16, #tpu.memory_space<vmem>>, vector<224x128xbf16>
    tpu.vector_store %arg9[%c0_17, %c384], %17 {strides = array<i32>} : memref<224x1152xbf16, #tpu.memory_space<vmem>>, vector<224x128xbf16>,
    %c8_18 = arith.constant 8 : index
    %c0_19 = arith.constant 0 : index
    %19 = vector.load %arg8[%c8_18, %c0_19] : memref<240x128xbf16, #tpu.memory_space<vmem>>, vector<224x128xbf16>
    %c0_20 = arith.constant 0 : index
    %c512 = arith.constant 512 : index
    %20 = vector.load %arg9[%c0_20, %c512] : memref<224x1152xbf16, #tpu.memory_space<vmem>>, vector<224x128xbf16>
    tpu.vector_store %arg9[%c0_20, %c512], %19 {strides = array<i32>} : memref<224x1152xbf16, #tpu.memory_space<vmem>>, vector<224x128xbf16>,
    %c9 = arith.constant 9 : index
    %c0_21 = arith.constant 0 : index
    %21 = vector.load %arg8[%c9, %c0_21] : memref<240x128xbf16, #tpu.memory_space<vmem>>, vector<224x128xbf16>
    %c0_22 = arith.constant 0 : index
    %c640 = arith.constant 640 : index
    %22 = vector.load %arg9[%c0_22, %c640] : memref<224x1152xbf16, #tpu.memory_space<vmem>>, vector<224x128xbf16>
    tpu.vector_store %arg9[%c0_22, %c640], %21 {strides = array<i32>} : memref<224x1152xbf16, #tpu.memory_space<vmem>>, vector<224x128xbf16>,
    %c14 = arith.constant 14 : index
    %c0_23 = arith.constant 0 : index
    %23 = vector.load %arg8[%c14, %c0_23] : memref<240x128xbf16, #tpu.memory_space<vmem>>, vector<224x128xbf16>
    %c0_24 = arith.constant 0 : index
    %c768 = arith.constant 768 : index
    %24 = vector.load %arg9[%c0_24, %c768] : memref<224x1152xbf16, #tpu.memory_space<vmem>>, vector<224x128xbf16>
    tpu.vector_store %arg9[%c0_24, %c768], %23 {strides = array<i32>} : memref<224x1152xbf16, #tpu.memory_space<vmem>>, vector<224x128xbf16>,
    %c15 = arith.constant 15 : index
    %c0_25 = arith.constant 0 : index
    %25 = vector.load %arg8[%c15, %c0_25] : memref<240x128xbf16, #tpu.memory_space<vmem>>, vector<224x128xbf16>
    %c0_26 = arith.constant 0 : index
    %c896 = arith.constant 896 : index
    %26 = vector.load %arg9[%c0_26, %c896] : memref<224x1152xbf16, #tpu.memory_space<vmem>>, vector<224x128xbf16>
    tpu.vector_store %arg9[%c0_26, %c896], %25 {strides = array<i32>} : memref<224x1152xbf16, #tpu.memory_space<vmem>>, vector<224x128xbf16>,
    %c16 = arith.constant 16 : index
    %c0_27 = arith.constant 0 : index
    %27 = vector.load %arg8[%c16, %c0_27] : memref<240x128xbf16, #tpu.memory_space<vmem>>, vector<224x128xbf16>
    %c0_28 = arith.constant 0 : index
    %c1024 = arith.constant 1024 : index
    %28 = vector.load %arg9[%c0_28, %c1024] : memref<224x1152xbf16, #tpu.memory_space<vmem>>, vector<224x128xbf16>
    tpu.vector_store %arg9[%c0_28, %c1024], %27 {strides = array<i32>} : memref<224x1152xbf16, #tpu.memory_space<vmem>>, vector<224x128xbf16>,
    %c0_29 = arith.constant 0 : index
    %c0_30 = arith.constant 0 : index
    %29 = vector.load %arg9[%c0_29, %c0_30] : memref<224x1152xbf16, #tpu.memory_space<vmem>>, vector<224x1152xbf16>
    %c0_31 = arith.constant 0 : index
    %c0_32 = arith.constant 0 : index
    %30 = vector.load %arg2[%c0_31, %c0_32] : memref<1152x128xbf16, #tpu.memory_space<vmem>>, vector<1152x128xbf16>
    %cst_33 = arith.constant dense<0.000000e+00> : vector<224x128xf32>
    %31 = tpu.matmul %29, %30, %cst_33 {dimension_numbers = #tpu.dot_dimension_numbers<[1], [0], [0], [1], [0, 0, 1, 1], [], []>} : vector<224x1152xbf16>, vector<1152x128xbf16>, vector<224x128xf32> -> vector<224x128xf32>
    %c0_34 = arith.constant 0 : index
    %c0_35 = arith.constant 0 : index
    %32 = vector.load %arg3[%c0_34, %c0_35] : memref<1x128xf32, #tpu.memory_space<vmem>>, vector<1x128xf32>
    %33 = vector.broadcast %32 : vector<1x128xf32> to vector<224x128xf32>
    %34 = arith.addf %31, %33 : vector<224x128xf32>
    %35 = vector.shape_cast %34 : vector<224x128xf32> to vector<4x56x128xf32>
    %36 = vector.broadcast %3 : vector<1x56x128xf32> to vector<4x56x128xf32>
    %37 = arith.mulf %35, %36 : vector<4x56x128xf32>
    %cst_36 = arith.constant dense<0.000000e+00> : vector<4x128xf32>
    %38 = vector.multi_reduction <add>, %37, %cst_36 [1] : vector<4x56x128xf32> to vector<4x128xf32>
    %39 = vector.shape_cast %38 : vector<4x128xf32> to vector<4x1x128xf32>
    %cst_37 = arith.constant 4.000000e-02 : f32
    %40 = vector.broadcast %cst_37 : f32 to vector<4x1x128xf32>
    %41 = arith.mulf %39, %40 : vector<4x1x128xf32>
    %42 = arith.mulf %37, %35 : vector<4x56x128xf32>
    %cst_38 = arith.constant dense<0.000000e+00> : vector<4x128xf32>
    %43 = vector.multi_reduction <add>, %42, %cst_38 [1] : vector<4x56x128xf32> to vector<4x128xf32>
    %44 = vector.shape_cast %43 : vector<4x128xf32> to vector<4x1x128xf32>
    %cst_39 = arith.constant 4.000000e-02 : f32
    %45 = vector.broadcast %cst_39 : f32 to vector<4x1x128xf32>
    %46 = arith.mulf %44, %45 : vector<4x1x128xf32>
    %47 = arith.mulf %41, %41 : vector<4x1x128xf32>
    %48 = arith.subf %46, %47 : vector<4x1x128xf32>
    %cst_40 = arith.constant 9.99999974E-6 : f32
    %49 = vector.broadcast %cst_40 : f32 to vector<4x1x128xf32>
    %50 = arith.addf %48, %49 : vector<4x1x128xf32>
    %51 = math.rsqrt %50 : vector<4x1x128xf32>
    %52 = vector.broadcast %41 : vector<4x1x128xf32> to vector<4x56x128xf32>
    %53 = arith.subf %35, %52 : vector<4x56x128xf32>
    %54 = vector.broadcast %51 : vector<4x1x128xf32> to vector<4x56x128xf32>
    %55 = arith.mulf %53, %54 : vector<4x56x128xf32>
    %cst_41 = arith.constant 0.000000e+00 : f32
    %56 = vector.broadcast %cst_41 : f32 to vector<4x56x128xf32>
    %57 = arith.maximumf %55, %56 : vector<4x56x128xf32>
    %58 = vector.broadcast %3 : vector<1x56x128xf32> to vector<4x56x128xf32>
    %59 = arith.mulf %57, %58 : vector<4x56x128xf32>
    %60 = vector.shape_cast %59 : vector<4x56x128xf32> to vector<224x128xf32>
    %61 = arith.truncf %60 : vector<224x128xf32> to vector<224x128xbf16>
    %c8_42 = arith.constant 8 : index
    %c0_43 = arith.constant 0 : index
    %62 = vector.load %arg8[%c8_42, %c0_43] : memref<240x128xbf16, #tpu.memory_space<vmem>>, vector<224x128xbf16>
    tpu.vector_store %arg8[%c8_42, %c0_43], %61 {strides = array<i32>} : memref<240x128xbf16, #tpu.memory_space<vmem>>, vector<224x128xbf16>,
    %c0_44 = arith.constant 0 : index
    %c0_45 = arith.constant 0 : index
    %63 = vector.load %arg8[%c0_44, %c0_45] : memref<240x128xbf16, #tpu.memory_space<vmem>>, vector<224x128xbf16>
    %c0_46 = arith.constant 0 : index
    %c0_47 = arith.constant 0 : index
    %64 = vector.load %arg9[%c0_46, %c0_47] : memref<224x1152xbf16, #tpu.memory_space<vmem>>, vector<224x128xbf16>
    tpu.vector_store %arg9[%c0_46, %c0_47], %63 {strides = array<i32>} : memref<224x1152xbf16, #tpu.memory_space<vmem>>, vector<224x128xbf16>,
    %c1_48 = arith.constant 1 : index
    %c0_49 = arith.constant 0 : index
    %65 = vector.load %arg8[%c1_48, %c0_49] : memref<240x128xbf16, #tpu.memory_space<vmem>>, vector<224x128xbf16>
    %c0_50 = arith.constant 0 : index
    %c128_51 = arith.constant 128 : index
    %66 = vector.load %arg9[%c0_50, %c128_51] : memref<224x1152xbf16, #tpu.memory_space<vmem>>, vector<224x128xbf16>
    tpu.vector_store %arg9[%c0_50, %c128_51], %65 {strides = array<i32>} : memref<224x1152xbf16, #tpu.memory_space<vmem>>, vector<224x128xbf16>,
    %c2_52 = arith.constant 2 : index
    %c0_53 = arith.constant 0 : index
    %67 = vector.load %arg8[%c2_52, %c0_53] : memref<240x128xbf16, #tpu.memory_space<vmem>>, vector<224x128xbf16>
    %c0_54 = arith.constant 0 : index
    %c256_55 = arith.constant 256 : index
    %68 = vector.load %arg9[%c0_54, %c256_55] : memref<224x1152xbf16, #tpu.memory_space<vmem>>, vector<224x128xbf16>
    tpu.vector_store %arg9[%c0_54, %c256_55], %67 {strides = array<i32>} : memref<224x1152xbf16, #tpu.memory_space<vmem>>, vector<224x128xbf16>,
    %c7_56 = arith.constant 7 : index
    %c0_57 = arith.constant 0 : index
    %69 = vector.load %arg8[%c7_56, %c0_57] : memref<240x128xbf16, #tpu.memory_space<vmem>>, vector<224x128xbf16>
    %c0_58 = arith.constant 0 : index
    %c384_59 = arith.constant 384 : index
    %70 = vector.load %arg9[%c0_58, %c384_59] : memref<224x1152xbf16, #tpu.memory_space<vmem>>, vector<224x128xbf16>
    tpu.vector_store %arg9[%c0_58, %c384_59], %69 {strides = array<i32>} : memref<224x1152xbf16, #tpu.memory_space<vmem>>, vector<224x128xbf16>,
    %c8_60 = arith.constant 8 : index
    %c0_61 = arith.constant 0 : index
    %71 = vector.load %arg8[%c8_60, %c0_61] : memref<240x128xbf16, #tpu.memory_space<vmem>>, vector<224x128xbf16>
    %c0_62 = arith.constant 0 : index
    %c512_63 = arith.constant 512 : index
    %72 = vector.load %arg9[%c0_62, %c512_63] : memref<224x1152xbf16, #tpu.memory_space<vmem>>, vector<224x128xbf16>
    tpu.vector_store %arg9[%c0_62, %c512_63], %71 {strides = array<i32>} : memref<224x1152xbf16, #tpu.memory_space<vmem>>, vector<224x128xbf16>,
    %c9_64 = arith.constant 9 : index
    %c0_65 = arith.constant 0 : index
    %73 = vector.load %arg8[%c9_64, %c0_65] : memref<240x128xbf16, #tpu.memory_space<vmem>>, vector<224x128xbf16>
    %c0_66 = arith.constant 0 : index
    %c640_67 = arith.constant 640 : index
    %74 = vector.load %arg9[%c0_66, %c640_67] : memref<224x1152xbf16, #tpu.memory_space<vmem>>, vector<224x128xbf16>
    tpu.vector_store %arg9[%c0_66, %c640_67], %73 {strides = array<i32>} : memref<224x1152xbf16, #tpu.memory_space<vmem>>, vector<224x128xbf16>,
    %c14_68 = arith.constant 14 : index
    %c0_69 = arith.constant 0 : index
    %75 = vector.load %arg8[%c14_68, %c0_69] : memref<240x128xbf16, #tpu.memory_space<vmem>>, vector<224x128xbf16>
    %c0_70 = arith.constant 0 : index
    %c768_71 = arith.constant 768 : index
    %76 = vector.load %arg9[%c0_70, %c768_71] : memref<224x1152xbf16, #tpu.memory_space<vmem>>, vector<224x128xbf16>
    tpu.vector_store %arg9[%c0_70, %c768_71], %75 {strides = array<i32>} : memref<224x1152xbf16, #tpu.memory_space<vmem>>, vector<224x128xbf16>,
    %c15_72 = arith.constant 15 : index
    %c0_73 = arith.constant 0 : index
    %77 = vector.load %arg8[%c15_72, %c0_73] : memref<240x128xbf16, #tpu.memory_space<vmem>>, vector<224x128xbf16>
    %c0_74 = arith.constant 0 : index
    %c896_75 = arith.constant 896 : index
    %78 = vector.load %arg9[%c0_74, %c896_75] : memref<224x1152xbf16, #tpu.memory_space<vmem>>, vector<224x128xbf16>
    tpu.vector_store %arg9[%c0_74, %c896_75], %77 {strides = array<i32>} : memref<224x1152xbf16, #tpu.memory_space<vmem>>, vector<224x128xbf16>,
    %c16_76 = arith.constant 16 : index
    %c0_77 = arith.constant 0 : index
    %79 = vector.load %arg8[%c16_76, %c0_77] : memref<240x128xbf16, #tpu.memory_space<vmem>>, vector<224x128xbf16>
    %c0_78 = arith.constant 0 : index
    %c1024_79 = arith.constant 1024 : index
    %80 = vector.load %arg9[%c0_78, %c1024_79] : memref<224x1152xbf16, #tpu.memory_space<vmem>>, vector<224x128xbf16>
    tpu.vector_store %arg9[%c0_78, %c1024_79], %79 {strides = array<i32>} : memref<224x1152xbf16, #tpu.memory_space<vmem>>, vector<224x128xbf16>,
    %c0_80 = arith.constant 0 : index
    %c0_81 = arith.constant 0 : index
    %81 = vector.load %arg9[%c0_80, %c0_81] : memref<224x1152xbf16, #tpu.memory_space<vmem>>, vector<224x1152xbf16>
    %c0_82 = arith.constant 0 : index
    %c0_83 = arith.constant 0 : index
    %82 = vector.load %arg4[%c0_82, %c0_83] : memref<1152x128xbf16, #tpu.memory_space<vmem>>, vector<1152x128xbf16>
    %cst_84 = arith.constant dense<0.000000e+00> : vector<224x128xf32>
    %83 = tpu.matmul %81, %82, %cst_84 {dimension_numbers = #tpu.dot_dimension_numbers<[1], [0], [0], [1], [0, 0, 1, 1], [], []>} : vector<224x1152xbf16>, vector<1152x128xbf16>, vector<224x128xf32> -> vector<224x128xf32>
    %c0_85 = arith.constant 0 : index
    %c0_86 = arith.constant 0 : index
    %84 = vector.load %arg5[%c0_85, %c0_86] : memref<1x128xf32, #tpu.memory_space<vmem>>, vector<1x128xf32>
    %85 = vector.broadcast %84 : vector<1x128xf32> to vector<224x128xf32>
    %86 = arith.addf %83, %85 : vector<224x128xf32>
    %87 = vector.shape_cast %86 : vector<224x128xf32> to vector<4x56x128xf32>
    %88 = vector.broadcast %3 : vector<1x56x128xf32> to vector<4x56x128xf32>
    %89 = arith.mulf %87, %88 : vector<4x56x128xf32>
    %cst_87 = arith.constant dense<0.000000e+00> : vector<4x128xf32>
    %90 = vector.multi_reduction <add>, %89, %cst_87 [1] : vector<4x56x128xf32> to vector<4x128xf32>
    %91 = vector.shape_cast %90 : vector<4x128xf32> to vector<4x1x128xf32>
    %cst_88 = arith.constant 4.000000e-02 : f32
    %92 = vector.broadcast %cst_88 : f32 to vector<4x1x128xf32>
    %93 = arith.mulf %91, %92 : vector<4x1x128xf32>
    %94 = arith.mulf %89, %87 : vector<4x56x128xf32>
    %cst_89 = arith.constant dense<0.000000e+00> : vector<4x128xf32>
    %95 = vector.multi_reduction <add>, %94, %cst_89 [1] : vector<4x56x128xf32> to vector<4x128xf32>
    %96 = vector.shape_cast %95 : vector<4x128xf32> to vector<4x1x128xf32>
    %cst_90 = arith.constant 4.000000e-02 : f32
    %97 = vector.broadcast %cst_90 : f32 to vector<4x1x128xf32>
    %98 = arith.mulf %96, %97 : vector<4x1x128xf32>
    %99 = arith.mulf %93, %93 : vector<4x1x128xf32>
    %100 = arith.subf %98, %99 : vector<4x1x128xf32>
    %cst_91 = arith.constant 9.99999974E-6 : f32
    %101 = vector.broadcast %cst_91 : f32 to vector<4x1x128xf32>
    %102 = arith.addf %100, %101 : vector<4x1x128xf32>
    %103 = math.rsqrt %102 : vector<4x1x128xf32>
    %104 = vector.broadcast %93 : vector<4x1x128xf32> to vector<4x56x128xf32>
    %105 = arith.subf %87, %104 : vector<4x56x128xf32>
    %106 = vector.broadcast %103 : vector<4x1x128xf32> to vector<4x56x128xf32>
    %107 = arith.mulf %105, %106 : vector<4x56x128xf32>
    %108 = arith.addf %107, %4 : vector<4x56x128xf32>
    %cst_92 = arith.constant 0.000000e+00 : f32
    %109 = vector.broadcast %cst_92 : f32 to vector<4x56x128xf32>
    %110 = arith.maximumf %108, %109 : vector<4x56x128xf32>
    %111 = vector.broadcast %3 : vector<1x56x128xf32> to vector<4x56x128xf32>
    %112 = arith.mulf %110, %111 : vector<4x56x128xf32>
    %c0_93 = arith.constant 0 : index
    %c0_94 = arith.constant 0 : index
    %c0_95 = arith.constant 0 : index
    %113 = vector.load %arg7[%c0_93, %c0_94, %c0_95] : memref<4x56x128xf32, #tpu.memory_space<vmem>>, vector<4x56x128xf32>
    tpu.vector_store %arg7[%c0_93, %c0_94, %c0_95], %112 {strides = array<i32>} : memref<4x56x128xf32, #tpu.memory_space<vmem>>, vector<4x56x128xf32>,
    return
  }
  func.func @transform_0(%arg0: i32) -> (i32, i32, i32) {
    %c0_i32 = arith.constant 0 : i32
    %c0_i32_0 = arith.constant 0 : i32
    %c0_i32_1 = arith.constant 0 : i32
    return %arg0, %c0_i32, %c0_i32_0 : i32, i32, i32
  }
  func.func @transform_1(%arg0: i32) -> (i32, i32) {
    %c0_i32 = arith.constant 0 : i32
    %c0_i32_0 = arith.constant 0 : i32
    %c0_i32_1 = arith.constant 0 : i32
    return %c0_i32, %c0_i32_0 : i32, i32
  }
  func.func @transform_2(%arg0: i32) -> (i32, i32) {
    %c0_i32 = arith.constant 0 : i32
    %c0_i32_0 = arith.constant 0 : i32
    %c0_i32_1 = arith.constant 0 : i32
    return %c0_i32, %c0_i32_0 : i32, i32
  }
  func.func @transform_3(%arg0: i32) -> (i32, i32) {
    %c0_i32 = arith.constant 0 : i32
    %c0_i32_0 = arith.constant 0 : i32
    %c0_i32_1 = arith.constant 0 : i32
    return %c0_i32, %c0_i32_0 : i32, i32
  }
  func.func @transform_4(%arg0: i32) -> (i32, i32) {
    %c0_i32 = arith.constant 0 : i32
    %c0_i32_0 = arith.constant 0 : i32
    %c0_i32_1 = arith.constant 0 : i32
    return %c0_i32, %c0_i32_0 : i32, i32
  }
  func.func @transform_5(%arg0: i32) -> (i32, i32) {
    %c0_i32 = arith.constant 0 : i32
    %c0_i32_0 = arith.constant 0 : i32
    %c0_i32_1 = arith.constant 0 : i32
    return %c0_i32, %c0_i32_0 : i32, i32
  }
  func.func @transform_6(%arg0: i32) -> (i32, i32, i32) {
    %c0_i32 = arith.constant 0 : i32
    %c0_i32_0 = arith.constant 0 : i32
    %c0_i32_1 = arith.constant 0 : i32
    return %arg0, %c0_i32, %c0_i32_0 : i32, i32, i32
  }
}

</mosaic_0001>

<bundles_post_ra>
// kernel: resblock_apply.1
= control target key start
LH: loop header
LB: loop body
LE: loop exit
PB: predicated region body
PF: predicated region fallthrough
CT: control target
= control target key end

     0   :  { %s11698_s21 = smov 0   ;;  %s15313_s0 = inlined_call_operand.vmem [shape: f32[8,56,128], index: 0, kind: input, shape index: {}]   ;;  %s15314_s1 = inlined_call_operand.vmem [shape: bf16[1152,128], index: 1, kind: input, shape index: {}]   ;;  %s15315_s2 = inlined_call_operand.vmem [shape: f32[1,128], index: 2, kind: input, shape index: {}]   ;;  %s15316_s3 = inlined_call_operand.vmem [shape: bf16[1152,128], index: 3, kind: input, shape index: {}]   ;;  %s15317_s4 = inlined_call_operand.vmem [shape: f32[1,128], index: 4, kind: input, shape index: {}]   ;;  %s15318_s5 = inlined_call_operand.vmem [shape: f32[56,1], index: 5, kind: input, shape index: {}]   ;;  %s15319_s6 = inlined_call_operand.vmem [shape: f32[8,56,128], index: 6, kind: output, shape index: {}]  }
   0x1 LB: > { %s9471_s22 = sadd.s32 4294967295, %s11660_s21   ;;  %p9475_p0 = scmp.ge.s32.totalorder %s11660_s21, 1  ;;  %s11660_s21 = sphi %s11698_s21, %s16_s21  }
   0x2   : > { %p214_p1 = scmp.lt.s32.totalorder %s11660_s21, 3 }
   0x4   : > { %p215_p2 = pnand %p9475_p0, %p214_p1 }
   0x6   : > { %218 = sbr.rel (%p215_p2) target bundleno = 1296 (0x510), region = 44 }
   0xb   : > { %v11100_v0 = vld [vmem:[%s15314_s1 + $0x78] sm:$0xff]   ;;  %v11103_v3 = vld [vmem:[%s15314_s1 + $0x70] sm:$0xff]   ;;  %v11662_v4 = vmov 0   ;;  %v11107_v8 = vld [vmem:[%s15314_s1 + $0x68] sm:$0xff]   ;;  %s9476_s29 = sshll.u32 %s9471_s22, 2  ;;  %vm924_vm2 = vcmask 1042432  }
   0xc   : > { %v11101_v1 = vld [vmem:[%s15314_s1 + $0x38] sm:$0xff]   ;;  %10156 = vmatprep.subr.bf16.mxu0 %v11100_v0  ;;  %296 = vst [vmem:[#allocation2] sm:$0xf] %v11662_v4  ;;  %297 = vst [vmem:[#allocation2 + $0x74] sm:$0xf] %v11662_v4  ;;  %11098 = vset.pattern.permute.xlu0 %v11662_v4  ;;  %v11105_v6 = vld [vmem:[%s15314_s1 + $0x30] sm:$0xff]  }
   0xd   : > { %v11102_v2 = vld [vmem:[%s15314_s1 + $0xf8] sm:$0xff]   ;;  %10157 = vmatpush3.bf16.msra.mxu0 %v11101_v1  ;;  %11099 = vset.pattern.permute.xlu1 %v11662_v4  ;;  %v11106_v7 = vld [vmem:[%s15314_s1 + $0xf0] sm:$0xff]   ;;  %v11109_v10 = vld [vmem:[%s15314_s1 + $0x28] sm:$0xff]   ;;  %p247_p3 = scmp.lt.s32.totalorder %s9476_s29, 7  ;;  %vm523_vm0 = vsmask.f32 3328 }
   0xe   : > { %10256 = vmatprep.subr.bf16.mxu1 %v11102_v2  ;;  %v11104_v5 = vld [vmem:[%s15314_s1 + $0xb8] sm:$0xff]   ;;  %10158 = vmatprep.subr.bf16.mxu0 %v11103_v3  ;;  %v11108_v9 = vld [vmem:[%s15314_s1 + $0xb0] sm:$0xff]   ;;  %v11110_v11 = vld [vmem:[%s15314_s1 + $0xe8] sm:$0xff]   ;;  %vm524_vm1 = vsmask.f32 7440  ;;  %vm925_vm4 = vcmask 1046532  }
   0xf   : > { %10257 = vmatpush3.bf16.msra.mxu1 %v11104_v5  ;;  %v11111_v12 = vld [vmem:[%s15314_s1 + $0x60] sm:$0xff]   ;;  %v11112_v13 = vld [vmem:[%s15314_s1 + $0xa8] sm:$0xff]   ;;  %v11115_v16 = vld [vmem:[%s15314_s1 + $0x58] sm:$0xff]   ;;  %s15488_s29 = smov (!%p247_p3, %s9476_s29), 7  ;;  %vm1097_vm3 = vsmask.f32 256 }
  0x10   : > { %10258 = vmatprep.subr.bf16.mxu1 %v11106_v7  ;;  %v11113_v14 = vld [vmem:[%s15314_s1 + $0x20] sm:$0xff]   ;;  %v11117_v18 = vld [vmem:[%s15314_s1 + $0x18] sm:$0xff]   ;;  %v11119_v20 = vld [vmem:[%s15314_s1 + $0x50] sm:$0xff]   ;;  %s11088_s30 = smul.u32 56, %s15488_s29  ;;  %vm1098_vm5 = vsmask.f32 4368 }
  0x11   : > { %10159 = vmatpush3.bf16.msra.mxu0 %v11105_v6  ;;  %v11114_v15 = vld [vmem:[%s15314_s1 + $0xe0] sm:$0xff]   ;;  %v11118_v19 = vld [vmem:[%s15314_s1 + $0xd8] sm:$0xff]   ;;  %v11121_v22 = vld [vmem:[%s15314_s1 + $0x10] sm:$0xff]   ;;  %v15340_v62 = vmov 0  ;;  %v15343_v63 = vmov 0  ;;  %vm1895_vm9 = vcmask 1040384  }
  0x12   : > { %10160 = vmatprep.subr.bf16.mxu0 %v11107_v8  ;;  %v11116_v17 = vld [vmem:[%s15314_s1 + $0xa0] sm:$0xff]   ;;  %v11120_v21 = vld [vmem:[%s15314_s1 + $0x98] sm:$0xff]   ;;  %v11122_v23 = vld [vmem:[%s15314_s1 + $0xd0] sm:$0xff]   ;;  %s11803_s16 = scalar_lea.vmem %s15313_s0, %s11088_s30  ;;  %vm1896_vm10 = vcmask 1044484   ;;  %s15132_s13 = scalar_lea.vmem %s15319_s6, %s11088_s30 }
  0x13   : > { %10259 = vmatpush3.bf16.msra.mxu1 %v11108_v9  ;;  %v11123_v24 = vld [vmem:[%s15314_s1 + $0x48] sm:$0xff]   ;;  %v11124_v25 = vld [vmem:[%s15314_s1 + $0x90] sm:$0xff]   ;;  %v11127_v28 = vld [vmem:[%s15314_s1 + $0x40] sm:$0xff]  }
  0x14   : > { %10260 = vmatprep.subr.bf16.mxu1 %v11110_v11  ;;  %v11125_v26 = vld [vmem:[%s15314_s1 + $0x8] sm:$0xff]   ;;  %v11129_v30 = vld [vmem:[%s15314_s1] sm:$0xff]   ;;  %v270_v34 = vld [vmem:[%s11803_s16 + $0x10] sm:$0xff] }
  0x15   : > { %10161 = vmatpush3.bf16.msra.mxu0 %v11109_v10  ;;  %v11126_v27 = vld [vmem:[%s15314_s1 + $0xc8] sm:$0xff]   ;;  %v11130_v31 = vld [vmem:[%s15314_s1 + $0xc0] sm:$0xff]   ;;  %v11134_v44 = vld [vmem:[%s15314_s1 + $0x178] sm:$0xff]  }
  0x16   : > { %10162 = vmatprep.subr.bf16.mxu0 %v11111_v12  ;;  %v11128_v29 = vld [vmem:[%s15314_s1 + $0x88] sm:$0xff]   ;;  %v268_v32 = vld [vmem:[%s11803_s16] sm:$0xff]  ;;  %v271_v48 = vld [vmem:[%s11803_s16 + $0x18] sm:$0xff] }
  0x17   : > { %10261 = vmatpush3.bf16.msra.mxu1 %v11112_v13  ;;  %v269_v33 = vld [vmem:[%s11803_s16 + $0x8] sm:$0xff]  ;;  %v9944_v35 = vpack.c.bf16 %v268_v32, %v268_v32  ;;  %v438_v37 = vld [vmem:[#allocation2] sm:$0xf]  ;;  %vm11824_vm6 = vmor %vm924_vm2, %vm925_vm4 }
  0x18   : > { %10262 = vmatprep.subr.bf16.mxu1 %v11114_v15  ;;  %v10003_v36 = vpack.c.bf16 %v270_v34, %v269_v33  ;;  %v494_v38 = vld [vmem:[#allocation2] sm:$0xf]  ;;  %466 = vst [vmem:[#allocation3] sm:$0xf] %v438_v37  ;;  %v15341_v62 = vsel %vm11824_vm6, 4294967295, %v15340_v62  ;;  %vm11830_vm7 = vmor %vm523_vm0, %vm524_vm1 }
  0x19   : > { %10163 = vmatpush3.bf16.msra.mxu0 %v11113_v14  ;;  %v527_v39 = vshrl.u32 %v494_v38, 16  ;;  %v530_v40 = vshll.u32 %v494_v38, 16  ;;  %410 = vst [vmem:[#allocation2 + $0x4] sm:$0xf] %v9944_v35  ;;  %v11133_v41 = vld [vmem:[%s15314_s1 + $0x80] sm:$0xff]   ;;  %15342 = vst [vmem:[#allocation4_spill] sm:$0xff] %v15341_v62 }
  0x1a   : > { %10164 = vmatprep.subr.bf16.mxu0 %v11115_v16  ;;  %10130 = vst [vmem:[#allocation2 + $0x8] sm:$0xff] %v10003_v36   ;;  %v866_v46 = vld [vmem:[#allocation2] sm:$0xe]  ;;  %v15344_v63 = vsel %vm11830_vm7, 4294967295, %v15343_v63  ;;  %vm11842_vm8 = vmor %vm1097_vm3, %vm1098_vm5 }
  0x1b   : > { %10263 = vmatpush3.bf16.msra.mxu1 %v11116_v17  ;;  %v529_v42 = vrot.slane %v527_v39, 4  ;;  %v532_v43 = vrot.slane %v530_v40, 5  ;;  %v1068_v47 = vld [vmem:[#allocation2] sm:$0x8]  ;;  %v9508_v53 = vrot.slane %v866_v46, 9  ;;  %15345 = vst [vmem:[#allocation5_spill] sm:$0xff] %v15344_v63  ;;  %vm12266_vm11 = vmor %vm1895_vm9, %vm1896_vm10 }
  0x1c   : > { %10264 = vmatprep.subr.bf16.mxu1 %v11118_v19  ;;  %v272_v49 = vld [vmem:[%s11803_s16 + $0x20] sm:$0xff]  ;;  %v1101_v50 = vshrl.u32 %v1068_v47, 16 }
  0x1d   : > { %10165 = vmatpush3.bf16.msra.mxu0 %v11117_v18  ;;  %v533_v45 = vor.u32 %v532_v43, %v529_v42  ;;  %v10008_v51 = vpack.c.bf16 %v272_v49, %v271_v48 }
  0x1e   : > { %10166 = vmatprep.subr.bf16.mxu0 %v11119_v20  ;;  %v9509_v3 = vrot.slane %v1101_v50, 11 }
  0x1f   : > { %10265 = vmatpush3.bf16.msra.mxu1 %v11120_v21  ;;  %v534_v52 = vrot.slane %v533_v45, 4  ;;  %10131 = vst [vmem:[#allocation2 + $0x10] sm:$0xff] %v10008_v51   ;;  %v273_v51 = vld [vmem:[%s11803_s16 + $0x28] sm:$0xff] }
  0x20   : > { %10266 = vmatprep.subr.bf16.mxu1 %v11122_v23  ;;  %v439_v54 = vld [vmem:[#allocation2 + $0x4] sm:$0xf] }
  0x21   : > { %10167 = vmatpush3.bf16.msra.mxu0 %v11121_v22  ;;  %v495_v55 = vld [vmem:[#allocation2 + $0x4] sm:$0xf]  ;;  %v496_v56 = vld [vmem:[#allocation2 + $0x8] sm:$0xf]  ;;  %467 = vst [vmem:[#allocation3 + $0x24] sm:$0xf] %v439_v54 }
  0x22   : > { %10168 = vmatprep.subr.bf16.mxu0 %v11123_v24  ;;  %v536_v57 = vshll.u32 %v495_v55, 16  ;;  %v540_v58 = vshrl.u32 %v495_v55, 16  ;;  %v546_v59 = vshll.u32 %v496_v56, 16  ;;  %v550_v60 = vshrl.u32 %v496_v56, 16  ;;  %v867_v61 = vld [vmem:[#allocation2 + $0x4] sm:$0xf] }
  0x23   : > { %10267 = vmatpush3.bf16.msra.mxu1 %v11124_v25  ;;  %v868_v0 = vld [vmem:[#allocation2 + $0x8] sm:$0xf]  ;;  %v929_v1 = vrot.slane %v867_v61, 5  ;;  %v1069_v2 = vld [vmem:[#allocation2 + $0x4] sm:$0xf] }
  0x24   : > { %10268 = vmatprep.subr.bf16.mxu1 %v11126_v27  ;;  %v538_v4 = vrot.slane %v536_v57, 5  ;;  %v542_v5 = vrot.slane %v540_v58, 4  ;;  %v548_v6 = vrot.slane %v546_v59, 5  ;;  %v552_v7 = vrot.slane %v550_v60, 4  ;;  %v1070_v8 = vld [vmem:[#allocation2 + $0x8] sm:$0xf] }
  0x25   : > { %10169 = vmatpush3.bf16.msra.mxu0 %v11125_v26  ;;  %v930_v9 = vsel %vm11824_vm6, %v9508_v53, %v929_v1  ;;  %v931_v10 = vrot.slane %v929_v1, 4  ;;  %v932_v11 = vrot.slane %v868_v0, 5  ;;  %v1106_v12 = vshrl.u32 %v1069_v2, 16  ;;  %v440_v13 = vld [vmem:[#allocation2 + $0x8] sm:$0xf] }
  0x26   : > { %10170 = vmatprep.subr.bf16.mxu0 %v11127_v28  ;;  %v539_v14 = vsel %vm11830_vm7, %v534_v52, %v538_v4  ;;  %v543_v15 = vor.u32 %v542_v5, %v538_v4  ;;  %v553_v16 = vor.u32 %v552_v7, %v548_v6  ;;  %1040 = vst [vmem:[#allocation3 + $0x8] sm:$0xf] %v930_v9  ;;  %v1109_v17 = vshll.u32 %v1069_v2, 16  ;;  %v441_v18 = vld [vmem:[#allocation2 + $0xc] sm:$0xf]  ;;  %v274_v52 = vld [vmem:[%s11803_s16 + $0x30] sm:$0xff] }
  0x27   : > { %10269 = vmatpush3.bf16.msra.mxu1 %v11128_v29  ;;  %468 = vst [vmem:[#allocation3 + $0x48] sm:$0xf] %v440_v13  ;;  %v497_v19 = vld [vmem:[#allocation2 + $0xc] sm:$0xf]  ;;  %838 = vst [vmem:[#allocation3 + $0x4] sm:$0xf] %v539_v14  ;;  %v933_v20 = vsel %vm11824_vm6, %v931_v10, %v932_v11 }
  0x28   : > { %10270 = vmatprep.subr.bf16.mxu1 %v11130_v31  ;;  %v934_v21 = vrot.slane %v932_v11, 4  ;;  %v1108_v22 = vrot.slane %v1106_v12, 7  ;;  %v1115_v23 = vshrl.u32 %v1070_v8, 16  ;;  %469 = vst [vmem:[#allocation3 + $0x6c] sm:$0xf] %v441_v18  ;;  %v544_v25 = vrot.slane %v543_v15, 4 }
  0x29   : > { %10171 = vmatpush3.bf16.msra.mxu0 %v11129_v30  ;;  %v869_v24 = vld [vmem:[#allocation2 + $0xc] sm:$0xf]  ;;  %v554_v26 = vrot.slane %v553_v16, 4  ;;  %1041 = vst [vmem:[#allocation3 + $0x2c] sm:$0xf] %v933_v20  ;;  %v15346_v27 = vmov 0 }
  0x2a   : > { %10356 = vmatprep.subr.bf16.mxu0 %v11134_v44  ;;  %v15347_v27 = vsel %vm11842_vm8, 4294967295, %v15346_v27  ;;  %v1118_v28 = vshll.u32 %v1070_v8, 16  ;;  %v498_v29 = vld [vmem:[#allocation2 + $0x10] sm:$0xf]  ;;  %v556_v30 = vshll.u32 %v497_v19, 16  ;;  %v1111_v31 = vor.u32 %v1109_v17, %v1108_v22  ;;  %v11135_v8 = vld [vmem:[%s15314_s1 + $0x138] sm:$0xff]  }
  0x2b   : > { %10271 = vmatpush3.bf16.msra.mxu1 %v11133_v41  ;;  %15348 = vst [vmem:[#allocation6_spill] sm:$0xff] %v15347_v27  ;;  %v1113_v32 = vrot.slane %v1108_v22, 4  ;;  %v11846_v33 = vrot.slane %v1115_v23, 7  ;;  %v560_v34 = vshrl.u32 %v497_v19, 16  ;;  %v870_v35 = vld [vmem:[#allocation2 + $0x10] sm:$0xf]  ;;  %v549_v36 = vsel %vm11830_vm7, %v544_v25, %v548_v6 }
  0x2c   : > { %v558_v37 = vrot.slane %v556_v30, 5  ;;  %v566_v38 = vshll.u32 %v498_v29, 16  ;;  %v935_v39 = vrot.slane %v869_v24, 5  ;;  %v1071_v40 = vld [vmem:[#allocation2 + $0xc] sm:$0xf]  ;;  %v1112_v41 = vsel %vm11842_vm8, %v9509_v3, %v1111_v31  ;;  %v275_v13 = vld [vmem:[%s11803_s16 + $0x38] sm:$0xff] }
  0x2d   : > { %839 = vst [vmem:[#allocation3 + $0x28] sm:$0xf] %v549_v36  ;;  %v1120_v42 = vor.u32 %v1118_v28, %v11846_v33  ;;  %v562_v43 = vrot.slane %v560_v34, 4  ;;  %v938_v44 = vrot.slane %v870_v35, 5  ;;  %v1072_v45 = vld [vmem:[#allocation2 + $0x10] sm:$0xf]  ;;  %v10013_v6 = vpack.c.bf16 %v274_v52, %v273_v51 }
  0x2e   : > { %v442_v46 = vld [vmem:[#allocation2 + $0x10] sm:$0xf]  ;;  %1384 = vst [vmem:[#allocation3 + $0xc] sm:$0xf] %v1112_v41  ;;  %v559_v47 = vsel %vm11830_vm7, %v554_v26, %v558_v37  ;;  %v11855_v48 = vrot.slane %v566_v38, 5  ;;  %v936_v49 = vsel %vm11824_vm6, %v934_v21, %v935_v39  ;;  %v937_v50 = vrot.slane %v935_v39, 4 }
  0x2f   : > { %v443_v53 = vld [vmem:[#allocation2 + $0x14] sm:$0xf]  ;;  %470 = vst [vmem:[#allocation3 + $0x90] sm:$0xf] %v442_v46  ;;  %v1121_v54 = vsel %vm11842_vm8, %v1113_v32, %v1120_v42  ;;  %v563_v55 = vor.u32 %v562_v43, %v558_v37  ;;  %840 = vst [vmem:[#allocation3 + $0x4c] sm:$0xf] %v559_v47 }
  0x30   : > { %1042 = vst [vmem:[#allocation3 + $0x50] sm:$0xf] %v936_v49  ;;  %v1122_v56 = vrot.slane %v11846_v33, 4  ;;  %v1124_v57 = vshrl.u32 %v1071_v40, 16  ;;  %471 = vst [vmem:[#allocation3 + $0xb4] sm:$0xf] %v443_v53  ;;  %v939_v61 = vsel %vm11824_vm6, %v937_v50, %v938_v44 }
  0x31   : > { %v499_v58 = vld [vmem:[#allocation2 + $0x14] sm:$0xf]  ;;  %v4991_v60 = vld [vmem:[#allocation2] sm:$0xf]  ;;  %1385 = vst [vmem:[#allocation3 + $0x30] sm:$0xf] %v1121_v54 }
  0x32   : > { %v871_v59 = vld [vmem:[#allocation2 + $0x14] sm:$0xf]  ;;  %v1127_v0 = vshll.u32 %v1071_v40, 16  ;;  %v1133_v1 = vshrl.u32 %v1072_v45, 16  ;;  %v1136_v2 = vshll.u32 %v1072_v45, 16  ;;  %v2436_v3 = vld [vmem:[#allocation3] sm:$0xff] }
  0x33   : > { %v564_v4 = vrot.slane %v563_v55, 4  ;;  %1043 = vst [vmem:[#allocation3 + $0x74] sm:$0xf] %v939_v61  ;;  %v1126_v5 = vrot.slane %v1124_v57, 7  ;;  %v570_v7 = vshrl.u32 %v498_v29, 16  ;;  %v576_v10 = vshll.u32 %v499_v58, 16 }
  0x34   : > { %v11869_v9 = vrot.slane %v1133_v1, 7  ;;  %v580_v11 = vshrl.u32 %v499_v58, 16  ;;  %v940_v12 = vrot.slane %v938_v44, 4  ;;  %v276_v14 = vld [vmem:[%s11803_s16 + $0x40] sm:$0xff]  ;;  %v277_v15 = vld [vmem:[%s11803_s16 + $0x48] sm:$0xff]  ;;  %v11145_v19 = vld [vmem:[%s15314_s1 + $0x170] sm:$0xff]  }
  0x35   : > { %v569_v16 = vsel %vm11830_vm7, %v564_v4, %v11855_v48  ;;  %v1129_v17 = vor.u32 %v1127_v0, %v1126_v5  ;;  %v1131_v18 = vrot.slane %v1126_v5, 4  ;;  %10132 = vst [vmem:[#allocation2 + $0x18] sm:$0xff] %v10013_v6   ;;  %v572_v20 = vrot.slane %v570_v7, 4  ;;  %v11880_v21 = vld [vmem:[#allocation2 + $0x14] sm:$0xf]  ;;  %v279_v23 = vld [vmem:[%s11803_s16 + $0x58] sm:$0xff] }
  0x36   : > { %v278_v22 = vld [vmem:[%s11803_s16 + $0x50] sm:$0xff]  ;;  %v2441_v24 = vld [vmem:[#allocation3 + $0x24] sm:$0xff]  ;;  %841 = vst [vmem:[#allocation3 + $0x70] sm:$0xf] %v569_v16  ;;  %v1138_v26 = vor.u32 %v1136_v2, %v11869_v9  ;;  %v578_v28 = vrot.slane %v576_v10, 5  ;;  %v582_v29 = vrot.slane %v580_v11, 4  ;;  %v10018_v42 = vpack.c.bf16 %v276_v14, %v275_v13 }
  0x37   : > { %v11131_v25 = vld [vmem:[#allocation3 + $0x4] ss:$36 sps:$4 sm:$0xff]   ;;  %v941_v30 = vrot.slane %v871_v59, 5  ;;  %5019 = vst [vmem:[#allocation3] sm:$0xf] %v4991_v60  ;;  %v9513_v31 = vcombine.low %v2436_v3, %v2441_v24  ;;  %v1130_v32 = vsel %vm11842_vm8, %v1122_v56, %v1129_v17  ;;  %v573_v33 = vor.u32 %v572_v20, %v11855_v48  ;;  %v11146_v36 = vld [vmem:[%s15314_s1 + $0x130] sm:$0xff]  }
  0x38   : > { %v280_v34 = vld [vmem:[%s11803_s16 + $0x60] sm:$0xff]  ;;  %3835 = vmatprep.mubr.bf16.mxu0 %v11131_v25  ;;  %v1139_v35 = vsel %vm11842_vm8, %v1131_v18, %v1138_v26  ;;  %1386 = vst [vmem:[#allocation3 + $0x54] sm:$0xf] %v1130_v32  ;;  %v583_v37 = vor.u32 %v582_v29, %v578_v28  ;;  %v10023_v43 = vpack.c.bf16 %v278_v22, %v277_v15  ;;  %v1140_v46 = vrot.slane %v11869_v9, 4  ;;  %v11159_v48 = vld [vmem:[%s15314_s1 + $0x168] sm:$0xff]   ;;  %v282_v53 = vld [vmem:[%s11803_s16 + $0x70] sm:$0xff] }
  0x39   : > { %v942_v38 = vsel %vm11824_vm6, %v940_v12, %v941_v30  ;;  %3836 = vmatmul.mubr.bf16.vlgmr.msra.gmra.mxu0 %v9513_v31  ;;  %v11136_v39 = vld [vmem:[#allocation3 + $0xc] ss:$36 sps:$4 sm:$0xff]   ;;  %1387 = vst [vmem:[#allocation3 + $0x78] sm:$0xf] %v1139_v35  ;;  %v574_v41 = vrot.slane %v573_v33, 4  ;;  %v10028_v44 = vpack.c.bf16 %v280_v34, %v279_v23  ;;  %v943_v45 = vrot.slane %v941_v30, 4 }
  0x3a   : > { %v11138_v40 = vld [vmem:[#allocation3 + $0x8] ss:$36 sps:$4 sm:$0xff]   ;;  %1044 = vst [vmem:[#allocation3 + $0x98] sm:$0xf] %v942_v38  ;;  %10357 = vmatpush3.bf16.msra.mxu0 %v11135_v8  ;;  %v1142_v47 = vshrl.u32 %v11880_v21, 16  ;;  %3980 = vmatprep.mubr.bf16.mxu1 %v11136_v39  ;;  %v584_v50 = vrot.slane %v583_v37, 4 }
  0x3b   : > { %10358 = vmatprep.subr.bf16.mxu0 %v11145_v19  ;;  %v579_v49 = vsel %vm11830_vm7, %v574_v41, %v578_v28  ;;  %v1145_v51 = vshll.u32 %v11880_v21, 16  ;;  %10133 = vst [vmem:[#allocation2 + $0x20] sm:$0xff] %v10018_v42   ;;  %10134 = vst [vmem:[#allocation2 + $0x28] sm:$0xff] %v10023_v43   ;;  %v281_v52 = vld [vmem:[%s11803_s16 + $0x68] sm:$0xff]  ;;  %3981 = vmatmul.mubr.bf16.vlgmr.msra.gmra.mxu1 %v11138_v40  ;;  %v11141_v60 = vld [vmem:[#allocation3 + $0x48] ss:$36 sps:$4 sm:$0xff]  }
  0x3c   : > { %10135 = vst [vmem:[#allocation2 + $0x30] sm:$0xff] %v10028_v44   ;;  %v500_v54 = vld [vmem:[#allocation2 + $0x18] sm:$0xf]  ;;  %842 = vst [vmem:[#allocation3 + $0x94] sm:$0xf] %v579_v49  ;;  %v11160_v57 = vld [vmem:[%s15314_s1 + $0x128] sm:$0xff]   ;;  %v10033_v58 = vpack.c.bf16 %v282_v53, %v281_v52 }
  0x3d   : > { %v872_v55 = vld [vmem:[#allocation2 + $0x18] sm:$0xf]  ;;  %v11139_v59 = vld [vmem:[#allocation3 + $0x4c] ss:$36 sps:$4 sm:$0xff]   ;;  %v586_v61 = vshll.u32 %v500_v54, 16  ;;  %v1144_v2 = vrot.slane %v1142_v47, 7 }
  0x3e   : > { %v1074_v56 = vld [vmem:[#allocation2 + $0x18] sm:$0xf]  ;;  %v11172_v0 = vld [vmem:[%s15314_s1 + $0x160] sm:$0xff]   ;;  %10359 = vmatpush3.bf16.msra.mxu0 %v11146_v36  ;;  %v944_v1 = vrot.slane %v872_v55, 5  ;;  %10136 = vst [vmem:[#allocation2 + $0x38] sm:$0xff] %v10033_v58   ;;  %3843 = vmatprep.mubr.bf16.mxu0 %v11139_v59  ;;  %v590_v16 = vshrl.u32 %v500_v54, 16 }
  0x3f   : > { %v1151_v3 = vshrl.u32 %v1074_v56, 16  ;;  %v1154_v4 = vshll.u32 %v1074_v56, 16  ;;  %v444_v5 = vld [vmem:[#allocation2 + $0x18] sm:$0xf]  ;;  %v588_v6 = vrot.slane %v586_v61, 5  ;;  %10360 = vmatprep.subr.bf16.mxu0 %v11159_v48  ;;  %v1147_v12 = vor.u32 %v1145_v51, %v1144_v2  ;;  %v11174_v19 = vld [vmem:[%s15314_s1 + $0x120] sm:$0xff]  }
  0x40   : > { %v445_v7 = vld [vmem:[#allocation2 + $0x1c] sm:$0xf]  ;;  %472 = vst [vmem:[#allocation3 + $0xd8] sm:$0xf] %v444_v5  ;;  %v11142_v9 = vld [vmem:[#allocation3 + $0x54] ss:$36 sps:$4 sm:$0xff]   ;;  %v945_v11 = vsel %vm11824_vm6, %v943_v45, %v944_v1 }
  0x41   : > { %v501_v8 = vld [vmem:[#allocation2 + $0x1c] sm:$0xf]  ;;  %v11144_v10 = vld [vmem:[#allocation3 + $0x50] ss:$36 sps:$4 sm:$0xff]   ;;  %v1149_v13 = vrot.slane %v1144_v2, 4  ;;  %3844 = vmatmul.mubr.bf16.gmra.mxu0 %v11141_v60  ;;  %v589_v14 = vsel %vm11830_vm7, %v584_v50, %v588_v6  ;;  %v11916_v15 = vrot.slane %v1151_v3, 7  ;;  %3988 = vmatprep.mubr.bf16.mxu1 %v11142_v9  ;;  %v1148_v20 = vsel %vm11842_vm8, %v1140_v46, %v1147_v12 }
  0x42   : > { %473 = vst [vmem:[#allocation3 + $0xfc] sm:$0xf] %v445_v7  ;;  %1045 = vst [vmem:[#allocation3 + $0xbc] sm:$0xf] %v945_v11  ;;  %v596_v17 = vshll.u32 %v501_v8, 16  ;;  %v600_v22 = vshrl.u32 %v501_v8, 16  ;;  %10361 = vmatpush3.bf16.msra.mxu0 %v11160_v57 }
  0x43   : > { %v873_v18 = vld [vmem:[#allocation2 + $0x1c] sm:$0xf]  ;;  %843 = vst [vmem:[#allocation3 + $0xb8] sm:$0xf] %v589_v14  ;;  %v502_v21 = vld [vmem:[#allocation2 + $0x20] sm:$0xf]  ;;  %v1156_v25 = vor.u32 %v1154_v4, %v11916_v15  ;;  %10362 = vmatprep.subr.bf16.mxu0 %v11172_v0  ;;  %3989 = vmatmul.mubr.bf16.gmra.mxu1 %v11144_v10 }
  0x44   : > { %v11923_v23 = vld [vmem:[#allocation2 + $0x20] sm:$0xf]  ;;  %v946_v24 = vrot.slane %v944_v1, 4  ;;  %1388 = vst [vmem:[#allocation3 + $0x9c] sm:$0xf] %v1148_v20  ;;  %v592_v26 = vrot.slane %v590_v16, 4 }
  0x45   : > { %v598_v28 = vrot.slane %v596_v17, 5  ;;  %v606_v29 = vshll.u32 %v502_v21, 16  ;;  %v1075_v30 = vld [vmem:[#allocation2 + $0x1c] sm:$0xf]  ;;  %v602_v31 = vrot.slane %v600_v22, 4  ;;  %v947_v32 = vrot.slane %v873_v18, 5 }
  0x46   : > { %v950_v33 = vrot.slane %v11923_v23, 5  ;;  %v1076_v34 = vld [vmem:[#allocation2 + $0x20] sm:$0xf]  ;;  %v1158_v35 = vrot.slane %v11916_v15, 4  ;;  %v283_v36 = vld [vmem:[%s11803_s16 + $0x78] sm:$0xff]  ;;  %v1157_v37 = vsel %vm11842_vm8, %v1149_v13, %v1156_v25  ;;  %v593_v38 = vor.u32 %v592_v26, %v588_v6  ;;  %10363 = vmatpush3.bf16.msra.mxu0 %v11174_v19 }
  0x47   : > { %v11931_v39 = vrot.slane %v606_v29, 5  ;;  %v1160_v40 = vshrl.u32 %v1075_v30, 16  ;;  %v446_v41 = vld [vmem:[#allocation2 + $0x20] sm:$0xf]  ;;  %v447_v42 = vld [vmem:[#allocation2 + $0x24] sm:$0xf]  ;;  %v603_v43 = vor.u32 %v602_v31, %v598_v28  ;;  %v948_v44 = vsel %vm11824_vm6, %v946_v24, %v947_v32 }
  0x48   : > { %1389 = vst [vmem:[#allocation3 + $0xc0] sm:$0xf] %v1157_v37  ;;  %v949_v45 = vrot.slane %v947_v32, 4  ;;  %v1163_v46 = vshll.u32 %v1075_v30, 16  ;;  %474 = vst [vmem:[#allocation3 + $0x120] sm:$0xf] %v446_v41 }
  0x49   : > { %475 = vst [vmem:[#allocation3 + $0x144] sm:$0xf] %v447_v42  ;;  %v503_v47 = vld [vmem:[#allocation2 + $0x24] sm:$0xf]  ;;  %v11935_v48 = vld [vmem:[#allocation2 + $0x28] sm:$0xf] }
  0x4a   : > { %v594_v49 = vrot.slane %v593_v38, 4  ;;  %1046 = vst [vmem:[#allocation3 + $0xe0] sm:$0xf] %v948_v44  ;;  %v1162_v50 = vrot.slane %v1160_v40, 7  ;;  %v1169_v51 = vshrl.u32 %v1076_v34, 16  ;;  %v1172_v52 = vshll.u32 %v1076_v34, 16 }
  0x4b   : > { %v875_v53 = vld [vmem:[#allocation2 + $0x24] sm:$0xf]  ;;  %v604_v54 = vrot.slane %v603_v43, 4  ;;  %v951_v55 = vsel %vm11824_vm6, %v949_v45, %v950_v33  ;;  %v610_v56 = vshrl.u32 %v502_v21, 16  ;;  %v616_v57 = vshll.u32 %v503_v47, 16  ;;  %v11183_v14 = vld [vmem:[%s15314_s1 + $0x158] sm:$0xff]  }
  0x4c   : > { %v11939_v58 = vld [vmem:[#allocation2 + $0x28] sm:$0xf]  ;;  %v284_v59 = vld [vmem:[%s11803_s16 + $0x80] sm:$0xff]  ;;  %v11147_v60 = vld [vmem:[#allocation3 + $0x94] ss:$36 sps:$4 sm:$0xff]   ;;  %v599_v0 = vsel %vm11830_vm7, %v594_v49, %v598_v28  ;;  %v1165_v1 = vor.u32 %v1163_v46, %v1162_v50  ;;  %v1167_v2 = vrot.slane %v1162_v50, 4  ;;  %10364 = vmatprep.subr.bf16.mxu0 %v11183_v14 }
  0x4d   : > { %v11149_v61 = vld [vmem:[#allocation3 + $0x90] ss:$36 sps:$4 sm:$0xff]   ;;  %1047 = vst [vmem:[#allocation3 + $0x104] sm:$0xf] %v951_v55  ;;  %v10038_v3 = vpack.c.bf16 %v284_v59, %v283_v36  ;;  %v609_v4 = vsel %vm11830_vm7, %v604_v54, %v11931_v39  ;;  %844 = vst [vmem:[#allocation3 + $0xdc] sm:$0xf] %v599_v0  ;;  %3851 = vmatprep.mubr.bf16.mxu0 %v11147_v60 }
  0x4e   : > { %v11947_v5 = vrot.slane %v1169_v51, 7  ;;  %v612_v6 = vrot.slane %v610_v56, 4  ;;  %v618_v7 = vrot.slane %v616_v57, 5  ;;  %v1077_v8 = vld [vmem:[#allocation2 + $0x24] sm:$0xf]  ;;  %v1166_v9 = vsel %vm11842_vm8, %v1158_v35, %v1165_v1  ;;  %3852 = vmatmul.mubr.bf16.gmra.mxu0 %v11149_v61  ;;  %v11185_v35 = vld [vmem:[%s15314_s1 + $0x118] sm:$0xff]  }
  0x4f   : > { %845 = vst [vmem:[#allocation3 + $0x100] sm:$0xf] %v609_v4  ;;  %v620_v10 = vshrl.u32 %v503_v47, 16  ;;  %v626_v11 = vshll.u32 %v11935_v48, 16  ;;  %v952_v12 = vrot.slane %v950_v33, 4  ;;  %10137 = vst [vmem:[#allocation2 + $0x40] sm:$0xff] %v10038_v3   ;;  %10365 = vmatpush3.bf16.msra.mxu0 %v11185_v35 }
  0x50   : > { %v1078_v13 = vld [vmem:[#allocation2 + $0x28] sm:$0xf]  ;;  %v1174_v15 = vor.u32 %v1172_v52, %v11947_v5  ;;  %1390 = vst [vmem:[#allocation3 + $0xe4] sm:$0xf] %v1166_v9  ;;  %v613_v16 = vor.u32 %v612_v6, %v11931_v39  ;;  %v953_v17 = vrot.slane %v875_v53, 5  ;;  %v956_v18 = vrot.slane %v11939_v58, 5 }
  0x51   : > { %v448_v19 = vld [vmem:[#allocation2 + $0x28] sm:$0xf]  ;;  %v449_v20 = vld [vmem:[#allocation2 + $0x2c] sm:$0xf]  ;;  %v11150_v21 = vld [vmem:[#allocation3 + $0x9c] ss:$36 sps:$4 sm:$0xff]  }
  0x52   : > { %v11152_v22 = vld [vmem:[#allocation3 + $0x98] ss:$36 sps:$4 sm:$0xff]   ;;  %v622_v23 = vrot.slane %v620_v10, 4  ;;  %476 = vst [vmem:[#allocation3 + $0x168] sm:$0xf] %v448_v19  ;;  %v1175_v24 = vsel %vm11842_vm8, %v1167_v2, %v1174_v15  ;;  %v614_v25 = vrot.slane %v613_v16, 4  ;;  %v954_v28 = vsel %vm11824_vm6, %v952_v12, %v953_v17  ;;  %3996 = vmatprep.mubr.bf16.mxu1 %v11150_v21 }
  0x53   : > { %477 = vst [vmem:[#allocation3 + $0x18c] sm:$0xf] %v449_v20  ;;  %v628_v26 = vrot.slane %v626_v11, 5  ;;  %1391 = vst [vmem:[#allocation3 + $0x108] sm:$0xf] %v1175_v24  ;;  %v955_v30 = vrot.slane %v953_v17, 4  ;;  %3997 = vmatmul.mubr.bf16.gmra.mxu1 %v11152_v22 }
  0x54   : > { %v623_v29 = vor.u32 %v622_v23, %v618_v7  ;;  %1048 = vst [vmem:[#allocation3 + $0x128] sm:$0xf] %v954_v28  ;;  %v1176_v31 = vrot.slane %v11947_v5, 4  ;;  %v1178_v32 = vshrl.u32 %v1077_v8, 16  ;;  %v505_v33 = vld [vmem:[#allocation2 + $0x2c] sm:$0xf]  ;;  %v619_v36 = vsel %vm11830_vm7, %v614_v25, %v618_v7 }
  0x55   : > { %v11963_v34 = vld [vmem:[#allocation2 + $0x30] sm:$0xf]  ;;  %v1181_v37 = vshll.u32 %v1077_v8, 16  ;;  %v1187_v38 = vshrl.u32 %v1078_v13, 16  ;;  %v1190_v39 = vshll.u32 %v1078_v13, 16  ;;  %v957_v42 = vsel %vm11824_vm6, %v955_v30, %v956_v18  ;;  %v285_v45 = vld [vmem:[%s11803_s16 + $0x88] sm:$0xff] }
  0x56   : > { %v877_v40 = vld [vmem:[#allocation2 + $0x2c] sm:$0xf]  ;;  %v624_v41 = vrot.slane %v623_v29, 4  ;;  %846 = vst [vmem:[#allocation3 + $0x124] sm:$0xf] %v619_v36  ;;  %v1180_v43 = vrot.slane %v1178_v32, 7 }
  0x57   : > { %v630_v44 = vshrl.u32 %v11935_v48, 16  ;;  %v11153_v46 = vld [vmem:[#allocation3 + $0xdc] ss:$36 sps:$4 sm:$0xff]   ;;  %1049 = vst [vmem:[#allocation3 + $0x14c] sm:$0xf] %v957_v42  ;;  %v11974_v49 = vrot.slane %v1187_v38, 7 }
  0x58   : > { %v11155_v47 = vld [vmem:[#allocation3 + $0xd8] ss:$36 sps:$4 sm:$0xff]   ;;  %v629_v50 = vsel %vm11830_vm7, %v624_v41, %v628_v26  ;;  %v1183_v51 = vor.u32 %v1181_v37, %v1180_v43  ;;  %v1185_v52 = vrot.slane %v1180_v43, 4  ;;  %v1079_v55 = vld [vmem:[#allocation2 + $0x2c] sm:$0xf]  ;;  %3859 = vmatprep.mubr.bf16.mxu0 %v11153_v46  ;;  %v636_v57 = vshll.u32 %v505_v33, 16 }
  0x59   : > { %v632_v53 = vrot.slane %v630_v44, 4  ;;  %v11978_v54 = vld [vmem:[#allocation2 + $0x30] sm:$0xf]  ;;  %847 = vst [vmem:[#allocation3 + $0x148] sm:$0xf] %v629_v50  ;;  %v1192_v48 = vor.u32 %v1190_v39, %v11974_v49  ;;  %v640_v58 = vshrl.u32 %v505_v33, 16  ;;  %3860 = vmatmul.mubr.bf16.gmra.mxu0 %v11155_v47 }
  0x5a   : > { %v286_v56 = vld [vmem:[%s11803_s16 + $0x90] sm:$0xff]  ;;  %v646_v59 = vshll.u32 %v11963_v34, 16  ;;  %v1184_v0 = vsel %vm11842_vm8, %v1176_v31, %v1183_v51  ;;  %v958_v2 = vrot.slane %v956_v18, 4  ;;  %v959_v3 = vrot.slane %v877_v40, 5  ;;  %v11156_v6 = vld [vmem:[#allocation3 + $0xe4] ss:$36 sps:$4 sm:$0xff]  }
  0x5b   : > { %v450_v60 = vld [vmem:[#allocation2 + $0x30] sm:$0xf]  ;;  %v633_v1 = vor.u32 %v632_v53, %v628_v26  ;;  %v451_v5 = vld [vmem:[#allocation2 + $0x34] sm:$0xf]  ;;  %v11158_v7 = vld [vmem:[#allocation3 + $0xe0] ss:$36 sps:$4 sm:$0xff]   ;;  %v1193_v8 = vsel %vm11842_vm8, %v1185_v52, %v1192_v48  ;;  %v10043_v10 = vpack.c.bf16 %v286_v56, %v285_v45  ;;  %4004 = vmatprep.mubr.bf16.mxu1 %v11156_v6 }
  0x5c   : > { %v11195_v61 = vld [vmem:[%s15314_s1 + $0x150] sm:$0xff]   ;;  %478 = vst [vmem:[#allocation3 + $0x1b0] sm:$0xf] %v450_v60  ;;  %1392 = vst [vmem:[#allocation3 + $0x12c] sm:$0xf] %v1184_v0  ;;  %v638_v9 = vrot.slane %v636_v57, 5  ;;  %v960_v14 = vsel %vm11824_vm6, %v958_v2, %v959_v3  ;;  %4005 = vmatmul.mubr.bf16.gmra.mxu1 %v11158_v7 }
  0x5d   : > { %v11988_v4 = vld [vmem:[#allocation2 + $0x30] sm:$0xf]  ;;  %479 = vst [vmem:[#allocation3 + $0x1d4] sm:$0xf] %v451_v5  ;;  %10366 = vmatprep.subr.bf16.mxu0 %v11195_v61  ;;  %1393 = vst [vmem:[#allocation3 + $0x150] sm:$0xf] %v1193_v8 }
  0x5e   : > { %v634_v11 = vrot.slane %v633_v1, 4  ;;  %v642_v12 = vrot.slane %v640_v58, 4  ;;  %v11992_v13 = vrot.slane %v646_v59, 5  ;;  %v11196_v15 = vld [vmem:[%s15314_s1 + $0x110] sm:$0xff]   ;;  %v961_v16 = vrot.slane %v959_v3, 4  ;;  %10138 = vst [vmem:[#allocation2 + $0x48] sm:$0xff] %v10043_v10  }
  0x5f   : > { %v962_v17 = vrot.slane %v11978_v54, 5  ;;  %1050 = vst [vmem:[#allocation3 + $0x170] sm:$0xf] %v960_v14  ;;  %v1194_v18 = vrot.slane %v11974_v49, 4  ;;  %v1196_v19 = vshrl.u32 %v1079_v55, 16  ;;  %v287_v20 = vld [vmem:[%s11803_s16 + $0x98] sm:$0xff]  ;;  %10367 = vmatpush3.bf16.msra.mxu0 %v11196_v15 }
  0x60   : > { %v639_v21 = vsel %vm11830_vm7, %v634_v11, %v638_v9  ;;  %v643_v22 = vor.u32 %v642_v12, %v638_v9  ;;  %v1199_v23 = vshll.u32 %v1079_v55, 16  ;;  %v1205_v24 = vshrl.u32 %v11988_v4, 16  ;;  %v507_v25 = vld [vmem:[#allocation2 + $0x34] sm:$0xf]  ;;  %v12005_v26 = vld [vmem:[#allocation2 + $0x38] sm:$0xf] }
  0x61   : > { %848 = vst [vmem:[#allocation3 + $0x16c] sm:$0xf] %v639_v21  ;;  %v963_v28 = vsel %vm11824_vm6, %v961_v16, %v962_v17  ;;  %v1198_v29 = vrot.slane %v1196_v19, 7  ;;  %v1208_v30 = vshll.u32 %v11988_v4, 16  ;;  %v650_v31 = vshrl.u32 %v11963_v34, 16  ;;  %v288_v33 = vld [vmem:[%s11803_s16 + $0xa0] sm:$0xff] }
  0x62   : > { %v879_v32 = vld [vmem:[#allocation2 + $0x34] sm:$0xf]  ;;  %v11161_v35 = vld [vmem:[#allocation3 + $0x124] ss:$36 sps:$4 sm:$0xff]   ;;  %v644_v37 = vrot.slane %v643_v22, 4  ;;  %v10048_v39 = vpack.c.bf16 %v288_v33, %v287_v20  ;;  %v12014_v42 = vrot.slane %v1205_v24, 7 }
  0x63   : > { %v11163_v36 = vld [vmem:[#allocation3 + $0x120] ss:$36 sps:$4 sm:$0xff]   ;;  %1051 = vst [vmem:[#allocation3 + $0x194] sm:$0xf] %v963_v28  ;;  %v1201_v40 = vor.u32 %v1199_v23, %v1198_v29  ;;  %v1203_v41 = vrot.slane %v1198_v29, 4  ;;  %v652_v43 = vrot.slane %v650_v31, 4  ;;  %3867 = vmatprep.mubr.bf16.mxu0 %v11161_v35 }
  0x64   : > { %v12012_v38 = vld [vmem:[#allocation2 + $0x38] sm:$0xf]  ;;  %v12016_v44 = vld [vmem:[#allocation2 + $0x34] sm:$0xf]  ;;  %v649_v34 = vsel %vm11830_vm7, %v644_v37, %v11992_v13  ;;  %v656_v45 = vshll.u32 %v507_v25, 16  ;;  %v660_v46 = vshrl.u32 %v507_v25, 16  ;;  %3868 = vmatmul.mubr.bf16.gmra.mxu0 %v11163_v36  ;;  %v1210_v54 = vor.u32 %v1208_v30, %v12014_v42 }
  0x65   : > { %v666_v47 = vshll.u32 %v12005_v26, 16  ;;  %v12022_v49 = vld [vmem:[#allocation2 + $0x38] sm:$0xf]  ;;  %10139 = vst [vmem:[#allocation2 + $0x50] sm:$0xff] %v10048_v39   ;;  %v11164_v51 = vld [vmem:[#allocation3 + $0x12c] ss:$36 sps:$4 sm:$0xff]   ;;  %v1202_v53 = vsel %vm11842_vm8, %v1194_v18, %v1201_v40  ;;  %v653_v55 = vor.u32 %v652_v43, %v11992_v13 }
  0x66   : > { %v452_v50 = vld [vmem:[#allocation2 + $0x38] sm:$0xf]  ;;  %v11166_v52 = vld [vmem:[#allocation3 + $0x128] ss:$36 sps:$4 sm:$0xff]   ;;  %849 = vst [vmem:[#allocation3 + $0x190] sm:$0xf] %v649_v34  ;;  %4012 = vmatprep.mubr.bf16.mxu1 %v11164_v51  ;;  %v1211_v61 = vsel %vm11842_vm8, %v1203_v41, %v1210_v54 }
  0x67   : > { %v964_v56 = vrot.slane %v962_v17, 4  ;;  %480 = vst [vmem:[#allocation3 + $0x1f8] sm:$0xf] %v452_v50  ;;  %1394 = vst [vmem:[#allocation3 + $0x174] sm:$0xf] %v1202_v53  ;;  %v658_v48 = vrot.slane %v656_v45, 5  ;;  %4013 = vmatmul.mubr.bf16.gmra.mxu1 %v11166_v52 }
  0x68   : > { %v662_v57 = vrot.slane %v660_v46, 4  ;;  %v12028_v58 = vrot.slane %v666_v47, 5  ;;  %v965_v59 = vrot.slane %v879_v32, 5  ;;  %v453_v60 = vld [vmem:[#allocation2 + $0x3c] sm:$0xf]  ;;  %v654_v0 = vrot.slane %v653_v55, 4 }
  0x69   : > { %v968_v1 = vrot.slane %v12012_v38, 5  ;;  %v1212_v2 = vrot.slane %v12014_v42, 4  ;;  %481 = vst [vmem:[#allocation3 + $0x21c] sm:$0xf] %v453_v60  ;;  %v509_v3 = vld [vmem:[#allocation2 + $0x3c] sm:$0xf] }
  0x6a   : > { %v289_v4 = vld [vmem:[%s11803_s16 + $0xa8] sm:$0xff]  ;;  %v290_v5 = vld [vmem:[%s11803_s16 + $0xb0] sm:$0xff]  ;;  %1395 = vst [vmem:[#allocation3 + $0x198] sm:$0xf] %v1211_v61  ;;  %v663_v6 = vor.u32 %v662_v57, %v658_v48  ;;  %v966_v7 = vsel %vm11824_vm6, %v964_v56, %v965_v59  ;;  %v967_v8 = vrot.slane %v965_v59, 4  ;;  %v1214_v9 = vshrl.u32 %v12016_v44, 16 }
  0x6b   : > { %v12039_v10 = vld [vmem:[#allocation2 + $0x40] sm:$0xf]  ;;  %v11209_v11 = vld [vmem:[%s15314_s1 + $0x1f8] sm:$0xff]   ;;  %v659_v12 = vsel %vm11830_vm7, %v654_v0, %v658_v48  ;;  %1052 = vst [vmem:[#allocation3 + $0x1b8] sm:$0xf] %v966_v7  ;;  %v1217_v13 = vshll.u32 %v12016_v44, 16  ;;  %v10053_v32 = vpack.c.bf16 %v290_v5, %v289_v4 }
  0x6c   : > { %v1223_v14 = vshrl.u32 %v12022_v49, 16  ;;  %v1226_v15 = vshll.u32 %v12022_v49, 16  ;;  %v11210_v16 = vld [vmem:[%s15314_s1 + $0x148] sm:$0xff]   ;;  %v664_v17 = vrot.slane %v663_v6, 4  ;;  %850 = vst [vmem:[#allocation3 + $0x1b4] sm:$0xf] %v659_v12  ;;  %v969_v18 = vsel %vm11824_vm6, %v967_v8, %v968_v1  ;;  %10456 = vmatprep.subr.bf16.mxu1 %v11209_v11 }
  0x6d   : > { %v1216_v19 = vrot.slane %v1214_v9, 7  ;;  %v670_v20 = vshrl.u32 %v12005_v26, 16  ;;  %v11211_v21 = vld [vmem:[%s15314_s1 + $0x1b8] sm:$0xff]   ;;  %1053 = vst [vmem:[#allocation3 + $0x1dc] sm:$0xf] %v969_v18  ;;  %v676_v23 = vshll.u32 %v509_v3, 16  ;;  %10368 = vmatprep.subr.bf16.mxu0 %v11210_v16 }
  0x6e   : > { %v12058_v22 = vrot.slane %v1223_v14, 7  ;;  %v680_v24 = vshrl.u32 %v509_v3, 16  ;;  %v686_v25 = vshll.u32 %v12039_v10, 16  ;;  %v11167_v28 = vld [vmem:[#allocation3 + $0x16c] ss:$36 sps:$4 sm:$0xff]   ;;  %v669_v30 = vsel %vm11830_vm7, %v664_v17, %v12028_v58  ;;  %10457 = vmatpush3.bf16.msra.mxu1 %v11211_v21  ;;  %10140 = vst [vmem:[#allocation2 + $0x58] sm:$0xff] %v10053_v32  }
  0x6f   : > { %v11169_v29 = vld [vmem:[#allocation3 + $0x168] ss:$36 sps:$4 sm:$0xff]   ;;  %v1219_v26 = vor.u32 %v1217_v13, %v1216_v19  ;;  %v1221_v31 = vrot.slane %v1216_v19, 4  ;;  %851 = vst [vmem:[#allocation3 + $0x1d8] sm:$0xf] %v669_v30  ;;  %v672_v35 = vrot.slane %v670_v20, 4  ;;  %3875 = vmatprep.mubr.bf16.mxu0 %v11167_v28 }
  0x70   : > { %v1228_v33 = vor.u32 %v1226_v15, %v12058_v22  ;;  %v678_v36 = vrot.slane %v676_v23, 5  ;;  %v682_v37 = vrot.slane %v680_v24, 4  ;;  %v12067_v39 = vrot.slane %v686_v25, 5  ;;  %v881_v40 = vld [vmem:[#allocation2 + $0x3c] sm:$0xf]  ;;  %3876 = vmatmul.mubr.bf16.gmra.mxu0 %v11169_v29  ;;  %v11212_v6 = vld [vmem:[%s15314_s1 + $0x108] sm:$0xff]  }
  0x71   : > { %v1220_v38 = vsel %vm11842_vm8, %v1212_v2, %v1219_v26  ;;  %v882_v41 = vld [vmem:[#allocation2 + $0x40] sm:$0xf]  ;;  %v970_v42 = vrot.slane %v968_v1, 4  ;;  %v11170_v43 = vld [vmem:[#allocation3 + $0x174] ss:$36 sps:$4 sm:$0xff]   ;;  %v673_v45 = vor.u32 %v672_v35, %v12028_v58  ;;  %v971_v47 = vrot.slane %v881_v40, 5  ;;  %10369 = vmatpush3.bf16.msra.mxu0 %v11212_v6 }
  0x72   : > { %v11173_v44 = vld [vmem:[#allocation3 + $0x170] ss:$36 sps:$4 sm:$0xff]   ;;  %v1229_v34 = vsel %vm11842_vm8, %v1221_v31, %v1228_v33  ;;  %1396 = vst [vmem:[#allocation3 + $0x1bc] sm:$0xf] %v1220_v38  ;;  %v683_v46 = vor.u32 %v682_v37, %v678_v36  ;;  %v974_v49 = vrot.slane %v882_v41, 5  ;;  %v1230_v52 = vrot.slane %v12058_v22, 4  ;;  %4020 = vmatprep.mubr.bf16.mxu1 %v11170_v43 }
  0x73   : > { %1397 = vst [vmem:[#allocation3 + $0x1e0] sm:$0xf] %v1229_v34  ;;  %v1083_v50 = vld [vmem:[#allocation2 + $0x3c] sm:$0xf]  ;;  %v1084_v51 = vld [vmem:[#allocation2 + $0x40] sm:$0xf]  ;;  %v972_v55 = vsel %vm11824_vm6, %v970_v42, %v971_v47  ;;  %4021 = vmatmul.mubr.bf16.gmra.mxu1 %v11173_v44 }
  0x74   : > { %v674_v53 = vrot.slane %v673_v45, 4  ;;  %v684_v54 = vrot.slane %v683_v46, 4  ;;  %v973_v56 = vrot.slane %v971_v47, 4  ;;  %v454_v48 = vld [vmem:[#allocation2 + $0x40] sm:$0xf]  ;;  %v1232_v57 = vshrl.u32 %v1083_v50, 16 }
  0x75   : > { %1054 = vst [vmem:[#allocation3 + $0x200] sm:$0xf] %v972_v55  ;;  %v1235_v58 = vshll.u32 %v1083_v50, 16  ;;  %v1241_v59 = vshrl.u32 %v1084_v51, 16  ;;  %v1244_v60 = vshll.u32 %v1084_v51, 16  ;;  %v690_v5 = vshrl.u32 %v12039_v10, 16 }
  0x76   : > { %v455_v61 = vld [vmem:[#allocation2 + $0x44] sm:$0xf]  ;;  %482 = vst [vmem:[#allocation3 + $0x240] sm:$0xf] %v454_v48  ;;  %v679_v0 = vsel %vm11830_vm7, %v674_v53, %v678_v36  ;;  %v689_v1 = vsel %vm11830_vm7, %v684_v54, %v12067_v39  ;;  %v975_v2 = vsel %vm11824_vm6, %v973_v56, %v974_v49  ;;  %v12082_v4 = vld [vmem:[#allocation2 + $0x48] sm:$0xf] }
  0x77   : > { %483 = vst [vmem:[#allocation3 + $0x264] sm:$0xf] %v455_v61  ;;  %v511_v3 = vld [vmem:[#allocation2 + $0x44] sm:$0xf]  ;;  %v11175_v7 = vld [vmem:[#allocation3 + $0x1b4] ss:$36 sps:$4 sm:$0xff]  }
  0x78   : > { %v11177_v8 = vld [vmem:[#allocation3 + $0x1b0] ss:$36 sps:$4 sm:$0xff]   ;;  %852 = vst [vmem:[#allocation3 + $0x1fc] sm:$0xf] %v679_v0  ;;  %853 = vst [vmem:[#allocation3 + $0x220] sm:$0xf] %v689_v1  ;;  %3883 = vmatprep.mubr.bf16.mxu0 %v11175_v7 }
  0x79   : > { %1055 = vst [vmem:[#allocation3 + $0x224] sm:$0xf] %v975_v2  ;;  %v1234_v9 = vrot.slane %v1232_v57, 7  ;;  %v12088_v11 = vrot.slane %v1241_v59, 7  ;;  %v692_v12 = vrot.slane %v690_v5, 4  ;;  %v696_v13 = vshll.u32 %v511_v3, 16  ;;  %3884 = vmatmul.mubr.bf16.gmra.mxu0 %v11177_v8 }
  0x7a   : > { %v700_v14 = vshrl.u32 %v511_v3, 16  ;;  %v883_v15 = vld [vmem:[#allocation2 + $0x44] sm:$0xf]  ;;  %v706_v17 = vshll.u32 %v12082_v4, 16  ;;  %v884_v18 = vld [vmem:[#allocation2 + $0x48] sm:$0xf] }
  0x7b   : > { %v1237_v16 = vor.u32 %v1235_v58, %v1234_v9  ;;  %v1239_v10 = vrot.slane %v1234_v9, 4  ;;  %v976_v19 = vrot.slane %v974_v49, 4  ;;  %v11178_v20 = vld [vmem:[#allocation3 + $0x1bc] ss:$36 sps:$4 sm:$0xff]   ;;  %v1246_v22 = vor.u32 %v1244_v60, %v12088_v11  ;;  %v1085_v26 = vld [vmem:[#allocation2 + $0x44] sm:$0xf] }
  0x7c   : > { %v11180_v21 = vld [vmem:[#allocation3 + $0x1b8] ss:$36 sps:$4 sm:$0xff]   ;;  %v693_v23 = vor.u32 %v692_v12, %v12067_v39  ;;  %v698_v24 = vrot.slane %v696_v13, 5  ;;  %v702_v28 = vrot.slane %v700_v14, 4  ;;  %v12095_v29 = vrot.slane %v706_v17, 5  ;;  %4028 = vmatprep.mubr.bf16.mxu1 %v11178_v20  ;;  %v291_v38 = vld [vmem:[%s11803_s16 + $0xb8] sm:$0xff] }
  0x7d   : > { %v1238_v25 = vsel %vm11842_vm8, %v1230_v52, %v1237_v16  ;;  %v977_v30 = vrot.slane %v883_v15, 5  ;;  %v11213_v31 = vld [vmem:[%s15314_s1 + $0x1f0] sm:$0xff]   ;;  %v1247_v32 = vsel %vm11842_vm8, %v1239_v10, %v1246_v22  ;;  %v980_v35 = vrot.slane %v884_v18, 5  ;;  %v1086_v36 = vld [vmem:[#allocation2 + $0x48] sm:$0xf]  ;;  %4029 = vmatmul.mubr.bf16.gmra.mxu1 %v11180_v21  ;;  %v292_v52 = vld [vmem:[%s11803_s16 + $0xc0] sm:$0xff] }
  0x7e   : > { %1398 = vst [vmem:[#allocation3 + $0x204] sm:$0xf] %v1238_v25  ;;  %v694_v33 = vrot.slane %v693_v23, 4  ;;  %v1248_v37 = vrot.slane %v12088_v11, 4  ;;  %1399 = vst [vmem:[#allocation3 + $0x228] sm:$0xf] %v1247_v32  ;;  %v703_v39 = vor.u32 %v702_v28, %v698_v24  ;;  %10458 = vmatprep.subr.bf16.mxu1 %v11213_v31  ;;  %v10058_v55 = vpack.c.bf16 %v292_v52, %v291_v38 }
  0x7f   : > { %v978_v40 = vsel %vm11824_vm6, %v976_v19, %v977_v30  ;;  %v979_v41 = vrot.slane %v977_v30, 4  ;;  %v1250_v42 = vshrl.u32 %v1085_v26, 16  ;;  %v11181_v43 = vld [vmem:[#allocation3 + $0x1fc] ss:$36 sps:$4 sm:$0xff]   ;;  %v1253_v34 = vshll.u32 %v1085_v26, 16 }
  0x80   : > { %v699_v44 = vsel %vm11830_vm7, %v694_v33, %v698_v24  ;;  %1056 = vst [vmem:[#allocation3 + $0x248] sm:$0xf] %v978_v40  ;;  %v1259_v45 = vshrl.u32 %v1086_v36, 16  ;;  %v11184_v46 = vld [vmem:[#allocation3 + $0x1f8] ss:$36 sps:$4 sm:$0xff]   ;;  %v704_v47 = vrot.slane %v703_v39, 4  ;;  %3891 = vmatprep.mubr.bf16.mxu0 %v11181_v43 }
  0x81   : > { %854 = vst [vmem:[#allocation3 + $0x244] sm:$0xf] %v699_v44  ;;  %v981_v49 = vsel %vm11824_vm6, %v979_v41, %v980_v35  ;;  %v1252_v50 = vrot.slane %v1250_v42, 7  ;;  %v1262_v51 = vshll.u32 %v1086_v36, 16  ;;  %v710_v54 = vshrl.u32 %v12082_v4, 16  ;;  %3892 = vmatmul.mubr.bf16.gmra.mxu0 %v11184_v46  ;;  %10141 = vst [vmem:[#allocation2 + $0x60] sm:$0xff] %v10058_v55  }
  0x82   : > { %1057 = vst [vmem:[#allocation3 + $0x26c] sm:$0xf] %v981_v49  ;;  %v12111_v53 = vrot.slane %v1259_v45, 7  ;;  %v709_v56 = vsel %vm11830_vm7, %v704_v47, %v12095_v29  ;;  %v456_v58 = vld [vmem:[#allocation2 + $0x48] sm:$0xf]  ;;  %v982_v60 = vrot.slane %v980_v35, 4 }
  0x83   : > { %v1255_v48 = vor.u32 %v1253_v34, %v1252_v50  ;;  %v1257_v57 = vrot.slane %v1252_v50, 4  ;;  %v457_v59 = vld [vmem:[#allocation2 + $0x4c] sm:$0xf]  ;;  %855 = vst [vmem:[#allocation3 + $0x268] sm:$0xf] %v709_v56  ;;  %v712_v2 = vrot.slane %v710_v54, 4 }
  0x84   : > { %v1264_v61 = vor.u32 %v1262_v51, %v12111_v53  ;;  %484 = vst [vmem:[#allocation3 + $0x288] sm:$0xf] %v456_v58  ;;  %485 = vst [vmem:[#allocation3 + $0x2ac] sm:$0xf] %v457_v59  ;;  %v513_v0 = vld [vmem:[#allocation2 + $0x4c] sm:$0xf] }
  0x85   : > { %v514_v1 = vld [vmem:[#allocation2 + $0x50] sm:$0xf]  ;;  %v1266_v3 = vrot.slane %v12111_v53, 4  ;;  %v1256_v4 = vsel %vm11842_vm8, %v1248_v37, %v1255_v48  ;;  %v716_v5 = vshll.u32 %v513_v0, 16  ;;  %v720_v6 = vshrl.u32 %v513_v0, 16 }
  0x86   : > { %v726_v7 = vshll.u32 %v514_v1, 16  ;;  %v885_v8 = vld [vmem:[#allocation2 + $0x4c] sm:$0xf]  ;;  %v11186_v9 = vld [vmem:[#allocation3 + $0x204] ss:$36 sps:$4 sm:$0xff]   ;;  %v1265_v12 = vsel %vm11842_vm8, %v1257_v57, %v1264_v61  ;;  %v713_v13 = vor.u32 %v712_v2, %v12095_v29  ;;  %v730_v18 = vshrl.u32 %v514_v1, 16 }
  0x87   : > { %v11188_v11 = vld [vmem:[#allocation3 + $0x200] ss:$36 sps:$4 sm:$0xff]   ;;  %1400 = vst [vmem:[#allocation3 + $0x24c] sm:$0xf] %v1256_v4  ;;  %v983_v14 = vrot.slane %v885_v8, 5  ;;  %v718_v15 = vrot.slane %v716_v5, 5  ;;  %4036 = vmatprep.mubr.bf16.mxu1 %v11186_v9 }
  0x88   : > { %1401 = vst [vmem:[#allocation3 + $0x270] sm:$0xf] %v1265_v12  ;;  %v722_v16 = vrot.slane %v720_v6, 4  ;;  %v728_v10 = vrot.slane %v726_v7, 5  ;;  %v886_v17 = vld [vmem:[#allocation2 + $0x50] sm:$0xf]  ;;  %4037 = vmatmul.mubr.bf16.gmra.mxu1 %v11188_v11 }
  0x89   : > { %v714_v19 = vrot.slane %v713_v13, 4  ;;  %v984_v20 = vsel %vm11824_vm6, %v982_v60, %v983_v14  ;;  %v985_v21 = vrot.slane %v983_v14, 4  ;;  %v986_v22 = vrot.slane %v886_v17, 5  ;;  %v1087_v23 = vld [vmem:[#allocation2 + $0x4c] sm:$0xf] }
  0x8a   : > { %v723_v24 = vor.u32 %v722_v16, %v718_v15  ;;  %1058 = vst [vmem:[#allocation3 + $0x290] sm:$0xf] %v984_v20  ;;  %v1088_v25 = vld [vmem:[#allocation2 + $0x50] sm:$0xf]  ;;  %v1268_v28 = vshrl.u32 %v1087_v23, 16  ;;  %v1271_v29 = vshll.u32 %v1087_v23, 16 }
  0x8b   : > { %v458_v30 = vld [vmem:[#allocation2 + $0x50] sm:$0xf]  ;;  %v719_v26 = vsel %vm11830_vm7, %v714_v19, %v718_v15  ;;  %v987_v31 = vsel %vm11824_vm6, %v985_v21, %v986_v22  ;;  %v1277_v32 = vshrl.u32 %v1088_v25, 16  ;;  %v1280_v33 = vshll.u32 %v1088_v25, 16  ;;  %v459_v35 = vld [vmem:[#allocation2 + $0x54] sm:$0xf] }
  0x8c   : > { %486 = vst [vmem:[#allocation3 + $0x2d0] sm:$0xf] %v458_v30  ;;  %v515_v36 = vld [vmem:[#allocation2 + $0x54] sm:$0xf]  ;;  %v11189_v37 = vld [vmem:[#allocation3 + $0x244] ss:$36 sps:$4 sm:$0xff]  }
  0x8d   : > { %v11191_v38 = vld [vmem:[#allocation3 + $0x240] ss:$36 sps:$4 sm:$0xff]   ;;  %v724_v39 = vrot.slane %v723_v24, 4  ;;  %856 = vst [vmem:[#allocation3 + $0x28c] sm:$0xf] %v719_v26  ;;  %v1270_v40 = vrot.slane %v1268_v28, 7  ;;  %3899 = vmatprep.mubr.bf16.mxu0 %v11189_v37 }
  0x8e   : > { %1059 = vst [vmem:[#allocation3 + $0x2b4] sm:$0xf] %v987_v31  ;;  %487 = vst [vmem:[#allocation3 + $0x2f4] sm:$0xf] %v459_v35  ;;  %v12130_v41 = vrot.slane %v1277_v32, 7  ;;  %v732_v43 = vrot.slane %v730_v18, 4  ;;  %3900 = vmatmul.mubr.bf16.gmra.mxu0 %v11191_v38 }
  0x8f   : > { %v12132_v42 = vld [vmem:[#allocation2 + $0x58] sm:$0xf]  ;;  %v736_v44 = vshll.u32 %v515_v36, 16  ;;  %v729_v34 = vsel %vm11830_vm7, %v724_v39, %v728_v10  ;;  %v740_v45 = vshrl.u32 %v515_v36, 16  ;;  %v887_v47 = vld [vmem:[#allocation2 + $0x54] sm:$0xf]  ;;  %v1273_v52 = vor.u32 %v1271_v29, %v1270_v40 }
  0x90   : > { %v746_v46 = vshll.u32 %v12132_v42, 16  ;;  %v988_v49 = vrot.slane %v986_v22, 4  ;;  %v11192_v50 = vld [vmem:[#allocation3 + $0x24c] ss:$36 sps:$4 sm:$0xff]   ;;  %857 = vst [vmem:[#allocation3 + $0x2b0] sm:$0xf] %v729_v34  ;;  %v1282_v55 = vor.u32 %v1280_v33, %v12130_v41  ;;  %v733_v56 = vor.u32 %v732_v43, %v728_v10 }
  0x91   : > { %v11194_v51 = vld [vmem:[#allocation3 + $0x248] ss:$36 sps:$4 sm:$0xff]   ;;  %v1275_v54 = vrot.slane %v1270_v40, 4  ;;  %v738_v48 = vrot.slane %v736_v44, 5  ;;  %v742_v57 = vrot.slane %v740_v45, 4  ;;  %v989_v60 = vrot.slane %v887_v47, 5  ;;  %4044 = vmatprep.mubr.bf16.mxu1 %v11192_v50 }
  0x92   : > { %v12138_v58 = vrot.slane %v746_v46, 5  ;;  %v888_v59 = vld [vmem:[#allocation2 + $0x58] sm:$0xf]  ;;  %v1274_v61 = vsel %vm11842_vm8, %v1266_v3, %v1273_v52  ;;  %v734_v1 = vrot.slane %v733_v56, 4  ;;  %v1089_v4 = vld [vmem:[#allocation2 + $0x54] sm:$0xf]  ;;  %4045 = vmatmul.mubr.bf16.gmra.mxu1 %v11194_v51 }
  0x93   : > { %v1283_v0 = vsel %vm11842_vm8, %v1275_v54, %v1282_v55  ;;  %v992_v2 = vrot.slane %v888_v59, 5  ;;  %v1090_v5 = vld [vmem:[#allocation2 + $0x58] sm:$0xf]  ;;  %1402 = vst [vmem:[#allocation3 + $0x294] sm:$0xf] %v1274_v61  ;;  %v743_v6 = vor.u32 %v742_v57, %v738_v48  ;;  %v990_v7 = vsel %vm11824_vm6, %v988_v49, %v989_v60  ;;  %v11216_v24 = vld [vmem:[%s15314_s1 + $0x1b0] sm:$0xff]  }
  0x94   : > { %1403 = vst [vmem:[#allocation3 + $0x2b8] sm:$0xf] %v1283_v0  ;;  %v991_v8 = vrot.slane %v989_v60, 4  ;;  %v1284_v53 = vrot.slane %v12130_v41, 4  ;;  %v739_v3 = vsel %vm11830_vm7, %v734_v1, %v738_v48  ;;  %1060 = vst [vmem:[#allocation3 + $0x2d8] sm:$0xf] %v990_v7  ;;  %10459 = vmatpush3.bf16.msra.mxu1 %v11216_v24 }
  0x95   : > { %v1286_v9 = vshrl.u32 %v1089_v4, 16  ;;  %v1289_v11 = vshll.u32 %v1089_v4, 16  ;;  %v1295_v12 = vshrl.u32 %v1090_v5, 16  ;;  %v744_v13 = vrot.slane %v743_v6, 4  ;;  %858 = vst [vmem:[#allocation3 + $0x2d4] sm:$0xf] %v739_v3 }
  0x96   : > { %v993_v14 = vsel %vm11824_vm6, %v991_v8, %v992_v2  ;;  %v1298_v15 = vshll.u32 %v1090_v5, 16  ;;  %v11199_v18 = vld [vmem:[#allocation3 + $0x288] ss:$36 sps:$4 sm:$0xff]   ;;  %v750_v20 = vshrl.u32 %v12132_v42, 16  ;;  %v460_v25 = vld [vmem:[#allocation2 + $0x58] sm:$0xf] }
  0x97   : > { %1061 = vst [vmem:[#allocation3 + $0x2fc] sm:$0xf] %v993_v14  ;;  %v1288_v16 = vrot.slane %v1286_v9, 7  ;;  %v12153_v10 = vrot.slane %v1295_v12, 7  ;;  %v11197_v17 = vld [vmem:[#allocation3 + $0x28c] ss:$36 sps:$4 sm:$0xff]   ;;  %v749_v19 = vsel %vm11830_vm7, %v744_v13, %v12138_v58 }
  0x98   : > { %859 = vst [vmem:[#allocation3 + $0x2f8] sm:$0xf] %v749_v19  ;;  %3907 = vmatprep.mubr.bf16.mxu0 %v11197_v17  ;;  %v461_v28 = vld [vmem:[#allocation2 + $0x5c] sm:$0xf]  ;;  %488 = vst [vmem:[#allocation3 + $0x318] sm:$0xf] %v460_v25 }
  0x99   : > { %v1291_v21 = vor.u32 %v1289_v11, %v1288_v16  ;;  %v1293_v22 = vrot.slane %v1288_v16, 4  ;;  %v1300_v23 = vor.u32 %v1298_v15, %v12153_v10  ;;  %3908 = vmatmul.mubr.bf16.gmra.mxu0 %v11199_v18  ;;  %489 = vst [vmem:[#allocation3 + $0x33c] sm:$0xf] %v461_v28  ;;  %v752_v31 = vrot.slane %v750_v20, 4  ;;  %v11202_v33 = vld [vmem:[#allocation3 + $0x290] ss:$36 sps:$4 sm:$0xff]  }
  0x9a   : > { %v994_v32 = vrot.slane %v992_v2, 4  ;;  %v517_v35 = vld [vmem:[#allocation2 + $0x5c] sm:$0xf]  ;;  %v518_v36 = vld [vmem:[#allocation2 + $0x60] sm:$0xf]  ;;  %v1302_v56 = vrot.slane %v12153_v10, 4 }
  0x9b   : > { %v11200_v29 = vld [vmem:[#allocation3 + $0x294] ss:$36 sps:$4 sm:$0xff]   ;;  %v1292_v30 = vsel %vm11842_vm8, %v1284_v53, %v1291_v21  ;;  %v1301_v26 = vsel %vm11842_vm8, %v1293_v22, %v1300_v23  ;;  %v753_v37 = vor.u32 %v752_v31, %v12138_v58  ;;  %v756_v38 = vshll.u32 %v517_v35, 16  ;;  %v889_v41 = vld [vmem:[#allocation2 + $0x5c] sm:$0xf]  ;;  %v11223_v11 = vld [vmem:[%s15314_s1 + $0x1e0] sm:$0xff]  }
  0x9c   : > { %1404 = vst [vmem:[#allocation3 + $0x2dc] sm:$0xf] %v1292_v30  ;;  %1405 = vst [vmem:[#allocation3 + $0x300] sm:$0xf] %v1301_v26  ;;  %4052 = vmatprep.mubr.bf16.mxu1 %v11200_v29  ;;  %v760_v39 = vshrl.u32 %v517_v35, 16  ;;  %v766_v40 = vshll.u32 %v518_v36, 16 }
  0x9d   : > { %4053 = vmatmul.mubr.bf16.gmra.mxu1 %v11202_v33  ;;  %v890_v42 = vld [vmem:[#allocation2 + $0x60] sm:$0xf]  ;;  %v754_v43 = vrot.slane %v753_v37, 4  ;;  %v758_v44 = vrot.slane %v756_v38, 5  ;;  %v1091_v46 = vld [vmem:[#allocation2 + $0x5c] sm:$0xf] }
  0x9e   : > { %v762_v34 = vrot.slane %v760_v39, 4  ;;  %v12168_v45 = vrot.slane %v766_v40, 5  ;;  %v11205_v49 = vld [vmem:[#allocation3 + $0x2d0] ss:$36 sps:$4 sm:$0xff]   ;;  %v995_v50 = vrot.slane %v889_v41, 5  ;;  %v998_v54 = vrot.slane %v890_v42, 5 }
  0x9f   : > { %v11203_v47 = vld [vmem:[#allocation3 + $0x2d4] ss:$36 sps:$4 sm:$0xff]   ;;  %v759_v51 = vsel %vm11830_vm7, %v754_v43, %v758_v44  ;;  %v1092_v55 = vld [vmem:[#allocation2 + $0x60] sm:$0xf]  ;;  %v1304_v58 = vshrl.u32 %v1091_v46, 16  ;;  %v1307_v59 = vshll.u32 %v1091_v46, 16 }
  0xa0   : > { %v763_v52 = vor.u32 %v762_v34, %v758_v44  ;;  %3915 = vmatprep.mubr.bf16.mxu0 %v11203_v47  ;;  %860 = vst [vmem:[#allocation3 + $0x31c] sm:$0xf] %v759_v51  ;;  %v996_v48 = vsel %vm11824_vm6, %v994_v32, %v995_v50  ;;  %v997_v57 = vrot.slane %v995_v50, 4  ;;  %v11221_v60 = vld [vmem:[%s15314_s1 + $0x1e8] sm:$0xff]   ;;  %v1313_v1 = vshrl.u32 %v1092_v55, 16  ;;  %v294_v15 = vld [vmem:[%s11803_s16 + $0xd0] sm:$0xff] }
  0xa1   : > { %3916 = vmatmul.mubr.bf16.gmra.mxu0 %v11205_v49  ;;  %1062 = vst [vmem:[#allocation3 + $0x320] sm:$0xf] %v996_v48  ;;  %v11208_v2 = vld [vmem:[#allocation3 + $0x2d8] ss:$36 sps:$4 sm:$0xff]   ;;  %v1306_v5 = vrot.slane %v1304_v58, 7  ;;  %v1316_v6 = vshll.u32 %v1092_v55, 16  ;;  %10460 = vmatprep.subr.bf16.mxu1 %v11221_v60 }
  0xa2   : > { %v764_v0 = vrot.slane %v763_v52, 4  ;;  %v999_v4 = vsel %vm11824_vm6, %v997_v57, %v998_v54  ;;  %v12183_v8 = vrot.slane %v1313_v1, 7  ;;  %v11222_v53 = vld [vmem:[%s15314_s1 + $0x1a8] sm:$0xff]   ;;  %v770_v13 = vshrl.u32 %v518_v36, 16  ;;  %v462_v16 = vld [vmem:[#allocation2 + $0x60] sm:$0xf] }
  0xa3   : > { %v11206_v61 = vld [vmem:[#allocation3 + $0x2dc] ss:$36 sps:$4 sm:$0xff]   ;;  %1063 = vst [vmem:[#allocation3 + $0x344] sm:$0xf] %v999_v4  ;;  %v1309_v3 = vor.u32 %v1307_v59, %v1306_v5  ;;  %v1311_v9 = vrot.slane %v1306_v5, 4  ;;  %v293_v12 = vld [vmem:[%s11803_s16 + $0xc8] sm:$0xff]  ;;  %10461 = vmatpush3.bf16.msra.mxu1 %v11222_v53 }
  0xa4   : > { %4060 = vmatprep.mubr.bf16.mxu1 %v11206_v61  ;;  %v769_v7 = vsel %vm11830_vm7, %v764_v0, %v12168_v45  ;;  %v1318_v14 = vor.u32 %v1316_v6, %v12183_v8  ;;  %v463_v10 = vld [vmem:[#allocation2 + $0x64] sm:$0xf]  ;;  %10462 = vmatprep.subr.bf16.mxu1 %v11223_v11  ;;  %v10063_v18 = vpack.c.bf16 %v294_v15, %v293_v12  ;;  %v772_v20 = vrot.slane %v770_v13, 4  ;;  %v11217_v40 = vld [vmem:[#allocation3 + $0x318] ss:$36 sps:$4 sm:$0xff]   ;;  %v11234_v46 = vld [vmem:[%s15314_s1 + $0x198] sm:$0xff]  }
  0xa5   : > { %4061 = vmatmul.mubr.bf16.gmra.mxu1 %v11208_v2  ;;  %861 = vst [vmem:[#allocation3 + $0x340] sm:$0xf] %v769_v7  ;;  %v1310_v17 = vsel %vm11842_vm8, %v1302_v56, %v1309_v3  ;;  %490 = vst [vmem:[#allocation3 + $0x360] sm:$0xf] %v462_v16  ;;  %v519_v19 = vld [vmem:[#allocation2 + $0x64] sm:$0xf] }
  0xa6   : > { %491 = vst [vmem:[#allocation3 + $0x384] sm:$0xf] %v463_v10  ;;  %v11226_v21 = vld [vmem:[%s15314_s1 + $0x1a0] sm:$0xff]   ;;  %v1319_v22 = vsel %vm11842_vm8, %v1311_v9, %v1318_v14  ;;  %1406 = vst [vmem:[#allocation3 + $0x324] sm:$0xf] %v1310_v17  ;;  %v776_v23 = vshll.u32 %v519_v19, 16  ;;  %v773_v28 = vor.u32 %v772_v20, %v12168_v45 }
  0xa7   : > { %v780_v24 = vshrl.u32 %v519_v19, 16  ;;  %v1000_v25 = vrot.slane %v998_v54, 4  ;;  %1407 = vst [vmem:[#allocation3 + $0x348] sm:$0xf] %v1319_v22  ;;  %10142 = vst [vmem:[#allocation2 + $0x68] sm:$0xff] %v10063_v18   ;;  %10463 = vmatpush3.bf16.msra.mxu1 %v11226_v21  ;;  %v11230_v37 = vld [vmem:[%s15314_s1 + $0x140] sm:$0xff]  }
  0xa8   : > { %v891_v29 = vld [vmem:[#allocation2 + $0x64] sm:$0xf]  ;;  %v778_v26 = vrot.slane %v776_v23, 5  ;;  %v774_v35 = vrot.slane %v773_v28, 4  ;;  %v1320_v43 = vrot.slane %v12183_v8, 4  ;;  %10370 = vmatprep.subr.bf16.mxu0 %v11230_v37  ;;  %v11233_v45 = vld [vmem:[%s15314_s1 + $0x1d8] sm:$0xff]  }
  0xa9   : > { %v1093_v30 = vld [vmem:[#allocation2 + $0x64] sm:$0xf]  ;;  %v782_v31 = vrot.slane %v780_v24, 4  ;;  %v1001_v32 = vrot.slane %v891_v29, 5  ;;  %10464 = vmatprep.subr.bf16.mxu1 %v11233_v45  ;;  %v11235_v0 = vld [vmem:[%s15314_s1 + $0x1d0] sm:$0xff]   ;;  %v295_v1 = vld [vmem:[%s11803_s16 + $0xd8] sm:$0xff] }
  0xaa   : > { %v1322_v33 = vshrl.u32 %v1093_v30, 16  ;;  %v1325_v36 = vshll.u32 %v1093_v30, 16  ;;  %v11232_v38 = vld [vmem:[%s15314_s1 + $0x100] sm:$0xff]   ;;  %v779_v44 = vsel %vm11830_vm7, %v774_v35, %v778_v26  ;;  %v11220_v51 = vld [vmem:[#allocation3 + $0x320] ss:$36 sps:$4 sm:$0xff]   ;;  %v9971_v8 = vpack.c.bf16 %v295_v1, %v295_v1  ;;  %v11238_v15 = vld [vmem:[%s15314_s1 + $0x190] sm:$0xff]  }
  0xab   : > { %v783_v41 = vor.u32 %v782_v31, %v778_v26  ;;  %v1002_v42 = vsel %vm11824_vm6, %v1000_v25, %v1001_v32  ;;  %862 = vst [vmem:[#allocation3 + $0x364] sm:$0xf] %v779_v44  ;;  %10371 = vmatpush3.bf16.msra.mxu0 %v11232_v38  ;;  %v1003_v47 = vrot.slane %v1001_v32, 4  ;;  %10465 = vmatpush3.bf16.msra.mxu1 %v11234_v46  ;;  %v11243_v22 = vld [vmem:[%s15314_s1 + $0x1c8] sm:$0xff]   ;;  %v11245_v31 = vld [vmem:[%s15314_s1 + $0x1c0] sm:$0xff]   ;;  %v12250_v37 = vld [vmem:[%s15314_s1 + $0x238] sm:$0xff]  }
  0xac   : > { %v11214_v39 = vld [vmem:[#allocation3 + $0x31c] ss:$36 sps:$4 sm:$0xff]   ;;  %1064 = vst [vmem:[#allocation3 + $0x368] sm:$0xf] %v1002_v42  ;;  %v1324_v34 = vrot.slane %v1322_v33, 7  ;;  %10466 = vmatprep.subr.bf16.mxu1 %v11235_v0  ;;  %v11244_v28 = vld [vmem:[%s15314_s1 + $0x188] sm:$0xff]   ;;  %11000 = vmatprep.subr.bf16.mxu0 %v12250_v37 }
  0xad   : > { %3923 = vmatprep.mubr.bf16.mxu0 %v11214_v39  ;;  %v784_v52 = vrot.slane %v783_v41, 4  ;;  %437 = vst [vmem:[#allocation2 + $0x70] sm:$0xf] %v9971_v8  ;;  %v1413_v41 = vld [vmem:[#allocation2 + $0x8] sm:$0xf]  ;;  %v11248_v42 = vld [vmem:[%s15314_s1 + $0x180] sm:$0xff]  }
  0xae   : > { %3924 = vmatmul.mubr.bf16.gmra.mxu0 %v11217_v40  ;;  %v1327_v49 = vor.u32 %v1325_v36, %v1324_v34  ;;  %v11218_v50 = vld [vmem:[#allocation3 + $0x324] ss:$36 sps:$4 sm:$0xff]   ;;  %v520_v54 = vld [vmem:[#allocation2 + $0x68] sm:$0xf]  ;;  %v1329_v61 = vrot.slane %v1324_v34, 4 }
  0xaf   : > { %v892_v55 = vld [vmem:[#allocation2 + $0x68] sm:$0xf]  ;;  %4068 = vmatprep.mubr.bf16.mxu1 %v11218_v50  ;;  %v786_v57 = vshll.u32 %v520_v54, 16  ;;  %v790_v4 = vshrl.u32 %v520_v54, 16  ;;  %v465_v53 = vld [vmem:[#allocation2 + $0x6c] sm:$0xf]  ;;  %10467 = vmatpush3.bf16.msra.mxu1 %v11238_v15 }
  0xb0   : > { %v1094_v56 = vld [vmem:[#allocation2 + $0x68] sm:$0xf]  ;;  %v1328_v48 = vsel %vm11842_vm8, %v1320_v43, %v1327_v49  ;;  %v1004_v58 = vrot.slane %v892_v55, 5  ;;  %4069 = vmatmul.mubr.bf16.gmra.mxu1 %v11220_v51  ;;  %v521_v3 = vld [vmem:[#allocation2 + $0x6c] sm:$0xf]  ;;  %10468 = vmatprep.subr.bf16.mxu1 %v11243_v22  ;;  %v15349_v15 = vmov 0 }
  0xb1   : > { %v1331_v59 = vshrl.u32 %v1094_v56, 16  ;;  %v1334_v60 = vshll.u32 %v1094_v56, 16  ;;  %1408 = vst [vmem:[#allocation3 + $0x36c] sm:$0xf] %v1328_v48  ;;  %v464_v2 = vld [vmem:[#allocation2 + $0x68] sm:$0xf] }
  0xb2   : > { %v788_v5 = vrot.slane %v786_v57, 5  ;;  %v1005_v6 = vsel %vm11824_vm6, %v1003_v47, %v1004_v58  ;;  %492 = vst [vmem:[#allocation3 + $0x3a8] sm:$0xf] %v464_v2  ;;  %493 = vst [vmem:[#allocation3 + $0x3cc] sm:$0xf] %v465_v53  ;;  %v792_v9 = vrot.slane %v790_v4, 4 }
  0xb3   : > { %v1333_v7 = vrot.slane %v1331_v59, 7  ;;  %1065 = vst [vmem:[#allocation3 + $0x38c] sm:$0xf] %v1005_v6  ;;  %v796_v11 = vshll.u32 %v521_v3, 16  ;;  %v800_v12 = vshrl.u32 %v521_v3, 16  ;;  %v1006_v10 = vrot.slane %v1004_v58, 4  ;;  %10469 = vmatpush3.bf16.msra.mxu1 %v11244_v28 }
  0xb4   : > { %v789_v13 = vsel %vm11830_vm7, %v784_v52, %v788_v5  ;;  %v893_v16 = vld [vmem:[#allocation2 + $0x6c] sm:$0xf]  ;;  %v793_v17 = vor.u32 %v792_v9, %v788_v5  ;;  %v1412_v40 = vld [vmem:[#allocation2 + $0x4] sm:$0xf]  ;;  %v522_v43 = vld [vmem:[#allocation2 + $0x70] sm:$0x1]  ;;  %10470 = vmatprep.subr.bf16.mxu1 %v11245_v31 }
  0xb5   : > { %v1336_v14 = vor.u32 %v1334_v60, %v1333_v7  ;;  %863 = vst [vmem:[#allocation3 + $0x388] sm:$0xf] %v789_v13  ;;  %v798_v18 = vrot.slane %v796_v11, 5  ;;  %v802_v19 = vrot.slane %v800_v12, 4  ;;  %v1007_v20 = vrot.slane %v893_v16, 5 }
  0xb6   : > { %v1095_v21 = vld [vmem:[#allocation2 + $0x6c] sm:$0xf]  ;;  %v794_v29 = vrot.slane %v793_v17, 4  ;;  %v1338_v32 = vrot.slane %v1333_v7, 4  ;;  %v894_v44 = vld [vmem:[#allocation2 + $0x70] sm:$0x1] }
  0xb7   : > { %v1337_v23 = vsel %vm11842_vm8, %v1329_v61, %v1336_v14  ;;  %v1340_v24 = vshrl.u32 %v1095_v21, 16  ;;  %v1343_v25 = vshll.u32 %v1095_v21, 16  ;;  %v803_v30 = vor.u32 %v802_v19, %v798_v18  ;;  %v1096_v34 = vld [vmem:[#allocation2 + $0x70] sm:$0xf]  ;;  %1440 = vst [vmem:[#allocation3 + $0x10] sm:$0xf] %v1412_v40  ;;  %10471 = vmatpush3.bf16.msra.mxu1 %v11248_v42 }
  0xb8   : > { %1409 = vst [vmem:[#allocation3 + $0x390] sm:$0xf] %v1337_v23  ;;  %v1008_v26 = vsel %vm11824_vm6, %v1006_v10, %v1007_v20  ;;  %v799_v35 = vsel %vm11830_vm7, %v794_v29, %v798_v18  ;;  %v1009_v36 = vrot.slane %v1007_v20, 4  ;;  %1441 = vst [vmem:[#allocation3 + $0x34] sm:$0xf] %v1413_v41  ;;  %v806_v47 = vshll.u32 %v522_v43, 16 }
  0xb9   : > { %1066 = vst [vmem:[#allocation3 + $0x3b0] sm:$0xf] %v1008_v26  ;;  %v1342_v33 = vrot.slane %v1340_v24, 7  ;;  %v804_v38 = vrot.slane %v803_v30, 4  ;;  %864 = vst [vmem:[#allocation3 + $0x3ac] sm:$0xf] %v799_v35 }
  0xba   : > { %v11227_v46 = vld [vmem:[#allocation3 + $0x360] ss:$36 sps:$4 sm:$0xff]   ;;  %v1010_v50 = vrot.slane %v894_v44, 5  ;;  %v1349_v52 = vshrl.u32 %v1096_v34, 16  ;;  %v1352_v54 = vshll.u32 %v1096_v34, 16  ;;  %v808_v57 = vrot.slane %v806_v47, 5 }
  0xbb   : > { %v1345_v39 = vor.u32 %v1343_v25, %v1342_v33  ;;  %v1347_v51 = vrot.slane %v1342_v33, 4  ;;  %v1468_v55 = vld [vmem:[#allocation2 + $0x4] sm:$0xf]  ;;  %v1469_v60 = vld [vmem:[#allocation2 + $0x8] sm:$0xf]  ;;  %v15350_v15 = vsel %vm12266_vm11, 4294967295, %v15349_v15 }
  0xbc   : > { %v11224_v45 = vld [vmem:[#allocation3 + $0x364] ss:$36 sps:$4 sm:$0xff]   ;;  %v1011_v58 = vsel %vm11824_vm6, %v1009_v36, %v1010_v50  ;;  %v1351_v59 = vrot.slane %v1349_v52, 7  ;;  %v1470_v61 = vld [vmem:[#allocation2 + $0xc] sm:$0xf]  ;;  %v1498_v0 = vshrl.u32 %v1468_v55, 16  ;;  %v809_v1 = vsel %vm11830_vm7, %v804_v38, %v808_v57 }
  0xbd   : > { %v1346_v49 = vsel %vm11842_vm8, %v1338_v32, %v1345_v39  ;;  %3931 = vmatprep.mubr.bf16.mxu0 %v11224_v45  ;;  %v11231_v48 = vld [vmem:[#allocation3 + $0x368] ss:$36 sps:$4 sm:$0xff]   ;;  %1067 = vst [vmem:[#allocation3 + $0x3d4] sm:$0xf] %v1011_v58  ;;  %v1501_v2 = vshll.u32 %v1468_v55, 16  ;;  %v1507_v4 = vshll.u32 %v1469_v60, 16 }
  0xbe   : > { %1410 = vst [vmem:[#allocation3 + $0x3b4] sm:$0xf] %v1346_v49  ;;  %3932 = vmatmul.mubr.bf16.gmra.mxu0 %v11227_v46  ;;  %v1511_v5 = vshrl.u32 %v1469_v60, 16  ;;  %865 = vst [vmem:[#allocation3 + $0x3d0] sm:$0xf] %v809_v1  ;;  %v1354_v6 = vor.u32 %v1352_v54, %v1351_v59  ;;  %v1500_v7 = vrot.slane %v1498_v0, 4 }
  0xbf   : > { %v11228_v56 = vld [vmem:[#allocation3 + $0x36c] ss:$36 sps:$4 sm:$0xff]   ;;  %v1517_v8 = vshll.u32 %v1470_v61, 16  ;;  %v1521_v53 = vshrl.u32 %v1470_v61, 16  ;;  %v1503_v3 = vrot.slane %v1501_v2, 5  ;;  %v1509_v9 = vrot.slane %v1507_v4, 5 }
  0xc0   : > { %4076 = vmatprep.mubr.bf16.mxu1 %v11228_v56  ;;  %v1513_v11 = vrot.slane %v1511_v5, 4  ;;  %v1355_v12 = vsel %vm11842_vm8, %v1347_v51, %v1354_v6  ;;  %v1837_v14 = vld [vmem:[#allocation2 + $0x4] sm:$0x8]  ;;  %15351 = vst [vmem:[#allocation7_spill] sm:$0xff] %v15350_v15  ;;  %v1838_v18 = vld [vmem:[#allocation2 + $0x8] sm:$0xf] }
  0xc1   : > { %4077 = vmatmul.mubr.bf16.gmra.mxu1 %v11231_v48  ;;  %v1519_v13 = vrot.slane %v1517_v8, 5  ;;  %v1523_v16 = vrot.slane %v1521_v53, 4  ;;  %1411 = vst [vmem:[#allocation3 + $0x3d8] sm:$0xf] %v1355_v12  ;;  %v1504_v10 = vor.u32 %v1503_v3, %v1500_v7  ;;  %v1839_v19 = vld [vmem:[#allocation2 + $0xc] sm:$0xf] }
  0xc2   : > { %v1514_v17 = vor.u32 %v1513_v11, %v1509_v9  ;;  %v9510_v20 = vrot.slane %v1837_v14, 11  ;;  %v1900_v21 = vrot.slane %v1838_v18, 7  ;;  %v1903_v22 = vrot.slane %v1839_v19, 7  ;;  %v2039_v23 = vld [vmem:[#allocation2 + $0x4] sm:$0x8] }
  0xc3   : > { %v2040_v24 = vld [vmem:[#allocation2 + $0x8] sm:$0xf]  ;;  %v1524_v25 = vor.u32 %v1523_v16, %v1519_v13  ;;  %v1505_v28 = vrot.slane %v1504_v10, 4  ;;  %v2041_v30 = vld [vmem:[#allocation2 + $0xc] sm:$0xf]  ;;  %v2069_v26 = vshrl.u32 %v2039_v23, 16 }
  0xc4   : > { %v1515_v29 = vrot.slane %v1514_v17, 4  ;;  %v2074_v31 = vshrl.u32 %v2040_v24, 16  ;;  %v1901_v32 = vsel %vm12266_vm11, %v9510_v20, %v1900_v21  ;;  %v1902_v33 = vrot.slane %v1900_v21, 4  ;;  %v1414_v38 = vld [vmem:[#allocation2 + $0xc] sm:$0xf]  ;;  %v11260_v10 = vld [vmem:[%s15314_s1 + $0x230] sm:$0xff]  }
  0xc5   : > { %v2077_v35 = vshll.u32 %v2040_v24, 16  ;;  %v2083_v36 = vshrl.u32 %v2041_v30, 16  ;;  %v11236_v39 = vld [vmem:[#allocation3 + $0x3ac] ss:$36 sps:$4 sm:$0xff]   ;;  %v1510_v41 = vsel %vm11830_vm7, %v1505_v28, %v1509_v9  ;;  %2011 = vst [vmem:[#allocation3 + $0x18] sm:$0xf] %v1901_v32 }
  0xc6   : > { %v11239_v40 = vld [vmem:[#allocation3 + $0x3a8] ss:$36 sps:$4 sm:$0xff]   ;;  %v1520_v42 = vsel %vm11830_vm7, %v1515_v29, %v1519_v13  ;;  %v9511_v43 = vrot.slane %v2069_v26, 11  ;;  %1442 = vst [vmem:[#allocation3 + $0x58] sm:$0xf] %v1414_v38  ;;  %v1904_v44 = vsel %vm12266_vm11, %v1902_v33, %v1903_v22  ;;  %v2076_v34 = vrot.slane %v2074_v31, 7  ;;  %3939 = vmatprep.mubr.bf16.mxu0 %v11236_v39 }
  0xc7   : > { %1809 = vst [vmem:[#allocation3 + $0x14] sm:$0xf] %v1510_v41  ;;  %1810 = vst [vmem:[#allocation3 + $0x38] sm:$0xf] %v1520_v42  ;;  %v12278_v45 = vrot.slane %v2083_v36, 7  ;;  %v2086_v46 = vshll.u32 %v2041_v30, 16  ;;  %3940 = vmatmul.mubr.bf16.gmra.mxu0 %v11239_v40 }
  0xc8   : > { %v1415_v47 = vld [vmem:[#allocation2 + $0x10] sm:$0xf]  ;;  %2012 = vst [vmem:[#allocation3 + $0x3c] sm:$0xf] %v1904_v44  ;;  %v1472_v50 = vld [vmem:[#allocation2 + $0x14] sm:$0xf]  ;;  %v2079_v56 = vor.u32 %v2077_v35, %v2076_v34 }
  0xc9   : > { %1443 = vst [vmem:[#allocation3 + $0x7c] sm:$0xf] %v1415_v47  ;;  %v1471_v49 = vld [vmem:[#allocation2 + $0x10] sm:$0xf]  ;;  %v1525_v51 = vrot.slane %v1524_v25, 4  ;;  %v1905_v52 = vrot.slane %v1903_v22, 4  ;;  %v2088_v57 = vor.u32 %v2086_v46, %v12278_v45 }
  0xca   : > { %v11240_v54 = vld [vmem:[#allocation3 + $0x3b4] ss:$36 sps:$4 sm:$0xff]   ;;  %v2081_v48 = vrot.slane %v2076_v34, 4  ;;  %v1527_v58 = vshll.u32 %v1471_v49, 16  ;;  %v1531_v59 = vshrl.u32 %v1471_v49, 16  ;;  %v1537_v60 = vshll.u32 %v1472_v50, 16 }
  0xcb   : > { %v11242_v55 = vld [vmem:[#allocation3 + $0x3b0] ss:$36 sps:$4 sm:$0xff]   ;;  %v1840_v61 = vld [vmem:[#allocation2 + $0x10] sm:$0xf]  ;;  %v2090_v0 = vrot.slane %v12278_v45, 4  ;;  %4084 = vmatprep.mubr.bf16.mxu1 %v11240_v54  ;;  %v2080_v1 = vsel %vm11842_vm8, %v9511_v43, %v2079_v56  ;;  %v1541_v7 = vshrl.u32 %v1472_v50, 16 }
  0xcc   : > { %v2089_v2 = vsel %vm11842_vm8, %v2081_v48, %v2088_v57  ;;  %v1841_v4 = vld [vmem:[#allocation2 + $0x14] sm:$0xf]  ;;  %v1906_v5 = vrot.slane %v1840_v61, 7  ;;  %v2042_v6 = vld [vmem:[#allocation2 + $0x10] sm:$0xf]  ;;  %4085 = vmatmul.mubr.bf16.gmra.mxu1 %v11242_v55  ;;  %v1529_v8 = vrot.slane %v1527_v58, 5 }
  0xcd   : > { %2352 = vst [vmem:[#allocation3 + $0x1c] sm:$0xf] %v2080_v1  ;;  %2353 = vst [vmem:[#allocation3 + $0x40] sm:$0xf] %v2089_v2  ;;  %v1533_v53 = vrot.slane %v1531_v59, 4  ;;  %v1539_v3 = vrot.slane %v1537_v60, 5 }
  0xce   : > { %v1909_v9 = vrot.slane %v1841_v4, 7  ;;  %v2043_v11 = vld [vmem:[#allocation2 + $0x14] sm:$0xf]  ;;  %v1907_v12 = vsel %vm12266_vm11, %v1905_v52, %v1906_v5  ;;  %v1908_v13 = vrot.slane %v1906_v5, 4  ;;  %v2092_v14 = vshrl.u32 %v2042_v6, 16  ;;  %v11273_v39 = vld [vmem:[%s15314_s1 + $0x228] sm:$0xff]  }
  0xcf   : > { %v2095_v16 = vshll.u32 %v2042_v6, 16  ;;  %v11246_v17 = vld [vmem:[#allocation3 + $0x14] ss:$36 sps:$4 sm:$0xff]   ;;  %v1530_v18 = vsel %vm11830_vm7, %v1525_v51, %v1529_v8  ;;  %v1534_v19 = vor.u32 %v1533_v53, %v1529_v8  ;;  %2013 = vst [vmem:[#allocation3 + $0x60] sm:$0xf] %v1907_v12  ;;  %v2101_v20 = vshrl.u32 %v2043_v11, 16 }
  0xd0   : > { %v2104_v21 = vshll.u32 %v2043_v11, 16  ;;  %v11250_v22 = vld [vmem:[#allocation3 + $0x10] ss:$36 sps:$4 sm:$0xff]   ;;  %1811 = vst [vmem:[#allocation3 + $0x5c] sm:$0xf] %v1530_v18  ;;  %v1910_v23 = vsel %vm12266_vm11, %v1908_v13, %v1909_v9  ;;  %v2094_v24 = vrot.slane %v2092_v14, 7  ;;  %4125 = vmatprep.mubr.bf16.mxu0 %v11246_v17 }
  0xd1   : > { %v1543_v25 = vrot.slane %v1541_v7, 4  ;;  %v1535_v28 = vrot.slane %v1534_v19, 4  ;;  %2014 = vst [vmem:[#allocation3 + $0x84] sm:$0xf] %v1910_v23  ;;  %v12295_v29 = vrot.slane %v2101_v20, 7  ;;  %4126 = vmatmul.mubr.bf16.vlgmr.msra.gmra.mxu0 %v11250_v22  ;;  %v1911_v38 = vrot.slane %v1909_v9, 4 }
  0xd2   : > { %v1416_v30 = vld [vmem:[#allocation2 + $0x14] sm:$0xf]  ;;  %v1417_v26 = vld [vmem:[#allocation2 + $0x18] sm:$0xf]  ;;  %v2097_v31 = vor.u32 %v2095_v16, %v2094_v24  ;;  %v2099_v32 = vrot.slane %v2094_v24, 4  ;;  %11001 = vmatpush3.bf16.msra.mxu0 %v12250_v37  ;;  %v11285_v58 = vld [vmem:[%s15314_s1 + $0x220] sm:$0xff]  }
  0xd3   : > { %1444 = vst [vmem:[#allocation3 + $0xa0] sm:$0xf] %v1416_v30  ;;  %1445 = vst [vmem:[#allocation3 + $0xc4] sm:$0xf] %v1417_v26  ;;  %v1473_v33 = vld [vmem:[#allocation2 + $0x18] sm:$0xf]  ;;  %v1544_v36 = vor.u32 %v1543_v25, %v1539_v3  ;;  %v1540_v40 = vsel %vm11830_vm7, %v1535_v28, %v1539_v3  ;;  %v2106_v41 = vor.u32 %v2104_v21, %v12295_v29  ;;  %11002 = vmatprep.subr.bf16.mxu0 %v11260_v10 }
  0xd4   : > { %v12297_v35 = vld [vmem:[#allocation2 + $0x1c] sm:$0xf]  ;;  %v1547_v42 = vshll.u32 %v1473_v33, 16  ;;  %v1551_v43 = vshrl.u32 %v1473_v33, 16  ;;  %v1842_v44 = vld [vmem:[#allocation2 + $0x18] sm:$0xf]  ;;  %v2098_v46 = vsel %vm11842_vm8, %v2090_v0, %v2097_v31 }
  0xd5   : > { %v12306_v34 = vld [vmem:[#allocation2 + $0x1c] sm:$0xf]  ;;  %v11251_v45 = vld [vmem:[#allocation3 + $0x1c] ss:$36 sps:$4 sm:$0xff]   ;;  %1812 = vst [vmem:[#allocation3 + $0x80] sm:$0xf] %v1540_v40  ;;  %v2107_v50 = vsel %vm11842_vm8, %v2099_v32, %v2106_v41 }
  0xd6   : > { %v1545_v47 = vrot.slane %v1544_v36, 4  ;;  %v1557_v49 = vshll.u32 %v12297_v35, 16  ;;  %v11253_v37 = vld [vmem:[#allocation3 + $0x18] ss:$36 sps:$4 sm:$0xff]   ;;  %2354 = vst [vmem:[#allocation3 + $0x64] sm:$0xf] %v2098_v46  ;;  %4270 = vmatprep.mubr.bf16.mxu1 %v11251_v45  ;;  %11003 = vmatpush3.bf16.msra.mxu0 %v11260_v10 }
  0xd7   : > { %v1549_v51 = vrot.slane %v1547_v42, 5  ;;  %v1553_v52 = vrot.slane %v1551_v43, 4  ;;  %v1912_v54 = vrot.slane %v1842_v44, 7  ;;  %2355 = vst [vmem:[#allocation3 + $0x88] sm:$0xf] %v2107_v50  ;;  %v1915_v56 = vrot.slane %v12306_v34, 7  ;;  %4271 = vmatmul.mubr.bf16.vlgmr.msra.gmra.mxu1 %v11253_v37  ;;  %11004 = vmatprep.subr.bf16.mxu0 %v11273_v39 }
  0xd8   : > { %v12313_v55 = vrot.slane %v1557_v49, 5  ;;  %v2044_v48 = vld [vmem:[#allocation2 + $0x18] sm:$0xf]  ;;  %v2045_v57 = vld [vmem:[#allocation2 + $0x1c] sm:$0xf]  ;;  %v2108_v4 = vrot.slane %v12295_v29, 4 }
  0xd9   : > { %v1550_v59 = vsel %vm11830_vm7, %v1545_v47, %v1549_v51  ;;  %v1554_v60 = vor.u32 %v1553_v52, %v1549_v51  ;;  %v1913_v61 = vsel %vm12266_vm11, %v1911_v38, %v1912_v54  ;;  %v1914_v0 = vrot.slane %v1912_v54, 4  ;;  %v1418_v1 = vld [vmem:[#allocation2 + $0x1c] sm:$0xf]  ;;  %v1419_v2 = vld [vmem:[#allocation2 + $0x20] sm:$0xf]  ;;  %v11306_v41 = vld [vmem:[%s15314_s1 + $0x210] sm:$0xff]  }
  0xda   : > { %1813 = vst [vmem:[#allocation3 + $0xa4] sm:$0xf] %v1550_v59  ;;  %2015 = vst [vmem:[#allocation3 + $0xa8] sm:$0xf] %v1913_v61  ;;  %v2110_v5 = vshrl.u32 %v2044_v48, 16  ;;  %v2113_v6 = vshll.u32 %v2044_v48, 16  ;;  %11005 = vmatpush3.bf16.msra.mxu0 %v11273_v39 }
  0xdb   : > { %v2119_v7 = vshrl.u32 %v2045_v57, 16  ;;  %1446 = vst [vmem:[#allocation3 + $0xe8] sm:$0xf] %v1418_v1  ;;  %1447 = vst [vmem:[#allocation3 + $0x10c] sm:$0xf] %v1419_v2  ;;  %v1555_v53 = vrot.slane %v1554_v60, 4  ;;  %v1916_v3 = vsel %vm12266_vm11, %v1914_v0, %v1915_v56  ;;  %11006 = vmatprep.subr.bf16.mxu0 %v11285_v58 }
  0xdc   : > { %v1475_v8 = vld [vmem:[#allocation2 + $0x20] sm:$0xf]  ;;  %v2122_v9 = vshll.u32 %v2045_v57, 16  ;;  %v12326_v11 = vld [vmem:[#allocation2 + $0x24] sm:$0xf]  ;;  %v1561_v12 = vshrl.u32 %v12297_v35, 16 }
  0xdd   : > { %2016 = vst [vmem:[#allocation3 + $0xcc] sm:$0xf] %v1916_v3  ;;  %v2112_v13 = vrot.slane %v2110_v5, 7  ;;  %v12329_v14 = vrot.slane %v2119_v7, 7  ;;  %v1567_v16 = vshll.u32 %v1475_v8, 16  ;;  %v1571_v10 = vshrl.u32 %v1475_v8, 16 }
  0xde   : > { %v1844_v17 = vld [vmem:[#allocation2 + $0x20] sm:$0xf]  ;;  %v11254_v18 = vld [vmem:[#allocation3 + $0x5c] ss:$36 sps:$4 sm:$0xff]   ;;  %v1560_v20 = vsel %vm11830_vm7, %v1555_v53, %v12313_v55  ;;  %v1563_v21 = vrot.slane %v1561_v12, 4  ;;  %v1577_v36 = vshll.u32 %v12326_v11, 16  ;;  %11007 = vmatpush3.bf16.msra.mxu0 %v11285_v58 }
  0xdf   : > { %v11256_v19 = vld [vmem:[#allocation3 + $0x58] ss:$36 sps:$4 sm:$0xff]   ;;  %1814 = vst [vmem:[#allocation3 + $0xc8] sm:$0xf] %v1560_v20  ;;  %v2115_v22 = vor.u32 %v2113_v6, %v2112_v13  ;;  %v2117_v23 = vrot.slane %v2112_v13, 4  ;;  %v2124_v24 = vor.u32 %v2122_v9, %v12329_v14  ;;  %v1569_v25 = vrot.slane %v1567_v16, 5  ;;  %4133 = vmatprep.mubr.bf16.mxu0 %v11254_v18 }
  0xe0   : > { %v12335_v28 = vld [vmem:[#allocation2 + $0x24] sm:$0xf]  ;;  %v11295_v29 = vld [vmem:[%s15314_s1 + $0x218] sm:$0xff]   ;;  %v1564_v31 = vor.u32 %v1563_v21, %v12313_v55  ;;  %v1573_v32 = vrot.slane %v1571_v10, 4  ;;  %4134 = vmatmul.mubr.bf16.gmra.mxu0 %v11256_v19  ;;  %v1917_v38 = vrot.slane %v1915_v56, 4  ;;  %v1918_v44 = vrot.slane %v1844_v17, 7 }
  0xe1   : > { %v11257_v30 = vld [vmem:[#allocation3 + $0x64] ss:$36 sps:$4 sm:$0xff]   ;;  %v2116_v33 = vsel %vm11842_vm8, %v2108_v4, %v2115_v22  ;;  %v2125_v35 = vsel %vm11842_vm8, %v2117_v23, %v2124_v24  ;;  %v2047_v40 = vld [vmem:[#allocation2 + $0x24] sm:$0xf]  ;;  %v1921_v34 = vrot.slane %v12335_v28, 7  ;;  %v1579_v45 = vrot.slane %v1577_v36, 5  ;;  %11008 = vmatprep.subr.bf16.mxu0 %v11295_v29 }
  0xe2   : > { %v11259_v26 = vld [vmem:[#allocation3 + $0x60] ss:$36 sps:$4 sm:$0xff]   ;;  %v2046_v39 = vld [vmem:[#allocation2 + $0x20] sm:$0xf]  ;;  %4278 = vmatprep.mubr.bf16.mxu1 %v11257_v30  ;;  %2356 = vst [vmem:[#allocation3 + $0xac] sm:$0xf] %v2116_v33  ;;  %v1574_v43 = vor.u32 %v1573_v32, %v1569_v25  ;;  %v1919_v51 = vsel %vm12266_vm11, %v1917_v38, %v1918_v44  ;;  %11009 = vmatpush3.bf16.msra.mxu0 %v11295_v29 }
  0xe3   : > { %2357 = vst [vmem:[#allocation3 + $0xd0] sm:$0xf] %v2125_v35  ;;  %v1565_v42 = vrot.slane %v1564_v31, 4  ;;  %4279 = vmatmul.mubr.bf16.gmra.mxu1 %v11259_v26  ;;  %v2126_v46 = vrot.slane %v12329_v14, 4  ;;  %v2128_v47 = vshrl.u32 %v2046_v39, 16  ;;  %v2131_v49 = vshll.u32 %v2046_v39, 16  ;;  %11010 = vmatprep.subr.bf16.mxu0 %v11306_v41 }
  0xe4   : > { %v1575_v50 = vrot.slane %v1574_v43, 4  ;;  %v1920_v52 = vrot.slane %v1918_v44, 4  ;;  %v1420_v54 = vld [vmem:[#allocation2 + $0x24] sm:$0xf]  ;;  %v1421_v55 = vld [vmem:[#allocation2 + $0x28] sm:$0xf] }
  0xe5   : > { %v1570_v37 = vsel %vm11830_vm7, %v1565_v42, %v1569_v25  ;;  %2017 = vst [vmem:[#allocation3 + $0xf0] sm:$0xf] %v1919_v51  ;;  %v2130_v56 = vrot.slane %v2128_v47, 7  ;;  %v2137_v48 = vshrl.u32 %v2047_v40, 16  ;;  %v2140_v57 = vshll.u32 %v2047_v40, 16  ;;  %v11319_v53 = vld [vmem:[%s15314_s1 + $0x208] sm:$0xff]  }
  0xe6   : > { %1815 = vst [vmem:[#allocation3 + $0xec] sm:$0xf] %v1570_v37  ;;  %1448 = vst [vmem:[#allocation3 + $0x130] sm:$0xf] %v1420_v54  ;;  %v1477_v58 = vld [vmem:[#allocation2 + $0x28] sm:$0xf]  ;;  %v1580_v0 = vsel %vm11830_vm7, %v1575_v50, %v1579_v45  ;;  %v1922_v1 = vsel %vm12266_vm11, %v1920_v52, %v1921_v34  ;;  %11011 = vmatpush3.bf16.msra.mxu0 %v11306_v41 }
  0xe7   : > { %1449 = vst [vmem:[#allocation3 + $0x154] sm:$0xf] %v1421_v55  ;;  %v1581_v59 = vshrl.u32 %v12326_v11, 16  ;;  %v11261_v60 = vld [vmem:[#allocation3 + $0xa4] ss:$36 sps:$4 sm:$0xff]   ;;  %v1587_v2 = vshll.u32 %v1477_v58, 16  ;;  %v2133_v4 = vor.u32 %v2131_v49, %v2130_v56  ;;  %11012 = vmatprep.subr.bf16.mxu0 %v11319_v53 }
  0xe8   : > { %v11263_v61 = vld [vmem:[#allocation3 + $0xa0] ss:$36 sps:$4 sm:$0xff]   ;;  %1816 = vst [vmem:[#allocation3 + $0x110] sm:$0xf] %v1580_v0  ;;  %2018 = vst [vmem:[#allocation3 + $0x114] sm:$0xf] %v1922_v1  ;;  %4141 = vmatprep.mubr.bf16.mxu0 %v11261_v60 }
  0xe9   : > { %v2135_v5 = vrot.slane %v2130_v56, 4  ;;  %v12360_v6 = vrot.slane %v2137_v48, 7  ;;  %v12362_v7 = vld [vmem:[#allocation2 + $0x2c] sm:$0xf]  ;;  %v1583_v8 = vrot.slane %v1581_v59, 4  ;;  %v1589_v3 = vrot.slane %v1587_v2, 5  ;;  %4142 = vmatmul.mubr.bf16.gmra.mxu0 %v11263_v61 }
  0xea   : > { %v1591_v9 = vshrl.u32 %v1477_v58, 16  ;;  %v1597_v11 = vshll.u32 %v12362_v7, 16  ;;  %v1846_v12 = vld [vmem:[#allocation2 + $0x28] sm:$0xf]  ;;  %v1923_v13 = vrot.slane %v1921_v34, 4  ;;  %v2134_v16 = vsel %vm11842_vm8, %v2126_v46, %v2133_v4  ;;  %v11331_v19 = vld [vmem:[%s15314_s1 + $0x200] sm:$0xff]   ;;  %11013 = vmatpush3.bf16.msra.mxu0 %v11319_v53 }
  0xeb   : > { %v11264_v14 = vld [vmem:[#allocation3 + $0xac] ss:$36 sps:$4 sm:$0xff]   ;;  %v2142_v10 = vor.u32 %v2140_v57, %v12360_v6  ;;  %v1584_v17 = vor.u32 %v1583_v8, %v1579_v45  ;;  %v1924_v18 = vrot.slane %v1846_v12, 7  ;;  %2358 = vst [vmem:[#allocation3 + $0xf4] sm:$0xf] %v2134_v16  ;;  %v2144_v33 = vrot.slane %v12360_v6, 4  ;;  %11014 = vmatprep.subr.bf16.mxu0 %v11331_v19 }
  0xec   : > { %v11266_v20 = vld [vmem:[#allocation3 + $0xa8] ss:$36 sps:$4 sm:$0xff]   ;;  %v1593_v21 = vrot.slane %v1591_v9, 4  ;;  %v12374_v22 = vrot.slane %v1597_v11, 5  ;;  %v1847_v23 = vld [vmem:[#allocation2 + $0x2c] sm:$0xf]  ;;  %4286 = vmatprep.mubr.bf16.mxu1 %v11264_v14 }
  0xed   : > { %v2143_v24 = vsel %vm11842_vm8, %v2135_v5, %v2142_v10  ;;  %v1585_v25 = vrot.slane %v1584_v17, 4  ;;  %v1925_v28 = vsel %vm12266_vm11, %v1923_v13, %v1924_v18  ;;  %v1926_v29 = vrot.slane %v1924_v18, 4  ;;  %v2048_v30 = vld [vmem:[#allocation2 + $0x28] sm:$0xf]  ;;  %v2049_v26 = vld [vmem:[#allocation2 + $0x2c] sm:$0xf]  ;;  %4287 = vmatmul.mubr.bf16.gmra.mxu1 %v11266_v20 }
  0xee   : > { %2359 = vst [vmem:[#allocation3 + $0x118] sm:$0xf] %v2143_v24  ;;  %v1594_v31 = vor.u32 %v1593_v21, %v1589_v3  ;;  %v1927_v32 = vrot.slane %v1847_v23, 7  ;;  %2019 = vst [vmem:[#allocation3 + $0x138] sm:$0xf] %v1925_v28  ;;  %v2146_v35 = vshrl.u32 %v2048_v30, 16  ;;  %11015 = vmatpush3.bf16.msra.mxu0 %v11331_v19 }
  0xef   : > { %v1422_v36 = vld [vmem:[#allocation2 + $0x2c] sm:$0xf]  ;;  %v1590_v38 = vsel %vm11830_vm7, %v1585_v25, %v1589_v3  ;;  %v2149_v39 = vshll.u32 %v2048_v30, 16  ;;  %v2155_v40 = vshrl.u32 %v2049_v26, 16  ;;  %v2158_v41 = vshll.u32 %v2049_v26, 16 }
  0xf0   : > { %v1423_v42 = vld [vmem:[#allocation2 + $0x30] sm:$0xf]  ;;  %1450 = vst [vmem:[#allocation3 + $0x178] sm:$0xf] %v1422_v36  ;;  %v11267_v43 = vld [vmem:[#allocation3 + $0xec] ss:$36 sps:$4 sm:$0xff]   ;;  %v1928_v45 = vsel %vm12266_vm11, %v1926_v29, %v1927_v32 }
  0xf1   : > { %v11269_v44 = vld [vmem:[#allocation3 + $0xe8] ss:$36 sps:$4 sm:$0xff]   ;;  %v1595_v34 = vrot.slane %v1594_v31, 4  ;;  %1817 = vst [vmem:[#allocation3 + $0x134] sm:$0xf] %v1590_v38  ;;  %v2148_v46 = vrot.slane %v2146_v35, 7  ;;  %4149 = vmatprep.mubr.bf16.mxu0 %v11267_v43 }
  0xf2   : > { %1451 = vst [vmem:[#allocation3 + $0x19c] sm:$0xf] %v1423_v42  ;;  %2020 = vst [vmem:[#allocation3 + $0x15c] sm:$0xf] %v1928_v45  ;;  %v12385_v47 = vrot.slane %v2155_v40, 7  ;;  %v1601_v51 = vshrl.u32 %v12362_v7, 16  ;;  %4150 = vmatmul.mubr.bf16.gmra.mxu0 %v11269_v44 }
  0xf3   : > { %v1479_v49 = vld [vmem:[#allocation2 + $0x30] sm:$0xf]  ;;  %v12387_v37 = vld [vmem:[#allocation2 + $0x34] sm:$0xf]  ;;  %v1600_v50 = vsel %vm11830_vm7, %v1595_v34, %v12374_v22  ;;  %v2151_v56 = vor.u32 %v2149_v39, %v2148_v46  ;;  %v2153_v48 = vrot.slane %v2148_v46, 4  ;;  %v1929_v1 = vrot.slane %v1927_v32, 4 }
  0xf4   : > { %v1607_v52 = vshll.u32 %v1479_v49, 16  ;;  %v1611_v54 = vshrl.u32 %v1479_v49, 16  ;;  %v1848_v55 = vld [vmem:[#allocation2 + $0x30] sm:$0xf]  ;;  %1818 = vst [vmem:[#allocation3 + $0x158] sm:$0xf] %v1600_v50  ;;  %v2160_v57 = vor.u32 %v2158_v41, %v12385_v47 }
  0xf5   : > { %v1617_v58 = vshll.u32 %v12387_v37, 16  ;;  %v1849_v59 = vld [vmem:[#allocation2 + $0x34] sm:$0xf]  ;;  %v1603_v60 = vrot.slane %v1601_v51, 4  ;;  %v2050_v2 = vld [vmem:[#allocation2 + $0x30] sm:$0xf]  ;;  %v2152_v6 = vsel %vm11842_vm8, %v2144_v33, %v2151_v56 }
  0xf6   : > { %v1609_v61 = vrot.slane %v1607_v52, 5  ;;  %v1613_v0 = vrot.slane %v1611_v54, 4  ;;  %v11270_v4 = vld [vmem:[#allocation3 + $0xf4] ss:$36 sps:$4 sm:$0xff]   ;;  %v2161_v7 = vsel %vm11842_vm8, %v2153_v48, %v2160_v57  ;;  %2360 = vst [vmem:[#allocation3 + $0x13c] sm:$0xf] %v2152_v6 }
  0xf7   : > { %v11272_v5 = vld [vmem:[#allocation3 + $0xf0] ss:$36 sps:$4 sm:$0xff]   ;;  %v1619_v8 = vrot.slane %v1617_v58, 5  ;;  %2361 = vst [vmem:[#allocation3 + $0x160] sm:$0xf] %v2161_v7  ;;  %v1604_v53 = vor.u32 %v1603_v60, %v12374_v22  ;;  %v1930_v9 = vrot.slane %v1848_v55, 7  ;;  %4294 = vmatprep.mubr.bf16.mxu1 %v11270_v4 }
  0xf8   : > { %v1614_v3 = vor.u32 %v1613_v0, %v1609_v61  ;;  %v1933_v11 = vrot.slane %v1849_v59, 7  ;;  %v2051_v12 = vld [vmem:[#allocation2 + $0x34] sm:$0xf]  ;;  %v2162_v13 = vrot.slane %v12385_v47, 4  ;;  %v2164_v14 = vshrl.u32 %v2050_v2, 16  ;;  %4295 = vmatmul.mubr.bf16.gmra.mxu1 %v11272_v5 }
  0xf9   : > { %v2167_v16 = vshll.u32 %v2050_v2, 16  ;;  %v2173_v10 = vshrl.u32 %v2051_v12, 16  ;;  %v1605_v17 = vrot.slane %v1604_v53, 4  ;;  %v1931_v19 = vsel %vm12266_vm11, %v1929_v1, %v1930_v9  ;;  %v1424_v24 = vld [vmem:[#allocation2 + $0x34] sm:$0xf] }
  0xfa   : > { %v1615_v18 = vrot.slane %v1614_v3, 4  ;;  %v1932_v20 = vrot.slane %v1930_v9, 4  ;;  %2021 = vst [vmem:[#allocation3 + $0x180] sm:$0xf] %v1931_v19  ;;  %v2166_v21 = vrot.slane %v2164_v14, 7  ;;  %v2176_v23 = vshll.u32 %v2051_v12, 16 }
  0xfb   : > { %v12403_v22 = vrot.slane %v2173_v10, 7  ;;  %v1621_v25 = vshrl.u32 %v12387_v37, 16  ;;  %v11274_v28 = vld [vmem:[#allocation3 + $0x134] ss:$36 sps:$4 sm:$0xff]   ;;  %v1610_v30 = vsel %vm11830_vm7, %v1605_v17, %v1609_v61  ;;  %1452 = vst [vmem:[#allocation3 + $0x1c0] sm:$0xf] %v1424_v24 }
  0xfc   : > { %v11276_v29 = vld [vmem:[#allocation3 + $0x130] ss:$36 sps:$4 sm:$0xff]   ;;  %v1620_v26 = vsel %vm11830_vm7, %v1615_v18, %v1619_v8  ;;  %v1934_v31 = vsel %vm12266_vm11, %v1932_v20, %v1933_v11  ;;  %v1935_v32 = vrot.slane %v1933_v11, 4  ;;  %1819 = vst [vmem:[#allocation3 + $0x17c] sm:$0xf] %v1610_v30  ;;  %v2169_v33 = vor.u32 %v2167_v16, %v2166_v21  ;;  %4157 = vmatprep.mubr.bf16.mxu0 %v11274_v28 }
  0xfd   : > { %1820 = vst [vmem:[#allocation3 + $0x1a0] sm:$0xf] %v1620_v26  ;;  %2022 = vst [vmem:[#allocation3 + $0x1a4] sm:$0xf] %v1934_v31  ;;  %v2171_v35 = vrot.slane %v2166_v21, 4  ;;  %v2178_v36 = vor.u32 %v2176_v23, %v12403_v22  ;;  %v1623_v40 = vrot.slane %v1621_v25, 4  ;;  %4158 = vmatmul.mubr.bf16.gmra.mxu0 %v11276_v29 }
  0xfe   : > { %v1425_v38 = vld [vmem:[#allocation2 + $0x38] sm:$0xf]  ;;  %v1482_v41 = vld [vmem:[#allocation2 + $0x3c] sm:$0xf]  ;;  %v2170_v45 = vsel %vm11842_vm8, %v2162_v13, %v2169_v33  ;;  %v11279_v37 = vld [vmem:[#allocation3 + $0x138] ss:$36 sps:$4 sm:$0xff]  }
  0xff   : > { %v1481_v39 = vld [vmem:[#allocation2 + $0x38] sm:$0xf]  ;;  %1453 = vst [vmem:[#allocation3 + $0x1e4] sm:$0xf] %v1425_v38  ;;  %v2179_v46 = vsel %vm11842_vm8, %v2171_v35, %v2178_v36  ;;  %v1624_v47 = vor.u32 %v1623_v40, %v1619_v8  ;;  %v1637_v49 = vshll.u32 %v1482_v41, 16  ;;  %v2180_v60 = vrot.slane %v12403_v22, 4 }
 0x100   : > { %v1627_v42 = vshll.u32 %v1481_v39, 16  ;;  %v1631_v43 = vshrl.u32 %v1481_v39, 16  ;;  %v1850_v44 = vld [vmem:[#allocation2 + $0x38] sm:$0xf]  ;;  %2362 = vst [vmem:[#allocation3 + $0x184] sm:$0xf] %v2170_v45  ;;  %v10172_v45 = vpop.f32.mrf.mxu0 }
 0x101   : > { %v11277_v34 = vld [vmem:[#allocation3 + $0x13c] ss:$36 sps:$4 sm:$0xff]   ;;  %2363 = vst [vmem:[#allocation3 + $0x1a8] sm:$0xf] %v2179_v46  ;;  %v1851_v52 = vld [vmem:[#allocation2 + $0x3c] sm:$0xf] }
 0x102   : > { %v1629_v50 = vrot.slane %v1627_v42, 5  ;;  %v1633_v51 = vrot.slane %v1631_v43, 4  ;;  %4302 = vmatprep.mubr.bf16.mxu1 %v11277_v34  ;;  %v1625_v54 = vrot.slane %v1624_v47, 4  ;;  %v12417_v55 = vrot.slane %v1637_v49, 5  ;;  %v2052_v57 = vld [vmem:[#allocation2 + $0x38] sm:$0xf] }
 0x103   : > { %v1936_v56 = vrot.slane %v1850_v44, 7  ;;  %v1939_v48 = vrot.slane %v1851_v52, 7  ;;  %4303 = vmatmul.mubr.bf16.gmra.mxu1 %v11279_v37  ;;  %v2053_v59 = vld [vmem:[#allocation2 + $0x3c] sm:$0xf]  ;;  %v2182_v61 = vshrl.u32 %v2052_v57, 16  ;;  %v2185_v0 = vshll.u32 %v2052_v57, 16  ;;  %v10173_v57 = vpop.f32.mrf.mxu0 }
 0x104   : > { %v1634_v58 = vor.u32 %v1633_v51, %v1629_v50  ;;  %v1630_v1 = vsel %vm11830_vm7, %v1625_v54, %v1629_v50  ;;  %v2191_v5 = vshrl.u32 %v2053_v59, 16  ;;  %v1426_v6 = vld [vmem:[#allocation2 + $0x3c] sm:$0xf]  ;;  %v1427_v7 = vld [vmem:[#allocation2 + $0x40] sm:$0xf]  ;;  %v2194_v13 = vshll.u32 %v2053_v59, 16 }
 0x105   : > { %v1937_v2 = vsel %vm12266_vm11, %v1935_v32, %v1936_v56  ;;  %v1938_v4 = vrot.slane %v1936_v56, 4  ;;  %v11280_v8 = vld [vmem:[#allocation3 + $0x17c] ss:$36 sps:$4 sm:$0xff]   ;;  %1821 = vst [vmem:[#allocation3 + $0x1c4] sm:$0xf] %v1630_v1  ;;  %v2184_v3 = vrot.slane %v2182_v61, 7  ;;  %v12453_v1 = vadd.f32 %v10173_v57, %v10172_v45 }
 0x106   : > { %v1635_v53 = vrot.slane %v1634_v58, 4  ;;  %2023 = vst [vmem:[#allocation3 + $0x1c8] sm:$0xf] %v1937_v2  ;;  %1454 = vst [vmem:[#allocation3 + $0x208] sm:$0xf] %v1426_v6  ;;  %v12426_v12 = vrot.slane %v2191_v5, 7  ;;  %4165 = vmatprep.mubr.bf16.mxu0 %v11280_v8  ;;  %v10272_v2 = vpop.f32.mrf.mxu1 }
 0x107   : > { %1455 = vst [vmem:[#allocation3 + $0x22c] sm:$0xf] %v1427_v7  ;;  %v11282_v9 = vld [vmem:[#allocation3 + $0x178] ss:$36 sps:$4 sm:$0xff]   ;;  %v1940_v11 = vsel %vm12266_vm11, %v1938_v4, %v1939_v48  ;;  %v1483_v14 = vld [vmem:[#allocation2 + $0x40] sm:$0xf]  ;;  %v2187_v10 = vor.u32 %v2185_v0, %v2184_v3 }
 0x108   : > { %v1640_v16 = vsel %vm11830_vm7, %v1635_v53, %v12417_v55  ;;  %2024 = vst [vmem:[#allocation3 + $0x1ec] sm:$0xf] %v1940_v11  ;;  %v2189_v17 = vrot.slane %v2184_v3, 4  ;;  %v12431_v18 = vld [vmem:[#allocation2 + $0x44] sm:$0xf]  ;;  %v1641_v19 = vshrl.u32 %v1482_v41, 16  ;;  %4166 = vmatmul.mubr.bf16.gmra.mxu0 %v11282_v9  ;;  %v2196_v21 = vor.u32 %v2194_v13, %v12426_v12  ;;  %v12462_v3 = vpop.f32.mrf.mxu0 }
 0x109   : > { %v11283_v20 = vld [vmem:[#allocation3 + $0x184] ss:$36 sps:$4 sm:$0xff]   ;;  %1822 = vst [vmem:[#allocation3 + $0x1e8] sm:$0xf] %v1640_v16  ;;  %v1647_v22 = vshll.u32 %v1483_v14, 16  ;;  %v1651_v23 = vshrl.u32 %v1483_v14, 16  ;;  %v2188_v25 = vsel %vm11842_vm8, %v2180_v60, %v2187_v10  ;;  %v10273_v14 = vpop.f32.mrf.mxu1 }
 0x10a   : > { %v11286_v24 = vld [vmem:[#allocation3 + $0x180] ss:$36 sps:$4 sm:$0xff]   ;;  %v1643_v28 = vrot.slane %v1641_v19, 4  ;;  %v1657_v29 = vshll.u32 %v12431_v18, 16  ;;  %4310 = vmatprep.mubr.bf16.mxu1 %v11283_v20  ;;  %v2197_v30 = vsel %vm11842_vm8, %v2189_v17, %v2196_v21  ;;  %2364 = vst [vmem:[#allocation3 + $0x1cc] sm:$0xf] %v2188_v25  ;;  %v12471_v21 = vadd.f32 %v10273_v14, %v10272_v2 }
 0x10b   : > { %v1649_v26 = vrot.slane %v1647_v22, 5  ;;  %v1653_v31 = vrot.slane %v1651_v23, 4  ;;  %v1852_v32 = vld [vmem:[#allocation2 + $0x40] sm:$0xf]  ;;  %v1853_v33 = vld [vmem:[#allocation2 + $0x44] sm:$0xf]  ;;  %4311 = vmatmul.mubr.bf16.gmra.mxu1 %v11286_v24  ;;  %v12473_v22 = vpop.f32.mrf.mxu0 }
 0x10c   : > { %2365 = vst [vmem:[#allocation3 + $0x1f0] sm:$0xf] %v2197_v30  ;;  %v1644_v35 = vor.u32 %v1643_v28, %v12417_v55  ;;  %v12440_v36 = vrot.slane %v1657_v29, 5  ;;  %v1941_v38 = vrot.slane %v1939_v48, 4  ;;  %v1942_v39 = vrot.slane %v1852_v32, 7  ;;  %v261_v51 = vld [vmem:[%s15318_s5] sm:$0xff]  ;;  %v12478_v30 = vpop.f32.mrf.mxu1 }
 0x10d   : > { %v2054_v40 = vld [vmem:[#allocation2 + $0x40] sm:$0xf]  ;;  %v1654_v41 = vor.u32 %v1653_v31, %v1649_v26  ;;  %v1945_v42 = vrot.slane %v1853_v33, 7  ;;  %v2055_v43 = vld [vmem:[#allocation2 + $0x44] sm:$0xf]  ;;  %v2198_v44 = vrot.slane %v12426_v12, 4  ;;  %4530 = vperm.xlu0 %11098, %v261_v51  }
 0x10e   : > { %v2200_v34 = vshrl.u32 %v2054_v40, 16  ;;  %v1645_v46 = vrot.slane %v1644_v35, 4  ;;  %v1943_v47 = vsel %vm12266_vm11, %v1941_v38, %v1942_v39  ;;  %v1944_v49 = vrot.slane %v1942_v39, 4  ;;  %v1428_v50 = vld [vmem:[#allocation2 + $0x44] sm:$0xf]  ;;  %v262_v16 = vld [vmem:[%s15318_s5 + $0x8] sm:$0xff]  ;;  %v10178_v38 = vpop.f32.mrf.mxu0 }
 0x10f   : > { %v2203_v37 = vshll.u32 %v2054_v40, 16  ;;  %v1655_v52 = vrot.slane %v1654_v41, 4  ;;  %2025 = vst [vmem:[#allocation3 + $0x210] sm:$0xf] %v1943_v47  ;;  %v2209_v55 = vshrl.u32 %v2055_v43, 16  ;;  %v2212_v56 = vshll.u32 %v2055_v43, 16 }
 0x110   : > { %v2202_v54 = vrot.slane %v2200_v34, 7  ;;  %v1429_v48 = vld [vmem:[#allocation2 + $0x48] sm:$0xf]  ;;  %1456 = vst [vmem:[#allocation3 + $0x250] sm:$0xf] %v1428_v50  ;;  %v1650_v60 = vsel %vm11830_vm7, %v1645_v46, %v1649_v26  ;;  %v1946_v61 = vsel %vm12266_vm11, %v1944_v49, %v1945_v42  ;;  %v1661_v0 = vshrl.u32 %v12431_v18, 16 }
 0x111   : > { %v11287_v58 = vld [vmem:[#allocation3 + $0x1c4] ss:$36 sps:$4 sm:$0xff]   ;;  %1457 = vst [vmem:[#allocation3 + $0x274] sm:$0xf] %v1429_v48  ;;  %v1660_v4 = vsel %vm11830_vm7, %v1655_v52, %v12440_v36  ;;  %1823 = vst [vmem:[#allocation3 + $0x20c] sm:$0xf] %v1650_v60  ;;  %4535 = vperm.xlu0 %11098, %v262_v16  }
 0x112   : > { %v11289_v59 = vld [vmem:[#allocation3 + $0x1c0] ss:$36 sps:$4 sm:$0xff]   ;;  %2026 = vst [vmem:[#allocation3 + $0x234] sm:$0xf] %v1946_v61  ;;  %v2205_v5 = vor.u32 %v2203_v37, %v2202_v54  ;;  %v2207_v6 = vrot.slane %v2202_v54, 4  ;;  %v12458_v7 = vrot.slane %v2209_v55, 7  ;;  %4173 = vmatprep.mubr.bf16.mxu0 %v11287_v58  ;;  %v10179_v37 = vpop.f32.mrf.mxu0 }
 0x113   : > { %v1485_v8 = vld [vmem:[#allocation2 + $0x48] sm:$0xf]  ;;  %v12460_v53 = vld [vmem:[#allocation2 + $0x4c] sm:$0xf]  ;;  %1824 = vst [vmem:[#allocation3 + $0x230] sm:$0xf] %v1660_v4  ;;  %4174 = vmatmul.mubr.bf16.gmra.mxu0 %v11289_v59  ;;  %v12502_v60 = vadd.f32 %v10179_v37, %v10178_v38 }
 0x114   : > { %v1663_v9 = vrot.slane %v1661_v0, 4  ;;  %v1667_v11 = vshll.u32 %v1485_v8, 16  ;;  %v1671_v12 = vshrl.u32 %v1485_v8, 16  ;;  %v1677_v13 = vshll.u32 %v12460_v53, 16  ;;  %v11290_v10 = vld [vmem:[#allocation3 + $0x1cc] ss:$36 sps:$4 sm:$0xff]   ;;  %v10181_v61 = vpop.f32.mrf.mxu0 }
 0x115   : > { %v11292_v17 = vld [vmem:[#allocation3 + $0x1c8] ss:$36 sps:$4 sm:$0xff]   ;;  %v2206_v18 = vsel %vm11842_vm8, %v2198_v44, %v2205_v5  ;;  %v2214_v19 = vor.u32 %v2212_v56, %v12458_v7  ;;  %v1947_v20 = vrot.slane %v1945_v42, 4  ;;  %v1854_v29 = vld [vmem:[#allocation2 + $0x48] sm:$0xf]  ;;  %v263_v26 = vld [vmem:[%s15318_s5 + $0x10] sm:$0xff]  ;;  %4318 = vmatprep.mubr.bf16.mxu1 %v11290_v10  ;;  %v12486_v44 = vpop.f32.mrf.mxu1 }
 0x116   : > { %2366 = vst [vmem:[#allocation3 + $0x214] sm:$0xf] %v2206_v18  ;;  %v1664_v23 = vor.u32 %v1663_v9, %v12440_v36  ;;  %v1669_v24 = vrot.slane %v1667_v11, 5  ;;  %v1673_v25 = vrot.slane %v1671_v12, 4  ;;  %v12476_v28 = vrot.slane %v1677_v13, 5  ;;  %4540 = vperm.xlu1 %11099, %v263_v26   ;;  %4319 = vmatmul.mubr.bf16.gmra.mxu1 %v11292_v17  ;;  %v265_v34 = vld [vmem:[%s15318_s5 + $0x20] sm:$0xff] }
 0x117   : > { %v2215_v31 = vsel %vm11842_vm8, %v2207_v6, %v2214_v19  ;;  %v1855_v32 = vld [vmem:[#allocation2 + $0x4c] sm:$0xf]  ;;  %v1948_v33 = vrot.slane %v1854_v29, 7  ;;  %v2056_v35 = vld [vmem:[#allocation2 + $0x48] sm:$0xf]  ;;  %v2216_v36 = vrot.slane %v12458_v7, 4  ;;  %4550 = vperm.xlu0 %11098, %v265_v34   ;;  %v10278_v56 = vpop.f32.mrf.mxu1  ;;  %v10182_v19 = vpop.f32.mrf.mxu0 }
 0x118   : > { %2367 = vst [vmem:[#allocation3 + $0x238] sm:$0xf] %v2215_v31  ;;  %v1665_v39 = vrot.slane %v1664_v23, 4  ;;  %v1674_v40 = vor.u32 %v1673_v25, %v1669_v24  ;;  %v1951_v41 = vrot.slane %v1855_v32, 7  ;;  %v2057_v42 = vld [vmem:[#allocation2 + $0x4c] sm:$0xf]  ;;  %v12523_v31 = vadd.f32 %v12473_v22, %v12462_v3 }
 0x119   : > { %v2218_v43 = vshrl.u32 %v2056_v35, 16  ;;  %v1949_v45 = vsel %vm12266_vm11, %v1947_v20, %v1948_v33  ;;  %v1950_v46 = vrot.slane %v1948_v33, 4  ;;  %v2221_v47 = vshll.u32 %v2056_v35, 16  ;;  %v264_v50 = vld [vmem:[%s15318_s5 + $0x18] sm:$0xff]  ;;  %v11296_v57 = vld [vmem:[#allocation3 + $0x208] ss:$36 sps:$4 sm:$0xff]   ;;  %v10279_v8 = vpop.f32.mrf.mxu1  ;;  %v10184_v37 = vpop.f32.mrf.mxu0 }
 0x11a   : > { %v2227_v49 = vshrl.u32 %v2057_v42, 16  ;;  %v1670_v51 = vsel %vm11830_vm7, %v1665_v39, %v1669_v24  ;;  %v1675_v52 = vrot.slane %v1674_v40, 4  ;;  %2027 = vst [vmem:[#allocation3 + $0x258] sm:$0xf] %v1949_v45  ;;  %v2230_v55 = vshll.u32 %v2057_v42, 16  ;;  %4545 = vperm.xlu1 %11099, %v264_v50   ;;  %v267_v23 = vld [vmem:[%s15318_s5 + $0x30] sm:$0xff] }
 0x11b   : > { %v2220_v54 = vrot.slane %v2218_v43, 7  ;;  %v11293_v48 = vld [vmem:[#allocation3 + $0x20c] ss:$36 sps:$4 sm:$0xff]   ;;  %1825 = vst [vmem:[#allocation3 + $0x254] sm:$0xf] %v1670_v51  ;;  %v1952_v58 = vsel %vm12266_vm11, %v1950_v46, %v1951_v41  ;;  %v1681_v7 = vshrl.u32 %v12460_v53, 16  ;;  %v12511_v14 = vadd.f32 %v10279_v8, %v10278_v56  ;;  %v10281_v20 = vpop.f32.mrf.mxu1  ;;  %4560 = vperm.xlu0 %11098, %v267_v23  }
 0x11c   : > { %v12500_v59 = vrot.slane %v2227_v49, 7  ;;  %v1680_v0 = vsel %vm11830_vm7, %v1675_v52, %v12476_v28  ;;  %2028 = vst [vmem:[#allocation3 + $0x27c] sm:$0xf] %v1952_v58  ;;  %v1430_v5 = vld [vmem:[#allocation2 + $0x4c] sm:$0xf]  ;;  %4181 = vmatprep.mubr.bf16.mxu0 %v11293_v48  ;;  %v1953_v13 = vrot.slane %v1951_v41, 4  ;;  %v12533_v3 = vadd.f32 %v12486_v44, %v12478_v30 }
 0x11d   : > { %v2223_v2 = vor.u32 %v2221_v47, %v2220_v54  ;;  %v2225_v4 = vrot.slane %v2220_v54, 4  ;;  %v1431_v6 = vld [vmem:[#allocation2 + $0x50] sm:$0xf]  ;;  %1826 = vst [vmem:[#allocation3 + $0x278] sm:$0xf] %v1680_v0  ;;  %4182 = vmatmul.mubr.bf16.gmra.mxu0 %v11296_v57  ;;  %v1683_v10 = vrot.slane %v1681_v7, 4  ;;  %v12535_v22 = vadd.f32 %v10182_v19, %v10181_v61  ;;  %v10185_v61 = vpop.f32.mrf.mxu0 }
 0x11e   : > { %v2232_v9 = vor.u32 %v2230_v55, %v12500_v59  ;;  %1458 = vst [vmem:[#allocation3 + $0x298] sm:$0xf] %v1430_v5  ;;  %1459 = vst [vmem:[#allocation3 + $0x2bc] sm:$0xf] %v1431_v6  ;;  %v1487_v11 = vld [vmem:[#allocation2 + $0x50] sm:$0xf]  ;;  %v12559_v19 = vadd.f32 %v10185_v61, %v10184_v37 }
 0x11f   : > { %v12509_v12 = vld [vmem:[#allocation2 + $0x54] sm:$0xf]  ;;  %v2224_v16 = vsel %vm11842_vm8, %v2216_v36, %v2223_v2  ;;  %v1687_v17 = vshll.u32 %v1487_v11, 16  ;;  %v1691_v53 = vshrl.u32 %v1487_v11, 16  ;;  %v1856_v18 = vld [vmem:[#allocation2 + $0x50] sm:$0xf]  ;;  %v1684_v32 = vor.u32 %v1683_v10, %v12476_v28  ;;  %v10282_v28 = vpop.f32.mrf.mxu1 }
 0x120   : > { %v11297_v24 = vld [vmem:[#allocation3 + $0x214] ss:$36 sps:$4 sm:$0xff]   ;;  %v2233_v29 = vsel %vm11842_vm8, %v2225_v4, %v2232_v9  ;;  %2368 = vst [vmem:[#allocation3 + $0x25c] sm:$0xf] %v2224_v16  ;;  %v1697_v26 = vshll.u32 %v12509_v12, 16  ;;  %v1954_v38 = vrot.slane %v1856_v18, 7  ;;  %v12544_v58 = vadd.f32 %v10282_v28, %v10281_v20  ;;  %v12556_v16 = vpop.f32.mrf.mxu0 }
 0x121   : > { %v11299_v25 = vld [vmem:[#allocation3 + $0x210] ss:$36 sps:$4 sm:$0xff]   ;;  %2369 = vst [vmem:[#allocation3 + $0x280] sm:$0xf] %v2233_v29  ;;  %v1689_v33 = vrot.slane %v1687_v17, 5  ;;  %v1693_v35 = vrot.slane %v1691_v53, 4  ;;  %4326 = vmatprep.mubr.bf16.mxu1 %v11297_v24 }
 0x122   : > { %v1857_v36 = vld [vmem:[#allocation2 + $0x54] sm:$0xf]  ;;  %v266_v39 = vld [vmem:[%s15318_s5 + $0x28] sm:$0xff]  ;;  %v12529_v40 = vrot.slane %v1697_v26, 5  ;;  %v2058_v42 = vld [vmem:[#allocation2 + $0x50] sm:$0xf]  ;;  %4327 = vmatmul.mubr.bf16.gmra.mxu1 %v11299_v25  ;;  %v1955_v46 = vsel %vm12266_vm11, %v1953_v13, %v1954_v38  ;;  %v12554_v13 = vpop.f32.mrf.mxu1 }
 0x123   : > { %v1957_v41 = vrot.slane %v1857_v36, 7  ;;  %v2059_v43 = vld [vmem:[#allocation2 + $0x54] sm:$0xf]  ;;  %4555 = vperm.xlu1 %11099, %v266_v39   ;;  %v1685_v34 = vrot.slane %v1684_v32, 4  ;;  %v1694_v45 = vor.u32 %v1693_v35, %v1689_v33  ;;  %v1956_v47 = vrot.slane %v1954_v38, 4  ;;  %v12564_v32 = vpop.f32.mrf.mxu0 }
 0x124   : > { %v1432_v49 = vld [vmem:[#allocation2 + $0x54] sm:$0xf]  ;;  %2029 = vst [vmem:[#allocation3 + $0x2a0] sm:$0xf] %v1955_v46  ;;  %v2234_v50 = vrot.slane %v12500_v59, 4  ;;  %v2236_v51 = vshrl.u32 %v2058_v42, 16  ;;  %v12562_v26 = vpop.f32.mrf.mxu1 }
 0x125   : > { %v2239_v52 = vshll.u32 %v2058_v42, 16  ;;  %v2245_v30 = vshrl.u32 %v2059_v43, 16  ;;  %v1433_v44 = vld [vmem:[#allocation2 + $0x58] sm:$0xf]  ;;  %1460 = vst [vmem:[#allocation3 + $0x2e0] sm:$0xf] %v1432_v49  ;;  %v1690_v56 = vsel %vm11830_vm7, %v1685_v34, %v1689_v33  ;;  %v1958_v57 = vsel %vm12266_vm11, %v1956_v47, %v1957_v41 }
 0x126   : > { %v11300_v54 = vld [vmem:[#allocation3 + $0x254] ss:$36 sps:$4 sm:$0xff]   ;;  %v1695_v48 = vrot.slane %v1694_v45, 4  ;;  %1461 = vst [vmem:[#allocation3 + $0x304] sm:$0xf] %v1433_v44  ;;  %v2238_v59 = vrot.slane %v2236_v51, 7  ;;  %v12582_v47 = vpop.f32.mrf.mxu1 }
 0x127   : > { %v11302_v55 = vld [vmem:[#allocation3 + $0x250] ss:$36 sps:$4 sm:$0xff]   ;;  %1827 = vst [vmem:[#allocation3 + $0x29c] sm:$0xf] %v1690_v56  ;;  %2030 = vst [vmem:[#allocation3 + $0x2c4] sm:$0xf] %v1958_v57  ;;  %4189 = vmatprep.mubr.bf16.mxu0 %v11300_v54 }
 0x128   : > { %v12546_v0 = vrot.slane %v2245_v30, 7  ;;  %v2248_v2 = vshll.u32 %v2059_v43, 16  ;;  %v1489_v4 = vld [vmem:[#allocation2 + $0x58] sm:$0xf]  ;;  %v1701_v5 = vshrl.u32 %v12509_v12, 16  ;;  %v1700_v6 = vsel %vm11830_vm7, %v1695_v48, %v12529_v40  ;;  %4190 = vmatmul.mubr.bf16.gmra.mxu0 %v11302_v55  ;;  %v12588_v55 = vpop.f32.mrf.mxu1 }
 0x129   : > { %v12552_v7 = vld [vmem:[#allocation2 + $0x5c] sm:$0xf]  ;;  %v1707_v8 = vshll.u32 %v1489_v4, 16  ;;  %v1711_v9 = vshrl.u32 %v1489_v4, 16  ;;  %v1959_v11 = vrot.slane %v1957_v41, 4  ;;  %v2241_v53 = vor.u32 %v2239_v52, %v2238_v59 }
 0x12a   : > { %v11303_v10 = vld [vmem:[#allocation3 + $0x25c] ss:$36 sps:$4 sm:$0xff]   ;;  %1828 = vst [vmem:[#allocation3 + $0x2c0] sm:$0xf] %v1700_v6  ;;  %v2243_v12 = vrot.slane %v2238_v59, 4  ;;  %v2250_v18 = vor.u32 %v2248_v2, %v12546_v0  ;;  %v1703_v20 = vrot.slane %v1701_v5, 4 }
 0x12b   : > { %v11305_v17 = vld [vmem:[#allocation3 + $0x258] ss:$36 sps:$4 sm:$0xff]   ;;  %v1709_v23 = vrot.slane %v1707_v8, 5  ;;  %v1713_v24 = vrot.slane %v1711_v9, 4  ;;  %v1717_v25 = vshll.u32 %v12552_v7, 16  ;;  %4334 = vmatprep.mubr.bf16.mxu1 %v11303_v10  ;;  %v2242_v33 = vsel %vm11842_vm8, %v2234_v50, %v2241_v53 }
 0x12c   : > { %v1858_v29 = vld [vmem:[#allocation2 + $0x58] sm:$0xf]  ;;  %v2251_v35 = vsel %vm11842_vm8, %v2243_v12, %v2250_v18  ;;  %v12570_v36 = vld [vmem:[#allocation2 + $0x5c] sm:$0xf]  ;;  %v2252_v41 = vrot.slane %v12546_v0, 4  ;;  %4335 = vmatmul.mubr.bf16.gmra.mxu1 %v11305_v17  ;;  %v1704_v42 = vor.u32 %v1703_v20, %v12529_v40  ;;  %v12586_v40 = vpop.f32.mrf.mxu0  ;;  %v1721_v53 = vshrl.u32 %v12552_v7, 16  ;;  %v12613_v12 = vpop.f32.mrf.mxu1 }
 0x12d   : > { %v1960_v38 = vrot.slane %v1858_v29, 7  ;;  %v2060_v39 = vld [vmem:[#allocation2 + $0x58] sm:$0xf]  ;;  %2370 = vst [vmem:[#allocation3 + $0x2a4] sm:$0xf] %v2242_v33  ;;  %v1714_v43 = vor.u32 %v1713_v24, %v1709_v23  ;;  %v12574_v28 = vrot.slane %v1717_v25, 5 }
 0x12e   : > { %2371 = vst [vmem:[#allocation3 + $0x2c8] sm:$0xf] %v2251_v35  ;;  %v1963_v34 = vrot.slane %v12570_v36, 7  ;;  %v2061_v45 = vld [vmem:[#allocation2 + $0x5c] sm:$0xf]  ;;  %v2254_v50 = vshrl.u32 %v2060_v39, 16  ;;  %v12598_v0 = vpop.f32.mrf.mxu0 }
 0x12f   : > { %v12580_v46 = vld [vmem:[%s15315_s2] ss:$0 sm:$0xff]  ;;  %v1961_v49 = vsel %vm12266_vm11, %v1959_v11, %v1960_v38  ;;  %v1962_v37 = vrot.slane %v1960_v38, 4  ;;  %v2257_v51 = vshll.u32 %v2060_v39, 16  ;;  %v1705_v52 = vrot.slane %v1704_v42, 4  ;;  %v12629_v39 = vpop.f32.mrf.mxu1 }
 0x130   : > { %v1715_v30 = vrot.slane %v1714_v43, 4  ;;  %2031 = vst [vmem:[#allocation3 + $0x2e8] sm:$0xf] %v1961_v49  ;;  %v2263_v44 = vshrl.u32 %v2061_v45, 16  ;;  %v2266_v54 = vshll.u32 %v2061_v45, 16  ;;  %v2256_v48 = vrot.slane %v2254_v50, 7  ;;  %v12615_v18 = vpop.f32.mrf.mxu0 }
 0x131   : > { %v1964_v56 = vsel %vm12266_vm11, %v1962_v37, %v1963_v34  ;;  %v3838_v57 = vadd.f32 %v12453_v1, %v12580_v46  ;;  %v3841_v61 = vadd.f32 %v12523_v31, %v12580_v46  ;;  %v1434_v59 = vld [vmem:[#allocation2 + $0x5c] sm:$0xf]  ;;  %v11307_v2 = vld [vmem:[#allocation3 + $0x29c] ss:$36 sps:$4 sm:$0xff]   ;;  %v1710_v5 = vsel %vm11830_vm7, %v1705_v52, %v1709_v23  ;;  %v1435_v10 = vld [vmem:[#allocation2 + $0x60] sm:$0xf] }
 0x132   : > { %v11309_v4 = vld [vmem:[#allocation3 + $0x298] ss:$36 sps:$4 sm:$0xff]   ;;  %v1720_v6 = vsel %vm11830_vm7, %v1715_v30, %v12574_v28  ;;  %2032 = vst [vmem:[#allocation3 + $0x30c] sm:$0xf] %v1964_v56  ;;  %v12605_v8 = vrot.slane %v2263_v44, 7  ;;  %v3846_v1 = vadd.f32 %v12502_v60, %v12580_v46  ;;  %v2259_v31 = vor.u32 %v2257_v51, %v2256_v48  ;;  %4197 = vmatprep.mubr.bf16.mxu0 %v11307_v2  ;;  %v12631_v42 = vpop.f32.mrf.mxu0  ;;  %v12644_v44 = vpop.f32.mrf.mxu1 }
 0x133   : > { %1462 = vst [vmem:[#allocation3 + $0x328] sm:$0xf] %v1434_v59  ;;  %1829 = vst [vmem:[#allocation3 + $0x2e4] sm:$0xf] %v1710_v5  ;;  %v2261_v9 = vrot.slane %v2256_v48, 4  ;;  %v12610_v11 = vadd.f32 %v12471_v21, %v3838_v57  ;;  %v12621_v25 = vadd.f32 %v12533_v3, %v3841_v61  ;;  %4198 = vmatmul.mubr.bf16.gmra.mxu0 %v11309_v4  ;;  %v1723_v33 = vrot.slane %v1721_v53, 4 }
 0x134   : > { %1830 = vst [vmem:[#allocation3 + $0x308] sm:$0xf] %v1720_v6  ;;  %v1491_v17 = vld [vmem:[#allocation2 + $0x60] sm:$0xf]  ;;  %v2268_v20 = vor.u32 %v2266_v54, %v12605_v8  ;;  %1463 = vst [vmem:[#allocation3 + $0x34c] sm:$0xf] %v1435_v10  ;;  %v2260_v7 = vsel %vm11842_vm8, %v2252_v41, %v2259_v31  ;;  %v12627_v38 = vadd.f32 %v12511_v14, %v3846_v1  ;;  %v12648_v61 = vpop.f32.mrf.mxu0  ;;  %v12652_v4 = vpop.f32.mrf.mxu1 }
 0x135   : > { %v12618_v60 = vld [vmem:[#allocation2 + $0x64] sm:$0xf]  ;;  %v1727_v23 = vshll.u32 %v1491_v17, 16  ;;  %v1731_v24 = vshrl.u32 %v1491_v17, 16  ;;  %v1860_v21 = vld [vmem:[#allocation2 + $0x60] sm:$0xf]  ;;  %v3849_v41 = vadd.f32 %v12535_v22, %v12580_v46  ;;  %v1724_v14 = vor.u32 %v1723_v33, %v12574_v28 }
 0x136   : > { %v11310_v29 = vld [vmem:[#allocation3 + $0x2a4] ss:$36 sps:$4 sm:$0xff]   ;;  %v1737_v35 = vshll.u32 %v12618_v60, 16  ;;  %v2269_v3 = vsel %vm11842_vm8, %v2261_v9, %v2268_v20  ;;  %2372 = vst [vmem:[#allocation3 + $0x2ec] sm:$0xf] %v2260_v7  ;;  %v1965_v51 = vrot.slane %v1963_v34, 4  ;;  %v12659_v9 = vpop.f32.mrf.mxu0 }
 0x137   : > { %v11312_v43 = vld [vmem:[#allocation3 + $0x2a0] ss:$36 sps:$4 sm:$0xff]   ;;  %v1729_v45 = vrot.slane %v1727_v23, 5  ;;  %v1733_v49 = vrot.slane %v1731_v24, 4  ;;  %v12635_v37 = vld [vmem:[#allocation2 + $0x64] sm:$0xf]  ;;  %4342 = vmatprep.mubr.bf16.mxu1 %v11310_v29  ;;  %v12655_v31 = vadd.f32 %v12544_v58, %v3849_v41 }
 0x138   : > { %2373 = vst [vmem:[#allocation3 + $0x310] sm:$0xf] %v2269_v3  ;;  %v12640_v50 = vrot.slane %v1737_v35, 5  ;;  %v1966_v52 = vrot.slane %v1860_v21, 7  ;;  %v2062_v30 = vld [vmem:[#allocation2 + $0x60] sm:$0xf]  ;;  %4343 = vmatmul.mubr.bf16.gmra.mxu1 %v11312_v43  ;;  %v12665_v21 = vpop.f32.mrf.mxu1  ;;  %v12673_v43 = vpop.f32.mrf.mxu0 }
 0x139   : > { %v1734_v54 = vor.u32 %v1733_v49, %v1729_v45  ;;  %v1969_v56 = vrot.slane %v12635_v37, 7  ;;  %v2063_v48 = vld [vmem:[#allocation2 + $0x64] sm:$0xf]  ;;  %v2270_v22 = vrot.slane %v12605_v8, 4  ;;  %v2272_v57 = vshrl.u32 %v2062_v30, 16 }
 0x13a   : > { %v1725_v28 = vrot.slane %v1724_v14, 4  ;;  %v1967_v59 = vsel %vm12266_vm11, %v1965_v51, %v1966_v52  ;;  %v1968_v36 = vrot.slane %v1966_v52, 4  ;;  %v2275_v34 = vshll.u32 %v2062_v30, 16  ;;  %v1436_v2 = vld [vmem:[#allocation2 + $0x64] sm:$0xf]  ;;  %v12678_v41 = vpop.f32.mrf.mxu1 }
 0x13b   : > { %v11313_v5 = vld [vmem:[#allocation3 + $0x2e4] ss:$36 sps:$4 sm:$0xff]   ;;  %v1735_v6 = vrot.slane %v1734_v54, 4  ;;  %2033 = vst [vmem:[#allocation3 + $0x330] sm:$0xf] %v1967_v59  ;;  %v2274_v1 = vrot.slane %v2272_v57, 7  ;;  %v3854_v8 = vadd.f32 %v12559_v19, %v12580_v46  ;;  %v10189_v54 = vadd.f32 %v12564_v32, %v12556_v16 }
 0x13c   : > { %1464 = vst [vmem:[#allocation3 + $0x370] sm:$0xf] %v1436_v2  ;;  %v11315_v10 = vld [vmem:[#allocation3 + $0x2e0] ss:$36 sps:$4 sm:$0xff]   ;;  %v1730_v17 = vsel %vm11830_vm7, %v1725_v28, %v1729_v45  ;;  %v1970_v53 = vsel %vm12266_vm11, %v1968_v36, %v1969_v56  ;;  %v2281_v20 = vshrl.u32 %v2063_v48, 16  ;;  %v2284_v23 = vshll.u32 %v2063_v48, 16  ;;  %4205 = vmatprep.mubr.bf16.mxu0 %v11313_v5  ;;  %v12686_v48 = vpop.f32.mrf.mxu0  ;;  %v12691_v2 = vpop.f32.mrf.mxu1 }
 0x13d   : > { %v1437_v24 = vld [vmem:[#allocation2 + $0x68] sm:$0xf]  ;;  %v1740_v58 = vsel %vm11830_vm7, %v1735_v6, %v12640_v50  ;;  %1831 = vst [vmem:[#allocation3 + $0x32c] sm:$0xf] %v1730_v17  ;;  %2034 = vst [vmem:[#allocation3 + $0x354] sm:$0xf] %v1970_v53  ;;  %v2277_v19 = vor.u32 %v2275_v34, %v2274_v1  ;;  %4206 = vmatmul.mubr.bf16.gmra.mxu0 %v11315_v10 }
 0x13e   : > { %v2279_v29 = vrot.slane %v2274_v1, 4  ;;  %1465 = vst [vmem:[#allocation3 + $0x394] sm:$0xf] %v1437_v24  ;;  %v1493_v7 = vld [vmem:[#allocation2 + $0x68] sm:$0xf]  ;;  %v1741_v35 = vshrl.u32 %v12618_v60, 16  ;;  %v10286_v60 = vadd.f32 %v12562_v26, %v12554_v13 }
 0x13f   : > { %v12670_v33 = vld [vmem:[#allocation2 + $0x6c] sm:$0xf]  ;;  %1832 = vst [vmem:[#allocation3 + $0x350] sm:$0xf] %v1740_v58  ;;  %v12675_v3 = vrot.slane %v2281_v20, 7  ;;  %v1747_v45 = vshll.u32 %v1493_v7, 16  ;;  %v2278_v52 = vsel %vm11842_vm8, %v2270_v22, %v2277_v19  ;;  %v12699_v20 = vpop.f32.mrf.mxu1 }
 0x140   : > { %v1751_v49 = vshrl.u32 %v1493_v7, 16  ;;  %v1757_v37 = vshll.u32 %v12670_v33, 16  ;;  %v11316_v14 = vld [vmem:[#allocation3 + $0x2ec] ss:$36 sps:$4 sm:$0xff]   ;;  %v1743_v30 = vrot.slane %v1741_v35, 4  ;;  %v1971_v13 = vrot.slane %v1969_v56, 4 }
 0x141   : > { %v11318_v51 = vld [vmem:[#allocation3 + $0x2e8] ss:$36 sps:$4 sm:$0xff]   ;;  %v2286_v57 = vor.u32 %v2284_v23, %v12675_v3  ;;  %2374 = vst [vmem:[#allocation3 + $0x334] sm:$0xf] %v2278_v52  ;;  %v1749_v28 = vrot.slane %v1747_v45, 5  ;;  %4350 = vmatprep.mubr.bf16.mxu1 %v11316_v14  ;;  %v12694_v16 = vadd.f32 %v10286_v60, %v3854_v8  ;;  %v2288_v53 = vrot.slane %v12675_v3, 4  ;;  %v12703_v8 = vpop.f32.mrf.mxu0 }
 0x142   : > { %v1753_v59 = vrot.slane %v1751_v49, 4  ;;  %v12689_v36 = vrot.slane %v1757_v37, 5  ;;  %v1862_v34 = vld [vmem:[#allocation2 + $0x68] sm:$0xf]  ;;  %v1744_v22 = vor.u32 %v1743_v30, %v12640_v50  ;;  %v1863_v5 = vld [vmem:[#allocation2 + $0x6c] sm:$0xf]  ;;  %4351 = vmatmul.mubr.bf16.gmra.mxu1 %v11318_v51  ;;  %v3857_v14 = vadd.f32 %v10189_v54, %v12580_v46 }
 0x143   : > { %v1972_v26 = vrot.slane %v1862_v34, 7  ;;  %v2064_v6 = vld [vmem:[#allocation2 + $0x68] sm:$0xf]  ;;  %v2287_v32 = vsel %vm11842_vm8, %v2279_v29, %v2286_v57  ;;  %v1975_v10 = vrot.slane %v1863_v5, 7  ;;  %v2065_v17 = vld [vmem:[#allocation2 + $0x6c] sm:$0xf]  ;;  %v12710_v51 = vpop.f32.mrf.mxu0  ;;  %v12720_v34 = vpop.f32.mrf.mxu1 }
 0x144   : > { %v1754_v1 = vor.u32 %v1753_v59, %v1749_v28  ;;  %2375 = vst [vmem:[#allocation3 + $0x358] sm:$0xf] %v2287_v32  ;;  %v1745_v23 = vrot.slane %v1744_v22, 4  ;;  %v2290_v24 = vshrl.u32 %v2064_v6, 16  ;;  %v2293_v19 = vshll.u32 %v2064_v6, 16 }
 0x145   : > { %v1973_v50 = vsel %vm12266_vm11, %v1971_v13, %v1972_v26  ;;  %v1974_v56 = vrot.slane %v1972_v26, 4  ;;  %v2299_v29 = vshrl.u32 %v2065_v17, 16  ;;  %v2302_v7 = vshll.u32 %v2065_v17, 16  ;;  %v11322_v45 = vld [vmem:[#allocation3 + $0x328] ss:$36 sps:$4 sm:$0xff]  }
 0x146   : > { %v1755_v58 = vrot.slane %v1754_v1, 4  ;;  %2035 = vst [vmem:[#allocation3 + $0x378] sm:$0xf] %v1973_v50  ;;  %v11320_v35 = vld [vmem:[#allocation3 + $0x32c] ss:$36 sps:$4 sm:$0xff]   ;;  %v1750_v3 = vsel %vm11830_vm7, %v1745_v23, %v1749_v28  ;;  %v2292_v37 = vrot.slane %v2290_v24, 7  ;;  %v10289_v59 = vadd.f32 %v12588_v55, %v12582_v47  ;;  %v12729_v23 = vpop.f32.mrf.mxu1 }
 0x147   : > { %v1976_v49 = vsel %vm12266_vm11, %v1974_v56, %v1975_v10  ;;  %1833 = vst [vmem:[#allocation3 + $0x374] sm:$0xf] %v1750_v3  ;;  %v12715_v30 = vrot.slane %v2299_v29, 7  ;;  %v1438_v60 = vld [vmem:[#allocation2 + $0x6c] sm:$0xf]  ;;  %v1761_v28 = vshrl.u32 %v12670_v33, 16  ;;  %4213 = vmatprep.mubr.bf16.mxu0 %v11320_v35  ;;  %v10192_v26 = vadd.f32 %v12598_v0, %v12586_v40  ;;  %v12726_v33 = vpop.f32.mrf.mxu0 }
 0x148   : > { %v1760_v52 = vsel %vm11830_vm7, %v1755_v58, %v12689_v36  ;;  %2036 = vst [vmem:[#allocation3 + $0x39c] sm:$0xf] %v1976_v49  ;;  %v1439_v57 = vld [vmem:[#allocation2 + $0x70] sm:$0xf]  ;;  %v2295_v54 = vor.u32 %v2293_v19, %v2292_v37  ;;  %v2297_v22 = vrot.slane %v2292_v37, 4  ;;  %v10292_v6 = vadd.f32 %v12629_v39, %v12613_v12  ;;  %4214 = vmatmul.mubr.bf16.gmra.mxu0 %v11322_v45 }
 0x149   : > { %1834 = vst [vmem:[#allocation3 + $0x398] sm:$0xf] %v1760_v52  ;;  %1466 = vst [vmem:[#allocation3 + $0x3b8] sm:$0xf] %v1438_v60  ;;  %v1495_v5 = vld [vmem:[#allocation2 + $0x70] sm:$0xf]  ;;  %v2304_v47 = vor.u32 %v2302_v7, %v12715_v30  ;;  %v12733_v24 = vadd.f32 %v10289_v59, %v3857_v14  ;;  %v12735_v39 = vpop.f32.mrf.mxu0  ;;  %v3862_v45 = vadd.f32 %v10192_v26, %v12580_v46 }
 0x14a   : > { %1467 = vst [vmem:[#allocation3 + $0x3dc] sm:$0xf] %v1439_v57  ;;  %v1496_v13 = vld [vmem:[#allocation2 + $0x74] sm:$0x1]  ;;  %v1763_v55 = vrot.slane %v1761_v28, 4  ;;  %v1767_v32 = vshll.u32 %v1495_v5, 16  ;;  %v2296_v50 = vsel %vm11842_vm8, %v2288_v53, %v2295_v54  ;;  %v12741_v53 = vpop.f32.mrf.mxu1 }
 0x14b   : > { %v1771_v1 = vshrl.u32 %v1495_v5, 16  ;;  %v1864_v17 = vld [vmem:[#allocation2 + $0x70] sm:$0xf]  ;;  %v1777_v56 = vshll.u32 %v1496_v13, 16  ;;  %v1865_v40 = vld [vmem:[#allocation2 + $0x74] sm:$0x7]  ;;  %v2305_v29 = vsel %vm11842_vm8, %v2297_v22, %v2304_v47  ;;  %v12743_v52 = vpop.f32.mrf.mxu0 }
 0x14c   : > { %v1977_v0 = vrot.slane %v1975_v10, 4  ;;  %v2066_v12 = vld [vmem:[#allocation2 + $0x70] sm:$0xf]  ;;  %v11325_v19 = vld [vmem:[#allocation3 + $0x330] ss:$36 sps:$4 sm:$0xff]   ;;  %v1764_v7 = vor.u32 %v1763_v55, %v12689_v36  ;;  %v1769_v35 = vrot.slane %v1767_v32, 5  ;;  %v12746_v54 = vpop.f32.mrf.mxu1 }
 0x14d   : > { %v11323_v58 = vld [vmem:[#allocation3 + $0x334] ss:$36 sps:$4 sm:$0xff]   ;;  %2376 = vst [vmem:[#allocation3 + $0x37c] sm:$0xf] %v2296_v50  ;;  %2377 = vst [vmem:[#allocation3 + $0x3a0] sm:$0xf] %v2305_v29  ;;  %v12750_v55 = vpop.f32.mrf.mxu0  ;;  %v12754_v50 = vadd.f32 %v10292_v6, %v3862_v45 }
 0x14e   : > { %v1773_v3 = vrot.slane %v1771_v1, 4  ;;  %v1779_v49 = vrot.slane %v1777_v56, 5  ;;  %v1978_v10 = vrot.slane %v1864_v17, 7  ;;  %v1981_v37 = vrot.slane %v1865_v40, 7  ;;  %v2067_v14 = vld [vmem:[#allocation2 + $0x74] sm:$0xf]  ;;  %4358 = vmatprep.mubr.bf16.mxu1 %v11323_v58  ;;  %v12758_v40 = vpop.f32.mrf.mxu1 }
 0x14f   : > { %v1765_v60 = vrot.slane %v1764_v7, 4  ;;  %v2306_v57 = vrot.slane %v12715_v30, 4  ;;  %v2308_v28 = vshrl.u32 %v2066_v12, 16  ;;  %v2311_v59 = vshll.u32 %v2066_v12, 16  ;;  %v2380_v36 = vld [vmem:[#allocation2 + $0x8] sm:$0xf]  ;;  %4359 = vmatmul.mubr.bf16.gmra.mxu1 %v11325_v19  ;;  %v10211_v7 = vpop.f32.mrf.mxu0 }
 0x150   : > { %v1774_v22 = vor.u32 %v1773_v3, %v1769_v35  ;;  %v1979_v5 = vsel %vm12266_vm11, %v1977_v0, %v1978_v10  ;;  %v1980_v13 = vrot.slane %v1978_v10, 4  ;;  %v2317_v26 = vshrl.u32 %v2067_v14, 16  ;;  %v2381_v47 = vld [vmem:[#allocation2 + $0xc] sm:$0xf]  ;;  %2408 = vst [vmem:[#allocation3 + $0x20] sm:$0xf] %v2380_v36  ;;  %v10309_v10 = vpop.f32.mrf.mxu1 }
 0x151   : > { %v11326_v32 = vld [vmem:[#allocation3 + $0x374] ss:$36 sps:$4 sm:$0xff]   ;;  %v1770_v30 = vsel %vm11830_vm7, %v1765_v60, %v1769_v35  ;;  %2037 = vst [vmem:[#allocation3 + $0x3c0] sm:$0xf] %v1979_v5  ;;  %v2310_v17 = vrot.slane %v2308_v28, 7  ;;  %v10195_v56 = vadd.f32 %v12631_v42, %v12615_v18  ;;  %v2320_v19 = vshll.u32 %v2067_v14, 16 }
 0x152   : > { %v11328_v1 = vld [vmem:[#allocation3 + $0x370] ss:$36 sps:$4 sm:$0xff]   ;;  %2409 = vst [vmem:[#allocation3 + $0x44] sm:$0xf] %v2381_v47  ;;  %v1775_v0 = vrot.slane %v1774_v22, 4  ;;  %v1982_v12 = vsel %vm12266_vm11, %v1980_v13, %v1981_v37  ;;  %v2319_v58 = vrot.slane %v2317_v26, 7  ;;  %4221 = vmatprep.mubr.bf16.mxu0 %v11326_v32  ;;  %v10295_v18 = vadd.f32 %v12652_v4, %v12644_v44  ;;  %v10212_v44 = vpop.f32.mrf.mxu0 }
 0x153   : > { %1835 = vst [vmem:[#allocation3 + $0x3bc] sm:$0xf] %v1770_v30  ;;  %v2382_v29 = vld [vmem:[#allocation2 + $0x10] sm:$0xf]  ;;  %2038 = vst [vmem:[#allocation3 + $0x3e4] sm:$0xf] %v1982_v12  ;;  %v2313_v35 = vor.u32 %v2311_v59, %v2310_v17  ;;  %v3865_v45 = vadd.f32 %v10195_v56, %v12580_v46  ;;  %4222 = vmatmul.mubr.bf16.gmra.mxu0 %v11328_v1  ;;  %v10198_v60 = vadd.f32 %v12659_v9, %v12648_v61  ;;  %v10311_v9 = vpop.f32.mrf.mxu1 }
 0x154   : > { %v2315_v6 = vrot.slane %v2310_v17, 4  ;;  %v2383_v42 = vld [vmem:[#allocation2 + $0x14] sm:$0xf]  ;;  %2410 = vst [vmem:[#allocation3 + $0x68] sm:$0xf] %v2382_v29  ;;  %v1780_v37 = vsel %vm11830_vm7, %v1775_v0, %v1779_v49  ;;  %v2322_v14 = vor.u32 %v2320_v19, %v2319_v58  ;;  %v10298_v28 = vadd.f32 %v12678_v41, %v12665_v21  ;;  %v10214_v32 = vpop.f32.mrf.mxu0 }
 0x155   : > { %v2384_v3 = vld [vmem:[#allocation2 + $0x18] sm:$0xf]  ;;  %2411 = vst [vmem:[#allocation3 + $0x8c] sm:$0xf] %v2383_v42  ;;  %v2385_v59 = vld [vmem:[#allocation2 + $0x1c] sm:$0xf]  ;;  %v2314_v5 = vsel %vm11842_vm8, %v2306_v57, %v2313_v35  ;;  %v12773_v13 = vadd.f32 %v10295_v18, %v3865_v45  ;;  %v10201_v49 = vadd.f32 %v12686_v48, %v12673_v43  ;;  %v10301_v61 = vadd.f32 %v12699_v20, %v12691_v2 }
 0x156   : > { %2412 = vst [vmem:[#allocation3 + $0xb0] sm:$0xf] %v2384_v3  ;;  %v2386_v36 = vld [vmem:[#allocation2 + $0x20] sm:$0xf]  ;;  %v11329_v4 = vld [vmem:[#allocation3 + $0x37c] ss:$36 sps:$4 sm:$0xff]   ;;  %v2323_v21 = vsel %vm11842_vm8, %v2315_v6, %v2322_v14  ;;  %v3870_v41 = vadd.f32 %v10198_v60, %v12580_v46  ;;  %v10204_v57 = vadd.f32 %v12710_v51, %v12703_v8  ;;  %v10304_v47 = vadd.f32 %v12729_v23, %v12720_v34  ;;  %v10312_v23 = vpop.f32.mrf.mxu1  ;;  %v10215_v0 = vpop.f32.mrf.mxu0 }
 0x157   : > { %v11332_v22 = vld [vmem:[#allocation3 + $0x378] ss:$36 sps:$4 sm:$0xff]   ;;  %1836 = vst [vmem:[#allocation3 + $0x3e0] sm:$0xf] %v1780_v37  ;;  %2413 = vst [vmem:[#allocation3 + $0xd4] sm:$0xf] %v2385_v59  ;;  %4366 = vmatprep.mubr.bf16.mxu1 %v11329_v4  ;;  %v3873_v2 = vadd.f32 %v10201_v49, %v12580_v46  ;;  %v10207_v20 = vadd.f32 %v12735_v39, %v12726_v33  ;;  %v10307_v1 = vadd.f32 %v12746_v54, %v12741_v53 }
 0x158   : > { %2414 = vst [vmem:[#allocation3 + $0xf8] sm:$0xf] %v2386_v36  ;;  %2378 = vst [vmem:[#allocation3 + $0x3c4] sm:$0xf] %v2314_v5  ;;  %v2387_v26 = vld [vmem:[#allocation2 + $0x24] sm:$0xf]  ;;  %v10210_v34 = vadd.f32 %v12750_v55, %v12743_v52  ;;  %4367 = vmatmul.mubr.bf16.gmra.mxu1 %v11332_v22  ;;  %v12793_v30 = vadd.f32 %v10298_v28, %v3870_v41  ;;  %v3878_v17 = vadd.f32 %v10204_v57, %v12580_v46  ;;  %v10314_v3 = vpop.f32.mrf.mxu1 }
 0x159   : > { %v2388_v43 = vld [vmem:[#allocation2 + $0x28] sm:$0xf]  ;;  %v2389_v48 = vld [vmem:[#allocation2 + $0x2c] sm:$0xf]  ;;  %2379 = vst [vmem:[#allocation3 + $0x3e8] sm:$0xf] %v2323_v21  ;;  %v10310_v33 = vadd.f32 %v10309_v10, %v12758_v40  ;;  %v10213_v39 = vadd.f32 %v10212_v44, %v10211_v7  ;;  %v12797_v12 = vadd.f32 %v10301_v61, %v3873_v2  ;;  %v3881_v53 = vadd.f32 %v10207_v20, %v12580_v46  ;;  %v10217_v7 = vpop.f32.mrf.mxu0 }
 0x15a   : > { %2415 = vst [vmem:[#allocation3 + $0x11c] sm:$0xf] %v2387_v26  ;;  %2416 = vst [vmem:[#allocation3 + $0x140] sm:$0xf] %v2388_v43  ;;  %v2390_v8 = vld [vmem:[#allocation2 + $0x30] sm:$0xf]  ;;  %v3886_v54 = vadd.f32 %v10210_v34, %v12580_v46  ;;  %v10313_v55 = vadd.f32 %v10312_v23, %v10311_v9  ;;  %v12801_v19 = vadd.f32 %v10304_v47, %v3878_v17  ;;  %v10315_v59 = vpop.f32.mrf.mxu1 }
 0x15b   : > { %2417 = vst [vmem:[#allocation3 + $0x164] sm:$0xf] %v2389_v48  ;;  %v2391_v51 = vld [vmem:[#allocation2 + $0x34] sm:$0xf]  ;;  %2418 = vst [vmem:[#allocation3 + $0x188] sm:$0xf] %v2390_v8  ;;  %v3889_v29 = vadd.f32 %v10213_v39, %v12580_v46  ;;  %v10216_v40 = vadd.f32 %v10215_v0, %v10214_v32  ;;  %v12804_v18 = vadd.f32 %v10307_v1, %v3881_v53  ;;  %v10218_v28 = vpop.f32.mrf.mxu0 }
 0x15c   : > { %2419 = vst [vmem:[#allocation3 + $0x1ac] sm:$0xf] %v2391_v51  ;;  %v2392_v56 = vld [vmem:[#allocation2 + $0x38] sm:$0xf]  ;;  %v2393_v52 = vld [vmem:[#allocation2 + $0x3c] sm:$0xf]  ;;  %v12806_v42 = vadd.f32 %v10310_v33, %v3886_v54  ;;  %v10219_v36 = vadd.f32 %v10218_v28, %v10217_v7  ;;  %v10316_v22 = vadd.f32 %v10315_v59, %v10314_v3  ;;  %v10317_v5 = vpop.f32.mrf.mxu1 }
 0x15d   : > { %2420 = vst [vmem:[#allocation3 + $0x1d0] sm:$0xf] %v2392_v56  ;;  %v2394_v58 = vld [vmem:[#allocation2 + $0x40] sm:$0xf]  ;;  %2421 = vst [vmem:[#allocation3 + $0x1f4] sm:$0xf] %v2393_v52  ;;  %v12808_v14 = vadd.f32 %v10313_v55, %v3889_v29  ;;  %v3894_v60 = vadd.f32 %v10216_v40, %v12580_v46  ;;  %v10220_v9 = vpop.f32.mrf.mxu0 }
 0x15e   : > { %v2395_v35 = vld [vmem:[#allocation2 + $0x44] sm:$0xf]  ;;  %2422 = vst [vmem:[#allocation3 + $0x218] sm:$0xf] %v2394_v58  ;;  %v2396_v6 = vld [vmem:[#allocation2 + $0x48] sm:$0xf]  ;;  %v3897_v61 = vadd.f32 %v10219_v36, %v12580_v46  ;;  %v10318_v21 = vpop.f32.mrf.mxu1 }
 0x15f   : > { %v11339_v45 = vld [vmem:[#allocation3 + $0x20] ss:$36 sps:$4 sm:$0xff]   ;;  %2423 = vst [vmem:[#allocation3 + $0x23c] sm:$0xf] %v2395_v35  ;;  %2424 = vst [vmem:[#allocation3 + $0x260] sm:$0xf] %v2396_v6  ;;  %v12811_v49 = vadd.f32 %v10316_v22, %v3894_v60  ;;  %v10319_v26 = vadd.f32 %v10318_v21, %v10317_v5  ;;  %v10221_v57 = vpop.f32.mrf.mxu0 }
 0x160   : > { %v11333_v10 = vld [vmem:[#allocation3 + $0x3bc] ss:$36 sps:$4 sm:$0xff]   ;;  %v11336_v44 = vld [vmem:[#allocation3 + $0x3c4] ss:$36 sps:$4 sm:$0xff]   ;;  %v11341_v47 = vld [vmem:[#allocation3 + $0xb0] ss:$36 sps:$4 sm:$0xff]   ;;  %v10222_v43 = vadd.f32 %v10221_v57, %v10220_v9  ;;  %v10320_v48 = vpop.f32.mrf.mxu1 }
 0x161   : > { %v11335_v37 = vld [vmem:[#allocation3 + $0x3b8] ss:$36 sps:$4 sm:$0xff]   ;;  %4229 = vmatprep.mubr.bf16.mxu0 %v11333_v10  ;;  %v11338_v4 = vld [vmem:[#allocation3 + $0x3c0] ss:$36 sps:$4 sm:$0xff]   ;;  %4374 = vmatprep.mubr.bf16.mxu1 %v11336_v44  ;;  %v11340_v41 = vld [vmem:[#allocation3 + $0x68] ss:$36 sps:$4 sm:$0xff]   ;;  %v12814_v2 = vadd.f32 %v10319_v26, %v3897_v61  ;;  %v10223_v1 = vpop.f32.mrf.mxu0 }
 0x162   : > { %4230 = vmatmul.mubr.bf16.gmra.mxu0 %v11335_v37  ;;  %4375 = vmatmul.mubr.bf16.gmra.mxu1 %v11338_v4  ;;  %v2397_v32 = vld [vmem:[#allocation2 + $0x4c] sm:$0xf]  ;;  %v2398_v20 = vld [vmem:[#allocation2 + $0x50] sm:$0xf]  ;;  %v2399_v8 = vld [vmem:[#allocation2 + $0x54] sm:$0xf]  ;;  %v3902_v51 = vadd.f32 %v10222_v43, %v12580_v46  ;;  %v10321_v34 = vpop.f32.mrf.mxu1 }
 0x163   : > { %11016 = vmatprep.mubr.bf16.mxu0 %v11339_v45  ;;  %2425 = vst [vmem:[#allocation3 + $0x284] sm:$0xf] %v2397_v32  ;;  %2426 = vst [vmem:[#allocation3 + $0x2a8] sm:$0xf] %v2398_v20  ;;  %v2400_v23 = vld [vmem:[#allocation2 + $0x58] sm:$0xf]  ;;  %v10322_v33 = vadd.f32 %v10321_v34, %v10320_v48  ;;  %v10224_v39 = vpop.f32.mrf.mxu0 }
 0x164   : > { %v2401_v17 = vld [vmem:[#allocation2 + $0x5c] sm:$0xf]  ;;  %2427 = vst [vmem:[#allocation3 + $0x2cc] sm:$0xf] %v2399_v8  ;;  %2428 = vst [vmem:[#allocation3 + $0x2f0] sm:$0xf] %v2400_v23  ;;  %v10225_v54 = vadd.f32 %v10224_v39, %v10223_v1  ;;  %v10323_v52 = vpop.f32.mrf.mxu1 }
 0x165   : > { %2429 = vst [vmem:[#allocation3 + $0x314] sm:$0xf] %v2401_v17  ;;  %v2402_v56 = vld [vmem:[#allocation2 + $0x60] sm:$0xf]  ;;  %v2403_v0 = vld [vmem:[#allocation2 + $0x64] sm:$0xf]  ;;  %v12817_v35 = vadd.f32 %v10322_v33, %v3902_v51  ;;  %v10226_v45 = vpop.f32.mrf.mxu0 }
 0x166   : > { %v2404_v53 = vld [vmem:[#allocation2 + $0x68] sm:$0xf]  ;;  %2430 = vst [vmem:[#allocation3 + $0x338] sm:$0xf] %v2402_v56  ;;  %2431 = vst [vmem:[#allocation3 + $0x35c] sm:$0xf] %v2403_v0  ;;  %v3905_v7 = vadd.f32 %v10225_v54, %v12580_v46  ;;  %v10324_v6 = vpop.f32.mrf.mxu1 }
 0x167   : > { %v2405_v55 = vld [vmem:[#allocation2 + $0x6c] sm:$0xf]  ;;  %2432 = vst [vmem:[#allocation3 + $0x380] sm:$0xf] %v2404_v53  ;;  %v2406_v58 = vld [vmem:[#allocation2 + $0x70] sm:$0xf]  ;;  %v10325_v3 = vadd.f32 %v10324_v6, %v10323_v52  ;;  %v10227_v60 = vpop.f32.mrf.mxu0 }
 0x168   : > { %v2407_v29 = vld [vmem:[#allocation2 + $0x74] sm:$0xf]  ;;  %2433 = vst [vmem:[#allocation3 + $0x3a4] sm:$0xf] %v2405_v55  ;;  %2434 = vst [vmem:[#allocation3 + $0x3c8] sm:$0xf] %v2406_v58  ;;  %v10228_v28 = vadd.f32 %v10227_v60, %v10226_v45  ;;  %v10326_v59 = vpop.f32.mrf.mxu1 }
 0x169   : > { %2435 = vst [vmem:[#allocation3 + $0x3ec] sm:$0xf] %v2407_v29  ;;  %v11342_v40 = vld [vmem:[#allocation3 + $0xf8] ss:$36 sps:$4 sm:$0xff]   ;;  %v11343_v10 = vld [vmem:[#allocation3 + $0x140] ss:$36 sps:$4 sm:$0xff]   ;;  %v12820_v37 = vadd.f32 %v10325_v3, %v3905_v7  ;;  %v10229_v36 = vpop.f32.mrf.mxu0 }
 0x16a   : > { %11017 = vmatmul.mubr.bf16.vlgmr.msra.gmra.mxu0 %v11340_v41  ;;  %v3910_v44 = vadd.f32 %v10228_v28, %v12580_v46  ;;  %v10327_v4 = vpop.f32.mrf.mxu1  ;;  %v6948_v22 = vld [vmem:[#allocation2 + $0x74] sm:$0xf]  ;;  %v11344_v9 = vld [vmem:[#allocation3 + $0x188] ss:$36 sps:$4 sm:$0xff]   ;;  %v11345_v57 = vld [vmem:[#allocation3 + $0x1d0] ss:$36 sps:$4 sm:$0xff]  }
 0x16b   : > { %11020 = vmatprep.mubr.bf16.mxu0 %v11341_v47  ;;  %v10328_v5 = vadd.f32 %v10327_v4, %v10326_v59  ;;  %v10230_v61 = vpop.f32.mrf.mxu0  ;;  %v11346_v0 = vld [vmem:[#allocation3 + $0x218] ss:$36 sps:$4 sm:$0xff]   ;;  %v11347_v52 = vld [vmem:[#allocation3 + $0x260] ss:$36 sps:$4 sm:$0xff]   ;;  %v12836_v58 = vld [vmem:[%s15315_s2] ss:$0 sm:$0xff] }
 0x16c   : > { %v10231_v21 = vadd.f32 %v10230_v61, %v10229_v36  ;;  %v10329_v41 = vpop.f32.mrf.mxu1  ;;  %v11348_v45 = vld [vmem:[#allocation3 + $0x2a8] ss:$36 sps:$4 sm:$0xff]  }
 0x16d   : > { %v12825_v47 = vadd.f32 %v10328_v5, %v3910_v44  ;;  %v10232_v43 = vpop.f32.mrf.mxu0 }
 0x16e   : > { %v3913_v48 = vadd.f32 %v10231_v21, %v12580_v46  ;;  %v10330_v32 = vpop.f32.mrf.mxu1 }
 0x16f   : > { %v10331_v20 = vadd.f32 %v10330_v32, %v10329_v41  ;;  %v10233_v1 = vpop.f32.mrf.mxu0  ;;  %v11350_v41 = vld [vmem:[#allocation3 + $0x338] ss:$36 sps:$4 sm:$0xff]  }
 0x170   : > { %v12823_v26 = vld [vmem:[#allocation3 + $0x3c8] ss:$36 sps:$4 sm:$0xff]   ;;  %v10234_v8 = vadd.f32 %v10233_v1, %v10232_v43  ;;  %v10332_v51 = vpop.f32.mrf.mxu1  ;;  %v11351_v43 = vld [vmem:[#allocation3 + $0x380] ss:$36 sps:$4 sm:$0xff]  }
 0x171   : > { %6976 = vst [vmem:[#allocation3 + $0x3ec] sm:$0xf] %v6948_v22  ;;  %v12828_v34 = vadd.f32 %v10331_v20, %v3913_v48  ;;  %v10235_v23 = vpop.f32.mrf.mxu0 }
 0x172   : > { %11021 = vmatmul.mubr.bf16.gmra.mxu0 %v11342_v40  ;;  %v3918_v17 = vadd.f32 %v10234_v8, %v12580_v46  ;;  %v10333_v33 = vpop.f32.mrf.mxu1 }
 0x173   : > { %11024 = vmatprep.mubr.bf16.mxu0 %v11343_v10  ;;  %v10334_v39 = vadd.f32 %v10333_v33, %v10332_v51  ;;  %v10236_v56 = vpop.f32.mrf.mxu0  ;;  %v11349_v10 = vld [vmem:[#allocation3 + $0x2f0] ss:$36 sps:$4 sm:$0xff]   ;;  %v11353_v51 = vld [vmem:[%s15316_s3 + $0x78] sm:$0xff]  }
 0x174   : > { %v10237_v53 = vadd.f32 %v10236_v56, %v10235_v23  ;;  %v10335_v54 = vpop.f32.mrf.mxu1  ;;  %v11354_v23 = vld [vmem:[%s15316_s3 + $0x38] sm:$0xff]   ;;  %10578 = vmatprep.subr.bf16.mxu1 %v11353_v51 }
 0x175   : > { %v12831_v55 = vadd.f32 %v10334_v39, %v3918_v17  ;;  %v10238_v6 = vpop.f32.mrf.mxu0  ;;  %10579 = vmatpush3.bf16.msra.mxu1 %v11354_v23 }
 0x176   : > { %v3921_v29 = vadd.f32 %v12836_v58, %v10237_v53  ;;  %v10336_v40 = vpop.f32.mrf.mxu1 }
 0x177   : > { %v10337_v7 = vadd.f32 %v10336_v40, %v10335_v54  ;;  %v10239_v3 = vpop.f32.mrf.mxu0 }
 0x178   : > { %v10240_v60 = vadd.f32 %v10239_v3, %v10238_v6  ;;  %v10338_v28 = vpop.f32.mrf.mxu1 }
 0x179   : > { %v12839_v46 = vadd.f32 %v10337_v7, %v3921_v29  ;;  %v10241_v59 = vpop.f32.mrf.mxu0 }
 0x17a   : > { %11025 = vmatmul.mubr.bf16.gmra.mxu0 %v11344_v9  ;;  %v3926_v36 = vadd.f32 %v12836_v58, %v10240_v60  ;;  %v10339_v44 = vpop.f32.mrf.mxu1 }
 0x17b   : > { %11028 = vmatprep.mubr.bf16.mxu0 %v11345_v57  ;;  %v10242_v4 = vpop.f32.mrf.mxu0  ;;  %v10340_v22 = vadd.f32 %v10339_v44, %v10338_v28 }
 0x17c   : > { %v10243_v5 = vadd.f32 %v10242_v4, %v10241_v59  ;;  %v10341_v61 = vpop.f32.mrf.mxu1 }
 0x17d   : > { %v12842_v9 = vadd.f32 %v10340_v22, %v3926_v36 }
 0x17e   : > { %v3929_v21 = vadd.f32 %v12836_v58, %v10243_v5  ;;  %v10342_v57 = vpop.f32.mrf.mxu1  ;;  %v10244_v20 = vpop.f32.mrf.mxu0 }
 0x17f   : > { %v10343_v48 = vadd.f32 %v10342_v57, %v10341_v61  ;;  %v11355_v61 = vld [vmem:[%s15316_s3 + $0x70] sm:$0xff]  }
 0x180   : > { %v10245_v1 = vpop.f32.mrf.mxu0  ;;  %10580 = vmatprep.subr.bf16.mxu1 %v11355_v61 }
 0x181   : > { %v12845_v32 = vadd.f32 %v10343_v48, %v3929_v21  ;;  %v10344_v8 = vpop.f32.mrf.mxu1  ;;  %v10246_v17 = vadd.f32 %v10245_v1, %v10244_v20  ;;  %v11356_v21 = vld [vmem:[%s15316_s3 + $0x30] sm:$0xff]  }
 0x182   : > { %11029 = vmatmul.mubr.bf16.gmra.mxu0 %v11346_v0  ;;  %v10247_v33 = vpop.f32.mrf.mxu0  ;;  %10581 = vmatpush3.bf16.msra.mxu1 %v11356_v21 }
 0x183   : > { %11032 = vmatprep.mubr.bf16.mxu0 %v11347_v52  ;;  %v10345_v39 = vpop.f32.mrf.mxu1  ;;  %v3934_v56 = vadd.f32 %v12836_v58, %v10246_v17 }
 0x184   : > { %v10346_v0 = vadd.f32 %v10345_v39, %v10344_v8  ;;  %v10248_v53 = vpop.f32.mrf.mxu0 }
 0x185   : > { %v10347_v54 = vpop.f32.mrf.mxu1  ;;  %v10249_v29 = vadd.f32 %v10248_v53, %v10247_v33 }
 0x186   : > { %v12855_v52 = vadd.f32 %v10346_v0, %v3934_v56 }
 0x187   : > { %v10348_v40 = vpop.f32.mrf.mxu1  ;;  %v3937_v7 = vadd.f32 %v12836_v58, %v10249_v29  ;;  %v10250_v3 = vpop.f32.mrf.mxu0 }
 0x188   : > { %v10349_v6 = vadd.f32 %v10348_v40, %v10347_v54 }
 0x18a   : > { %11033 = vmatmul.mubr.bf16.gmra.mxu0 %v11348_v45  ;;  %v12858_v45 = vadd.f32 %v10349_v6, %v3937_v7 }
 0x18b   : > { %11036 = vmatprep.mubr.bf16.mxu0 %v11349_v10  ;;  %v10251_v10 = vpop.f32.mrf.mxu0 }
 0x18c   : > { %v10252_v60 = vadd.f32 %v10251_v10, %v10250_v3  ;;  %v10350_v28 = vpop.f32.mrf.mxu1 }
 0x18d   : > { %v10253_v59 = vpop.f32.mrf.mxu0 }
 0x18e   : > { %v3942_v36 = vadd.f32 %v12836_v58, %v10252_v60  ;;  %v10351_v44 = vpop.f32.mrf.mxu1  ;;  %v11358_v60 = vld [vmem:[%s15316_s3 + $0x28] sm:$0xff]  }
 0x18f   : > { %v10254_v4 = vpop.f32.mrf.mxu0 }
 0x190   : > { %v10255_v22 = vadd.f32 %v10254_v4, %v10253_v59  ;;  %v10353_v5 = vpop.f32.mrf.mxu1 }
 0x191   : > { %v10372_v57 = vpop.f32.mrf.mxu0 }
 0x192   : > { %11037 = vmatmul.mubr.bf16.gmra.mxu0 %v11350_v41  ;;  %v10354_v48 = vpop.f32.mrf.mxu1 }
 0x193   : > { %11040 = vmatprep.mubr.bf16.mxu0 %v11351_v43  ;;  %v3945_v43 = vadd.f32 %v12836_v58, %v10255_v22  ;;  %v10355_v20 = vadd.f32 %v10354_v48, %v10353_v5  ;;  %v10373_v1 = vpop.f32.mrf.mxu0 }
 0x194   : > { %v10374_v8 = vadd.f32 %v10373_v1, %v10372_v57 }
 0x195   : > { %v12870_v51 = vadd.f32 %v10355_v20, %v3945_v43  ;;  %v10375_v23 = vpop.f32.mrf.mxu0 }
 0x196   : > { %v12873_v17 = vadd.f32 %v10374_v8, %v12610_v11 }
 0x197   : > { %v12875_v33 = vpop.f32.mrf.mxu1  ;;  %v10376_v39 = vpop.f32.mrf.mxu0 }
 0x198   : > { %v10377_v0 = vadd.f32 %v10376_v39, %v10375_v23 }
 0x199   : > { %v12877_v56 = vpop.f32.mrf.mxu1 }
 0x19a   : > { %11041 = vmatmul.mubr.bf16.gmra.mxu0 %v12823_v26  ;;  %v10352_v26 = vadd.f32 %v10351_v44, %v10350_v28  ;;  %v12880_v58 = vadd.f32 %v10377_v0, %v12621_v25  ;;  %v11357_v25 = vld [vmem:[%s15316_s3 + $0x68] sm:$0xff]  }
 0x19b   : > { %v12882_v53 = vpop.f32.mrf.mxu1  ;;  %10582 = vmatprep.subr.bf16.mxu1 %v11357_v25 }
 0x19c   : > { %v12867_v41 = vadd.f32 %v10352_v26, %v3942_v36  ;;  %10583 = vmatpush3.bf16.msra.mxu1 %v11358_v60 }
 0x19d   : > { %v12884_v54 = vpop.f32.mrf.mxu1 }
 0x1a0   : > { %v10378_v29 = vpop.f32.mrf.mxu0 }
 0x1a2   : > { %v10379_v40 = vpop.f32.mrf.mxu0 }
 0x1a3   : > { %v12886_v7 = vpop.f32.mrf.mxu1  ;;  %v10380_v6 = vadd.f32 %v10379_v40, %v10378_v29 }
 0x1a4   : > { %v10381_v11 = vpop.f32.mrf.mxu0 }
 0x1a5   : > { %v12888_v3 = vpop.f32.mrf.mxu1  ;;  %v12891_v10 = vadd.f32 %v10380_v6, %v12627_v38 }
 0x1a6   : > { %v10382_v28 = vpop.f32.mrf.mxu0 }
 0x1a7   : > { %v12899_v59 = vpop.f32.mrf.mxu1  ;;  %v10383_v36 = vadd.f32 %v10382_v28, %v10381_v11 }
 0x1a9   : > { %v10384_v44 = vpop.f32.mrf.mxu0  ;;  %v12901_v26 = vpop.f32.mrf.mxu1  ;;  %v12904_v38 = vadd.f32 %v10383_v36, %v12655_v31 }
 0x1ab   : > { %v10385_v4 = vpop.f32.mrf.mxu0 }
 0x1ac   : > { %v10386_v22 = vadd.f32 %v10385_v4, %v10384_v44 }
 0x1ad   : > { %v12906_v5 = vpop.f32.mrf.mxu1  ;;  %v10387_v61 = vpop.f32.mrf.mxu0 }
 0x1ae   : > { %v12909_v21 = vadd.f32 %v10386_v22, %v12694_v16 }
 0x1af   : > { %v12911_v57 = vpop.f32.mrf.mxu1  ;;  %v10388_v43 = vpop.f32.mrf.mxu0 }
 0x1b0   : > { %v10389_v48 = vadd.f32 %v10388_v43, %v10387_v61 }
 0x1b1   : > { %v12913_v20 = vpop.f32.mrf.mxu1 }
 0x1b2   : > { %v10390_v1 = vpop.f32.mrf.mxu0  ;;  %v12916_v8 = vadd.f32 %v10389_v48, %v12733_v24 }
 0x1b3   : > { %v12918_v31 = vpop.f32.mrf.mxu1 }
 0x1b4   : > { %v10391_v23 = vpop.f32.mrf.mxu0 }
 0x1b5   : > { %v10392_v39 = vadd.f32 %v10391_v23, %v10390_v1 }
 0x1b6   : > { %v10393_v0 = vpop.f32.mrf.mxu0 }
 0x1b7   : > { %v12921_v29 = vadd.f32 %v10392_v39, %v12754_v50 }
 0x1b8   : > { %v12923_v16 = vpop.f32.mrf.mxu1  ;;  %v10394_v40 = vpop.f32.mrf.mxu0 }
 0x1b9   : > { %15352 = vst [vmem:[#allocation8_spill] sm:$0xff] %v12921_v29  ;;  %v10395_v11 = vadd.f32 %v10394_v40, %v10393_v0 }
 0x1ba   : > { %v12925_v6 = vpop.f32.mrf.mxu1 }
 0x1bb   : > { %v12928_v25 = vadd.f32 %v10395_v11, %v12773_v13 }
 0x1bc   : > { %v12930_v60 = vpop.f32.mrf.mxu1 }
 0x1bd   : > { %15353 = vst [vmem:[#allocation9_spill] sm:$0xff] %v12928_v25  ;;  %v10396_v24 = vpop.f32.mrf.mxu0 }
 0x1be   : > { %v12932_v28 = vpop.f32.mrf.mxu1 }
 0x1bf   : > { %v10397_v36 = vpop.f32.mrf.mxu0 }
 0x1c0   : > { %v10398_v44 = vadd.f32 %v10397_v36, %v10396_v24 }
 0x1c1   : > { %v10399_v50 = vpop.f32.mrf.mxu0 }
 0x1c2   : > { %v12937_v22 = vadd.f32 %v10398_v44, %v12793_v30 }
 0x1c3   : > { %v12934_v4 = vpop.f32.mrf.mxu1  ;;  %v10400_v43 = vpop.f32.mrf.mxu0 }
 0x1c4   : > { %15354 = vst [vmem:[#allocation10_spill] sm:$0xff] %v12937_v22  ;;  %v10401_v48 = vadd.f32 %v10400_v43, %v10399_v50 }
 0x1c5   : > { %v12939_v61 = vpop.f32.mrf.mxu1 }
 0x1c6   : > { %v12944_v23 = vadd.f32 %v10401_v48, %v12797_v12 }
 0x1c7   : > { %v12941_v1 = vpop.f32.mrf.mxu1 }
 0x1c8   : > { %v10402_v13 = vpop.f32.mrf.mxu0  ;;  %15355 = vst [vmem:[#allocation11_spill] sm:$0xff] %v12944_v23 }
 0x1c9   : > { %v12946_v39 = vpop.f32.mrf.mxu1 }
 0x1ca   : > { %v10403_v0 = vpop.f32.mrf.mxu0 }
 0x1cb   : > { %v10404_v40 = vadd.f32 %v10403_v0, %v10402_v13  ;;  %v12948_v11 = vpop.f32.mrf.mxu1 }
 0x1cc   : > { %v10405_v24 = vpop.f32.mrf.mxu0 }
 0x1cd   : > { %v12951_v30 = vadd.f32 %v10404_v40, %v12801_v19  ;;  %v12953_v36 = vpop.f32.mrf.mxu1 }
 0x1ce   : > { %v10406_v44 = vpop.f32.mrf.mxu0 }
 0x1cf   : > { %15356 = vst [vmem:[#allocation12_spill] sm:$0xff] %v12951_v30  ;;  %v10407_v50 = vadd.f32 %v10406_v44, %v10405_v24  ;;  %v12955_v43 = vpop.f32.mrf.mxu1 }
 0x1d1   : > { %v12958_v15 = vadd.f32 %v10407_v50, %v12804_v18  ;;  %v12960_v12 = vpop.f32.mrf.mxu1 }
 0x1d3   : > { %15357 = vst [vmem:[#allocation13_spill] sm:$0xff] %v12958_v15  ;;  %v10408_v48 = vpop.f32.mrf.mxu0 }
 0x1d5   : > { %v10409_v63 = vpop.f32.mrf.mxu0 }
 0x1d6   : > { %v10410_v13 = vadd.f32 %v10409_v63, %v10408_v48  ;;  %v12962_v0 = vpop.f32.mrf.mxu1  ;;  %v11359_v48 = vld [vmem:[%s15316_s3 + $0x60] sm:$0xff]  }
 0x1d7   : > { %v10411_v27 = vpop.f32.mrf.mxu0  ;;  %10584 = vmatprep.subr.bf16.mxu1 %v11359_v48 }
 0x1d8   : > { %v12965_v19 = vadd.f32 %v10410_v13, %v12806_v42  ;;  %v12967_v40 = vpop.f32.mrf.mxu1  ;;  %v11360_v42 = vld [vmem:[%s15316_s3 + $0x20] sm:$0xff]  }
 0x1d9   : > { %v10412_v62 = vpop.f32.mrf.mxu0  ;;  %10585 = vmatpush3.bf16.msra.mxu1 %v11360_v42 }
 0x1da   : > { %15358 = vst [vmem:[#allocation14_spill] sm:$0xff] %v12965_v19  ;;  %v10413_v24 = vadd.f32 %v10412_v62, %v10411_v27  ;;  %v12969_v44 = vpop.f32.mrf.mxu1 }
 0x1dc   : > { %v12972_v18 = vadd.f32 %v10413_v24, %v12808_v14  ;;  %v12974_v15 = vpop.f32.mrf.mxu1 }
 0x1dd   : > { %v10414_v50 = vpop.f32.mrf.mxu0 }
 0x1de   : > { %15359 = vst [vmem:[#allocation15_spill] sm:$0xff] %v12972_v18 }
 0x1df   : > { %v10415_v23 = vpop.f32.mrf.mxu0 }
 0x1e0   : > { %v10416_v63 = vadd.f32 %v10415_v23, %v10414_v50 }
 0x1e1   : > { %v10417_v62 = vpop.f32.mrf.mxu0 }
 0x1e2   : > { %v12982_v13 = vpop.f32.mrf.mxu1  ;;  %v12985_v27 = vadd.f32 %v10416_v63, %v12811_v49 }
 0x1e3   : > { %v10418_v24 = vpop.f32.mrf.mxu0 }
 0x1e4   : > { %v12987_v14 = vpop.f32.mrf.mxu1  ;;  %v10419_v23 = vadd.f32 %v10418_v24, %v10417_v62  ;;  %v11361_v62 = vld [vmem:[%s15316_s3 + $0x58] sm:$0xff]  }
 0x1e5   : > { %v11362_v24 = vld [vmem:[%s15316_s3 + $0x18] sm:$0xff]   ;;  %10586 = vmatprep.subr.bf16.mxu1 %v11361_v62  ;;  %v11369_v62 = vld [vmem:[%s15316_s3 + $0xb0] sm:$0xff]  }
 0x1e6   : > { %v12989_v50 = vpop.f32.mrf.mxu1  ;;  %v12992_v18 = vadd.f32 %v10419_v23, %v12814_v2  ;;  %10587 = vmatpush3.bf16.msra.mxu1 %v11362_v24 }
 0x1e8   : > { %15360 = vst [vmem:[#allocation16_spill] sm:$0xff] %v12992_v18  ;;  %v10420_v19 = vpop.f32.mrf.mxu0  ;;  %v12994_v22 = vpop.f32.mrf.mxu1 }
 0x1ea   : > { %v10421_v30 = vpop.f32.mrf.mxu0 }
 0x1eb   : > { %v10422_v25 = vadd.f32 %v10421_v30, %v10420_v19  ;;  %v11365_v30 = vld [vmem:[%s15316_s3 + $0xf8] sm:$0xff]  }
 0x1ec   : > { %v12996_v29 = vpop.f32.mrf.mxu1  ;;  %v10423_v49 = vpop.f32.mrf.mxu0  ;;  %10678 = vmatprep.subr.bf16.mxu0 %v11365_v30 }
 0x1ed   : > { %v12999_v63 = vadd.f32 %v10422_v25, %v12817_v35  ;;  %v11366_v35 = vld [vmem:[%s15316_s3 + $0xb8] sm:$0xff]  }
 0x1ee   : > { %v13001_v48 = vpop.f32.mrf.mxu1  ;;  %v10424_v42 = vpop.f32.mrf.mxu0  ;;  %10679 = vmatpush3.bf16.msra.mxu0 %v11366_v35  ;;  %v11372_v35 = vld [vmem:[%s15316_s3 + $0xa8] sm:$0xff]  }
 0x1ef   : > { %15361 = vst [vmem:[#allocation17_spill] sm:$0xff] %v12999_v63  ;;  %v10425_v2 = vadd.f32 %v10424_v42, %v10423_v49  ;;  %v11367_v49 = vld [vmem:[%s15316_s3 + $0xf0] sm:$0xff]  }
 0x1f0   : > { %v13012_v19 = vpop.f32.mrf.mxu1  ;;  %10680 = vmatprep.subr.bf16.mxu0 %v11367_v49 }
 0x1f1   : > { %15362 = vst [vmem:[#allocation18_spill] sm:$0xff] %v13012_v19  ;;  %v13018_v25 = vadd.f32 %v10425_v2, %v12820_v37  ;;  %v11371_v2 = vld [vmem:[%s15316_s3 + $0xe8] sm:$0xff]  }
 0x1f2   : > { %v13023_v42 = vpop.f32.mrf.mxu1  ;;  %10681 = vmatpush3.bf16.msra.mxu0 %v11369_v62  ;;  %v11374_v62 = vld [vmem:[%s15316_s3 + $0xa0] sm:$0xff]  }
 0x1f3   : > { %15363 = vst [vmem:[#allocation19_spill] sm:$0xff] %v13018_v25  ;;  %v10426_v23 = vpop.f32.mrf.mxu0  ;;  %10682 = vmatprep.subr.bf16.mxu0 %v11371_v2 }
 0x1f5   : > { %v10427_v63 = vpop.f32.mrf.mxu0 }
 0x1f6   : > { %v10428_v19 = vadd.f32 %v10427_v63, %v10426_v23  ;;  %10683 = vmatpush3.bf16.msra.mxu0 %v11372_v35 }
 0x1f7   : > { %v10429_v18 = vpop.f32.mrf.mxu0 }
 0x1f8   : > { %v13029_v37 = vadd.f32 %v10428_v19, %v12825_v47  ;;  %v13034_v24 = vpop.f32.mrf.mxu1  ;;  %v11373_v47 = vld [vmem:[%s15316_s3 + $0xe0] sm:$0xff]  }
 0x1f9   : > { %v10430_v30 = vpop.f32.mrf.mxu0  ;;  %10684 = vmatprep.subr.bf16.mxu0 %v11373_v47  ;;  %v11376_v47 = vld [vmem:[%s15316_s3 + $0x98] sm:$0xff]  }
 0x1fa   : > { %15364 = vst [vmem:[#allocation20_spill] sm:$0xff] %v13029_v37  ;;  %v10431_v25 = vadd.f32 %v10430_v30, %v10429_v18  ;;  %v13045_v19 = vpop.f32.mrf.mxu1  ;;  %v11363_v18 = vld [vmem:[%s15316_s3 + $0x50] sm:$0xff]   ;;  %10685 = vmatpush3.bf16.msra.mxu0 %v11374_v62  ;;  %v11375_v30 = vld [vmem:[%s15316_s3 + $0xd8] sm:$0xff]  }
 0x1fb   : > { %10588 = vmatprep.subr.bf16.mxu1 %v11363_v18  ;;  %10686 = vmatprep.subr.bf16.mxu0 %v11375_v30 }
 0x1fc   : > { %v13040_v23 = vadd.f32 %v10431_v25, %v12828_v34  ;;  %v11364_v34 = vld [vmem:[%s15316_s3 + $0x10] sm:$0xff]   ;;  %v13062_v35 = vpop.f32.mrf.mxu1 }
 0x1fd   : > { %v10432_v63 = vpop.f32.mrf.mxu0  ;;  %15367 = vst [vmem:[#allocation23_spill] sm:$0xff] %v13062_v35  ;;  %10589 = vmatpush3.bf16.msra.mxu1 %v11364_v34  ;;  %v11380_v34 = vld [vmem:[%s15316_s3 + $0x90] sm:$0xff]  }
 0x1fe   : > { %15365 = vst [vmem:[#allocation21_spill] sm:$0xff] %v13040_v23  ;;  %10687 = vmatpush3.bf16.msra.mxu0 %v11376_v47  ;;  %v11382_v47 = vld [vmem:[%s15316_s3 + $0x88] sm:$0xff]  }
 0x1ff   : > { %v10433_v49 = vpop.f32.mrf.mxu0 }
 0x200   : > { %v10434_v37 = vadd.f32 %v10433_v49, %v10432_v63 }
 0x201   : > { %v10435_v2 = vpop.f32.mrf.mxu0 }
 0x202   : > { %v13057_v25 = vadd.f32 %v10434_v37, %v12831_v55  ;;  %v11379_v55 = vld [vmem:[%s15316_s3 + $0xd0] sm:$0xff]   ;;  %v13073_v37 = vpop.f32.mrf.mxu1 }
 0x203   : > { %v10436_v63 = vpop.f32.mrf.mxu0  ;;  %15369 = vst [vmem:[#allocation25_spill] sm:$0xff] %v13073_v37  ;;  %10688 = vmatprep.subr.bf16.mxu0 %v11379_v55  ;;  %v11368_v55 = vld [vmem:[%s15316_s3 + $0x48] sm:$0xff]  }
 0x204   : > { %15366 = vst [vmem:[#allocation22_spill] sm:$0xff] %v13057_v25  ;;  %v10437_v49 = vadd.f32 %v10436_v63, %v10435_v2  ;;  %10689 = vmatpush3.bf16.msra.mxu0 %v11380_v34  ;;  %v13081_v30 = vpop.f32.mrf.mxu1  ;;  %10590 = vmatprep.subr.bf16.mxu1 %v11368_v55 }
 0x205   : > { %15370 = vst [vmem:[#allocation26_spill] sm:$0xff] %v13081_v30 }
 0x206   : > { %v13068_v62 = vadd.f32 %v10437_v49, %v12839_v46  ;;  %v11381_v46 = vld [vmem:[%s15316_s3 + $0xc8] sm:$0xff]   ;;  %v13098_v23 = vpop.f32.mrf.mxu1 }
 0x207   : > { %10690 = vmatprep.subr.bf16.mxu0 %v11381_v46  ;;  %15372 = vst [vmem:[#allocation28_spill] sm:$0xff] %v13098_v23 }
 0x208   : > { %15368 = vst [vmem:[#allocation24_spill] sm:$0xff] %v13068_v62  ;;  %v10438_v18 = vpop.f32.mrf.mxu0  ;;  %10691 = vmatpush3.bf16.msra.mxu0 %v11382_v47  ;;  %v11383_v62 = vld [vmem:[%s15316_s3 + $0xc0] sm:$0xff]  }
 0x209   : > { %10692 = vmatprep.subr.bf16.mxu0 %v11383_v62  ;;  %v11378_v47 = vld [vmem:[%s15316_s3] sm:$0xff]  }
 0x20a   : > { %v10439_v25 = vpop.f32.mrf.mxu0 }
 0x20b   : > { %v10440_v2 = vadd.f32 %v10439_v25, %v10438_v18  ;;  %v11370_v18 = vld [vmem:[%s15316_s3 + $0x8] sm:$0xff]  }
 0x20c   : > { %v10441_v63 = vpop.f32.mrf.mxu0  ;;  %10591 = vmatpush3.bf16.msra.mxu1 %v11370_v18 }
 0x20d   : > { %v13087_v49 = vadd.f32 %v10440_v2, %v12842_v9  ;;  %v11384_v9 = vld [vmem:[%s15316_s3 + $0x80] sm:$0xff]  }
 0x20e   : > { %v10442_v25 = vpop.f32.mrf.mxu0  ;;  %10693 = vmatpush3.bf16.msra.mxu0 %v11384_v9 }
 0x20f   : > { %15371 = vst [vmem:[#allocation27_spill] sm:$0xff] %v13087_v49  ;;  %v10443_v34 = vadd.f32 %v10442_v25, %v10441_v63  ;;  %v11377_v63 = vld [vmem:[%s15316_s3 + $0x40] sm:$0xff]   ;;  %v13112_v25 = vpop.f32.mrf.mxu1 }
 0x210   : > { %10592 = vmatprep.subr.bf16.mxu1 %v11377_v63 }
 0x211   : > { %v13104_v2 = vadd.f32 %v10443_v34, %v12845_v32  ;;  %10593 = vmatpush3.bf16.msra.mxu1 %v11378_v47  ;;  %v10474_v47 = vadd.f32 %v12877_v56, %v12875_v33 }
 0x213   : > { %15373 = vst [vmem:[#allocation29_spill] sm:$0xff] %v13104_v2  ;;  %v10444_v46 = vpop.f32.mrf.mxu0  ;;  %v13117_v2 = vpop.f32.mrf.mxu1 }
 0x215   : > { %v10445_v55 = vpop.f32.mrf.mxu0  ;;  %v13122_v30 = vpop.f32.mrf.mxu1 }
 0x216   : > { %v10446_v18 = vadd.f32 %v10445_v55, %v10444_v46 }
 0x217   : > { %v10447_v49 = vpop.f32.mrf.mxu0  ;;  %v13124_v35 = vpop.f32.mrf.mxu1 }
 0x218   : > { %v13115_v32 = vadd.f32 %v10446_v18, %v12855_v52  ;;  %v13128_v52 = vpop.permute.xlu0 %4530 }
 0x219   : > { %v10448_v34 = vpop.f32.mrf.mxu0  ;;  %v13141_v33 = vpop.f32.mrf.mxu1 }
 0x21a   : > { %v10449_v23 = vadd.f32 %v10448_v34, %v10447_v49  ;;  %v10486_v34 = vadd.f32 %v12911_v57, %v12906_v5  ;;  %v10495_v5 = vadd.f32 %v12932_v28, %v12930_v60  ;;  %v10507_v28 = vadd.f32 %v12960_v12, %v12955_v43  ;;  %v15376_v12 = vld [vmem:[#allocation8_spill] sm:$0xff] }
 0x21c   : > { %v13120_v62 = vadd.f32 %v10449_v23, %v12858_v45  ;;  %v10477_v45 = vadd.f32 %v12884_v54, %v12882_v53  ;;  %v10480_v23 = vadd.f32 %v12888_v3, %v12886_v7  ;;  %v4273_v53 = vadd.f32 %v10474_v47, %v12873_v17  ;;  %v11394_v54 = vld [vmem:[%s15316_s3 + $0x178] sm:$0xff]   ;;  %v13158_v57 = vpop.permute.xlu0 %4535  ;;  %v15380_v47 = vld [vmem:[#allocation11_spill] sm:$0xff] }
 0x21d   : > { %15374 = vst [vmem:[#allocation30_spill] sm:$0xff] %v13158_v57  ;;  %10778 = vmatprep.subr.bf16.mxu1 %v11394_v54  ;;  %v4289_v60 = vadd.f32 %v10486_v34, %v12909_v21  ;;  %v15384_v34 = vld [vmem:[#allocation14_spill] sm:$0xff] }
 0x21e   : > { %v4281_v7 = vadd.f32 %v10480_v23, %v12891_v10  ;;  %v10498_v10 = vadd.f32 %v12939_v61, %v12934_v4  ;;  %v10513_v61 = vadd.f32 %v12974_v15, %v12969_v44  ;;  %v10522_v15 = vadd.f32 %v13001_v48, %v12996_v29  ;;  %v15383_v48 = vld [vmem:[#allocation13_spill] sm:$0xff] }
 0x220   : > { %v13204_v23 = vpop.permute.xlu0 %4550 }
 0x221   : > { %15381 = vst [vmem:[#allocation8_spill] sm:$0xff] %v13204_v23 }
 0x222   : > { %v10450_v9 = vpop.f32.mrf.mxu0 }
 0x224   : > { %v10451_v37 = vpop.f32.mrf.mxu0 }
 0x225   : > { %v10452_v63 = vadd.f32 %v10451_v37, %v10450_v9  ;;  %v10483_v37 = vadd.f32 %v12901_v26, %v12899_v59  ;;  %v4276_v59 = vadd.f32 %v10477_v45, %v12880_v58  ;;  %v10492_v26 = vadd.f32 %v12925_v6, %v12923_v16  ;;  %v13171_v16 = vpop.f32.mrf.mxu1 }
 0x226   : > { %v10453_v46 = vpop.f32.mrf.mxu0  ;;  %v10501_v58 = vadd.f32 %v12946_v39, %v12941_v1  ;;  %v10516_v1 = vadd.f32 %v12987_v14, %v12982_v13  ;;  %v10519_v39 = vadd.f32 %v12994_v22, %v12989_v50  ;;  %v15378_v14 = vld [vmem:[#allocation12_spill] sm:$0xff]  ;;  %v15379_v50 = vld [vmem:[#allocation10_spill] sm:$0xff] }
 0x227   : > { %v13131_v55 = vadd.f32 %v10452_v63, %v12867_v41  ;;  %v10489_v41 = vadd.f32 %v12918_v31, %v12913_v20  ;;  %v4284_v20 = vadd.f32 %v10483_v37, %v12904_v38  ;;  %v10504_v31 = vadd.f32 %v12953_v36, %v12948_v11  ;;  %v13197_v44 = vpop.f32.mrf.mxu1 }
 0x228   : > { %v10454_v49 = vpop.f32.mrf.mxu0  ;;  %v10510_v38 = vadd.f32 %v12967_v40, %v12962_v0  ;;  %v4297_v0 = vadd.f32 %v10492_v26, %v15376_v12  ;;  %v13202_v45 = vadd.f32 %v10501_v58, %v15380_v47  ;;  %v13220_v54 = vadd.f32 %v10516_v1, %v12985_v27  ;;  %v15391_v47 = vld [vmem:[#allocation26_spill] sm:$0xff] }
 0x229   : > { %v10455_v18 = vadd.f32 %v10454_v49, %v10453_v46  ;;  %v4292_v4 = vadd.f32 %v10489_v41, %v12916_v8  ;;  %v15377_v8 = vld [vmem:[#allocation9_spill] sm:$0xff]  ;;  %v4313_v22 = vadd.f32 %v10504_v31, %v15378_v14  ;;  %v4305_v46 = vadd.f32 %v10498_v10, %v15379_v50  ;;  %v5047_v31 = vld [vmem:[#allocation2] sm:$0xf] }
 0x22a   : > { %v11018_v56 = vpop.f32.mrf.mxu0  ;;  %v4300_v40 = vadd.f32 %v10495_v5, %v15377_v8  ;;  %v10528_v27 = vadd.f32 %v13045_v19, %v13034_v24  ;;  %v15389_v14 = vld [vmem:[#allocation23_spill] sm:$0xff]  ;;  %v15390_v50 = vld [vmem:[#allocation25_spill] sm:$0xff] }
 0x22b   : > { %v13146_v9 = vadd.f32 %v10455_v18, %v12870_v51  ;;  %v13160_v51 = vpop.permute.xlu1 %4540  ;;  %v13178_v63 = vadd.f32 %v11018_v56, %v4281_v7  ;;  %v13213_v18 = vadd.f32 %v10507_v28, %v15383_v48  ;;  %v13216_v56 = vadd.f32 %v10510_v38, %v15384_v34  ;;  %v15385_v7 = vld [vmem:[#allocation16_spill] sm:$0xff]  ;;  %v10545_v38 = vpop.f32.mrf.mxu1 }
 0x22c   : > { %v4417_v3 = vpop.f32.mrf.mxu0  ;;  %15375 = vst [vmem:[#allocation31_spill] sm:$0xff] %v13160_v51  ;;  %v13249_v48 = vpop.permute.xlu0 %4560 }
 0x22d   : > { %v13162_v17 = vadd.f32 %v4417_v3, %v4273_v53  ;;  %v4565_v49 = vmul.f32 %v13160_v51, %v13178_v63  ;;  %v13223_v3 = vadd.f32 %v10519_v39, %v15385_v7  ;;  %v15388_v39 = vld [vmem:[#allocation17_spill] sm:$0xff]  ;;  %15393 = vst [vmem:[#allocation12_spill] sm:$0xff] %v13249_v48  ;;  %v10537_v7 = vadd.f32 %v13117_v2, %v13112_v25 }
 0x22e   : > { %v11019_v6 = vpop.f32.mrf.mxu0  ;;  %v15397_v25 = vld [vmem:[#allocation21_spill] sm:$0xff] }
 0x22f   : > { %v4563_v21 = vmul.f32 %v13128_v52, %v13162_v17  ;;  %v13189_v36 = vadd.f32 %v11019_v6, %v4284_v20  ;;  %v13208_v37 = vpop.permute.xlu1 %4545  ;;  %v15387_v6 = vld [vmem:[#allocation18_spill] sm:$0xff] }
 0x230   : > { %v4420_v11 = vpop.f32.mrf.mxu0  ;;  %15382 = vst [vmem:[#allocation9_spill] sm:$0xff] %v13208_v37  ;;  %v10525_v28 = vadd.f32 %v13023_v42, %v15387_v6  ;;  %v10531_v42 = vadd.f32 %v15390_v50, %v15389_v14  ;;  %v15395_v6 = vld [vmem:[#allocation19_spill] sm:$0xff] }
 0x231   : > { %v13191_v43 = vadd.f32 %v4420_v11, %v4276_v59  ;;  %v4643_v41 = vmul.f32 %v4563_v21, %v13162_v17  ;;  %v15386_v59 = vld [vmem:[#allocation15_spill] sm:$0xff]  ;;  %v4566_v5 = vmul.f32 %v13208_v37, %v13189_v36  ;;  %v13240_v11 = vadd.f32 %v10522_v15, %v15388_v39 }
 0x232   : > { %v11022_v13 = vpop.f32.mrf.mxu0  ;;  %v13226_v26 = vadd.f32 %v10513_v61, %v15386_v59  ;;  %v10547_v59 = vpop.f32.mrf.mxu1  ;;  %v13263_v39 = vadd.f32 %v10525_v28, %v15395_v6  ;;  %v13272_v50 = vadd.f32 %v10531_v42, %v15397_v25 }
 0x233   : > { %v4564_v29 = vmul.f32 %v13158_v57, %v13191_v43  ;;  %v13237_v1 = vadd.f32 %v11022_v13, %v4297_v0  ;;  %v5077_v0 = vshrl.u32 %v5047_v31, 16  ;;  %v5080_v13 = vshll.u32 %v5047_v31, 16 }
 0x234   : > { %v4433_v53 = vpop.f32.mrf.mxu0  ;;  %v4646_v15 = vmul.f32 %v4566_v5, %v13189_v36 }
 0x235   : > { %v4591_v20 = vadd.f32 %v4564_v29, %v4563_v21  ;;  %v4644_v10 = vmul.f32 %v4564_v29, %v13191_v43  ;;  %v13231_v58 = vadd.f32 %v4433_v53, %v4289_v60  ;;  %v4645_v21 = vmul.f32 %v4565_v49, %v13178_v63  ;;  %v15392_v29 = vld [vmem:[#allocation28_spill] sm:$0xff]  ;;  %v13252_v53 = vpop.permute.xlu1 %4555 }
 0x236   : > { %v11023_v61 = vpop.f32.mrf.mxu0  ;;  %v10534_v24 = vadd.f32 %v15392_v29, %v15391_v47  ;;  %15394 = vst [vmem:[#allocation10_spill] sm:$0xff] %v13252_v53 }
 0x237   : > { %v4592_v12 = vadd.f32 %v4591_v20, %v4565_v49  ;;  %v4671_v8 = vadd.f32 %v4644_v10, %v4643_v41  ;;  %v4567_v60 = vmul.f32 %v13204_v23, %v13231_v58  ;;  %v4569_v20 = vmul.f32 %v13249_v48, %v13237_v1 }
 0x238   : > { %v4436_v19 = vpop.f32.mrf.mxu0  ;;  %v13260_v10 = vadd.f32 %v11023_v61, %v4300_v40  ;;  %v13274_v40 = vrot.slane %v5077_v0, 4  ;;  %v13276_v61 = vrot.slane %v5080_v13, 5  ;;  %v15400_v0 = vld [vmem:[#allocation24_spill] sm:$0xff]  ;;  %v10540_v13 = vadd.f32 %v13124_v35, %v13122_v30 }
 0x239   : > { %v4672_v34 = vadd.f32 %v4671_v8, %v4645_v21  ;;  %v4593_v49 = vadd.f32 %v4592_v12, %v4566_v5  ;;  %v13254_v41 = vadd.f32 %v4436_v19, %v4292_v4  ;;  %v4647_v21 = vmul.f32 %v4567_v60, %v13231_v58  ;;  %v15396_v12 = vld [vmem:[#allocation20_spill] sm:$0xff] }
 0x23a   : > { %v11026_v31 = vpop.f32.mrf.mxu0  ;;  %v13269_v2 = vadd.f32 %v10528_v27, %v15396_v12  ;;  %15398 = vst [vmem:[#allocation11_spill] sm:$0xff] %v13276_v61  ;;  %v13289_v6 = vadd.f32 %v10537_v7, %v15400_v0 }
 0x23b   : > { %v4594_v14 = vadd.f32 %v4593_v49, %v4567_v60  ;;  %v4673_v8 = vadd.f32 %v4672_v34, %v4646_v15  ;;  %v4568_v4 = vmul.f32 %v13252_v53, %v13254_v41  ;;  %v15399_v60 = vld [vmem:[#allocation22_spill] sm:$0xff]  ;;  %v10548_v15 = vpop.f32.mrf.mxu1  ;;  %v4570_v34 = vmul.f32 %v13128_v52, %v13260_v10 }
 0x23c   : > { %v4449_v5 = vpop.f32.mrf.mxu0  ;;  %v13280_v19 = vadd.f32 %v10534_v24, %v15399_v60  ;;  %v13284_v27 = vadd.f32 %v11026_v31, %v4313_v22  ;;  %v10549_v31 = vadd.f32 %v10548_v15, %v10547_v59 }
 0x23d   : > { %v4674_v28 = vadd.f32 %v4673_v8, %v4647_v21  ;;  %v4595_v47 = vadd.f32 %v4594_v14, %v4568_v4  ;;  %v4648_v29 = vmul.f32 %v4568_v4, %v13254_v41  ;;  %v13286_v49 = vadd.f32 %v4449_v5, %v4305_v46 }
 0x23e   : > { %v11027_v42 = vpop.f32.mrf.mxu0  ;;  %v4649_v14 = vmul.f32 %v4569_v20, %v13237_v1  ;;  %v10543_v8 = vadd.f32 %v13171_v16, %v13141_v33  ;;  %v10546_v4 = vadd.f32 %v10545_v38, %v13197_v44  ;;  %v4650_v30 = vmul.f32 %v4570_v34, %v13260_v10 }
 0x23f   : > { %v4596_v21 = vadd.f32 %v4595_v47, %v4569_v20  ;;  %v4675_v24 = vadd.f32 %v4674_v28, %v4648_v29  ;;  %v4571_v22 = vmul.f32 %v13158_v57, %v13286_v49  ;;  %v13300_v46 = vadd.f32 %v11027_v42, %v13213_v18  ;;  %v10550_v20 = vpop.f32.mrf.mxu1  ;;  %v15401_v28 = vld [vmem:[#allocation27_spill] sm:$0xff] }
 0x240   : > { %v4452_v7 = vpop.f32.mrf.mxu0  ;;  %v4573_v33 = vmul.f32 %v13208_v37, %v13284_v27  ;;  %v13312_v47 = vadd.f32 %v10540_v13, %v15401_v28 }
 0x241   : > { %v4597_v5 = vrot.slane %v4596_v21, 4  ;;  %v4676_v12 = vadd.f32 %v4675_v24, %v4649_v14  ;;  %v13303_v35 = vadd.f32 %v4452_v7, %v13202_v45  ;;  %v4603_v16 = vadd.f32 %v4571_v22, %v4570_v34  ;;  %v15402_v34 = vld [vmem:[#allocation29_spill] sm:$0xff] }
 0x242   : > { %v4651_v44 = vmul.f32 %v4571_v22, %v13286_v49  ;;  %v11030_v38 = vpop.f32.mrf.mxu0  ;;  %v4574_v29 = vmul.f32 %v13204_v23, %v13300_v46  ;;  %v13320_v42 = vadd.f32 %v10543_v8, %v15402_v34  ;;  %v4653_v22 = vmul.f32 %v4573_v33, %v13284_v27 }
 0x243   : > { %v4598_v25 = vadd.f32 %v4597_v5, %v4596_v21  ;;  %v4677_v18 = vrot.slane %v4676_v12, 4  ;;  %v4572_v59 = vmul.f32 %v13160_v51, %v13303_v35  ;;  %v13317_v60 = vadd.f32 %v11030_v38, %v13220_v54 }
 0x244   : > { %v4683_v45 = vadd.f32 %v4651_v44, %v4650_v30  ;;  %v4465_v15 = vpop.f32.mrf.mxu0  ;;  %v13328_v5 = vadd.f32 %v10546_v4, %v13115_v32  ;;  %v13331_v54 = vadd.f32 %v10549_v31, %v13120_v62  ;;  %v10551_v30 = vpop.f32.mrf.mxu1 }
 0x245   : > { %v4599_v0 = vrot.slane %v4598_v25, 2  ;;  %v4678_v14 = vadd.f32 %v4677_v18, %v4676_v12  ;;  %v4604_v21 = vadd.f32 %v4603_v16, %v4572_v59  ;;  %v4652_v24 = vmul.f32 %v4572_v59, %v13303_v35 }
 0x246   : > { %v13325_v13 = vadd.f32 %v4465_v15, %v13216_v56  ;;  %v11031_v7 = vpop.f32.mrf.mxu0  ;;  %v4654_v16 = vmul.f32 %v4574_v29, %v13300_v46  ;;  %v4577_v18 = vmul.f32 %v13128_v52, %v13317_v60 }
 0x247   : > { %v4600_v8 = vadd.f32 %v4599_v0, %v4598_v25  ;;  %v4679_v44 = vrot.slane %v4678_v14, 2  ;;  %v4605_v38 = vadd.f32 %v4604_v21, %v4573_v33  ;;  %v4684_v12 = vadd.f32 %v4683_v45, %v4652_v24 }
 0x248   : > { %v4575_v56 = vmul.f32 %v13252_v53, %v13325_v13  ;;  %v13339_v59 = vadd.f32 %v11031_v7, %v13223_v3  ;;  %v4468_v32 = vpop.f32.mrf.mxu0  ;;  %v10552_v25 = vadd.f32 %v10551_v30, %v10550_v20  ;;  %v4657_v7 = vmul.f32 %v4577_v18, %v13317_v60 }
 0x249   : > { %v4601_v4 = vrot.slane %v4600_v8, 1  ;;  %v4680_v62 = vadd.f32 %v4679_v44, %v4678_v14  ;;  %v4685_v31 = vadd.f32 %v4684_v12, %v4653_v22  ;;  %v4606_v28 = vadd.f32 %v4605_v38, %v4574_v29 }
 0x24a   : > { %v4655_v33 = vmul.f32 %v4575_v56, %v13325_v13  ;;  %v4578_v45 = vmul.f32 %v13158_v57, %v13339_v59  ;;  %v13345_v15 = vadd.f32 %v4468_v32, %v13226_v26  ;;  %v11034_v34 = vpop.f32.mrf.mxu0 }
 0x24b   : > { %v4602_v0 = vadd.f32 %v4601_v4, %v4600_v8  ;;  %v4681_v21 = vrot.slane %v4680_v62, 1  ;;  %v4607_v24 = vadd.f32 %v4606_v28, %v4575_v56  ;;  %v4686_v3 = vadd.f32 %v4685_v31, %v4654_v16  ;;  %v10553_v8 = vpop.f32.mrf.mxu1 }
 0x24c   : > { %v4615_v61 = vadd.f32 %v4578_v45, %v4577_v18  ;;  %v4658_v14 = vmul.f32 %v4578_v45, %v13339_v59  ;;  %v4576_v20 = vmul.f32 %v13249_v48, %v13345_v15  ;;  %v4481_v29 = vpop.f32.mrf.mxu0  ;;  %v13354_v26 = vadd.f32 %v11034_v34, %v13269_v2 }
 0x24d   : > { %v13351_v22 = vmul.f32 0.04, %v4602_v0  ;;  %v4682_v30 = vadd.f32 %v4681_v21, %v4680_v62  ;;  %v4687_v44 = vadd.f32 %v4686_v3, %v4655_v33  ;;  %v13358_v18 = vadd.f32 %v4481_v29, %v13240_v11  ;;  %v10554_v3 = vpop.f32.mrf.mxu1 }
 0x24e   : > { %v4695_v38 = vadd.f32 %v4658_v14, %v4657_v7  ;;  %v4608_v12 = vadd.f32 %v4607_v24, %v4576_v20  ;;  %v4656_v16 = vmul.f32 %v4576_v20, %v13345_v15  ;;  %v11035_v56 = vpop.f32.mrf.mxu0 }
 0x24f   : > { %v4719_v32 = vmul.f32 0.04, %v4682_v30  ;;  %v4723_v4 = vmul.f32 %v13351_v22, %v13351_v22  ;;  %v4739_v62 = vsub.f32 %v13162_v17, %v13351_v22  ;;  %v4740_v2 = vsub.f32 %v13191_v43, %v13351_v22 }
 0x250   : > { %v4484_v45 = vpop.f32.mrf.mxu0  ;;  %v4609_v21 = vrot.slane %v4608_v12, 4  ;;  %v4688_v24 = vadd.f32 %v4687_v44, %v4656_v16  ;;  %v4579_v7 = vmul.f32 %v13160_v51, %v13358_v18  ;;  %v13379_v14 = vadd.f32 %v11035_v56, %v13272_v50 }
 0x251   : > { %v4727_v34 = vsub.f32 %v4719_v32, %v4723_v4  ;;  %v13382_v20 = vadd.f32 %v4484_v45, %v13263_v39  ;;  %v13385_v30 = vadd.f32 %v10552_v25, %v13131_v55  ;;  %v4581_v44 = vmul.f32 %v13204_v23, %v13354_v26 }
 0x252   : > { %v11038_v29 = vpop.f32.mrf.mxu0  ;;  %v4610_v4 = vadd.f32 %v4609_v21, %v4608_v12  ;;  %v4689_v33 = vrot.slane %v4688_v24, 4  ;;  %v4616_v16 = vadd.f32 %v4615_v61, %v4579_v7  ;;  %v4659_v0 = vmul.f32 %v4579_v7, %v13358_v18 }
 0x253   : > { %v4731_v32 = vadd.f32 1e-05, %v4727_v34  ;;  %v4580_v50 = vmul.f32 %v13208_v37, %v13382_v20  ;;  %v13393_v56 = vadd.f32 %v11038_v29, %v13312_v47  ;;  %v10555_v45 = vadd.f32 %v10554_v3, %v10553_v8 }
 0x254   : > { %v4497_v39 = vpop.f32.mrf.mxu0  ;;  %v4611_v55 = vrot.slane %v4610_v4, 2  ;;  %v4690_v25 = vadd.f32 %v4689_v33, %v4688_v24  ;;  %v4696_v34 = vadd.f32 %v4695_v38, %v4659_v0  ;;  %v4582_v12 = vmul.f32 %v13252_v53, %v13379_v14 }
 0x255   : > { %11607 = vrsqrt.f32 %v4731_v32  ;;  %v4617_v21 = vadd.f32 %v4616_v16, %v4580_v50  ;;  %v4660_v61 = vmul.f32 %v4580_v50, %v13382_v20  ;;  %v4661_v31 = vmul.f32 %v4581_v44, %v13354_v26 }
 0x256   : > { %v11039_v11 = vpop.f32.mrf.mxu0  ;;  %v4612_v7 = vadd.f32 %v4611_v55, %v4610_v4  ;;  %v4691_v28 = vrot.slane %v4690_v25, 2  ;;  %v13400_v47 = vadd.f32 %v4497_v39, %v13280_v19  ;;  %v4585_v33 = vmul.f32 %v13158_v57, %v13393_v56 }
 0x257   : > { %v4618_v29 = vadd.f32 %v4617_v21, %v4581_v44  ;;  %v4697_v8 = vadd.f32 %v4696_v34, %v4660_v61  ;;  %v13405_v38 = vadd.f32 %v11039_v11, %v13320_v42  ;;  %v4662_v19 = vmul.f32 %v4582_v12, %v13379_v14 }
 0x258   : > { %v4500_v0 = vpop.f32.mrf.mxu0  ;;  %v4613_v24 = vrot.slane %v4612_v7, 1  ;;  %v4692_v3 = vadd.f32 %v4691_v28, %v4690_v25  ;;  %v4583_v32 = vmul.f32 %v13249_v48, %v13400_v47  ;;  %v13418_v28 = vadd.f32 %v10555_v45, %v13146_v9 }
 0x259   : > { %v13410_v4 = vadd.f32 %v4500_v0, %v13289_v6  ;;  %v4698_v16 = vadd.f32 %v4697_v8, %v4661_v31  ;;  %v4619_v44 = vadd.f32 %v4618_v29, %v4582_v12  ;;  %v4586_v50 = vmul.f32 %v13160_v51, %v13405_v38 }
 0x25a   : > { %v11042_v39 = vpop.f32.mrf.mxu0  ;;  %v4614_v55 = vadd.f32 %v4613_v24, %v4612_v7  ;;  %v4693_v42 = vrot.slane %v4692_v3, 1  ;;  %v4665_v25 = vmul.f32 %v4585_v33, %v13393_v56  ;;  %v4663_v34 = vmul.f32 %v4583_v32, %v13400_v47 }
 0x25b   : > { %v4584_v11 = vmul.f32 %v13128_v52, %v13410_v4  ;;  %v4620_v6 = vadd.f32 %v4619_v44, %v4583_v32  ;;  %v4699_v21 = vadd.f32 %v4698_v16, %v4662_v19  ;;  %v13425_v29 = vmul.f32 %v4586_v50, %v13405_v38 }
 0x25c   : > { %v4513_v31 = vpop.f32.mrf.mxu0  ;;  %v13422_v12 = vmul.f32 0.04, %v4614_v55  ;;  %v4694_v61 = vadd.f32 %v4693_v42, %v4692_v3  ;;  %v15405_v17 = vsub.f32 %v13231_v58, %v13351_v22  ;;  %v15406_v43 = vsub.f32 %v13254_v41, %v13351_v22 }
 0x25d   : > { %v4627_v7 = vadd.f32 %v4585_v33, %v4584_v11  ;;  %v4621_v8 = vrot.slane %v4620_v6, 4  ;;  %v4700_v0 = vadd.f32 %v4699_v21, %v4663_v34  ;;  %v4664_v24 = vmul.f32 %v4584_v11, %v13410_v4 }
 0x25e   : > { %v13429_v9 = vadd.f32 %v4513_v31, %v13328_v5  ;;  %v4720_v45 = vmul.f32 0.04, %v4694_v61  ;;  %v4724_v32 = vmul.f32 %v13422_v12, %v13422_v12  ;;  %v4746_v19 = vsub.f32 %v13260_v10, %v13422_v12 }
 0x25f   : > { %v4622_v11 = vadd.f32 %v4621_v8, %v4620_v6  ;;  %v13448_v34 = vadd.f32 %v11042_v39, %v13385_v30  ;;  %v4701_v31 = vrot.slane %v4700_v0, 4  ;;  %v4707_v61 = vadd.f32 %v4665_v25, %v4664_v24  ;;  %v11043_v24 = vpop.f32.mrf.mxu0 }
 0x260   : > { %v4728_v55 = vsub.f32 %v4720_v45, %v4724_v32  ;;  %v4587_v16 = vmul.f32 %v13208_v37, %v13429_v9  ;;  %v4628_v33 = vadd.f32 %v4627_v7, %v4586_v50  ;;  %v15403_v6 = vsub.f32 %v13178_v63, %v13351_v22  ;;  %v11445_v50 = vld [vmem:[%s15316_s3 + $0x1f8] sm:$0xff]  }
 0x261   : > { %v15404_v39 = vsub.f32 %v13189_v36, %v13351_v22  ;;  %v15407_v63 = vsub.f32 %v13237_v1, %v13351_v22  ;;  %10878 = vmatprep.subr.bf16.mxu0 %v11445_v50  ;;  %v4702_v50 = vadd.f32 %v4701_v31, %v4700_v0  ;;  %v15408_v31 = vld [vmem:[#allocation11_spill] sm:$0xff]  ;;  %v15413_v10 = vsub.f32 %v13325_v13, %v13422_v12 }
 0x262   : > { %v11608_v21 = vpop.eup %11607  ;;  %v4732_v8 = vadd.f32 1e-05, %v4728_v55 }
 0x263   : > { %v4767_v5 = vmul.f32 %v11608_v21, %v4739_v62  ;;  %v4768_v45 = vmul.f32 %v11608_v21, %v4740_v2  ;;  %v4769_v30 = vmul.f32 %v11608_v21, %v15403_v6  ;;  %v4770_v25 = vmul.f32 %v11608_v21, %v15404_v39 }
 0x264   : > { %v4771_v62 = vmul.f32 %v11608_v21, %v15405_v17  ;;  %v4772_v2 = vmul.f32 %v11608_v21, %v15406_v43  ;;  %v4773_v7 = vmul.f32 %v11608_v21, %v15407_v63  ;;  %11609 = vrsqrt.f32 %v4732_v8  ;;  %v5615_v43 = vld [vmem:[#allocation2] sm:$0x8] }
 0x265   : > { %v4795_v36 = vmax.f32 %v4767_v5, 0.0  ;;  %v4796_v32 = vmax.f32 %v4768_v45, 0.0  ;;  %v4797_v6 = vmax.f32 %v4769_v30, 0.0  ;;  %v4798_v39 = vmax.f32 %v4770_v25, 0.0  ;;  %v4516_v45 = vpop.f32.mrf.mxu0 }
 0x266   : > { %v4799_v42 = vmax.f32 %v4771_v62, 0.0  ;;  %v4800_v44 = vmax.f32 %v4772_v2, 0.0  ;;  %v4801_v3 = vmax.f32 %v4773_v7, 0.0  ;;  %v4623_v21 = vrot.slane %v4622_v11, 2 }
 0x267   : > { %v4823_v58 = vmul.f32 %v4795_v36, %v13128_v52  ;;  %v4824_v41 = vmul.f32 %v4796_v32, %v13158_v57  ;;  %v4825_v17 = vmul.f32 %v4797_v6, %v13160_v51  ;;  %v4826_v1 = vmul.f32 %v4798_v39, %v13208_v37 }
 0x268   : > { %v4827_v22 = vmul.f32 %v4799_v42, %v13204_v23  ;;  %v4828_v5 = vmul.f32 %v4800_v44, %v13252_v53  ;;  %v4829_v55 = vmul.f32 %v4801_v3, %v13249_v48  ;;  %v4629_v62 = vadd.f32 %v4628_v33, %v4587_v16 }
 0x269   : > { %v9972_v30 = vpack.c.bf16 %v4823_v58, %v4823_v58  ;;  %v10068_v25 = vpack.c.bf16 %v4825_v17, %v4824_v41  ;;  %v4624_v7 = vadd.f32 %v4623_v21, %v4622_v11  ;;  %v4667_v8 = vmul.f32 %v4587_v16, %v13429_v9  ;;  %v13493_v11 = vld [vmem:[#allocation2] sm:$0xe] }
 0x26a   : > { %v10073_v2 = vpack.c.bf16 %v4827_v22, %v4826_v1  ;;  %v10078_v63 = vpack.c.bf16 %v4829_v55, %v4828_v5  ;;  %v4703_v36 = vrot.slane %v4702_v50, 2  ;;  %v4708_v42 = vadd.f32 %v4707_v61, %v13425_v29 }
 0x26b   : > { %4963 = vst [vmem:[#allocation2 + $0x4] sm:$0xf] %v9972_v30  ;;  %10143 = vst [vmem:[#allocation2 + $0x8] sm:$0xff] %v10068_v25   ;;  %v13486_v44 = vadd.f32 %v11043_v24, %v13418_v28  ;;  %v13489_v3 = vadd.f32 %v4516_v45, %v13331_v54  ;;  %v4625_v0 = vrot.slane %v4624_v7, 1  ;;  %v4589_v33 = vmul.f32 %v13252_v53, %v13448_v34 }
 0x26c   : > { %10144 = vst [vmem:[#allocation2 + $0x10] sm:$0xff] %v10073_v2   ;;  %10145 = vst [vmem:[#allocation2 + $0x18] sm:$0xff] %v10078_v63   ;;  %v5645_v16 = vshrl.u32 %v5615_v43, 16  ;;  %v5083_v32 = vor.u32 %v15408_v31, %v13274_v40  ;;  %v4704_v6 = vadd.f32 %v4703_v36, %v4702_v50  ;;  %v4709_v29 = vadd.f32 %v4708_v42, %v4667_v8 }
 0x26d   : > { %v4590_v28 = vmul.f32 %v13249_v48, %v13486_v44  ;;  %v4588_v54 = vmul.f32 %v13204_v23, %v13489_v3  ;;  %v4626_v61 = vadd.f32 %v4625_v0, %v4624_v7  ;;  %v9739_v41 = vrot.slane %v13493_v11, 9 }
 0x26e   : > { %v4705_v24 = vrot.slane %v4704_v6, 1  ;;  %v4669_v1 = vmul.f32 %v4589_v33, %v13448_v34  ;;  %v13506_v40 = vrot.slane %v5645_v16, 11  ;;  %v13508_v22 = vrot.slane %v5083_v32, 4 }
 0x26f   : > { %v4630_v39 = vadd.f32 %v4629_v62, %v4588_v54  ;;  %v4668_v58 = vmul.f32 %v4588_v54, %v13489_v3  ;;  %v13503_v17 = vmul.f32 0.04, %v4626_v61  ;;  %v13511_v55 = vmul.f32 %v4590_v28, %v13486_v44 }
 0x270   : > { %v4706_v5 = vadd.f32 %v4705_v24, %v4704_v6  ;;  %v15409_v0 = vsub.f32 %v13286_v49, %v13422_v12  ;;  %v15410_v16 = vsub.f32 %v13303_v35, %v13422_v12  ;;  %v15411_v32 = vsub.f32 %v13284_v27, %v13422_v12 }
 0x271   : > { %v4631_v21 = vadd.f32 %v4630_v39, %v4589_v33  ;;  %v4710_v45 = vadd.f32 %v4709_v29, %v4668_v58  ;;  %v4725_v30 = vmul.f32 %v13503_v17, %v13503_v17  ;;  %v4753_v25 = vsub.f32 %v13317_v60, %v13503_v17  ;;  %v11610_v43 = vpop.eup %11609 }
 0x272   : > { %v4754_v50 = vsub.f32 %v13339_v59, %v13503_v17  ;;  %v4755_v62 = vsub.f32 %v13358_v18, %v13503_v17  ;;  %v4721_v2 = vmul.f32 0.04, %v4706_v5  ;;  %v4756_v63 = vsub.f32 %v13382_v20, %v13503_v17  ;;  %v4992_v36 = vld [vmem:[#allocation2 + $0x4] sm:$0xf]  ;;  %v4993_v27 = vld [vmem:[#allocation2 + $0x8] sm:$0xf] }
 0x273   : > { %v4757_v7 = vsub.f32 %v13354_v26, %v13503_v17  ;;  %v4758_v8 = vsub.f32 %v13379_v14, %v13503_v17  ;;  %v4774_v42 = vmul.f32 %v11610_v43, %v4746_v19  ;;  %v4775_v33 = vmul.f32 %v11610_v43, %v15409_v0  ;;  %5020 = vst [vmem:[#allocation3 + $0x24] sm:$0xf] %v4992_v36  ;;  %v11447_v26 = vld [vmem:[%s15316_s3 + $0x1b8] sm:$0xff]  }
 0x274   : > { %v4776_v31 = vmul.f32 %v11610_v43, %v15410_v16  ;;  %v4777_v6 = vmul.f32 %v11610_v43, %v15411_v32  ;;  %v15412_v29 = vsub.f32 %v13300_v46, %v13422_v12  ;;  %v4779_v19 = vmul.f32 %v11610_v43, %v15413_v10  ;;  %5021 = vst [vmem:[#allocation3 + $0x48] sm:$0xf] %v4993_v27  ;;  %v5048_v27 = vld [vmem:[#allocation2 + $0x4] sm:$0xf] }
 0x275   : > { %v15414_v49 = vsub.f32 %v13345_v15, %v13422_v12  ;;  %v4729_v24 = vsub.f32 %v4721_v2, %v4725_v30  ;;  %v4802_v35 = vmax.f32 %v4774_v42, 0.0  ;;  %v4803_v39 = vmax.f32 %v4775_v33, 0.0  ;;  %v5417_v12 = vld [vmem:[#allocation2 + $0x4] sm:$0xf]  ;;  %v13552_v30 = vld [vmem:[#allocation2 + $0x8] sm:$0xf] }
 0x276   : > { %v4778_v54 = vmul.f32 %v11610_v43, %v15412_v29  ;;  %v4804_v58 = vmax.f32 %v4776_v31, 0.0  ;;  %v4805_v5 = vmax.f32 %v4777_v6, 0.0  ;;  %v4807_v36 = vmax.f32 %v4779_v19, 0.0  ;;  %v5616_v31 = vld [vmem:[#allocation2 + $0x4] sm:$0xf] }
 0x277   : > { %v4780_v61 = vmul.f32 %v11610_v43, %v15414_v49  ;;  %v4733_v32 = vadd.f32 1e-05, %v4729_v24  ;;  %v4830_v46 = vmul.f32 %v4802_v35, %v13128_v52  ;;  %v4831_v13 = vmul.f32 %v4803_v39, %v13158_v57  ;;  %v4994_v43 = vld [vmem:[#allocation2 + $0xc] sm:$0xf]  ;;  %v5617_v6 = vld [vmem:[#allocation2 + $0x8] sm:$0xf] }
 0x278   : > { %v4806_v0 = vmax.f32 %v4778_v54, 0.0  ;;  %v4832_v29 = vmul.f32 %v4804_v58, %v13160_v51  ;;  %v4833_v15 = vmul.f32 %v4805_v5, %v13208_v37  ;;  %v4835_v42 = vmul.f32 %v4807_v36, %v13252_v53  ;;  %5022 = vst [vmem:[#allocation3 + $0x6c] sm:$0xf] %v4994_v43  ;;  %v4996_v24 = vld [vmem:[#allocation2 + $0x14] sm:$0xf] }
 0x279   : > { %v4808_v16 = vmax.f32 %v4780_v61, 0.0  ;;  %11611 = vrsqrt.f32 %v4733_v32  ;;  %v10083_v54 = vpack.c.bf16 %v4831_v13, %v4830_v46  ;;  %v4759_v19 = vsub.f32 %v13400_v47, %v13503_v17  ;;  %v4995_v61 = vld [vmem:[#allocation2 + $0x10] sm:$0xf]  ;;  %5024 = vst [vmem:[#allocation3 + $0xb4] sm:$0xf] %v4996_v24 }
 0x27a   : > { %v4834_v2 = vmul.f32 %v4806_v0, %v13204_v23  ;;  %v10088_v10 = vpack.c.bf16 %v4833_v15, %v4832_v29  ;;  %v4632_v49 = vadd.f32 %v4631_v21, %v4590_v28  ;;  %v4711_v39 = vadd.f32 %v4710_v45, %v4669_v1  ;;  %5023 = vst [vmem:[#allocation3 + $0x90] sm:$0xf] %v4995_v61  ;;  %v13562_v46 = vld [vmem:[#allocation2 + $0x8] sm:$0xf]  ;;  %v4997_v29 = vld [vmem:[#allocation2 + $0x18] sm:$0xf] }
 0x27b   : > { %v13557_v33 = vmul.f32 %v4808_v16, %v13249_v48  ;;  %v5476_v58 = vrot.slane %v5417_v12, 5  ;;  %v5479_v5 = vrot.slane %v13552_v30, 5  ;;  %10146 = vst [vmem:[#allocation2 + $0x20] sm:$0xff] %v10083_v54   ;;  %v5650_v36 = vshrl.u32 %v5616_v31, 16  ;;  %5025 = vst [vmem:[#allocation3 + $0xd8] sm:$0xf] %v4997_v29 }
 0x27c   : > { %v10093_v35 = vpack.c.bf16 %v4835_v42, %v4834_v2  ;;  %10147 = vst [vmem:[#allocation2 + $0x28] sm:$0xff] %v10088_v10   ;;  %v4633_v0 = vrot.slane %v4632_v49, 4  ;;  %v5653_v16 = vshll.u32 %v5616_v31, 16  ;;  %v5659_v32 = vshrl.u32 %v5617_v6, 16  ;;  %v4998_v2 = vld [vmem:[#allocation2 + $0x1c] sm:$0xf] }
 0x27d   : > { %v4712_v28 = vadd.f32 %v4711_v39, %v13511_v55  ;;  %v5477_v21 = vsel %vm11824_vm6, %v9739_v41, %v5476_v58  ;;  %v5478_v45 = vrot.slane %v5476_v58, 4  ;;  %v5662_v13 = vshll.u32 %v5617_v6, 16  ;;  %5026 = vst [vmem:[#allocation3 + $0xfc] sm:$0xf] %v4998_v2  ;;  %v13577_v58 = vld [vmem:[#allocation2 + $0x10] sm:$0xf] }
 0x27e   : > { %10148 = vst [vmem:[#allocation2 + $0x30] sm:$0xff] %v10093_v35   ;;  %v4634_v15 = vadd.f32 %v4633_v0, %v4632_v49  ;;  %5587 = vst [vmem:[#allocation3 + $0x8] sm:$0xf] %v5477_v21  ;;  %v5652_v12 = vrot.slane %v5650_v36, 7  ;;  %v13569_v30 = vrot.slane %v5659_v32, 7  ;;  %v5086_v43 = vshll.u32 %v5048_v27, 16 }
 0x27f   : > { %v4713_v42 = vrot.slane %v4712_v28, 4  ;;  %v5480_v55 = vsel %vm11824_vm6, %v5478_v45, %v5479_v5  ;;  %v5090_v31 = vshrl.u32 %v5048_v27, 16  ;;  %v5096_v11 = vshll.u32 %v13562_v46, 16  ;;  %v5419_v49 = vld [vmem:[#allocation2 + $0xc] sm:$0xf] }
 0x280   : > { %v4635_v41 = vrot.slane %v4634_v15, 2  ;;  %5588 = vst [vmem:[#allocation3 + $0x2c] sm:$0xf] %v5480_v55  ;;  %v5655_v6 = vor.u32 %v5653_v16, %v5652_v12  ;;  %v5657_v54 = vrot.slane %v5652_v12, 4  ;;  %v5664_v10 = vor.u32 %v5662_v13, %v13569_v30  ;;  %v13585_v21 = vld [vmem:[#allocation2 + $0xc] sm:$0xf] }
 0x281   : > { %v4714_v61 = vadd.f32 %v4713_v42, %v4712_v28  ;;  %v5088_v24 = vrot.slane %v5086_v43, 5  ;;  %v5092_v35 = vrot.slane %v5090_v31, 4  ;;  %v13575_v39 = vrot.slane %v5096_v11, 5  ;;  %v13590_v12 = vld [vmem:[#allocation2 + $0x10] sm:$0xf] }
 0x282   : > { %v4636_v0 = vadd.f32 %v4635_v41, %v4634_v15  ;;  %v5656_v36 = vsel %vm11842_vm8, %v13506_v40, %v5655_v6  ;;  %v5665_v32 = vsel %vm11842_vm8, %v5657_v54, %v5664_v10  ;;  %v5100_v16 = vshrl.u32 %v13562_v46, 16  ;;  %v11476_v46 = vld [vmem:[%s15316_s3 + $0x1a8] sm:$0xff]  }
 0x283   : > { %v4715_v45 = vrot.slane %v4714_v61, 2  ;;  %5928 = vst [vmem:[#allocation3 + $0xc] sm:$0xf] %v5656_v36  ;;  %5929 = vst [vmem:[#allocation3 + $0x30] sm:$0xf] %v5665_v32  ;;  %v5089_v13 = vsel %vm11830_vm7, %v13508_v22, %v5088_v24  ;;  %v5093_v29 = vor.u32 %v5092_v35, %v5088_v24  ;;  %v5481_v15 = vrot.slane %v5479_v5, 4 }
 0x284   : > { %v4637_v43 = vrot.slane %v4636_v0, 1  ;;  %5388 = vst [vmem:[#allocation3 + $0x4] sm:$0xf] %v5089_v13  ;;  %v5482_v40 = vrot.slane %v5419_v49, 5  ;;  %v5485_v2 = vrot.slane %v13577_v58, 5  ;;  %v5666_v42 = vrot.slane %v13569_v30, 4 }
 0x285   : > { %v4716_v55 = vadd.f32 %v4715_v45, %v4714_v61  ;;  %v13594_v31 = vrot.slane %v5093_v29, 4  ;;  %v5668_v11 = vshrl.u32 %v13585_v21, 16  ;;  %v5671_v41 = vshll.u32 %v13585_v21, 16  ;;  %v5000_v36 = vld [vmem:[#allocation2 + $0x24] sm:$0xf] }
 0x286   : > { %v11612_v6 = vpop.eup %11611  ;;  %v4638_v22 = vadd.f32 %v4637_v43, %v4636_v0  ;;  %v5483_v5 = vsel %vm11824_vm6, %v5481_v15, %v5482_v40  ;;  %v13600_v54 = vrot.slane %v5482_v40, 4  ;;  %v5677_v10 = vshrl.u32 %v13590_v12, 16  ;;  %v4999_v0 = vld [vmem:[#allocation2 + $0x20] sm:$0xf]  ;;  %5028 = vst [vmem:[#allocation3 + $0x144] sm:$0xf] %v5000_v36 }
 0x287   : > { %v4781_v49 = vmul.f32 %v11612_v6, %v4753_v25  ;;  %v4782_v61 = vmul.f32 %v11612_v6, %v4754_v50  ;;  %v4783_v24 = vmul.f32 %v11612_v6, %v4755_v62  ;;  %v4784_v35 = vmul.f32 %v11612_v6, %v4756_v63  ;;  %5589 = vst [vmem:[#allocation3 + $0x50] sm:$0xf] %v5483_v5  ;;  %v11385_v13 = vld [vmem:[#allocation3 + $0x8] ss:$36 sps:$4 sm:$0xff]   ;;  %v5620_v21 = vld [vmem:[#allocation2 + $0x14] sm:$0xf] }
 0x288   : > { %v4785_v60 = vmul.f32 %v11612_v6, %v4757_v7  ;;  %v4786_v59 = vmul.f32 %v11612_v6, %v4758_v8  ;;  %v4787_v18 = vmul.f32 %v11612_v6, %v4759_v19  ;;  %v13624_v25 = vmul.f32 0.04, %v4638_v22  ;;  %5027 = vst [vmem:[#allocation3 + $0x120] sm:$0xf] %v4999_v0  ;;  %v11458_v22 = vld [vmem:[%s15316_s3 + $0x1f0] sm:$0xff]   ;;  %v11484_v58 = vld [vmem:[%s15316_s3 + $0x1a0] sm:$0xff]  }
 0x289   : > { %v4809_v20 = vmax.f32 %v4781_v49, 0.0  ;;  %v4810_v50 = vmax.f32 %v4782_v61, 0.0  ;;  %v4811_v62 = vmax.f32 %v4783_v24, 0.0  ;;  %v4812_v63 = vmax.f32 %v4784_v35, 0.0  ;;  %v5001_v35 = vld [vmem:[#allocation2 + $0x28] sm:$0xf] }
 0x28a   : > { %v4813_v7 = vmax.f32 %v4785_v60, 0.0  ;;  %v4814_v32 = vmax.f32 %v4786_v59, 0.0  ;;  %v4815_v14 = vmax.f32 %v4787_v18, 0.0  ;;  %v4717_v8 = vrot.slane %v4716_v55, 1  ;;  %v11387_v29 = vld [vmem:[#allocation3 + $0xc] ss:$36 sps:$4 sm:$0xff]  }
 0x28b   : > { %v4837_v45 = vmul.f32 %v4809_v20, %v13128_v52  ;;  %v4838_v47 = vmul.f32 %v4810_v50, %v13158_v57  ;;  %v4839_v17 = vmul.f32 %v4811_v62, %v13160_v51  ;;  %v4840_v19 = vmul.f32 %v4812_v63, %v13208_v37  ;;  %8521 = vmatprep.mubr.bf16.mxu0 %v11387_v29  ;;  %v5002_v0 = vld [vmem:[#allocation2 + $0x2c] sm:$0xf] }
 0x28c   : > { %v4841_v15 = vmul.f32 %v4813_v7, %v13204_v23  ;;  %v4842_v43 = vmul.f32 %v4814_v32, %v13252_v53  ;;  %v4843_v40 = vmul.f32 %v4815_v14, %v13249_v48  ;;  %v4718_v6 = vadd.f32 %v4717_v8, %v4716_v55  ;;  %8522 = vmatmul.mubr.bf16.vlgmr.msra.gmra.mxu0 %v11385_v13  ;;  %v5050_v18 = vld [vmem:[#allocation2 + $0xc] sm:$0xf]  ;;  %v13657_v7 = vld [vmem:[#allocation2 + $0x10] sm:$0xf]  ;;  %v5004_v14 = vld [vmem:[#allocation2 + $0x34] sm:$0xf] }
 0x28d   : > { %v10098_v5 = vpack.c.bf16 %v4837_v45, %v13557_v33  ;;  %v10103_v49 = vpack.c.bf16 %v4839_v17, %v4838_v47  ;;  %v4726_v61 = vmul.f32 %v13624_v25, %v13624_v25  ;;  %v4760_v24 = vsub.f32 %v13410_v4, %v13624_v25  ;;  %5029 = vst [vmem:[#allocation3 + $0x168] sm:$0xf] %v5001_v35  ;;  %v11460_v33 = vld [vmem:[%s15316_s3 + $0x1b0] sm:$0xff]  }
 0x28e   : > { %v10108_v36 = vpack.c.bf16 %v4841_v15, %v4840_v19  ;;  %v10113_v60 = vpack.c.bf16 %v4843_v40, %v4842_v43  ;;  %v4722_v59 = vmul.f32 0.04, %v4718_v6  ;;  %v4761_v55 = vsub.f32 %v13393_v56, %v13624_v25  ;;  %5030 = vst [vmem:[#allocation3 + $0x18c] sm:$0xf] %v5002_v0  ;;  %v5003_v32 = vld [vmem:[#allocation2 + $0x30] sm:$0xf]  ;;  %10879 = vmatpush3.bf16.msra.mxu0 %v11447_v26 }
 0x28f   : > { %10149 = vst [vmem:[#allocation2 + $0x38] sm:$0xff] %v10098_v5   ;;  %10150 = vst [vmem:[#allocation2 + $0x40] sm:$0xff] %v10103_v49   ;;  %v4762_v20 = vsub.f32 %v13405_v38, %v13624_v25  ;;  %v4763_v50 = vsub.f32 %v13429_v9, %v13624_v25  ;;  %v4764_v62 = vsub.f32 %v13489_v3, %v13624_v25  ;;  %10880 = vmatprep.subr.bf16.mxu0 %v11458_v22  ;;  %v11474_v26 = vld [vmem:[%s15316_s3 + $0x1e8] sm:$0xff]   ;;  %v13687_v49 = vld [vmem:[#allocation2 + $0x18] sm:$0xf] }
 0x290   : > { %v4765_v63 = vsub.f32 %v13448_v34, %v13624_v25  ;;  %10151 = vst [vmem:[#allocation2 + $0x48] sm:$0xff] %v10108_v36   ;;  %10152 = vst [vmem:[#allocation2 + $0x50] sm:$0xff] %v10113_v60   ;;  %v4730_v8 = vsub.f32 %v4722_v59, %v4726_v61  ;;  %v4766_v45 = vsub.f32 %v13486_v44, %v13624_v25  ;;  %v5670_v19 = vrot.slane %v5668_v11, 7  ;;  %v5621_v60 = vld [vmem:[#allocation2 + $0x18] sm:$0xf]  ;;  %v11498_v3 = vld [vmem:[%s15316_s3 + $0x188] sm:$0xff]  }
 0x291   : > { %v5099_v47 = vsel %vm11830_vm7, %v13594_v31, %v13575_v39  ;;  %v5486_v17 = vsel %vm11824_vm6, %v13600_v54, %v5485_v2  ;;  %5031 = vst [vmem:[#allocation3 + $0x1b0] sm:$0xf] %v5003_v32  ;;  %5032 = vst [vmem:[#allocation3 + $0x1d4] sm:$0xf] %v5004_v14  ;;  %v13677_v31 = vrot.slane %v5677_v10, 7  ;;  %v5680_v13 = vshll.u32 %v13590_v12, 16 }
 0x292   : > { %5389 = vst [vmem:[#allocation3 + $0x28] sm:$0xf] %v5099_v47  ;;  %5590 = vst [vmem:[#allocation3 + $0x74] sm:$0xf] %v5486_v17  ;;  %v5102_v54 = vrot.slane %v5100_v16, 4  ;;  %v5106_v15 = vshll.u32 %v5050_v18, 16  ;;  %v5673_v6 = vor.u32 %v5671_v41, %v5670_v19  ;;  %10881 = vmatpush3.bf16.msra.mxu0 %v11460_v33 }
 0x293   : > { %v4734_v29 = vadd.f32 1e-05, %v4730_v8  ;;  %v5110_v43 = vshrl.u32 %v5050_v18, 16  ;;  %v5116_v40 = vshll.u32 %v13657_v7, 16  ;;  %v5675_v22 = vrot.slane %v5670_v19, 4  ;;  %10882 = vmatprep.subr.bf16.mxu0 %v11474_v26  ;;  %v11483_v41 = vld [vmem:[%s15316_s3 + $0x1e0] sm:$0xff]  }
 0x294   : > { %v5682_v11 = vor.u32 %v5680_v13, %v13677_v31  ;;  %v5103_v5 = vor.u32 %v5102_v54, %v13575_v39  ;;  %v5421_v10 = vld [vmem:[#allocation2 + $0x14] sm:$0xf]  ;;  %v5108_v16 = vrot.slane %v5106_v15, 5  ;;  %v5674_v39 = vsel %vm11842_vm8, %v5666_v42, %v5673_v6  ;;  %v11395_v59 = vld [vmem:[%s15316_s3 + $0x138] sm:$0xff]   ;;  %v11396_v9 = vld [vmem:[#allocation3 + $0x48] ss:$36 sps:$4 sm:$0xff]  }
 0x295   : > { %11613 = vrsqrt.f32 %v4734_v29  ;;  %v5112_v12 = vrot.slane %v5110_v43, 4  ;;  %v13692_v61 = vrot.slane %v5116_v40, 5  ;;  %v5120_v36 = vshrl.u32 %v13657_v7, 16  ;;  %5930 = vst [vmem:[#allocation3 + $0x54] sm:$0xf] %v5674_v39  ;;  %v11405_v26 = vld [vmem:[%s15316_s3 + $0x170] sm:$0xff]  }
 0x296   : > { %v5683_v35 = vsel %vm11842_vm8, %v5675_v22, %v5682_v11  ;;  %v5104_v0 = vrot.slane %v5103_v5, 4  ;;  %v5487_v30 = vrot.slane %v5485_v2, 4  ;;  %v5488_v33 = vrot.slane %v5421_v10, 5  ;;  %v5052_v32 = vld [vmem:[#allocation2 + $0x14] sm:$0xf]  ;;  %10883 = vmatpush3.bf16.msra.mxu0 %v11476_v46  ;;  %v11485_v2 = vld [vmem:[%s15316_s3 + $0x1d8] sm:$0xff]  }
 0x297   : > { %5931 = vst [vmem:[#allocation3 + $0x78] sm:$0xf] %v5683_v35  ;;  %v5113_v18 = vor.u32 %v5112_v12, %v5108_v16  ;;  %v5491_v42 = vrot.slane %v13687_v49, 5  ;;  %v5684_v7 = vrot.slane %v13677_v31, 4  ;;  %v5686_v8 = vshrl.u32 %v5620_v21, 16  ;;  %10884 = vmatprep.subr.bf16.mxu0 %v11483_v41  ;;  %v11406_v49 = vld [vmem:[%s15316_s3 + $0x130] sm:$0xff]  }
 0x298   : > { %v5109_v14 = vsel %vm11830_vm7, %v5104_v0, %v5108_v16  ;;  %v5689_v47 = vshll.u32 %v5620_v21, 16  ;;  %v13713_v17 = vld [vmem:[#allocation2 + $0x18] sm:$0xf]  ;;  %v5489_v54 = vsel %vm11824_vm6, %v5487_v30, %v5488_v33  ;;  %v5490_v29 = vrot.slane %v5488_v33, 4  ;;  %v5423_v6 = vld [vmem:[#allocation2 + $0x1c] sm:$0xf] }
 0x299   : > { %v11388_v19 = vld [vmem:[#allocation3] ss:$36 sps:$4 sm:$0xff]   ;;  %v5114_v31 = vrot.slane %v5113_v18, 4  ;;  %5390 = vst [vmem:[#allocation3 + $0x4c] sm:$0xf] %v5109_v14  ;;  %v5688_v15 = vrot.slane %v5686_v8, 7 }
 0x29a   : > { %v11390_v13 = vld [vmem:[#allocation3 + $0x4] ss:$36 sps:$4 sm:$0xff]   ;;  %5591 = vst [vmem:[#allocation3 + $0x98] sm:$0xf] %v5489_v54  ;;  %v5695_v43 = vshrl.u32 %v5621_v60, 16  ;;  %v5698_v40 = vshll.u32 %v5621_v60, 16  ;;  %v5492_v16 = vsel %vm11824_vm6, %v5490_v29, %v5491_v42  ;;  %10885 = vmatpush3.bf16.msra.mxu0 %v11484_v58 }
 0x29b   : > { %8376 = vmatprep.mubr.bf16.mxu1 %v11390_v13  ;;  %v5119_v22 = vsel %vm11830_vm7, %v5114_v31, %v13692_v61  ;;  %v5122_v11 = vrot.slane %v5120_v36, 4  ;;  %v5126_v5 = vshll.u32 %v5052_v32, 16  ;;  %v5130_v10 = vshrl.u32 %v5052_v32, 16  ;;  %v13732_v46 = vld [vmem:[#allocation2 + $0x1c] sm:$0xf]  ;;  %v11419_v35 = vld [vmem:[%s15316_s3 + $0x168] sm:$0xff]   ;;  %10886 = vmatprep.subr.bf16.mxu0 %v11485_v2 }
 0x29c   : > { %8377 = vmatmul.mubr.bf16.vlgmr.msra.gmra.mxu1 %v11388_v19  ;;  %5391 = vst [vmem:[#allocation3 + $0x70] sm:$0xf] %v5119_v22  ;;  %v5691_v12 = vor.u32 %v5689_v47, %v5688_v15  ;;  %v5693_v21 = vrot.slane %v5688_v15, 4  ;;  %v13736_v41 = vrot.slane %v5695_v43, 7  ;;  %v13738_v39 = vld [vmem:[#allocation2 + $0x20] sm:$0xf] }
 0x29d   : > { %v11489_v0 = vld [vmem:[%s15316_s3 + $0x198] sm:$0xff]   ;;  %10779 = vmatpush3.bf16.msra.mxu1 %v11395_v59  ;;  %5592 = vst [vmem:[#allocation3 + $0xbc] sm:$0xf] %v5492_v16  ;;  %v5123_v36 = vor.u32 %v5122_v11, %v13692_v61  ;;  %v5128_v60 = vrot.slane %v5126_v5, 5  ;;  %v5132_v18 = vrot.slane %v5130_v10, 4  ;;  %v5136_v30 = vshll.u32 %v13713_v17, 16 }
 0x29e   : > { %v13748_v33 = vld [vmem:[#allocation2 + $0x20] sm:$0xf]  ;;  %v11495_v32 = vld [vmem:[%s15316_s3 + $0x1d0] sm:$0xff]   ;;  %v11391_v14 = vld [vmem:[#allocation3 + $0x50] ss:$36 sps:$4 sm:$0xff]   ;;  %v5692_v8 = vsel %vm11842_vm8, %v5684_v7, %v5691_v12  ;;  %v5700_v59 = vor.u32 %v5698_v40, %v13736_v41  ;;  %v5140_v47 = vshrl.u32 %v13713_v17, 16  ;;  %10780 = vmatprep.subr.bf16.mxu1 %v11405_v26  ;;  %10887 = vmatpush3.bf16.msra.mxu0 %v11489_v0 }
 0x29f   : > { %v5493_v61 = vrot.slane %v5491_v42, 4  ;;  %v11393_v58 = vld [vmem:[#allocation3 + $0x54] ss:$36 sps:$4 sm:$0xff]   ;;  %5932 = vst [vmem:[#allocation3 + $0x9c] sm:$0xf] %v5692_v8  ;;  %v5124_v19 = vrot.slane %v5123_v36, 4  ;;  %v5133_v13 = vor.u32 %v5132_v18, %v5128_v60  ;;  %10888 = vmatprep.subr.bf16.mxu0 %v11495_v32 }
 0x2a0   : > { %v13757_v31 = vrot.slane %v5136_v30, 5  ;;  %v5494_v2 = vrot.slane %v5423_v6, 5  ;;  %v11496_v54 = vld [vmem:[%s15316_s3 + $0x190] sm:$0xff]   ;;  %v5701_v7 = vsel %vm11842_vm8, %v5693_v21, %v5700_v59  ;;  %v5497_v29 = vrot.slane %v13738_v39, 5  ;;  %v5005_v26 = vld [vmem:[#allocation2 + $0x38] sm:$0xf]  ;;  %8529 = vmatprep.mubr.bf16.mxu0 %v11393_v58 }
 0x2a1   : > { %v5702_v15 = vrot.slane %v13736_v41, 4  ;;  %v5704_v42 = vshrl.u32 %v13732_v46, 16  ;;  %5933 = vst [vmem:[#allocation3 + $0xc0] sm:$0xf] %v5701_v7  ;;  %v5129_v43 = vsel %vm11830_vm7, %v5124_v19, %v5128_v60  ;;  %v5134_v40 = vrot.slane %v5133_v13, 4  ;;  %10781 = vmatpush3.bf16.msra.mxu1 %v11406_v49  ;;  %v11420_v11 = vld [vmem:[%s15316_s3 + $0x128] sm:$0xff]   ;;  %8530 = vmatmul.mubr.bf16.gmra.mxu0 %v11391_v14 }
 0x2a2   : > { %v5495_v6 = vsel %vm11824_vm6, %v5493_v61, %v5494_v2  ;;  %v5496_v22 = vrot.slane %v5494_v2, 4  ;;  %v5006_v5 = vld [vmem:[#allocation2 + $0x3c] sm:$0xf]  ;;  %5033 = vst [vmem:[#allocation3 + $0x1f8] sm:$0xf] %v5005_v26  ;;  %v11614_v10 = vpop.eup %11613  ;;  %v5707_v12 = vshll.u32 %v13732_v46, 16  ;;  %10782 = vmatprep.subr.bf16.mxu1 %v11419_v35  ;;  %10889 = vmatpush3.bf16.msra.mxu0 %v11496_v54 }
 0x2a3   : > { %5392 = vst [vmem:[#allocation3 + $0x94] sm:$0xf] %v5129_v43  ;;  %5593 = vst [vmem:[#allocation3 + $0xe0] sm:$0xf] %v5495_v6  ;;  %v13774_v16 = vrot.slane %v5704_v42, 7  ;;  %v5713_v49 = vshrl.u32 %v13748_v33, 16  ;;  %v4788_v36 = vmul.f32 %v11614_v10, %v4760_v24  ;;  %v4789_v60 = vmul.f32 %v11614_v10, %v4761_v55 }
 0x2a4   : > { %v5716_v21 = vshll.u32 %v13748_v33, 16  ;;  %v11433_v0 = vld [vmem:[%s15316_s3 + $0x160] sm:$0xff]   ;;  %5034 = vst [vmem:[#allocation3 + $0x21c] sm:$0xf] %v5006_v5  ;;  %v4790_v46 = vmul.f32 %v11614_v10, %v4762_v20  ;;  %v4791_v35 = vmul.f32 %v11614_v10, %v4763_v50  ;;  %v11497_v30 = vld [vmem:[%s15316_s3 + $0x1c8] sm:$0xff]   ;;  %v4792_v4 = vmul.f32 %v11614_v10, %v4764_v62  ;;  %v11444_v44 = vld [vmem:[%s15316_s3 + $0x158] sm:$0xff]  }
 0x2a5   : > { %v11398_v18 = vld [vmem:[#allocation3 + $0x4c] ss:$36 sps:$4 sm:$0xff]   ;;  %v4793_v56 = vmul.f32 %v11614_v10, %v4765_v63  ;;  %v4794_v38 = vmul.f32 %v11614_v10, %v4766_v45  ;;  %v5139_v24 = vsel %vm11830_vm7, %v5134_v40, %v13757_v31  ;;  %v4816_v34 = vmax.f32 %v4788_v36, 0.0  ;;  %10783 = vmatpush3.bf16.msra.mxu1 %v11420_v11  ;;  %v5007_v8 = vld [vmem:[#allocation2 + $0x40] sm:$0xf]  ;;  %v11446_v2 = vld [vmem:[%s15316_s3 + $0x118] sm:$0xff]   ;;  %10890 = vmatprep.subr.bf16.mxu0 %v11497_v30 }
 0x2a6   : > { %v11434_v55 = vld [vmem:[%s15316_s3 + $0x120] sm:$0xff]   ;;  %v4817_v20 = vmax.f32 %v4789_v60, 0.0  ;;  %v4818_v50 = vmax.f32 %v4790_v46, 0.0  ;;  %v4819_v62 = vmax.f32 %v4791_v35, 0.0  ;;  %8384 = vmatprep.mubr.bf16.mxu1 %v11398_v18  ;;  %5393 = vst [vmem:[#allocation3 + $0xb8] sm:$0xf] %v5139_v24  ;;  %v5498_v14 = vsel %vm11824_vm6, %v5496_v22, %v5497_v29  ;;  %10784 = vmatprep.subr.bf16.mxu1 %v11433_v0 }
 0x2a7   : > { %v11505_v25 = vld [vmem:[%s15316_s3 + $0x1c0] sm:$0xff]   ;;  %v4820_v63 = vmax.f32 %v4792_v4, 0.0  ;;  %v4821_v45 = vmax.f32 %v4793_v56, 0.0  ;;  %v4822_v32 = vmax.f32 %v4794_v38, 0.0  ;;  %8385 = vmatmul.mubr.bf16.gmra.mxu1 %v11396_v9  ;;  %v4844_v59 = vmul.f32 %v4816_v34, %v13128_v52  ;;  %5594 = vst [vmem:[#allocation3 + $0x104] sm:$0xf] %v5498_v14  ;;  %10891 = vmatpush3.bf16.msra.mxu0 %v11498_v3 }
 0x2a8   : > { %v4845_v61 = vmul.f32 %v4817_v20, %v13158_v57  ;;  %v4846_v58 = vmul.f32 %v4818_v50, %v13160_v51  ;;  %v4847_v19 = vmul.f32 %v4819_v62, %v13208_v37  ;;  %v5054_v13 = vld [vmem:[#allocation2 + $0x1c] sm:$0xf]  ;;  %v5008_v54 = vld [vmem:[#allocation2 + $0x44] sm:$0xf]  ;;  %5035 = vst [vmem:[#allocation3 + $0x240] sm:$0xf] %v5007_v8  ;;  %v5709_v40 = vor.u32 %v5707_v12, %v13774_v16 }
 0x2a9   : > { %v4848_v7 = vmul.f32 %v4820_v63, %v13204_v23  ;;  %v4849_v42 = vmul.f32 %v4821_v45, %v13252_v53  ;;  %v4850_v26 = vmul.f32 %v4822_v32, %v13249_v48  ;;  %v11401_v43 = vld [vmem:[#allocation3 + $0x9c] ss:$36 sps:$4 sm:$0xff]   ;;  %v13836_v6 = vld [vmem:[#allocation2 + $0x20] sm:$0xf]  ;;  %5036 = vst [vmem:[#allocation3 + $0x264] sm:$0xf] %v5008_v54  ;;  %10785 = vmatpush3.bf16.msra.mxu1 %v11434_v55 }
 0x2aa   : > { %v10118_v22 = vpack.c.bf16 %v4845_v61, %v4844_v59  ;;  %v10123_v11 = vpack.c.bf16 %v4847_v19, %v4846_v58  ;;  %v11399_v5 = vld [vmem:[#allocation3 + $0x98] ss:$36 sps:$4 sm:$0xff]   ;;  %v5711_v10 = vrot.slane %v13774_v16, 4  ;;  %v13839_v0 = vrot.slane %v5713_v49, 7  ;;  %v5425_v36 = vld [vmem:[#allocation2 + $0x24] sm:$0xf]  ;;  %10892 = vmatprep.subr.bf16.mxu0 %v11505_v25  ;;  %8537 = vmatprep.mubr.bf16.mxu0 %v11401_v43 }
 0x2ab   : > { %v11506_v60 = vld [vmem:[%s15316_s3 + $0x180] sm:$0xff]   ;;  %v9999_v46 = vpack.c.bf16 %v4850_v26, %v4850_v26  ;;  %v10128_v12 = vpack.c.bf16 %v4849_v42, %v4848_v7  ;;  %v5710_v35 = vsel %vm11842_vm8, %v5702_v15, %v5709_v40  ;;  %v5142_v16 = vrot.slane %v5140_v47, 4  ;;  %v13850_v49 = vld [vmem:[#allocation2 + $0x28] sm:$0xf]  ;;  %10786 = vmatprep.subr.bf16.mxu1 %v11444_v44  ;;  %v11457_v30 = vld [vmem:[%s15316_s3 + $0x150] sm:$0xff]   ;;  %8538 = vmatmul.mubr.bf16.gmra.mxu0 %v11399_v5 }
 0x2ac   : > { %v13852_v18 = vld [vmem:[#allocation2 + $0x24] sm:$0xf]  ;;  %10153 = vst [vmem:[#allocation2 + $0x58] sm:$0xff] %v10118_v22   ;;  %10154 = vst [vmem:[#allocation2 + $0x60] sm:$0xff] %v10123_v11   ;;  %v5718_v41 = vor.u32 %v5716_v21, %v13839_v0  ;;  %v5146_v15 = vshll.u32 %v5054_v13, 16  ;;  %v5150_v17 = vshrl.u32 %v5054_v13, 16  ;;  %10893 = vmatpush3.bf16.msra.mxu0 %v11506_v60 }
 0x2ad   : > { %5934 = vst [vmem:[#allocation3 + $0xe4] sm:$0xf] %v5710_v35  ;;  %v5156_v47 = vshll.u32 %v13836_v6, 16  ;;  %v5625_v4 = vld [vmem:[#allocation2 + $0x28] sm:$0xf]  ;;  %v11459_v56 = vld [vmem:[%s15316_s3 + $0x110] sm:$0xff]   ;;  %v5143_v24 = vor.u32 %v5142_v16, %v13757_v31  ;;  %10787 = vmatpush3.bf16.msra.mxu1 %v11446_v2 }
 0x2ae   : > { %10155 = vst [vmem:[#allocation2 + $0x68] sm:$0xff] %v10128_v12   ;;  %4990 = vst [vmem:[#allocation2 + $0x70] sm:$0xf] %v9999_v46  ;;  %v11402_v38 = vld [vmem:[#allocation3 + $0x90] ss:$36 sps:$4 sm:$0xff]   ;;  %v5160_v55 = vshrl.u32 %v13836_v6, 16  ;;  %v5719_v33 = vsel %vm11842_vm8, %v5711_v10, %v5718_v41  ;;  %10788 = vmatprep.subr.bf16.mxu1 %v11457_v30 }
 0x2af   : > { %v11404_v9 = vld [vmem:[#allocation3 + $0x94] ss:$36 sps:$4 sm:$0xff]   ;;  %v5148_v21 = vrot.slane %v5146_v15, 5  ;;  %v5152_v3 = vrot.slane %v5150_v17, 4  ;;  %v5158_v34 = vrot.slane %v5156_v47, 5  ;;  %v5144_v62 = vrot.slane %v5143_v24, 4 }
 0x2b0   : > { %v5009_v20 = vld [vmem:[#allocation2 + $0x48] sm:$0xf]  ;;  %8392 = vmatprep.mubr.bf16.mxu1 %v11404_v9  ;;  %5935 = vst [vmem:[#allocation3 + $0x108] sm:$0xf] %v5719_v33  ;;  %v5499_v31 = vrot.slane %v5497_v29, 4  ;;  %v5500_v44 = vrot.slane %v5425_v36, 5 }
 0x2b1   : > { %v11473_v50 = vld [vmem:[%s15316_s3 + $0x148] sm:$0xff]   ;;  %v5503_v25 = vrot.slane %v13850_v49, 5  ;;  %5037 = vst [vmem:[#allocation3 + $0x288] sm:$0xf] %v5009_v20  ;;  %8393 = vmatmul.mubr.bf16.gmra.mxu1 %v11402_v38  ;;  %v5153_v45 = vor.u32 %v5152_v3, %v5148_v21  ;;  %v5720_v32 = vrot.slane %v13839_v0, 4  ;;  %v5722_v14 = vshrl.u32 %v13852_v18, 16 }
 0x2b2   : > { %v5010_v63 = vld [vmem:[#allocation2 + $0x4c] sm:$0xf]  ;;  %v5725_v8 = vshll.u32 %v13852_v18, 16  ;;  %v5056_v59 = vld [vmem:[#allocation2 + $0x24] sm:$0xf]  ;;  %v5149_v39 = vsel %vm11830_vm7, %v5144_v62, %v5148_v21  ;;  %v5501_v29 = vsel %vm11824_vm6, %v5499_v31, %v5500_v44  ;;  %v5502_v61 = vrot.slane %v5500_v44, 4  ;;  %10789 = vmatpush3.bf16.msra.mxu1 %v11459_v56 }
 0x2b3   : > { %5038 = vst [vmem:[#allocation3 + $0x2ac] sm:$0xf] %v5010_v63  ;;  %v5731_v58 = vshrl.u32 %v5625_v4, 16  ;;  %v13881_v19 = vld [vmem:[#allocation2 + $0x28] sm:$0xf]  ;;  %v5154_v13 = vrot.slane %v5153_v45, 4  ;;  %10790 = vmatprep.subr.bf16.mxu1 %v11473_v50 }
 0x2b4   : > { %5394 = vst [vmem:[#allocation3 + $0xdc] sm:$0xf] %v5149_v39  ;;  %5595 = vst [vmem:[#allocation3 + $0x128] sm:$0xf] %v5501_v29  ;;  %v5724_v2 = vrot.slane %v5722_v14, 7  ;;  %v5734_v54 = vshll.u32 %v5625_v4, 16  ;;  %v5504_v26 = vsel %vm11824_vm6, %v5502_v61, %v5503_v25 }
 0x2b5   : > { %v5162_v7 = vrot.slane %v5160_v55, 4  ;;  %v11475_v42 = vld [vmem:[%s15316_s3 + $0x108] sm:$0xff]   ;;  %v13890_v43 = vrot.slane %v5731_v58, 7  ;;  %v5166_v40 = vshll.u32 %v5056_v59, 16  ;;  %v5170_v6 = vshrl.u32 %v5056_v59, 16  ;;  %v11493_v11 = vld [vmem:[%s15316_s3 + $0x140] sm:$0xff]  }
 0x2b6   : > { %v5427_v22 = vld [vmem:[#allocation2 + $0x2c] sm:$0xf]  ;;  %v5159_v5 = vsel %vm11830_vm7, %v5154_v13, %v5158_v34  ;;  %5596 = vst [vmem:[#allocation3 + $0x14c] sm:$0xf] %v5504_v26  ;;  %v5727_v10 = vor.u32 %v5725_v8, %v5724_v2  ;;  %v5729_v0 = vrot.slane %v5724_v2, 4  ;;  %v5176_v30 = vshll.u32 %v13881_v19, 16  ;;  %10791 = vmatpush3.bf16.msra.mxu1 %v11475_v42 }
 0x2b7   : > { %v5163_v36 = vor.u32 %v5162_v7, %v5158_v34  ;;  %v13897_v60 = vld [vmem:[#allocation2 + $0x30] sm:$0xf]  ;;  %v5626_v46 = vld [vmem:[#allocation2 + $0x2c] sm:$0xf]  ;;  %5395 = vst [vmem:[#allocation3 + $0x100] sm:$0xf] %v5159_v5  ;;  %v5736_v35 = vor.u32 %v5734_v54, %v13890_v43  ;;  %10792 = vmatprep.subr.bf16.mxu1 %v11493_v11 }
 0x2b8   : > { %v5011_v12 = vld [vmem:[#allocation2 + $0x50] sm:$0xf]  ;;  %v5168_v16 = vrot.slane %v5166_v40, 5  ;;  %v5172_v18 = vrot.slane %v5170_v6, 4  ;;  %v5012_v41 = vld [vmem:[#allocation2 + $0x54] sm:$0xf]  ;;  %v5728_v17 = vsel %vm11842_vm8, %v5720_v32, %v5727_v10 }
 0x2b9   : > { %5039 = vst [vmem:[#allocation3 + $0x2d0] sm:$0xf] %v5011_v12  ;;  %v11409_v15 = vld [vmem:[#allocation3 + $0xe4] ss:$36 sps:$4 sm:$0xff]   ;;  %v5164_v47 = vrot.slane %v5163_v36, 4  ;;  %v5737_v38 = vsel %vm11842_vm8, %v5729_v0, %v5736_v35  ;;  %v5180_v24 = vshrl.u32 %v13881_v19, 16 }
 0x2ba   : > { %5040 = vst [vmem:[#allocation3 + $0x2f4] sm:$0xf] %v5012_v41  ;;  %v11494_v4 = vld [vmem:[%s15316_s3 + $0x100] sm:$0xff]   ;;  %v11407_v56 = vld [vmem:[#allocation3 + $0xe0] ss:$36 sps:$4 sm:$0xff]   ;;  %v5173_v9 = vor.u32 %v5172_v18, %v5168_v16  ;;  %8545 = vmatprep.mubr.bf16.mxu0 %v11409_v15  ;;  %v5178_v3 = vrot.slane %v5176_v30, 5 }
 0x2bb   : > { %5936 = vst [vmem:[#allocation3 + $0x12c] sm:$0xf] %v5728_v17  ;;  %v5627_v55 = vld [vmem:[#allocation2 + $0x30] sm:$0xf]  ;;  %v11510_v33 = vld [vmem:[%s15316_s3 + $0x238] sm:$0xff]   ;;  %v5169_v21 = vsel %vm11830_vm7, %v5164_v47, %v5168_v16  ;;  %v5505_v34 = vrot.slane %v5503_v25, 4  ;;  %8546 = vmatmul.mubr.bf16.gmra.mxu0 %v11407_v56  ;;  %10793 = vmatpush3.bf16.msra.mxu1 %v11494_v4 }
 0x2bc   : > { %5937 = vst [vmem:[#allocation3 + $0x150] sm:$0xf] %v5737_v38  ;;  %v5506_v20 = vrot.slane %v5427_v22, 5  ;;  %v5058_v50 = vld [vmem:[#allocation2 + $0x2c] sm:$0xf]  ;;  %v5174_v62 = vrot.slane %v5173_v9, 4  ;;  %11044 = vmatprep.subr.bf16.mxu1 %v11510_v33 }
 0x2bd   : > { %5396 = vst [vmem:[#allocation3 + $0x124] sm:$0xf] %v5169_v21  ;;  %v5509_v31 = vrot.slane %v13897_v60, 5  ;;  %v5738_v44 = vrot.slane %v13890_v43, 4  ;;  %v5740_v63 = vshrl.u32 %v5626_v46, 16  ;;  %v5743_v14 = vshll.u32 %v5626_v46, 16 }
 0x2be   : > { %v5507_v45 = vsel %vm11824_vm6, %v5505_v34, %v5506_v20  ;;  %v5508_v32 = vrot.slane %v5506_v20, 4  ;;  %v5749_v8 = vshrl.u32 %v5627_v55, 16  ;;  %v5179_v49 = vsel %vm11830_vm7, %v5174_v62, %v5178_v3  ;;  %v13922_v59 = vld [vmem:[#allocation2 + $0x30] sm:$0xf]  ;;  %v11412_v61 = vld [vmem:[#allocation3 + $0xdc] ss:$36 sps:$4 sm:$0xff]  }
 0x2bf   : > { %5597 = vst [vmem:[#allocation3 + $0x170] sm:$0xf] %v5507_v45  ;;  %v5742_v25 = vrot.slane %v5740_v63, 7  ;;  %v5182_v39 = vrot.slane %v5180_v24, 4  ;;  %v5186_v29 = vshll.u32 %v5058_v50, 16  ;;  %v5752_v13 = vshll.u32 %v5627_v55, 16  ;;  %8400 = vmatprep.mubr.bf16.mxu1 %v11412_v61 }
 0x2c0   : > { %5397 = vst [vmem:[#allocation3 + $0x148] sm:$0xf] %v5179_v49  ;;  %v5510_v58 = vsel %vm11824_vm6, %v5508_v32, %v5509_v31  ;;  %v13926_v19 = vrot.slane %v5749_v8, 7  ;;  %v5429_v2 = vld [vmem:[#allocation2 + $0x34] sm:$0xf]  ;;  %v5190_v5 = vshrl.u32 %v5058_v50, 16 }
 0x2c1   : > { %v13928_v54 = vld [vmem:[#allocation2 + $0x38] sm:$0xf]  ;;  %v11410_v7 = vld [vmem:[#allocation3 + $0xd8] ss:$36 sps:$4 sm:$0xff]   ;;  %5598 = vst [vmem:[#allocation3 + $0x194] sm:$0xf] %v5510_v58  ;;  %v5745_v42 = vor.u32 %v5743_v14, %v5742_v25  ;;  %v5183_v43 = vor.u32 %v5182_v39, %v5178_v3 }
 0x2c2   : > { %v5747_v26 = vrot.slane %v5742_v25, 4  ;;  %v5628_v40 = vld [vmem:[#allocation2 + $0x34] sm:$0xf]  ;;  %v5013_v6 = vld [vmem:[#allocation2 + $0x58] sm:$0xf]  ;;  %v5754_v22 = vor.u32 %v5752_v13, %v13926_v19  ;;  %v5188_v11 = vrot.slane %v5186_v29, 5  ;;  %8401 = vmatmul.mubr.bf16.gmra.mxu1 %v11410_v7 }
 0x2c3   : > { %v5196_v10 = vshll.u32 %v13922_v59, 16  ;;  %v5014_v0 = vld [vmem:[#allocation2 + $0x5c] sm:$0xf]  ;;  %5041 = vst [vmem:[#allocation3 + $0x318] sm:$0xf] %v5013_v6  ;;  %v5746_v60 = vsel %vm11842_vm8, %v5738_v44, %v5745_v42  ;;  %v5184_v46 = vrot.slane %v5183_v43, 4 }
 0x2c4   : > { %v11415_v36 = vld [vmem:[#allocation3 + $0x12c] ss:$36 sps:$4 sm:$0xff]   ;;  %v5629_v12 = vld [vmem:[#allocation2 + $0x38] sm:$0xf]  ;;  %5042 = vst [vmem:[#allocation3 + $0x33c] sm:$0xf] %v5014_v0  ;;  %v5755_v16 = vsel %vm11842_vm8, %v5747_v26, %v5754_v22 }
 0x2c5   : > { %v11413_v35 = vld [vmem:[#allocation3 + $0x128] ss:$36 sps:$4 sm:$0xff]   ;;  %5938 = vst [vmem:[#allocation3 + $0x174] sm:$0xf] %v5746_v60  ;;  %v5192_v18 = vrot.slane %v5190_v5, 4  ;;  %v5511_v30 = vrot.slane %v5509_v31, 4  ;;  %8553 = vmatprep.mubr.bf16.mxu0 %v11415_v36  ;;  %v5189_v41 = vsel %vm11830_vm7, %v5184_v46, %v5188_v11 }
 0x2c6   : > { %5939 = vst [vmem:[#allocation3 + $0x198] sm:$0xf] %v5755_v16  ;;  %v5200_v15 = vshrl.u32 %v13922_v59, 16  ;;  %v5512_v17 = vrot.slane %v5429_v2, 5  ;;  %v5515_v47 = vrot.slane %v13928_v54, 5  ;;  %8554 = vmatmul.mubr.bf16.gmra.mxu0 %v11413_v35  ;;  %v5198_v56 = vrot.slane %v5196_v10, 5 }
 0x2c7   : > { %v5193_v4 = vor.u32 %v5192_v18, %v5188_v11  ;;  %5398 = vst [vmem:[#allocation3 + $0x16c] sm:$0xf] %v5189_v41  ;;  %v5758_v38 = vshrl.u32 %v5628_v40, 16  ;;  %v5767_v9 = vshrl.u32 %v5629_v12, 16  ;;  %v5060_v24 = vld [vmem:[#allocation2 + $0x34] sm:$0xf] }
 0x2c8   : > { %v11418_v55 = vld [vmem:[#allocation3 + $0x124] ss:$36 sps:$4 sm:$0xff]   ;;  %v5513_v33 = vsel %vm11824_vm6, %v5511_v30, %v5512_v17  ;;  %v5514_v21 = vrot.slane %v5512_v17, 4  ;;  %v5756_v3 = vrot.slane %v13926_v19, 4  ;;  %v5761_v34 = vshll.u32 %v5628_v40, 16 }
 0x2c9   : > { %v5194_v20 = vrot.slane %v5193_v4, 4  ;;  %5599 = vst [vmem:[#allocation3 + $0x1b8] sm:$0xf] %v5513_v33  ;;  %v5760_v50 = vrot.slane %v5758_v38, 7  ;;  %v13943_v62 = vrot.slane %v5767_v9, 7  ;;  %v5770_v31 = vshll.u32 %v5629_v12, 16  ;;  %8408 = vmatprep.mubr.bf16.mxu1 %v11418_v55 }
 0x2ca   : > { %v5061_v44 = vld [vmem:[#allocation2 + $0x38] sm:$0xf]  ;;  %v5516_v45 = vsel %vm11824_vm6, %v5514_v21, %v5515_v47  ;;  %v5202_v32 = vrot.slane %v5200_v15, 4  ;;  %v5206_v14 = vshll.u32 %v5060_v24, 16  ;;  %v5210_v8 = vshrl.u32 %v5060_v24, 16 }
 0x2cb   : > { %v11416_v63 = vld [vmem:[#allocation3 + $0x120] ss:$36 sps:$4 sm:$0xff]   ;;  %v13947_v25 = vld [vmem:[#allocation2 + $0x40] sm:$0xf]  ;;  %v5199_v59 = vsel %vm11830_vm7, %v5194_v20, %v5198_v56  ;;  %5600 = vst [vmem:[#allocation3 + $0x1dc] sm:$0xf] %v5516_v45  ;;  %v5763_v39 = vor.u32 %v5761_v34, %v5760_v50  ;;  %v5772_v61 = vor.u32 %v5770_v31, %v13943_v62 }
 0x2cc   : > { %v5431_v49 = vld [vmem:[#allocation2 + $0x3c] sm:$0xf]  ;;  %v5765_v29 = vrot.slane %v5760_v50, 4  ;;  %v5015_v19 = vld [vmem:[#allocation2 + $0x60] sm:$0xf]  ;;  %8409 = vmatmul.mubr.bf16.gmra.mxu1 %v11416_v63  ;;  %v5203_v13 = vor.u32 %v5202_v32, %v5198_v56  ;;  %v5208_v2 = vrot.slane %v5206_v14, 5 }
 0x2cd   : > { %v5630_v58 = vld [vmem:[#allocation2 + $0x3c] sm:$0xf]  ;;  %5399 = vst [vmem:[#allocation3 + $0x190] sm:$0xf] %v5199_v59  ;;  %v5212_v54 = vrot.slane %v5210_v8, 4  ;;  %v5216_v7 = vshll.u32 %v5061_v44, 16  ;;  %v5764_v43 = vsel %vm11842_vm8, %v5756_v3, %v5763_v39 }
 0x2ce   : > { %v5016_v42 = vld [vmem:[#allocation2 + $0x64] sm:$0xf]  ;;  %5043 = vst [vmem:[#allocation3 + $0x360] sm:$0xf] %v5015_v19  ;;  %v11423_v26 = vld [vmem:[#allocation3 + $0x174] ss:$36 sps:$4 sm:$0xff]   ;;  %v5773_v40 = vsel %vm11842_vm8, %v5765_v29, %v5772_v61 }
 0x2cf   : > { %v5220_v6 = vshrl.u32 %v5061_v44, 16  ;;  %v5631_v22 = vld [vmem:[#allocation2 + $0x40] sm:$0xf]  ;;  %5044 = vst [vmem:[#allocation3 + $0x384] sm:$0xf] %v5016_v42  ;;  %v5204_v5 = vrot.slane %v5203_v13, 4  ;;  %v5213_v10 = vor.u32 %v5212_v54, %v5208_v2  ;;  %8561 = vmatprep.mubr.bf16.mxu0 %v11423_v26 }
 0x2d0   : > { %v11421_v11 = vld [vmem:[#allocation3 + $0x170] ss:$36 sps:$4 sm:$0xff]   ;;  %5940 = vst [vmem:[#allocation3 + $0x1bc] sm:$0xf] %v5764_v43  ;;  %5941 = vst [vmem:[#allocation3 + $0x1e0] sm:$0xf] %v5773_v40 }
 0x2d1   : > { %v5218_v0 = vrot.slane %v5216_v7, 5  ;;  %v5517_v36 = vrot.slane %v5515_v47, 4  ;;  %v5518_v60 = vrot.slane %v5431_v49, 5  ;;  %v5521_v46 = vrot.slane %v13947_v25, 5  ;;  %v5062_v16 = vld [vmem:[#allocation2 + $0x3c] sm:$0xf]  ;;  %8562 = vmatmul.mubr.bf16.gmra.mxu0 %v11421_v11 }
 0x2d2   : > { %v5774_v12 = vrot.slane %v13943_v62, 4  ;;  %v5776_v35 = vshrl.u32 %v5630_v58, 16  ;;  %v5209_v18 = vsel %vm11830_vm7, %v5204_v5, %v5208_v2  ;;  %v5214_v30 = vrot.slane %v5213_v10, 4  ;;  %v5063_v38 = vld [vmem:[#allocation2 + $0x40] sm:$0xf] }
 0x2d3   : > { %v5779_v41 = vshll.u32 %v5630_v58, 16  ;;  %v5785_v15 = vshrl.u32 %v5631_v22, 16  ;;  %5400 = vst [vmem:[#allocation3 + $0x1b4] sm:$0xf] %v5209_v18  ;;  %v5519_v17 = vsel %vm11824_vm6, %v5517_v36, %v5518_v60  ;;  %v5520_v47 = vrot.slane %v5518_v60, 4 }
 0x2d4   : > { %v5778_v4 = vrot.slane %v5776_v35, 7  ;;  %v5788_v56 = vshll.u32 %v5631_v22, 16  ;;  %v5219_v9 = vsel %vm11830_vm7, %v5214_v30, %v5218_v0  ;;  %5601 = vst [vmem:[#allocation3 + $0x200] sm:$0xf] %v5519_v17  ;;  %v5222_v55 = vrot.slane %v5220_v6, 4 }
 0x2d5   : > { %v13964_v24 = vrot.slane %v5785_v15, 7  ;;  %v5226_v33 = vshll.u32 %v5062_v16, 16  ;;  %v5433_v21 = vld [vmem:[#allocation2 + $0x44] sm:$0xf]  ;;  %5401 = vst [vmem:[#allocation3 + $0x1d8] sm:$0xf] %v5219_v9  ;;  %v5522_v34 = vsel %vm11824_vm6, %v5520_v47, %v5521_v46 }
 0x2d6   : > { %v11426_v3 = vld [vmem:[#allocation3 + $0x16c] ss:$36 sps:$4 sm:$0xff]   ;;  %v5781_v20 = vor.u32 %v5779_v41, %v5778_v4  ;;  %v5783_v50 = vrot.slane %v5778_v4, 4  ;;  %5602 = vst [vmem:[#allocation3 + $0x224] sm:$0xf] %v5522_v34  ;;  %v5223_v45 = vor.u32 %v5222_v55, %v5218_v0  ;;  %v5230_v14 = vshrl.u32 %v5062_v16, 16 }
 0x2d7   : > { %v13968_v62 = vld [vmem:[#allocation2 + $0x48] sm:$0xf]  ;;  %v5632_v31 = vld [vmem:[#allocation2 + $0x44] sm:$0xf]  ;;  %v5790_v63 = vor.u32 %v5788_v56, %v13964_v24  ;;  %v5228_v32 = vrot.slane %v5226_v33, 5  ;;  %8416 = vmatprep.mubr.bf16.mxu1 %v11426_v3  ;;  %v5236_v39 = vshll.u32 %v5063_v38, 16 }
 0x2d8   : > { %v11424_v44 = vld [vmem:[#allocation3 + $0x168] ss:$36 sps:$4 sm:$0xff]   ;;  %v5633_v8 = vld [vmem:[#allocation2 + $0x48] sm:$0xf]  ;;  %v11427_v25 = vld [vmem:[#allocation3 + $0x1b8] ss:$36 sps:$4 sm:$0xff]   ;;  %v5782_v59 = vsel %vm11842_vm8, %v5774_v12, %v5781_v20 }
 0x2d9   : > { %v5017_v49 = vld [vmem:[#allocation2 + $0x68] sm:$0xf]  ;;  %v11429_v29 = vld [vmem:[#allocation3 + $0x1bc] ss:$36 sps:$4 sm:$0xff]   ;;  %8417 = vmatmul.mubr.bf16.gmra.mxu1 %v11424_v44  ;;  %v5791_v61 = vsel %vm11842_vm8, %v5783_v50, %v5790_v63  ;;  %5942 = vst [vmem:[#allocation3 + $0x204] sm:$0xf] %v5782_v59 }
 0x2da   : > { %5045 = vst [vmem:[#allocation3 + $0x3a8] sm:$0xf] %v5017_v49  ;;  %v5224_v58 = vrot.slane %v5223_v45, 4  ;;  %v5232_v19 = vrot.slane %v5230_v14, 4  ;;  %v5523_v13 = vrot.slane %v5521_v46, 4  ;;  %v5238_v2 = vrot.slane %v5236_v39, 5  ;;  %8569 = vmatprep.mubr.bf16.mxu0 %v11429_v29 }
 0x2db   : > { %5943 = vst [vmem:[#allocation3 + $0x228] sm:$0xf] %v5791_v61  ;;  %v5240_v54 = vshrl.u32 %v5063_v38, 16  ;;  %v5524_v7 = vrot.slane %v5433_v21, 5  ;;  %v5018_v42 = vld [vmem:[#allocation2 + $0x6c] sm:$0xf]  ;;  %8570 = vmatmul.mubr.bf16.gmra.mxu0 %v11427_v25 }
 0x2dc   : > { %v5229_v26 = vsel %vm11830_vm7, %v5224_v58, %v5228_v32  ;;  %v5233_v43 = vor.u32 %v5232_v19, %v5228_v32  ;;  %v5527_v40 = vrot.slane %v13968_v62, 5  ;;  %v5794_v6 = vshrl.u32 %v5632_v31, 16  ;;  %v5064_v22 = vld [vmem:[#allocation2 + $0x44] sm:$0xf]  ;;  %5046 = vst [vmem:[#allocation3 + $0x3cc] sm:$0xf] %v5018_v42 }
 0x2dd   : > { %5402 = vst [vmem:[#allocation3 + $0x1fc] sm:$0xf] %v5229_v26  ;;  %v5525_v11 = vsel %vm11824_vm6, %v5523_v13, %v5524_v7  ;;  %v5526_v5 = vrot.slane %v5524_v7, 4  ;;  %v5792_v10 = vrot.slane %v13964_v24, 4  ;;  %v5803_v0 = vshrl.u32 %v5633_v8, 16 }
 0x2de   : > { %v5065_v36 = vld [vmem:[#allocation2 + $0x48] sm:$0xf]  ;;  %v11432_v60 = vld [vmem:[#allocation3 + $0x1b4] ss:$36 sps:$4 sm:$0xff]   ;;  %v5234_v46 = vrot.slane %v5233_v43, 4  ;;  %v5797_v12 = vshll.u32 %v5632_v31, 16 }
 0x2df   : > { %5603 = vst [vmem:[#allocation3 + $0x248] sm:$0xf] %v5525_v11  ;;  %v5806_v35 = vshll.u32 %v5633_v8, 16  ;;  %v5528_v16 = vsel %vm11824_vm6, %v5526_v5, %v5527_v40  ;;  %v5796_v18 = vrot.slane %v5794_v6, 7  ;;  %v13983_v30 = vrot.slane %v5803_v0, 7  ;;  %8424 = vmatprep.mubr.bf16.mxu1 %v11432_v60 }
 0x2e0   : > { %v5242_v41 = vrot.slane %v5240_v54, 4  ;;  %v5435_v15 = vld [vmem:[#allocation2 + $0x4c] sm:$0xf]  ;;  %v5239_v47 = vsel %vm11830_vm7, %v5234_v46, %v5238_v2  ;;  %5604 = vst [vmem:[#allocation3 + $0x26c] sm:$0xf] %v5528_v16  ;;  %v5246_v4 = vshll.u32 %v5064_v22, 16 }
 0x2e1   : > { %v11430_v17 = vld [vmem:[#allocation3 + $0x1b0] ss:$36 sps:$4 sm:$0xff]   ;;  %v5250_v56 = vshrl.u32 %v5064_v22, 16  ;;  %v5256_v38 = vshll.u32 %v5065_v36, 16  ;;  %5403 = vst [vmem:[#allocation3 + $0x220] sm:$0xf] %v5239_v47  ;;  %v5799_v9 = vor.u32 %v5797_v12, %v5796_v18  ;;  %v5808_v55 = vor.u32 %v5806_v35, %v13983_v30 }
 0x2e2   : > { %v5801_v24 = vrot.slane %v5796_v18, 4  ;;  %v5243_v33 = vor.u32 %v5242_v41, %v5238_v2  ;;  %v5956_v21 = vld [vmem:[#allocation2 + $0x4] sm:$0xf]  ;;  %v5957_v3 = vld [vmem:[#allocation2 + $0x8] sm:$0xf]  ;;  %8425 = vmatmul.mubr.bf16.gmra.mxu1 %v11430_v17  ;;  %v5248_v20 = vrot.slane %v5246_v4, 5 }
 0x2e3   : > { %v11437_v34 = vld [vmem:[#allocation3 + $0x204] ss:$36 sps:$4 sm:$0xff]   ;;  %v13988_v50 = vld [vmem:[#allocation2 + $0x50] sm:$0xf]  ;;  %5984 = vst [vmem:[#allocation3 + $0x10] sm:$0xf] %v5956_v21  ;;  %v5800_v31 = vsel %vm11842_vm8, %v5792_v10, %v5799_v9 }
 0x2e4   : > { %5985 = vst [vmem:[#allocation3 + $0x34] sm:$0xf] %v5957_v3  ;;  %v11435_v62 = vld [vmem:[#allocation3 + $0x200] ss:$36 sps:$4 sm:$0xff]   ;;  %v5809_v44 = vsel %vm11842_vm8, %v5801_v24, %v5808_v55  ;;  %v5244_v63 = vrot.slane %v5243_v33, 4  ;;  %v5252_v45 = vrot.slane %v5250_v56, 4  ;;  %8577 = vmatprep.mubr.bf16.mxu0 %v11437_v34 }
 0x2e5   : > { %v5634_v32 = vld [vmem:[#allocation2 + $0x4c] sm:$0xf]  ;;  %5944 = vst [vmem:[#allocation3 + $0x24c] sm:$0xf] %v5800_v31  ;;  %5945 = vst [vmem:[#allocation3 + $0x270] sm:$0xf] %v5809_v44  ;;  %8578 = vmatmul.mubr.bf16.gmra.mxu0 %v11435_v62 }
 0x2e6   : > { %v5260_v14 = vshrl.u32 %v5065_v36, 16  ;;  %v5529_v8 = vrot.slane %v5527_v40, 4  ;;  %v5530_v49 = vrot.slane %v5435_v15, 5  ;;  %v5635_v25 = vld [vmem:[#allocation2 + $0x50] sm:$0xf]  ;;  %v5249_v59 = vsel %vm11830_vm7, %v5244_v63, %v5248_v20 }
 0x2e7   : > { %v5253_v39 = vor.u32 %v5252_v45, %v5248_v20  ;;  %v5258_v29 = vrot.slane %v5256_v38, 5  ;;  %5404 = vst [vmem:[#allocation3 + $0x244] sm:$0xf] %v5249_v59  ;;  %v5533_v19 = vrot.slane %v13988_v50, 5  ;;  %v5812_v13 = vshrl.u32 %v5634_v32, 16 }
 0x2e8   : > { %v5531_v61 = vsel %vm11824_vm6, %v5529_v8, %v5530_v49  ;;  %v5532_v58 = vrot.slane %v5530_v49, 4  ;;  %v5066_v2 = vld [vmem:[#allocation2 + $0x4c] sm:$0xf]  ;;  %v5810_v7 = vrot.slane %v13983_v30, 4  ;;  %v5821_v42 = vshrl.u32 %v5635_v25, 16 }
 0x2e9   : > { %v5254_v54 = vrot.slane %v5253_v39, 4  ;;  %5605 = vst [vmem:[#allocation3 + $0x290] sm:$0xf] %v5531_v61  ;;  %v5067_v26 = vld [vmem:[#allocation2 + $0x50] sm:$0xf]  ;;  %v5262_v43 = vrot.slane %v5260_v14, 4 }
 0x2ea   : > { %v11440_v40 = vld [vmem:[#allocation3 + $0x1fc] ss:$36 sps:$4 sm:$0xff]   ;;  %v5534_v6 = vsel %vm11824_vm6, %v5532_v58, %v5533_v19  ;;  %v5814_v22 = vrot.slane %v5812_v13, 7  ;;  %v5815_v11 = vshll.u32 %v5634_v32, 16  ;;  %v5824_v5 = vshll.u32 %v5635_v25, 16 }
 0x2eb   : > { %v5437_v10 = vld [vmem:[#allocation2 + $0x54] sm:$0xf]  ;;  %v5259_v36 = vsel %vm11830_vm7, %v5254_v54, %v5258_v29  ;;  %5606 = vst [vmem:[#allocation3 + $0x2b4] sm:$0xf] %v5534_v6  ;;  %v14004_v60 = vrot.slane %v5821_v42, 7  ;;  %v5263_v46 = vor.u32 %v5262_v43, %v5258_v29  ;;  %v5266_v12 = vshll.u32 %v5066_v2, 16  ;;  %8432 = vmatprep.mubr.bf16.mxu1 %v11440_v40 }
 0x2ec   : > { %v11438_v0 = vld [vmem:[#allocation3 + $0x1f8] ss:$36 sps:$4 sm:$0xff]   ;;  %v5958_v16 = vld [vmem:[#allocation2 + $0xc] sm:$0xf]  ;;  %5405 = vst [vmem:[#allocation3 + $0x268] sm:$0xf] %v5259_v36  ;;  %v5817_v18 = vor.u32 %v5815_v11, %v5814_v22 }
 0x2ed   : > { %v5636_v35 = vld [vmem:[#allocation2 + $0x54] sm:$0xf]  ;;  %v5819_v30 = vrot.slane %v5814_v22, 4  ;;  %v5270_v41 = vshrl.u32 %v5066_v2, 16  ;;  %v5276_v15 = vshll.u32 %v5067_v26, 16  ;;  %8433 = vmatmul.mubr.bf16.gmra.mxu1 %v11438_v0  ;;  %v5826_v47 = vor.u32 %v5824_v5, %v14004_v60 }
 0x2ee   : > { %v5959_v17 = vld [vmem:[#allocation2 + $0x10] sm:$0xf]  ;;  %5986 = vst [vmem:[#allocation3 + $0x58] sm:$0xf] %v5958_v16  ;;  %v5264_v4 = vrot.slane %v5263_v46, 4  ;;  %v5268_v56 = vrot.slane %v5266_v12, 5  ;;  %v5818_v24 = vsel %vm11842_vm8, %v5810_v7, %v5817_v18 }
 0x2ef   : > { %v5438_v38 = vld [vmem:[#allocation2 + $0x58] sm:$0xf]  ;;  %5987 = vst [vmem:[#allocation3 + $0x7c] sm:$0xf] %v5959_v17  ;;  %v11443_v9 = vld [vmem:[#allocation3 + $0x24c] ss:$36 sps:$4 sm:$0xff]   ;;  %v5827_v34 = vsel %vm11842_vm8, %v5819_v30, %v5826_v47 }
 0x2f0   : > { %v5272_v55 = vrot.slane %v5270_v41, 4  ;;  %v5280_v33 = vshrl.u32 %v5067_v26, 16  ;;  %v5637_v21 = vld [vmem:[#allocation2 + $0x58] sm:$0xf]  ;;  %v11441_v3 = vld [vmem:[#allocation3 + $0x248] ss:$36 sps:$4 sm:$0xff]   ;;  %v5269_v20 = vsel %vm11830_vm7, %v5264_v4, %v5268_v56  ;;  %8585 = vmatprep.mubr.bf16.mxu0 %v11443_v9 }
 0x2f1   : > { %5946 = vst [vmem:[#allocation3 + $0x294] sm:$0xf] %v5818_v24  ;;  %v5535_v50 = vrot.slane %v5533_v19, 4  ;;  %v5536_v62 = vrot.slane %v5437_v10, 5  ;;  %5947 = vst [vmem:[#allocation3 + $0x2b8] sm:$0xf] %v5827_v34  ;;  %8586 = vmatmul.mubr.bf16.gmra.mxu0 %v11441_v3 }
 0x2f2   : > { %v5273_v31 = vor.u32 %v5272_v55, %v5268_v56  ;;  %v5278_v44 = vrot.slane %v5276_v15, 5  ;;  %5406 = vst [vmem:[#allocation3 + $0x28c] sm:$0xf] %v5269_v20  ;;  %v5539_v63 = vrot.slane %v5438_v38, 5  ;;  %v5830_v45 = vshrl.u32 %v5636_v35, 16 }
 0x2f3   : > { %v5537_v32 = vsel %vm11824_vm6, %v5535_v50, %v5536_v62  ;;  %v5538_v14 = vrot.slane %v5536_v62, 4  ;;  %v5828_v8 = vrot.slane %v14004_v60, 4  ;;  %v5839_v49 = vshrl.u32 %v5637_v21, 16  ;;  %v5068_v25 = vld [vmem:[#allocation2 + $0x54] sm:$0xf] }
 0x2f4   : > { %v5274_v59 = vrot.slane %v5273_v31, 4  ;;  %5607 = vst [vmem:[#allocation3 + $0x2d8] sm:$0xf] %v5537_v32  ;;  %v5832_v39 = vrot.slane %v5830_v45, 7  ;;  %v5833_v29 = vshll.u32 %v5636_v35, 16  ;;  %v5282_v58 = vrot.slane %v5280_v33, 4 }
 0x2f5   : > { %v5069_v61 = vld [vmem:[#allocation2 + $0x58] sm:$0xf]  ;;  %v11450_v19 = vld [vmem:[#allocation3 + $0x244] ss:$36 sps:$4 sm:$0xff]   ;;  %v5540_v13 = vsel %vm11824_vm6, %v5538_v14, %v5539_v63  ;;  %v14018_v2 = vrot.slane %v5839_v49, 7  ;;  %v5842_v54 = vshll.u32 %v5637_v21, 16 }
 0x2f6   : > { %v5439_v7 = vld [vmem:[#allocation2 + $0x5c] sm:$0xf]  ;;  %v5279_v26 = vsel %vm11830_vm7, %v5274_v59, %v5278_v44  ;;  %5608 = vst [vmem:[#allocation3 + $0x2fc] sm:$0xf] %v5540_v13  ;;  %v5835_v43 = vor.u32 %v5833_v29, %v5832_v39  ;;  %v5837_v40 = vrot.slane %v5832_v39, 4  ;;  %v5283_v6 = vor.u32 %v5282_v58, %v5278_v44  ;;  %8440 = vmatprep.mubr.bf16.mxu1 %v11450_v19 }
 0x2f7   : > { %v11448_v42 = vld [vmem:[#allocation3 + $0x240] ss:$36 sps:$4 sm:$0xff]   ;;  %v14022_v22 = vld [vmem:[#allocation2 + $0x60] sm:$0xf]  ;;  %5407 = vst [vmem:[#allocation3 + $0x2b0] sm:$0xf] %v5279_v26  ;;  %v5844_v5 = vor.u32 %v5842_v54, %v14018_v2 }
 0x2f8   : > { %v5638_v11 = vld [vmem:[#allocation2 + $0x5c] sm:$0xf]  ;;  %v5286_v10 = vshll.u32 %v5068_v25, 16  ;;  %v5290_v0 = vshrl.u32 %v5068_v25, 16  ;;  %v5296_v36 = vshll.u32 %v5069_v61, 16  ;;  %8441 = vmatmul.mubr.bf16.gmra.mxu1 %v11448_v42  ;;  %v5836_v12 = vsel %vm11842_vm8, %v5828_v8, %v5835_v43 }
 0x2f9   : > { %v14025_v60 = vld [vmem:[#allocation2 + $0x60] sm:$0xf]  ;;  %v5960_v46 = vld [vmem:[#allocation2 + $0x14] sm:$0xf]  ;;  %v5284_v35 = vrot.slane %v5283_v6, 4  ;;  %v5541_v16 = vrot.slane %v5539_v63, 4  ;;  %v5845_v15 = vsel %vm11842_vm8, %v5837_v40, %v5844_v5 }
 0x2fa   : > { %v5070_v18 = vld [vmem:[#allocation2 + $0x5c] sm:$0xf]  ;;  %v5961_v30 = vld [vmem:[#allocation2 + $0x18] sm:$0xf]  ;;  %5988 = vst [vmem:[#allocation3 + $0xa0] sm:$0xf] %v5960_v46 }
 0x2fb   : > { %v11453_v41 = vld [vmem:[#allocation3 + $0x294] ss:$36 sps:$4 sm:$0xff]   ;;  %5948 = vst [vmem:[#allocation3 + $0x2dc] sm:$0xf] %v5836_v12  ;;  %v5288_v17 = vrot.slane %v5286_v10, 5  ;;  %v5300_v47 = vshrl.u32 %v5069_v61, 16 }
 0x2fc   : > { %5989 = vst [vmem:[#allocation3 + $0xc4] sm:$0xf] %v5961_v30  ;;  %v11451_v4 = vld [vmem:[#allocation3 + $0x290] ss:$36 sps:$4 sm:$0xff]   ;;  %5949 = vst [vmem:[#allocation3 + $0x300] sm:$0xf] %v5845_v15  ;;  %8593 = vmatprep.mubr.bf16.mxu0 %v11453_v41 }
 0x2fd   : > { %v5292_v56 = vrot.slane %v5290_v0, 4  ;;  %v5298_v38 = vrot.slane %v5296_v36, 5  ;;  %v5542_v9 = vrot.slane %v5439_v7, 5  ;;  %v5289_v24 = vsel %vm11830_vm7, %v5284_v35, %v5288_v17  ;;  %8594 = vmatmul.mubr.bf16.gmra.mxu0 %v11451_v4  ;;  %v5071_v44 = vld [vmem:[#allocation2 + $0x60] sm:$0xf] }
 0x2fe   : > { %v5545_v55 = vrot.slane %v14022_v22, 5  ;;  %v5846_v33 = vrot.slane %v14018_v2, 4  ;;  %v5848_v21 = vshrl.u32 %v5638_v11, 16  ;;  %5408 = vst [vmem:[#allocation3 + $0x2d4] sm:$0xf] %v5289_v24  ;;  %v5857_v50 = vshrl.u32 %v14025_v60, 16 }
 0x2ff   : > { %v5293_v3 = vor.u32 %v5292_v56, %v5288_v17  ;;  %v5543_v34 = vsel %vm11824_vm6, %v5541_v16, %v5542_v9  ;;  %v5544_v20 = vrot.slane %v5542_v9, 4  ;;  %v5851_v31 = vshll.u32 %v5638_v11, 16  ;;  %v11456_v32 = vld [vmem:[#allocation3 + $0x28c] ss:$36 sps:$4 sm:$0xff]   ;;  %v5962_v43 = vld [vmem:[#allocation2 + $0x1c] sm:$0xf] }
 0x300   : > { %5609 = vst [vmem:[#allocation3 + $0x320] sm:$0xf] %v5543_v34  ;;  %v5850_v62 = vrot.slane %v5848_v21, 7  ;;  %v5302_v63 = vrot.slane %v5300_v47, 4  ;;  %v5306_v45 = vshll.u32 %v5070_v18, 16  ;;  %v5860_v49 = vshll.u32 %v14025_v60, 16  ;;  %8448 = vmatprep.mubr.bf16.mxu1 %v11456_v32 }
 0x301   : > { %v5294_v14 = vrot.slane %v5293_v3, 4  ;;  %v5546_v8 = vsel %vm11824_vm6, %v5544_v20, %v5545_v55  ;;  %v5441_v25 = vld [vmem:[#allocation2 + $0x64] sm:$0xf]  ;;  %v14041_v59 = vld [vmem:[#allocation2 + $0x68] sm:$0xf]  ;;  %v14043_v58 = vrot.slane %v5857_v50, 7 }
 0x302   : > { %v11454_v39 = vld [vmem:[#allocation3 + $0x288] ss:$36 sps:$4 sm:$0xff]   ;;  %5610 = vst [vmem:[#allocation3 + $0x344] sm:$0xf] %v5546_v8  ;;  %v5853_v29 = vor.u32 %v5851_v31, %v5850_v62  ;;  %v5855_v61 = vrot.slane %v5850_v62, 4  ;;  %v5303_v19 = vor.u32 %v5302_v63, %v5298_v38  ;;  %v5308_v54 = vrot.slane %v5306_v45, 5 }
 0x303   : > { %v5640_v13 = vld [vmem:[#allocation2 + $0x64] sm:$0xf]  ;;  %v5299_v2 = vsel %vm11830_vm7, %v5294_v14, %v5298_v38  ;;  %v5310_v7 = vshrl.u32 %v5070_v18, 16  ;;  %v5316_v42 = vshll.u32 %v5071_v44, 16  ;;  %v5641_v26 = vld [vmem:[#allocation2 + $0x68] sm:$0xf]  ;;  %8449 = vmatmul.mubr.bf16.gmra.mxu1 %v11454_v39  ;;  %v5862_v11 = vor.u32 %v5860_v49, %v14043_v58 }
 0x304   : > { %v11461_v40 = vld [vmem:[#allocation3 + $0x2d8] ss:$36 sps:$4 sm:$0xff]   ;;  %5409 = vst [vmem:[#allocation3 + $0x2f8] sm:$0xf] %v5299_v2  ;;  %v5854_v22 = vsel %vm11842_vm8, %v5846_v33, %v5853_v29  ;;  %v5304_v5 = vrot.slane %v5303_v19, 4  ;;  %v5320_v36 = vshrl.u32 %v5071_v44, 16 }
 0x305   : > { %v11463_v6 = vld [vmem:[#allocation3 + $0x2dc] ss:$36 sps:$4 sm:$0xff]   ;;  %5990 = vst [vmem:[#allocation3 + $0xe8] sm:$0xf] %v5962_v43  ;;  %5950 = vst [vmem:[#allocation3 + $0x324] sm:$0xf] %v5854_v22  ;;  %v5863_v12 = vsel %vm11842_vm8, %v5855_v61, %v5862_v11 }
 0x306   : > { %v5312_v10 = vrot.slane %v5310_v7, 4  ;;  %v5318_v0 = vrot.slane %v5316_v42, 5  ;;  %v5547_v60 = vrot.slane %v5545_v55, 4  ;;  %v5963_v46 = vld [vmem:[#allocation2 + $0x20] sm:$0xf]  ;;  %8601 = vmatprep.mubr.bf16.mxu0 %v11463_v6  ;;  %v5309_v35 = vsel %vm11830_vm7, %v5304_v5, %v5308_v54 }
 0x307   : > { %v5548_v16 = vrot.slane %v5441_v25, 5  ;;  %v5551_v18 = vrot.slane %v14041_v59, 5  ;;  %v5072_v30 = vld [vmem:[#allocation2 + $0x64] sm:$0xf]  ;;  %5991 = vst [vmem:[#allocation3 + $0x10c] sm:$0xf] %v5963_v46  ;;  %8602 = vmatmul.mubr.bf16.gmra.mxu0 %v11461_v40 }
 0x308   : > { %5951 = vst [vmem:[#allocation3 + $0x348] sm:$0xf] %v5863_v12  ;;  %v5313_v41 = vor.u32 %v5312_v10, %v5308_v54  ;;  %5410 = vst [vmem:[#allocation3 + $0x31c] sm:$0xf] %v5309_v35  ;;  %v5864_v15 = vrot.slane %v14043_v58, 4  ;;  %v5866_v17 = vshrl.u32 %v5640_v13, 16 }
 0x309   : > { %v5869_v47 = vshll.u32 %v5640_v13, 16  ;;  %v14056_v4 = vld [vmem:[#allocation2 + $0x68] sm:$0xf]  ;;  %v5549_v56 = vsel %vm11824_vm6, %v5547_v60, %v5548_v16  ;;  %v5550_v38 = vrot.slane %v5548_v16, 4  ;;  %v5875_v9 = vshrl.u32 %v5641_v26, 16 }
 0x30a   : > { %v5878_v24 = vshll.u32 %v5641_v26, 16  ;;  %v5314_v55 = vrot.slane %v5313_v41, 4  ;;  %5611 = vst [vmem:[#allocation3 + $0x368] sm:$0xf] %v5549_v56  ;;  %v5868_v33 = vrot.slane %v5866_v17, 7  ;;  %v5322_v21 = vrot.slane %v5320_v36, 4 }
 0x30b   : > { %v5326_v3 = vshll.u32 %v5072_v30, 16  ;;  %v5443_v34 = vld [vmem:[#allocation2 + $0x6c] sm:$0xf]  ;;  %v5552_v20 = vsel %vm11824_vm6, %v5550_v38, %v5551_v18  ;;  %v14062_v50 = vrot.slane %v5875_v9, 7  ;;  %v5330_v62 = vshrl.u32 %v5072_v30, 16 }
 0x30c   : > { %v5336_v31 = vshll.u32 %v14056_v4, 16  ;;  %v5444_v44 = vld [vmem:[#allocation2 + $0x70] sm:$0x1]  ;;  %v5319_v45 = vsel %vm11830_vm7, %v5314_v55, %v5318_v0  ;;  %5612 = vst [vmem:[#allocation3 + $0x38c] sm:$0xf] %v5552_v20  ;;  %v5871_v32 = vor.u32 %v5869_v47, %v5868_v33  ;;  %v5873_v14 = vrot.slane %v5868_v33, 4 }
 0x30d   : > { %v11466_v63 = vld [vmem:[#allocation3 + $0x2d4] ss:$36 sps:$4 sm:$0xff]   ;;  %v5323_v8 = vor.u32 %v5322_v21, %v5318_v0  ;;  %5411 = vst [vmem:[#allocation3 + $0x340] sm:$0xf] %v5319_v45  ;;  %v5880_v59 = vor.u32 %v5878_v24, %v14062_v50  ;;  %v5328_v39 = vrot.slane %v5326_v3, 5  ;;  %v5332_v29 = vrot.slane %v5330_v62, 4 }
 0x30e   : > { %v5642_v49 = vld [vmem:[#allocation2 + $0x6c] sm:$0xf]  ;;  %v14068_v61 = vld [vmem:[#allocation2 + $0x70] sm:$0xf]  ;;  %8456 = vmatprep.mubr.bf16.mxu1 %v11466_v63  ;;  %v5872_v58 = vsel %vm11842_vm8, %v5864_v15, %v5871_v32  ;;  %v5340_v13 = vshrl.u32 %v14056_v4, 16  ;;  %v5553_v2 = vrot.slane %v5551_v18, 4 }
 0x30f   : > { %v11464_v25 = vld [vmem:[#allocation3 + $0x2d0] ss:$36 sps:$4 sm:$0xff]   ;;  %v5324_v19 = vrot.slane %v5323_v8, 4  ;;  %v5964_v7 = vld [vmem:[#allocation2 + $0x24] sm:$0xf]  ;;  %v5881_v43 = vsel %vm11842_vm8, %v5873_v14, %v5880_v59  ;;  %v5333_v40 = vor.u32 %v5332_v29, %v5328_v39  ;;  %v5554_v6 = vrot.slane %v5443_v34, 5 }
 0x310   : > { %v5074_v54 = vld [vmem:[#allocation2 + $0x6c] sm:$0xf]  ;;  %v11467_v42 = vld [vmem:[#allocation3 + $0x320] ss:$36 sps:$4 sm:$0xff]   ;;  %8457 = vmatmul.mubr.bf16.gmra.mxu1 %v11464_v25  ;;  %5952 = vst [vmem:[#allocation3 + $0x36c] sm:$0xf] %v5872_v58 }
 0x311   : > { %v11469_v26 = vld [vmem:[#allocation3 + $0x324] ss:$36 sps:$4 sm:$0xff]   ;;  %5992 = vst [vmem:[#allocation3 + $0x130] sm:$0xf] %v5964_v7  ;;  %5953 = vst [vmem:[#allocation3 + $0x390] sm:$0xf] %v5881_v43  ;;  %v5329_v22 = vsel %vm11830_vm7, %v5324_v19, %v5328_v39  ;;  %v5555_v60 = vsel %vm11824_vm6, %v5553_v2, %v5554_v6 }
 0x312   : > { %v5338_v11 = vrot.slane %v5336_v31, 5  ;;  %v5557_v5 = vrot.slane %v5444_v44, 5  ;;  %v5884_v10 = vshrl.u32 %v5642_v49, 16  ;;  %v5965_v0 = vld [vmem:[#allocation2 + $0x28] sm:$0xf]  ;;  %8609 = vmatprep.mubr.bf16.mxu0 %v11469_v26  ;;  %v5334_v36 = vrot.slane %v5333_v40, 4 }
 0x313   : > { %5412 = vst [vmem:[#allocation3 + $0x364] sm:$0xf] %v5329_v22  ;;  %v5556_v46 = vrot.slane %v5554_v6, 4  ;;  %v5882_v12 = vrot.slane %v14062_v50, 4  ;;  %v6381_v35 = vld [vmem:[#allocation2 + $0x4] sm:$0x8]  ;;  %8610 = vmatmul.mubr.bf16.gmra.mxu0 %v11467_v42 }
 0x314   : > { %5993 = vst [vmem:[#allocation3 + $0x154] sm:$0xf] %v5965_v0  ;;  %5613 = vst [vmem:[#allocation3 + $0x3b0] sm:$0xf] %v5555_v60  ;;  %v5886_v16 = vrot.slane %v5884_v10, 7  ;;  %v5887_v18 = vshll.u32 %v5642_v49, 16  ;;  %v5339_v17 = vsel %vm11830_vm7, %v5334_v36, %v5338_v11 }
 0x315   : > { %v5893_v30 = vshrl.u32 %v14068_v61, 16  ;;  %v5075_v41 = vld [vmem:[#allocation2 + $0x70] sm:$0x1]  ;;  %v5342_v15 = vrot.slane %v5340_v13, 4  ;;  %v5558_v47 = vsel %vm11824_vm6, %v5556_v46, %v5557_v5  ;;  %v5346_v4 = vshll.u32 %v5074_v54, 16 }
 0x316   : > { %v5350_v56 = vshrl.u32 %v5074_v54, 16  ;;  %v6382_v38 = vld [vmem:[#allocation2 + $0x8] sm:$0xf]  ;;  %v14085_v9 = vld [vmem:[#allocation2 + $0xc] sm:$0xf]  ;;  %v5889_v55 = vor.u32 %v5887_v18, %v5886_v16  ;;  %v5891_v33 = vrot.slane %v5886_v16, 4 }
 0x317   : > { %v11472_v24 = vld [vmem:[#allocation3 + $0x31c] ss:$36 sps:$4 sm:$0xff]   ;;  %5413 = vst [vmem:[#allocation3 + $0x388] sm:$0xf] %v5339_v17  ;;  %5614 = vst [vmem:[#allocation3 + $0x3d4] sm:$0xf] %v5558_v47  ;;  %v5343_v3 = vor.u32 %v5342_v15, %v5338_v11 }
 0x318   : > { %v5896_v21 = vshll.u32 %v14068_v61, 16  ;;  %v6580_v34 = vld [vmem:[#allocation2 + $0x4] sm:$0x8]  ;;  %v6581_v20 = vld [vmem:[#allocation2 + $0x8] sm:$0xf]  ;;  %v5895_v62 = vrot.slane %v5893_v30, 7  ;;  %8464 = vmatprep.mubr.bf16.mxu1 %v11472_v24  ;;  %v5890_v63 = vsel %vm11842_vm8, %v5882_v12, %v5889_v55 }
 0x319   : > { %v11470_v50 = vld [vmem:[#allocation3 + $0x318] ss:$36 sps:$4 sm:$0xff]   ;;  %v5348_v31 = vrot.slane %v5346_v4, 5  ;;  %v5352_v1 = vrot.slane %v5350_v56, 4  ;;  %v5356_v44 = vshll.u32 %v5075_v41, 16  ;;  %v5344_v45 = vrot.slane %v5343_v3, 4 }
 0x31a   : > { %v9741_v32 = vrot.slane %v6381_v35, 11  ;;  %v6441_v14 = vrot.slane %v6382_v38, 7  ;;  %v6582_v8 = vld [vmem:[#allocation2 + $0xc] sm:$0xf]  ;;  %v11477_v49 = vld [vmem:[#allocation3 + $0x368] ss:$36 sps:$4 sm:$0xff]   ;;  %8465 = vmatmul.mubr.bf16.gmra.mxu1 %v11470_v50  ;;  %v5898_v59 = vor.u32 %v5896_v21, %v5895_v62 }
 0x31b   : > { %v11479_v25 = vld [vmem:[#allocation3 + $0x36c] ss:$36 sps:$4 sm:$0xff]   ;;  %5954 = vst [vmem:[#allocation3 + $0x3b4] sm:$0xf] %v5890_v63  ;;  %v5353_v39 = vor.u32 %v5352_v1, %v5348_v31  ;;  %v5358_v29 = vrot.slane %v5356_v44, 5  ;;  %v5349_v58 = vsel %vm11830_vm7, %v5344_v45, %v5348_v31  ;;  %v6444_v54 = vrot.slane %v14085_v9, 7 }
 0x31c   : > { %v6012_v61 = vld [vmem:[#allocation2 + $0x4] sm:$0xf]  ;;  %v6442_v13 = vsel %vm12266_vm11, %v9741_v32, %v6441_v14  ;;  %v6443_v2 = vrot.slane %v6441_v14, 4  ;;  %v5966_v7 = vld [vmem:[#allocation2 + $0x2c] sm:$0xf]  ;;  %8617 = vmatprep.mubr.bf16.mxu0 %v11479_v25  ;;  %v5899_v42 = vsel %vm11842_vm8, %v5891_v33, %v5898_v59  ;;  %v6610_v43 = vshrl.u32 %v6580_v34, 16 }
 0x31d   : > { %v5354_v26 = vrot.slane %v5353_v39, 4  ;;  %5414 = vst [vmem:[#allocation3 + $0x3ac] sm:$0xf] %v5349_v58  ;;  %6552 = vst [vmem:[#allocation3 + $0x18] sm:$0xf] %v6442_v13  ;;  %v6615_v40 = vshrl.u32 %v6581_v20, 16  ;;  %8618 = vmatmul.mubr.bf16.gmra.mxu0 %v11477_v49 }
 0x31e   : > { %v5967_v6 = vld [vmem:[#allocation2 + $0x30] sm:$0xf]  ;;  %5994 = vst [vmem:[#allocation3 + $0x178] sm:$0xf] %v5966_v7  ;;  %5955 = vst [vmem:[#allocation3 + $0x3d8] sm:$0xf] %v5899_v42  ;;  %v6445_v22 = vsel %vm12266_vm11, %v6443_v2, %v6444_v54 }
 0x31f   : > { %v6624_v11 = vshrl.u32 %v6582_v8, 16  ;;  %v6013_v5 = vld [vmem:[#allocation2 + $0x8] sm:$0xf]  ;;  %v14099_v10 = vld [vmem:[#allocation2 + $0xc] sm:$0xf]  ;;  %v5359_v36 = vsel %vm11830_vm7, %v5354_v26, %v5358_v29  ;;  %v6618_v60 = vshll.u32 %v6581_v20, 16 }
 0x320   : > { %5995 = vst [vmem:[#allocation3 + $0x19c] sm:$0xf] %v5967_v6  ;;  %v11482_v0 = vld [vmem:[#allocation3 + $0x364] ss:$36 sps:$4 sm:$0xff]   ;;  %6553 = vst [vmem:[#allocation3 + $0x3c] sm:$0xf] %v6445_v22 }
 0x321   : > { %v6627_v46 = vshll.u32 %v6582_v8, 16  ;;  %5415 = vst [vmem:[#allocation3 + $0x3d0] sm:$0xf] %v5359_v36  ;;  %v6617_v12 = vrot.slane %v6615_v40, 7  ;;  %v14103_v35 = vrot.slane %v6624_v11, 7  ;;  %v6042_v16 = vshrl.u32 %v6012_v61, 16  ;;  %8472 = vmatprep.mubr.bf16.mxu1 %v11482_v0 }
 0x322   : > { %v6045_v18 = vshll.u32 %v6012_v61, 16  ;;  %v6384_v30 = vld [vmem:[#allocation2 + $0x10] sm:$0xf]  ;;  %v11480_v41 = vld [vmem:[#allocation3 + $0x360] ss:$36 sps:$4 sm:$0xff]   ;;  %v9742_v15 = vrot.slane %v6610_v43, 11 }
 0x323   : > { %v6051_v17 = vshll.u32 %v6013_v5, 16  ;;  %v6055_v47 = vshrl.u32 %v6013_v5, 16  ;;  %v6620_v4 = vor.u32 %v6618_v60, %v6617_v12  ;;  %v6622_v56 = vrot.slane %v6617_v12, 4  ;;  %v14106_v24 = vld [vmem:[#allocation2 + $0x14] sm:$0xf]  ;;  %8473 = vmatmul.mubr.bf16.gmra.mxu1 %v11480_v41 }
 0x324   : > { %v6629_v38 = vor.u32 %v6627_v46, %v14103_v35  ;;  %v6044_v9 = vrot.slane %v6042_v16, 4  ;;  %v6047_v55 = vrot.slane %v6045_v18, 5  ;;  %v6061_v3 = vshll.u32 %v14099_v10, 16  ;;  %v6583_v34 = vld [vmem:[#allocation2 + $0x10] sm:$0xf] }
 0x325   : > { %v6053_v33 = vrot.slane %v6051_v17, 5  ;;  %v6057_v21 = vrot.slane %v6055_v47, 4  ;;  %v6621_v20 = vsel %vm11842_vm8, %v9742_v15, %v6620_v4  ;;  %v6446_v62 = vrot.slane %v6444_v54, 4  ;;  %v6584_v1 = vld [vmem:[#allocation2 + $0x14] sm:$0xf] }
 0x326   : > { %v6630_v50 = vsel %vm11842_vm8, %v6622_v56, %v6629_v38  ;;  %v6447_v31 = vrot.slane %v6384_v30, 7  ;;  %v11486_v44 = vld [vmem:[#allocation3 + $0x3b0] ss:$36 sps:$4 sm:$0xff]   ;;  %6893 = vst [vmem:[#allocation3 + $0x1c] sm:$0xf] %v6621_v20  ;;  %v6048_v45 = vor.u32 %v6047_v55, %v6044_v9  ;;  %v6065_v14 = vshrl.u32 %v14099_v10, 16 }
 0x327   : > { %v11488_v63 = vld [vmem:[#allocation3 + $0x3b4] ss:$36 sps:$4 sm:$0xff]   ;;  %6894 = vst [vmem:[#allocation3 + $0x40] sm:$0xf] %v6630_v50  ;;  %v6058_v32 = vor.u32 %v6057_v21, %v6053_v33  ;;  %v6450_v59 = vrot.slane %v14106_v24, 7  ;;  %v6633_v39 = vshrl.u32 %v6583_v34, 16 }
 0x328   : > { %v6015_v8 = vld [vmem:[#allocation2 + $0x10] sm:$0xf]  ;;  %v6448_v49 = vsel %vm12266_vm11, %v6446_v62, %v6447_v31  ;;  %v6449_v25 = vrot.slane %v6447_v31, 4  ;;  %v14117_v29 = vld [vmem:[#allocation2 + $0x14] sm:$0xf]  ;;  %8625 = vmatprep.mubr.bf16.mxu0 %v11488_v63  ;;  %v6049_v13 = vrot.slane %v6048_v45, 4 }
 0x329   : > { %v5968_v61 = vld [vmem:[#allocation2 + $0x34] sm:$0xf]  ;;  %v11492_v58 = vld [vmem:[#allocation3 + $0x3ac] ss:$36 sps:$4 sm:$0xff]   ;;  %v6063_v2 = vrot.slane %v6061_v3, 5  ;;  %v6631_v54 = vrot.slane %v14103_v35, 4  ;;  %8626 = vmatmul.mubr.bf16.gmra.mxu0 %v11486_v44 }
 0x32a   : > { %6554 = vst [vmem:[#allocation3 + $0x60] sm:$0xf] %v6448_v49  ;;  %5996 = vst [vmem:[#allocation3 + $0x1c0] sm:$0xf] %v5968_v61  ;;  %v6059_v7 = vrot.slane %v6058_v32, 4  ;;  %v6451_v42 = vsel %vm12266_vm11, %v6449_v25, %v6450_v59  ;;  %v6635_v26 = vrot.slane %v6633_v39, 7  ;;  %8480 = vmatprep.mubr.bf16.mxu1 %v11492_v58  ;;  %v6054_v22 = vsel %vm11830_vm7, %v6049_v13, %v6053_v33 }
 0x32b   : > { %v6636_v43 = vshll.u32 %v6583_v34, 16  ;;  %v5969_v40 = vld [vmem:[#allocation2 + $0x38] sm:$0xf]  ;;  %v11490_v6 = vld [vmem:[#allocation3 + $0x3a8] ss:$36 sps:$4 sm:$0xff]   ;;  %v6642_v11 = vshrl.u32 %v6584_v1, 16 }
 0x32c   : > { %6555 = vst [vmem:[#allocation3 + $0x84] sm:$0xf] %v6451_v42  ;;  %v6645_v5 = vshll.u32 %v6584_v1, 16  ;;  %v6067_v10 = vrot.slane %v6065_v14, 4  ;;  %5997 = vst [vmem:[#allocation3 + $0x1e4] sm:$0xf] %v5969_v40  ;;  %v6064_v0 = vsel %vm11830_vm7, %v6059_v7, %v6063_v2  ;;  %8481 = vmatmul.mubr.bf16.gmra.mxu1 %v11490_v6 }
 0x32d   : > { %6353 = vst [vmem:[#allocation3 + $0x14] sm:$0xf] %v6054_v22  ;;  %v6638_v36 = vor.u32 %v6636_v43, %v6635_v26  ;;  %v6640_v60 = vrot.slane %v6635_v26, 4  ;;  %v6071_v46 = vshll.u32 %v6015_v8, 16  ;;  %v6386_v12 = vld [vmem:[#allocation2 + $0x18] sm:$0xf] }
 0x32e   : > { %v14126_v35 = vld [vmem:[#allocation2 + $0x1c] sm:$0xf]  ;;  %6354 = vst [vmem:[#allocation3 + $0x38] sm:$0xf] %v6064_v0  ;;  %v14128_v16 = vrot.slane %v6642_v11, 7  ;;  %v6068_v18 = vor.u32 %v6067_v10, %v6063_v2  ;;  %v6075_v30 = vshrl.u32 %v6015_v8, 16 }
 0x32f   : > { %v6081_v41 = vshll.u32 %v14117_v29, 16  ;;  %v6585_v15 = vld [vmem:[#allocation2 + $0x18] sm:$0xf]  ;;  %v6639_v17 = vsel %vm11842_vm8, %v6631_v54, %v6638_v36  ;;  %v6073_v47 = vrot.slane %v6071_v46, 5  ;;  %v6586_v4 = vld [vmem:[#allocation2 + $0x1c] sm:$0xf] }
 0x330   : > { %v11501_v56 = vld [vmem:[#allocation3 + $0x1c] ss:$36 sps:$4 sm:$0xff]   ;;  %v6647_v38 = vor.u32 %v6645_v5, %v14128_v16  ;;  %6895 = vst [vmem:[#allocation3 + $0x64] sm:$0xf] %v6639_v17  ;;  %v6069_v9 = vrot.slane %v6068_v18, 4  ;;  %v6077_v24 = vrot.slane %v6075_v30, 4 }
 0x331   : > { %v6085_v55 = vshrl.u32 %v14117_v29, 16  ;;  %v11499_v33 = vld [vmem:[#allocation3 + $0x18] ss:$36 sps:$4 sm:$0xff]   ;;  %v6083_v21 = vrot.slane %v6081_v41, 5  ;;  %v6452_v3 = vrot.slane %v6450_v59, 4  ;;  %v6453_v34 = vrot.slane %v6386_v12, 7  ;;  %8811 = vmatprep.mubr.bf16.mxu0 %v11501_v56 }
 0x332   : > { %v6456_v20 = vrot.slane %v14126_v35, 7  ;;  %v6648_v50 = vsel %vm11842_vm8, %v6640_v60, %v6647_v38  ;;  %v6074_v62 = vsel %vm11830_vm7, %v6069_v9, %v6073_v47  ;;  %v6078_v31 = vor.u32 %v6077_v24, %v6073_v47  ;;  %v6017_v44 = vld [vmem:[#allocation2 + $0x18] sm:$0xf]  ;;  %v14140_v63 = vld [vmem:[#allocation2 + $0x1c] sm:$0xf]  ;;  %8812 = vmatmul.mubr.bf16.vlgmr.msra.gmra.mxu0 %v11499_v33  ;;  %v11520_v6 = vld [vmem:[%s15316_s3 + $0x230] sm:$0xff]  }
 0x333   : > { %v6651_v1 = vshrl.u32 %v6585_v15, 16  ;;  %v5970_v45 = vld [vmem:[#allocation2 + $0x3c] sm:$0xf]  ;;  %6896 = vst [vmem:[#allocation3 + $0x88] sm:$0xf] %v6648_v50  ;;  %v6454_v32 = vsel %vm12266_vm11, %v6452_v3, %v6453_v34  ;;  %v6455_v14 = vrot.slane %v6453_v34, 4 }
 0x334   : > { %6355 = vst [vmem:[#allocation3 + $0x5c] sm:$0xf] %v6074_v62  ;;  %v6649_v8 = vrot.slane %v14128_v16, 4  ;;  %v6660_v49 = vshrl.u32 %v6586_v4, 16  ;;  %v5971_v25 = vld [vmem:[#allocation2 + $0x40] sm:$0xf] }
 0x335   : > { %5998 = vst [vmem:[#allocation3 + $0x208] sm:$0xf] %v5970_v45  ;;  %v6079_v59 = vrot.slane %v6078_v31, 4  ;;  %6556 = vst [vmem:[#allocation3 + $0xa8] sm:$0xf] %v6454_v32  ;;  %v6653_v39 = vrot.slane %v6651_v1, 7  ;;  %v6457_v13 = vsel %vm12266_vm11, %v6455_v14, %v6456_v20 }
 0x336   : > { %v6654_v29 = vshll.u32 %v6585_v15, 16  ;;  %v6087_v61 = vrot.slane %v6085_v55, 4  ;;  %5999 = vst [vmem:[#allocation3 + $0x22c] sm:$0xf] %v5971_v25  ;;  %v11504_v58 = vld [vmem:[#allocation3 + $0x14] ss:$36 sps:$4 sm:$0xff]  }
 0x337   : > { %v14147_v2 = vrot.slane %v6660_v49, 7  ;;  %v6663_v54 = vshll.u32 %v6586_v4, 16  ;;  %v11502_v7 = vld [vmem:[#allocation3 + $0x10] ss:$36 sps:$4 sm:$0xff]   ;;  %v6084_v42 = vsel %vm11830_vm7, %v6079_v59, %v6083_v21  ;;  %6557 = vst [vmem:[#allocation3 + $0xcc] sm:$0xf] %v6457_v13  ;;  %8666 = vmatprep.mubr.bf16.mxu1 %v11504_v58 }
 0x338   : > { %v6656_v26 = vor.u32 %v6654_v29, %v6653_v39  ;;  %v6658_v43 = vrot.slane %v6653_v39, 4  ;;  %v6088_v40 = vor.u32 %v6087_v61, %v6083_v21  ;;  %6356 = vst [vmem:[#allocation3 + $0x80] sm:$0xf] %v6084_v42  ;;  %v6091_v11 = vshll.u32 %v6017_v44, 16  ;;  %v6388_v0 = vld [vmem:[#allocation2 + $0x20] sm:$0xf]  ;;  %8667 = vmatmul.mubr.bf16.vlgmr.msra.gmra.mxu1 %v11502_v7 }
 0x339   : > { %v6665_v22 = vor.u32 %v6663_v54, %v14147_v2  ;;  %v6095_v5 = vshrl.u32 %v6017_v44, 16  ;;  %v6101_v10 = vshll.u32 %v14140_v63, 16  ;;  %v14158_v46 = vld [vmem:[#allocation2 + $0x24] sm:$0xf]  ;;  %v6587_v12 = vld [vmem:[#allocation2 + $0x20] sm:$0xf] }
 0x33a   : > { %v6657_v36 = vsel %vm11842_vm8, %v6649_v8, %v6656_v26  ;;  %v6089_v60 = vrot.slane %v6088_v40, 4  ;;  %v11624_v35 = vld [vmem:[%s15316_s3 + $0x238] sm:$0xff]   ;;  %v6093_v18 = vrot.slane %v6091_v11, 5  ;;  %v6105_v41 = vshrl.u32 %v14140_v63, 16  ;;  %v6588_v15 = vld [vmem:[#allocation2 + $0x24] sm:$0xf] }
 0x33b   : > { %11045 = vmatpush3.bf16.msra.mxu1 %v11624_v35  ;;  %v6666_v16 = vsel %vm11842_vm8, %v6658_v43, %v6665_v22  ;;  %6897 = vst [vmem:[#allocation3 + $0xac] sm:$0xf] %v6657_v36  ;;  %v6097_v30 = vrot.slane %v6095_v5, 4  ;;  %v11509_v17 = vld [vmem:[#allocation3 + $0x64] ss:$36 sps:$4 sm:$0xff]   ;;  %v6458_v47 = vrot.slane %v6456_v20, 4 }
 0x33c   : > { %6898 = vst [vmem:[#allocation3 + $0xd0] sm:$0xf] %v6666_v16  ;;  %11046 = vmatprep.subr.bf16.mxu1 %v11520_v6  ;;  %v6459_v4 = vrot.slane %v6388_v0, 7  ;;  %v6019_v56 = vld [vmem:[#allocation2 + $0x20] sm:$0xf]  ;;  %v11533_v38 = vld [vmem:[%s15316_s3 + $0x228] sm:$0xff]   ;;  %v6094_v24 = vsel %vm11830_vm7, %v6089_v60, %v6093_v18  ;;  %8819 = vmatprep.mubr.bf16.mxu0 %v11509_v17 }
 0x33d   : > { %v11507_v9 = vld [vmem:[#allocation3 + $0x60] ss:$36 sps:$4 sm:$0xff]   ;;  %v6098_v55 = vor.u32 %v6097_v30, %v6093_v18  ;;  %v6103_v33 = vrot.slane %v6101_v10, 5  ;;  %v14171_v21 = vld [vmem:[#allocation2 + $0x24] sm:$0xf]  ;;  %v6462_v20 = vrot.slane %v14158_v46, 7 }
 0x33e   : > { %6357 = vst [vmem:[#allocation3 + $0xa4] sm:$0xf] %v6094_v24  ;;  %v6460_v3 = vsel %vm12266_vm11, %v6458_v47, %v6459_v4  ;;  %v6461_v34 = vrot.slane %v6459_v4, 4  ;;  %v6669_v50 = vshrl.u32 %v6587_v12, 16  ;;  %v5972_v62 = vld [vmem:[#allocation2 + $0x44] sm:$0xf]  ;;  %8820 = vmatmul.mubr.bf16.gmra.mxu0 %v11507_v9 }
 0x33f   : > { %v6099_v31 = vrot.slane %v6098_v55, 4  ;;  %11047 = vmatpush3.bf16.msra.mxu1 %v11520_v6  ;;  %6558 = vst [vmem:[#allocation3 + $0xf0] sm:$0xf] %v6460_v3  ;;  %v6667_v1 = vrot.slane %v14147_v2, 4  ;;  %v6678_v44 = vshrl.u32 %v6588_v15, 16  ;;  %v6107_v63 = vrot.slane %v6105_v41, 4 }
 0x340   : > { %v11546_v45 = vld [vmem:[%s15316_s3 + $0x220] sm:$0xff]   ;;  %v5973_v32 = vld [vmem:[#allocation2 + $0x48] sm:$0xf]  ;;  %6000 = vst [vmem:[#allocation3 + $0x250] sm:$0xf] %v5972_v62  ;;  %v6463_v8 = vsel %vm12266_vm11, %v6461_v34, %v6462_v20  ;;  %v6671_v49 = vrot.slane %v6669_v50, 7  ;;  %11048 = vmatprep.subr.bf16.mxu1 %v11533_v38 }
 0x341   : > { %v11513_v14 = vld [vmem:[#allocation3 + $0x5c] ss:$36 sps:$4 sm:$0xff]   ;;  %v6672_v25 = vshll.u32 %v6587_v12, 16  ;;  %v6681_v59 = vshll.u32 %v6588_v15, 16  ;;  %6001 = vst [vmem:[#allocation3 + $0x274] sm:$0xf] %v5973_v32  ;;  %v6104_v29 = vsel %vm11830_vm7, %v6099_v31, %v6103_v33  ;;  %v6108_v58 = vor.u32 %v6107_v63, %v6103_v33 }
 0x342   : > { %v11511_v39 = vld [vmem:[#allocation3 + $0x58] ss:$36 sps:$4 sm:$0xff]   ;;  %6559 = vst [vmem:[#allocation3 + $0x114] sm:$0xf] %v6463_v8  ;;  %v14184_v61 = vrot.slane %v6678_v44, 7  ;;  %v6111_v13 = vshll.u32 %v6019_v56, 16  ;;  %8674 = vmatprep.mubr.bf16.mxu1 %v11513_v14 }
 0x343   : > { %v6390_v2 = vld [vmem:[#allocation2 + $0x28] sm:$0xf]  ;;  %6358 = vst [vmem:[#allocation3 + $0xc8] sm:$0xf] %v6104_v29  ;;  %v6674_v54 = vor.u32 %v6672_v25, %v6671_v49  ;;  %v6676_v7 = vrot.slane %v6671_v49, 4  ;;  %v6115_v42 = vshrl.u32 %v6019_v56, 16  ;;  %8675 = vmatmul.mubr.bf16.gmra.mxu1 %v11511_v39 }
 0x344   : > { %v6121_v26 = vshll.u32 %v14171_v21, 16  ;;  %v14187_v43 = vld [vmem:[#allocation2 + $0x2c] sm:$0xf]  ;;  %v11516_v40 = vld [vmem:[#allocation3 + $0xac] ss:$36 sps:$4 sm:$0xff]   ;;  %v6683_v6 = vor.u32 %v6681_v59, %v14184_v61  ;;  %v6109_v5 = vrot.slane %v6108_v58, 4  ;;  %11049 = vmatpush3.bf16.msra.mxu1 %v11533_v38 }
 0x345   : > { %v6589_v22 = vld [vmem:[#allocation2 + $0x28] sm:$0xf]  ;;  %v6675_v11 = vsel %vm11842_vm8, %v6667_v1, %v6674_v54  ;;  %v6113_v10 = vrot.slane %v6111_v13, 5  ;;  %v6117_v0 = vrot.slane %v6115_v42, 4  ;;  %v6590_v36 = vld [vmem:[#allocation2 + $0x2c] sm:$0xf]  ;;  %8827 = vmatprep.mubr.bf16.mxu0 %v11516_v40  ;;  %11050 = vmatprep.subr.bf16.mxu1 %v11546_v45 }
 0x346   : > { %v11556_v60 = vld [vmem:[%s15316_s3 + $0x218] sm:$0xff]   ;;  %v11514_v46 = vld [vmem:[#allocation3 + $0xa8] ss:$36 sps:$4 sm:$0xff]   ;;  %v6684_v12 = vsel %vm11842_vm8, %v6676_v7, %v6683_v6  ;;  %6899 = vst [vmem:[#allocation3 + $0xf4] sm:$0xf] %v6675_v11  ;;  %v6125_v35 = vshrl.u32 %v14171_v21, 16 }
 0x347   : > { %v6464_v16 = vrot.slane %v6462_v20, 4  ;;  %v6465_v18 = vrot.slane %v6390_v2, 7  ;;  %6900 = vst [vmem:[#allocation3 + $0x118] sm:$0xf] %v6684_v12  ;;  %v6114_v30 = vsel %vm11830_vm7, %v6109_v5, %v6113_v10  ;;  %v6118_v41 = vor.u32 %v6117_v0, %v6113_v10  ;;  %v6021_v17 = vld [vmem:[#allocation2 + $0x28] sm:$0xf]  ;;  %8828 = vmatmul.mubr.bf16.gmra.mxu0 %v11514_v46 }
 0x348   : > { %v6123_v15 = vrot.slane %v6121_v26, 5  ;;  %v5974_v47 = vld [vmem:[#allocation2 + $0x4c] sm:$0xf]  ;;  %6359 = vst [vmem:[#allocation3 + $0xec] sm:$0xf] %v6114_v30  ;;  %v6468_v38 = vrot.slane %v14187_v43, 7  ;;  %11051 = vmatpush3.bf16.msra.mxu1 %v11546_v45 }
 0x349   : > { %v6466_v4 = vsel %vm12266_vm11, %v6464_v16, %v6465_v18  ;;  %v6467_v56 = vrot.slane %v6465_v18, 4  ;;  %v6687_v9 = vshrl.u32 %v6589_v22, 16  ;;  %v5975_v24 = vld [vmem:[#allocation2 + $0x50] sm:$0xf]  ;;  %6002 = vst [vmem:[#allocation3 + $0x298] sm:$0xf] %v5974_v47  ;;  %11052 = vmatprep.subr.bf16.mxu1 %v11556_v60 }
 0x34a   : > { %v6119_v55 = vrot.slane %v6118_v41, 4  ;;  %6560 = vst [vmem:[#allocation3 + $0x138] sm:$0xf] %v6466_v4  ;;  %v6685_v33 = vrot.slane %v14184_v61, 4  ;;  %v6696_v21 = vshrl.u32 %v6590_v36, 16  ;;  %v6127_v34 = vrot.slane %v6125_v35, 4 }
 0x34b   : > { %v6022_v3 = vld [vmem:[#allocation2 + $0x2c] sm:$0xf]  ;;  %6003 = vst [vmem:[#allocation3 + $0x2bc] sm:$0xf] %v5975_v24  ;;  %v11566_v20 = vld [vmem:[%s15316_s3 + $0x210] sm:$0xff]   ;;  %v6469_v62 = vsel %vm12266_vm11, %v6467_v56, %v6468_v38  ;;  %v6689_v31 = vrot.slane %v6687_v9, 7 }
 0x34c   : > { %v11519_v50 = vld [vmem:[#allocation3 + $0xa4] ss:$36 sps:$4 sm:$0xff]   ;;  %v6690_v1 = vshll.u32 %v6589_v22, 16  ;;  %v6699_v44 = vshll.u32 %v6590_v36, 16  ;;  %v6124_v32 = vsel %vm11830_vm7, %v6119_v55, %v6123_v15  ;;  %6561 = vst [vmem:[#allocation3 + $0x15c] sm:$0xf] %v6469_v62  ;;  %v6128_v45 = vor.u32 %v6127_v34, %v6123_v15  ;;  %11053 = vmatpush3.bf16.msra.mxu1 %v11556_v60 }
 0x34d   : > { %v11517_v63 = vld [vmem:[#allocation3 + $0xa0] ss:$36 sps:$4 sm:$0xff]   ;;  %v14211_v14 = vrot.slane %v6696_v21, 7  ;;  %v6131_v8 = vshll.u32 %v6021_v17, 16  ;;  %v6392_v49 = vld [vmem:[#allocation2 + $0x30] sm:$0xf]  ;;  %8682 = vmatprep.mubr.bf16.mxu1 %v11519_v50  ;;  %11054 = vmatprep.subr.bf16.mxu1 %v11566_v20 }
 0x34e   : > { %6360 = vst [vmem:[#allocation3 + $0x110] sm:$0xf] %v6124_v32  ;;  %v6692_v25 = vor.u32 %v6690_v1, %v6689_v31  ;;  %v6694_v59 = vrot.slane %v6689_v31, 4  ;;  %v6135_v39 = vshrl.u32 %v6021_v17, 16  ;;  %v6141_v29 = vshll.u32 %v6022_v3, 16  ;;  %8683 = vmatmul.mubr.bf16.gmra.mxu1 %v11517_v63  ;;  %v11579_v10 = vld [vmem:[%s15316_s3 + $0x208] sm:$0xff]  }
 0x34f   : > { %v14213_v61 = vld [vmem:[#allocation2 + $0x34] sm:$0xf]  ;;  %v6591_v58 = vld [vmem:[#allocation2 + $0x30] sm:$0xf]  ;;  %v6701_v13 = vor.u32 %v6699_v44, %v14211_v14  ;;  %v6129_v2 = vrot.slane %v6128_v45, 4  ;;  %v6133_v54 = vrot.slane %v6131_v8, 5 }
 0x350   : > { %v6592_v7 = vld [vmem:[#allocation2 + $0x34] sm:$0xf]  ;;  %v11523_v42 = vld [vmem:[#allocation3 + $0xf4] ss:$36 sps:$4 sm:$0xff]   ;;  %v6693_v26 = vsel %vm11842_vm8, %v6685_v33, %v6692_v25  ;;  %v6137_v43 = vrot.slane %v6135_v39, 4  ;;  %v6145_v40 = vshrl.u32 %v6022_v3, 16  ;;  %11055 = vmatpush3.bf16.msra.mxu1 %v11566_v20 }
 0x351   : > { %v11521_v6 = vld [vmem:[#allocation3 + $0xf0] ss:$36 sps:$4 sm:$0xff]   ;;  %v6702_v22 = vsel %vm11842_vm8, %v6694_v59, %v6701_v13  ;;  %6901 = vst [vmem:[#allocation3 + $0x13c] sm:$0xf] %v6693_v26  ;;  %v6134_v11 = vsel %vm11830_vm7, %v6129_v2, %v6133_v54  ;;  %v6470_v5 = vrot.slane %v6468_v38, 4  ;;  %8835 = vmatprep.mubr.bf16.mxu0 %v11523_v42  ;;  %v6143_v36 = vrot.slane %v6141_v29, 5  ;;  %11056 = vmatprep.subr.bf16.mxu1 %v11579_v10 }
 0x352   : > { %6902 = vst [vmem:[#allocation3 + $0x160] sm:$0xf] %v6702_v22  ;;  %v6138_v0 = vor.u32 %v6137_v43, %v6133_v54  ;;  %6361 = vst [vmem:[#allocation3 + $0x134] sm:$0xf] %v6134_v11  ;;  %v6471_v60 = vrot.slane %v6392_v49, 7  ;;  %8836 = vmatmul.mubr.bf16.gmra.mxu0 %v11521_v6  ;;  %v6474_v35 = vrot.slane %v14213_v61, 7 }
 0x353   : > { %v6023_v46 = vld [vmem:[#allocation2 + $0x30] sm:$0xf]  ;;  %v5976_v12 = vld [vmem:[#allocation2 + $0x54] sm:$0xf]  ;;  %v6703_v16 = vrot.slane %v14211_v14, 4  ;;  %v6705_v18 = vshrl.u32 %v6591_v58, 16 }
 0x354   : > { %v6714_v30 = vshrl.u32 %v6592_v7, 16  ;;  %v5977_v41 = vld [vmem:[#allocation2 + $0x58] sm:$0xf]  ;;  %6004 = vst [vmem:[#allocation3 + $0x2e0] sm:$0xf] %v5976_v12  ;;  %v6139_v15 = vrot.slane %v6138_v0, 4  ;;  %v6472_v17 = vsel %vm12266_vm11, %v6470_v5, %v6471_v60  ;;  %11057 = vmatpush3.bf16.msra.mxu1 %v11579_v10 }
 0x355   : > { %v6473_v47 = vrot.slane %v6471_v60, 4  ;;  %v6024_v4 = vld [vmem:[#allocation2 + $0x34] sm:$0xf]  ;;  %v6147_v56 = vrot.slane %v6145_v40, 4  ;;  %6005 = vst [vmem:[#allocation3 + $0x304] sm:$0xf] %v5977_v41 }
 0x356   : > { %v11526_v38 = vld [vmem:[#allocation3 + $0xec] ss:$36 sps:$4 sm:$0xff]   ;;  %6562 = vst [vmem:[#allocation3 + $0x180] sm:$0xf] %v6472_v17  ;;  %v6707_v9 = vrot.slane %v6705_v18, 7  ;;  %v6708_v24 = vshll.u32 %v6591_v58, 16  ;;  %v6144_v21 = vsel %vm11830_vm7, %v6139_v15, %v6143_v36 }
 0x357   : > { %v6717_v55 = vshll.u32 %v6592_v7, 16  ;;  %v11524_v33 = vld [vmem:[#allocation3 + $0xe8] ss:$36 sps:$4 sm:$0xff]   ;;  %v6475_v3 = vsel %vm12266_vm11, %v6473_v47, %v6474_v35  ;;  %v14233_v34 = vrot.slane %v6714_v30, 7  ;;  %v6148_v50 = vor.u32 %v6147_v56, %v6143_v36  ;;  %v6394_v62 = vld [vmem:[#allocation2 + $0x38] sm:$0xf]  ;;  %8690 = vmatprep.mubr.bf16.mxu1 %v11526_v38 }
 0x358   : > { %v11592_v20 = vld [vmem:[%s15316_s3 + $0x200] sm:$0xff]   ;;  %6362 = vst [vmem:[#allocation3 + $0x158] sm:$0xf] %v6144_v21  ;;  %6563 = vst [vmem:[#allocation3 + $0x1a4] sm:$0xf] %v6475_v3  ;;  %v6710_v31 = vor.u32 %v6708_v24, %v6707_v9  ;;  %v6712_v1 = vrot.slane %v6707_v9, 4  ;;  %8691 = vmatmul.mubr.bf16.gmra.mxu1 %v11524_v33 }
 0x359   : > { %v6151_v44 = vshll.u32 %v6023_v46, 16  ;;  %v6155_v63 = vshrl.u32 %v6023_v46, 16  ;;  %v6593_v32 = vld [vmem:[#allocation2 + $0x38] sm:$0xf]  ;;  %v6719_v14 = vor.u32 %v6717_v55, %v14233_v34  ;;  %v6149_v45 = vrot.slane %v6148_v50, 4  ;;  %11058 = vmatprep.subr.bf16.mxu1 %v11592_v20 }
 0x35a   : > { %v6161_v8 = vshll.u32 %v6024_v4, 16  ;;  %v6594_v49 = vld [vmem:[#allocation2 + $0x3c] sm:$0xf]  ;;  %v11529_v25 = vld [vmem:[#allocation3 + $0x13c] ss:$36 sps:$4 sm:$0xff]   ;;  %v6711_v59 = vsel %vm11842_vm8, %v6703_v16, %v6710_v31  ;;  %v6165_v29 = vshrl.u32 %v6024_v4, 16  ;;  %11059 = vmatpush3.bf16.msra.mxu1 %v11592_v20 }
 0x35b   : > { %v6153_v39 = vrot.slane %v6151_v44, 5  ;;  %v11527_v61 = vld [vmem:[#allocation3 + $0x138] ss:$36 sps:$4 sm:$0xff]   ;;  %v6720_v58 = vsel %vm11842_vm8, %v6712_v1, %v6719_v14  ;;  %6903 = vst [vmem:[#allocation3 + $0x184] sm:$0xf] %v6711_v59  ;;  %v6157_v13 = vrot.slane %v6155_v63, 4  ;;  %8843 = vmatprep.mubr.bf16.mxu0 %v11529_v25 }
 0x35c   : > { %v6395_v2 = vld [vmem:[#allocation2 + $0x3c] sm:$0xf]  ;;  %6904 = vst [vmem:[#allocation3 + $0x1a8] sm:$0xf] %v6720_v58  ;;  %v6163_v7 = vrot.slane %v6161_v8, 5  ;;  %v6476_v42 = vrot.slane %v6474_v35, 4  ;;  %8844 = vmatmul.mubr.bf16.gmra.mxu0 %v11527_v61 }
 0x35d   : > { %v6154_v54 = vsel %vm11830_vm7, %v6149_v45, %v6153_v39  ;;  %v6477_v26 = vrot.slane %v6394_v62, 7  ;;  %v5978_v43 = vld [vmem:[#allocation2 + $0x5c] sm:$0xf]  ;;  %v6158_v40 = vor.u32 %v6157_v13, %v6153_v39  ;;  %v6723_v6 = vshrl.u32 %v6593_v32, 16  ;;  %v6025_v11 = vld [vmem:[#allocation2 + $0x38] sm:$0xf] }
 0x35e   : > { %6363 = vst [vmem:[#allocation3 + $0x17c] sm:$0xf] %v6154_v54  ;;  %v6732_v22 = vshrl.u32 %v6594_v49, 16  ;;  %v5979_v5 = vld [vmem:[#allocation2 + $0x60] sm:$0xf]  ;;  %v6480_v36 = vrot.slane %v6395_v2, 7 }
 0x35f   : > { %6006 = vst [vmem:[#allocation3 + $0x328] sm:$0xf] %v5978_v43  ;;  %v6478_v10 = vsel %vm12266_vm11, %v6476_v42, %v6477_v26  ;;  %v6479_v0 = vrot.slane %v6477_v26, 4  ;;  %v14247_v60 = vld [vmem:[#allocation2 + $0x3c] sm:$0xf]  ;;  %v6167_v46 = vrot.slane %v6165_v29, 4 }
 0x360   : > { %6007 = vst [vmem:[#allocation3 + $0x34c] sm:$0xf] %v5979_v5  ;;  %v11532_v12 = vld [vmem:[#allocation3 + $0x134] ss:$36 sps:$4 sm:$0xff]   ;;  %v6159_v35 = vrot.slane %v6158_v40, 4  ;;  %v6726_v16 = vshll.u32 %v6593_v32, 16 }
 0x361   : > { %6564 = vst [vmem:[#allocation3 + $0x1c8] sm:$0xf] %v6478_v10  ;;  %v6735_v18 = vshll.u32 %v6594_v49, 16  ;;  %v11530_v30 = vld [vmem:[#allocation3 + $0x130] ss:$36 sps:$4 sm:$0xff]   ;;  %v6481_v41 = vsel %vm12266_vm11, %v6479_v0, %v6480_v36  ;;  %v6725_v15 = vrot.slane %v6723_v6, 7  ;;  %v6168_v47 = vor.u32 %v6167_v46, %v6163_v7  ;;  %8698 = vmatprep.mubr.bf16.mxu1 %v11532_v12 }
 0x362   : > { %v14251_v17 = vrot.slane %v6732_v22, 7  ;;  %v6396_v4 = vld [vmem:[#allocation2 + $0x40] sm:$0xf]  ;;  %v6164_v56 = vsel %vm11830_vm7, %v6159_v35, %v6163_v7  ;;  %6565 = vst [vmem:[#allocation3 + $0x1ec] sm:$0xf] %v6481_v41  ;;  %v6721_v38 = vrot.slane %v14233_v34, 4  ;;  %8699 = vmatmul.mubr.bf16.gmra.mxu1 %v11530_v30 }
 0x363   : > { %v6171_v9 = vshll.u32 %v6025_v11, 16  ;;  %v6175_v24 = vshrl.u32 %v6025_v11, 16  ;;  %v14256_v55 = vld [vmem:[#allocation2 + $0x44] sm:$0xf]  ;;  %6364 = vst [vmem:[#allocation3 + $0x1a0] sm:$0xf] %v6164_v56  ;;  %v6728_v33 = vor.u32 %v6726_v16, %v6725_v15 }
 0x364   : > { %v6730_v21 = vrot.slane %v6725_v15, 4  ;;  %v6737_v3 = vor.u32 %v6735_v18, %v14251_v17  ;;  %v6181_v50 = vshll.u32 %v14247_v60, 16  ;;  %v6595_v62 = vld [vmem:[#allocation2 + $0x40] sm:$0xf]  ;;  %v6169_v31 = vrot.slane %v6168_v47, 4 }
 0x365   : > { %v11536_v20 = vld [vmem:[#allocation3 + $0x184] ss:$36 sps:$4 sm:$0xff]   ;;  %v6173_v1 = vrot.slane %v6171_v9, 5  ;;  %v6729_v34 = vsel %vm11842_vm8, %v6721_v38, %v6728_v33  ;;  %v6177_v32 = vrot.slane %v6175_v24, 4  ;;  %v6596_v14 = vld [vmem:[#allocation2 + $0x44] sm:$0xf] }
 0x366   : > { %v11534_v44 = vld [vmem:[#allocation3 + $0x180] ss:$36 sps:$4 sm:$0xff]   ;;  %v6738_v63 = vsel %vm11842_vm8, %v6730_v21, %v6737_v3  ;;  %8851 = vmatprep.mubr.bf16.mxu0 %v11536_v20  ;;  %6905 = vst [vmem:[#allocation3 + $0x1cc] sm:$0xf] %v6729_v34  ;;  %v6185_v8 = vshrl.u32 %v14247_v60, 16  ;;  %v6482_v49 = vrot.slane %v6480_v36, 4  ;;  %v10694_v34 = vpop.f32.mrf.mxu0 }
 0x367   : > { %6906 = vst [vmem:[#allocation3 + $0x1f0] sm:$0xf] %v6738_v63  ;;  %v6174_v45 = vsel %vm11830_vm7, %v6169_v31, %v6173_v1  ;;  %v6483_v25 = vrot.slane %v6396_v4, 7  ;;  %8852 = vmatmul.mubr.bf16.gmra.mxu0 %v11534_v44  ;;  %v6178_v59 = vor.u32 %v6177_v32, %v6173_v1  ;;  %v6183_v39 = vrot.slane %v6181_v50, 5  ;;  %v6027_v58 = vld [vmem:[#allocation2 + $0x40] sm:$0xf] }
 0x368   : > { %6365 = vst [vmem:[#allocation3 + $0x1c4] sm:$0xf] %v6174_v45  ;;  %v6486_v29 = vrot.slane %v14256_v55, 7  ;;  %v6741_v61 = vshrl.u32 %v6595_v62, 16  ;;  %v5980_v13 = vld [vmem:[#allocation2 + $0x64] sm:$0xf] }
 0x369   : > { %v6484_v2 = vsel %vm12266_vm11, %v6482_v49, %v6483_v25  ;;  %v6485_v54 = vrot.slane %v6483_v25, 4  ;;  %v6739_v7 = vrot.slane %v14251_v17, 4  ;;  %v6750_v42 = vshrl.u32 %v6596_v14, 16  ;;  %v5981_v26 = vld [vmem:[#allocation2 + $0x68] sm:$0xf] }
 0x36a   : > { %6008 = vst [vmem:[#allocation3 + $0x370] sm:$0xf] %v5980_v13  ;;  %v6179_v43 = vrot.slane %v6178_v59, 4  ;;  %6566 = vst [vmem:[#allocation3 + $0x210] sm:$0xf] %v6484_v2  ;;  %v6743_v40 = vrot.slane %v6741_v61, 7 }
 0x36b   : > { %v6744_v6 = vshll.u32 %v6595_v62, 16  ;;  %v6028_v22 = vld [vmem:[#allocation2 + $0x44] sm:$0xf]  ;;  %v6187_v11 = vrot.slane %v6185_v8, 4  ;;  %6009 = vst [vmem:[#allocation3 + $0x394] sm:$0xf] %v5981_v26  ;;  %v6487_v10 = vsel %vm12266_vm11, %v6485_v54, %v6486_v29 }
 0x36c   : > { %v11539_v5 = vld [vmem:[#allocation3 + $0x17c] ss:$36 sps:$4 sm:$0xff]   ;;  %v14273_v0 = vrot.slane %v6750_v42, 7  ;;  %v6753_v36 = vshll.u32 %v6596_v14, 16  ;;  %v6398_v60 = vld [vmem:[#allocation2 + $0x48] sm:$0xf]  ;;  %v6184_v35 = vsel %vm11830_vm7, %v6179_v43, %v6183_v39 }
 0x36d   : > { %v14275_v46 = vld [vmem:[#allocation2 + $0x4c] sm:$0xf]  ;;  %v11537_v12 = vld [vmem:[#allocation3 + $0x178] ss:$36 sps:$4 sm:$0xff]   ;;  %6567 = vst [vmem:[#allocation3 + $0x234] sm:$0xf] %v6487_v10  ;;  %v6746_v16 = vor.u32 %v6744_v6, %v6743_v40  ;;  %v6188_v30 = vor.u32 %v6187_v11, %v6183_v39  ;;  %8706 = vmatprep.mubr.bf16.mxu1 %v11539_v5 }
 0x36e   : > { %v6748_v18 = vrot.slane %v6743_v40, 4  ;;  %v6597_v41 = vld [vmem:[#allocation2 + $0x48] sm:$0xf]  ;;  %6366 = vst [vmem:[#allocation3 + $0x1e8] sm:$0xf] %v6184_v35  ;;  %v6755_v15 = vor.u32 %v6753_v36, %v14273_v0  ;;  %v6191_v17 = vshll.u32 %v6027_v58, 16  ;;  %8707 = vmatmul.mubr.bf16.gmra.mxu1 %v11537_v12 }
 0x36f   : > { %v6195_v47 = vshrl.u32 %v6027_v58, 16  ;;  %v6201_v4 = vshll.u32 %v6028_v22, 16  ;;  %v6598_v56 = vld [vmem:[#allocation2 + $0x4c] sm:$0xf]  ;;  %v6747_v38 = vsel %vm11842_vm8, %v6739_v7, %v6746_v16  ;;  %v6189_v9 = vrot.slane %v6188_v30, 4 }
 0x370   : > { %v14282_v24 = vld [vmem:[#allocation2 + $0x48] sm:$0xf]  ;;  %v6756_v33 = vsel %vm11842_vm8, %v6748_v18, %v6755_v15  ;;  %6907 = vst [vmem:[#allocation3 + $0x214] sm:$0xf] %v6747_v38  ;;  %v6193_v21 = vrot.slane %v6191_v17, 5  ;;  %v6205_v50 = vshrl.u32 %v6028_v22, 16 }
 0x371   : > { %v11542_v55 = vld [vmem:[#allocation3 + $0x1cc] ss:$36 sps:$4 sm:$0xff]   ;;  %v6197_v3 = vrot.slane %v6195_v47, 4  ;;  %6908 = vst [vmem:[#allocation3 + $0x238] sm:$0xf] %v6756_v33  ;;  %v6203_v20 = vrot.slane %v6201_v4, 5 }
 0x372   : > { %v11540_v62 = vld [vmem:[#allocation3 + $0x1c8] ss:$36 sps:$4 sm:$0xff]   ;;  %v6488_v31 = vrot.slane %v6486_v29, 4  ;;  %v6489_v1 = vrot.slane %v6398_v60, 7  ;;  %v6492_v44 = vrot.slane %v14275_v46, 7  ;;  %8859 = vmatprep.mubr.bf16.mxu0 %v11542_v55  ;;  %v6194_v63 = vsel %vm11830_vm7, %v6189_v9, %v6193_v21  ;;  %v10695_v29 = vpop.f32.mrf.mxu0 }
 0x373   : > { %v6198_v32 = vor.u32 %v6197_v3, %v6193_v21  ;;  %v6757_v14 = vrot.slane %v14273_v0, 4  ;;  %v6759_v45 = vshrl.u32 %v6597_v41, 16  ;;  %v5982_v8 = vld [vmem:[#allocation2 + $0x6c] sm:$0xf]  ;;  %8860 = vmatmul.mubr.bf16.gmra.mxu0 %v11540_v62  ;;  %6367 = vst [vmem:[#allocation3 + $0x20c] sm:$0xf] %v6194_v63  ;;  %v14303_v11 = vadd.f32 %v10695_v29, %v10694_v34 }
 0x374   : > { %v6490_v49 = vsel %vm12266_vm11, %v6488_v31, %v6489_v1  ;;  %v6491_v25 = vrot.slane %v6489_v1, 4  ;;  %v6762_v59 = vshll.u32 %v6597_v41, 16  ;;  %v6768_v39 = vshrl.u32 %v6598_v56, 16  ;;  %v5983_v61 = vld [vmem:[#allocation2 + $0x70] sm:$0xf]  ;;  %v10697_v5 = vpop.f32.mrf.mxu0 }
 0x375   : > { %6010 = vst [vmem:[#allocation3 + $0x3b8] sm:$0xf] %v5982_v8  ;;  %v6199_v58 = vrot.slane %v6198_v32, 4  ;;  %6568 = vst [vmem:[#allocation3 + $0x258] sm:$0xf] %v6490_v49  ;;  %v6761_v13 = vrot.slane %v6759_v45, 7 }
 0x376   : > { %v14292_v2 = vld [vmem:[#allocation2 + $0x4c] sm:$0xf]  ;;  %v6207_v54 = vrot.slane %v6205_v50, 4  ;;  %v6211_v7 = vshll.u32 %v14282_v24, 16  ;;  %6011 = vst [vmem:[#allocation3 + $0x3dc] sm:$0xf] %v5983_v61  ;;  %v6493_v26 = vsel %vm12266_vm11, %v6491_v25, %v6492_v44  ;;  %v10698_v47 = vpop.f32.mrf.mxu0 }
 0x377   : > { %v11545_v42 = vld [vmem:[#allocation3 + $0x1c4] ss:$36 sps:$4 sm:$0xff]   ;;  %v14299_v43 = vrot.slane %v6768_v39, 7  ;;  %v6771_v40 = vshll.u32 %v6598_v56, 16  ;;  %v6400_v6 = vld [vmem:[#allocation2 + $0x50] sm:$0xf]  ;;  %v6204_v0 = vsel %vm11830_vm7, %v6199_v58, %v6203_v20  ;;  %v6764_v36 = vor.u32 %v6762_v59, %v6761_v13 }
 0x378   : > { %v14301_v22 = vld [vmem:[#allocation2 + $0x54] sm:$0xf]  ;;  %v11543_v10 = vld [vmem:[#allocation3 + $0x1c0] ss:$36 sps:$4 sm:$0xff]   ;;  %6569 = vst [vmem:[#allocation3 + $0x27c] sm:$0xf] %v6493_v26  ;;  %v6208_v12 = vor.u32 %v6207_v54, %v6203_v20  ;;  %8714 = vmatprep.mubr.bf16.mxu1 %v11545_v42  ;;  %v14318_v21 = vadd.f32 %v10698_v47, %v10697_v5 }
 0x379   : > { %v6766_v60 = vrot.slane %v6761_v13, 4  ;;  %v14307_v35 = vld [vmem:[#allocation2 + $0x50] sm:$0xf]  ;;  %v6921_v16 = vld [vmem:[#allocation2 + $0x8] sm:$0xf]  ;;  %v6773_v18 = vor.u32 %v6771_v40, %v14299_v43  ;;  %v6213_v30 = vrot.slane %v6211_v7, 5  ;;  %8715 = vmatmul.mubr.bf16.gmra.mxu1 %v11543_v10  ;;  %v6765_v9 = vsel %vm11842_vm8, %v6757_v14, %v6764_v36  ;;  %v10594_v10 = vpop.f32.mrf.mxu1 }
 0x37a   : > { %6368 = vst [vmem:[#allocation3 + $0x230] sm:$0xf] %v6204_v0  ;;  %v6215_v41 = vshrl.u32 %v14282_v24, 16  ;;  %v6221_v15 = vshll.u32 %v14292_v2, 16  ;;  %v14312_v17 = vld [vmem:[#allocation2 + $0x54] sm:$0xf] }
 0x37b   : > { %v6922_v4 = vld [vmem:[#allocation2 + $0xc] sm:$0xf]  ;;  %6949 = vst [vmem:[#allocation3 + $0x20] sm:$0xf] %v6921_v16  ;;  %v6209_v55 = vrot.slane %v6208_v12, 4  ;;  %v6774_v24 = vsel %vm11842_vm8, %v6766_v60, %v6773_v18  ;;  %v6225_v62 = vshrl.u32 %v14292_v2, 16 }
 0x37c   : > { %v11547_v56 = vld [vmem:[#allocation3 + $0x210] ss:$36 sps:$4 sm:$0xff]   ;;  %v14316_v33 = vld [vmem:[#allocation2 + $0x50] sm:$0xf]  ;;  %6950 = vst [vmem:[#allocation3 + $0x44] sm:$0xf] %v6922_v4 }
 0x37d   : > { %v11549_v38 = vld [vmem:[#allocation3 + $0x214] ss:$36 sps:$4 sm:$0xff]   ;;  %6909 = vst [vmem:[#allocation3 + $0x25c] sm:$0xf] %v6765_v9  ;;  %v6217_v3 = vrot.slane %v6215_v41, 4  ;;  %v6223_v50 = vrot.slane %v6221_v15, 5  ;;  %v6214_v31 = vsel %vm11830_vm7, %v6209_v55, %v6213_v30 }
 0x37e   : > { %v6923_v20 = vld [vmem:[#allocation2 + $0x10] sm:$0xf]  ;;  %8867 = vmatprep.mubr.bf16.mxu0 %v11549_v38  ;;  %6910 = vst [vmem:[#allocation3 + $0x280] sm:$0xf] %v6774_v24  ;;  %v6494_v1 = vrot.slane %v6492_v44, 4  ;;  %v6495_v34 = vrot.slane %v6400_v6, 7 }
 0x37f   : > { %v6498_v63 = vrot.slane %v14301_v22, 7  ;;  %v6924_v32 = vld [vmem:[#allocation2 + $0x14] sm:$0xf]  ;;  %6951 = vst [vmem:[#allocation3 + $0x68] sm:$0xf] %v6923_v20  ;;  %8868 = vmatmul.mubr.bf16.gmra.mxu0 %v11547_v56  ;;  %v6218_v14 = vor.u32 %v6217_v3, %v6213_v30  ;;  %v6775_v45 = vrot.slane %v14299_v43, 4  ;;  %v10700_v22 = vpop.f32.mrf.mxu0 }
 0x380   : > { %6369 = vst [vmem:[#allocation3 + $0x254] sm:$0xf] %v6214_v31  ;;  %v6777_v8 = vshrl.u32 %v14307_v35, 16  ;;  %v6780_v49 = vshll.u32 %v14307_v35, 16  ;;  %v14331_v25 = vld [vmem:[#allocation2 + $0x54] sm:$0xf]  ;;  %v6496_v46 = vsel %vm12266_vm11, %v6494_v1, %v6495_v34 }
 0x381   : > { %6952 = vst [vmem:[#allocation3 + $0x8c] sm:$0xf] %v6924_v32  ;;  %v6925_v59 = vld [vmem:[#allocation2 + $0x18] sm:$0xf]  ;;  %v6497_v44 = vrot.slane %v6495_v34, 4  ;;  %v6786_v39 = vshrl.u32 %v14312_v17, 16 }
 0x382   : > { %v6789_v29 = vshll.u32 %v14312_v17, 16  ;;  %v6926_v61 = vld [vmem:[#allocation2 + $0x1c] sm:$0xf]  ;;  %6953 = vst [vmem:[#allocation3 + $0xb0] sm:$0xf] %v6925_v59  ;;  %v6219_v58 = vrot.slane %v6218_v14, 4  ;;  %v10595_v17 = vpop.f32.mrf.mxu1 }
 0x383   : > { %6570 = vst [vmem:[#allocation3 + $0x2a0] sm:$0xf] %v6496_v46  ;;  %v6779_v13 = vrot.slane %v6777_v8, 7  ;;  %v6227_v2 = vrot.slane %v6225_v62, 4  ;;  %v6231_v54 = vshll.u32 %v14316_v33, 16  ;;  %v6499_v43 = vsel %vm12266_vm11, %v6497_v44, %v6498_v63 }
 0x384   : > { %6954 = vst [vmem:[#allocation3 + $0xd4] sm:$0xf] %v6926_v61  ;;  %v6927_v7 = vld [vmem:[#allocation2 + $0x20] sm:$0xf]  ;;  %v11552_v26 = vld [vmem:[#allocation3 + $0x20c] ss:$36 sps:$4 sm:$0xff]   ;;  %v6224_v0 = vsel %vm11830_vm7, %v6219_v58, %v6223_v50  ;;  %v10596_v55 = vadd.f32 %v10595_v17, %v10594_v10  ;;  %v10597_v62 = vpop.f32.mrf.mxu1 }
 0x385   : > { %v11550_v42 = vld [vmem:[#allocation3 + $0x208] ss:$36 sps:$4 sm:$0xff]   ;;  %v14342_v40 = vrot.slane %v6786_v39, 7  ;;  %v6402_v6 = vld [vmem:[#allocation2 + $0x58] sm:$0xf]  ;;  %v6782_v36 = vor.u32 %v6780_v49, %v6779_v13  ;;  %v6784_v60 = vrot.slane %v6779_v13, 4  ;;  %v6228_v12 = vor.u32 %v6227_v2, %v6223_v50  ;;  %8722 = vmatprep.mubr.bf16.mxu1 %v11552_v26  ;;  %v10701_v2 = vpop.f32.mrf.mxu0 }
 0x386   : > { %v14344_v5 = vld [vmem:[#allocation2 + $0x5c] sm:$0xf]  ;;  %6955 = vst [vmem:[#allocation3 + $0xf8] sm:$0xf] %v6927_v7  ;;  %6571 = vst [vmem:[#allocation3 + $0x2c4] sm:$0xf] %v6499_v43  ;;  %8723 = vmatmul.mubr.bf16.gmra.mxu1 %v11550_v42  ;;  %v10598_v59 = vpop.f32.mrf.mxu1 }
 0x387   : > { %v6601_v35 = vld [vmem:[#allocation2 + $0x58] sm:$0xf]  ;;  %6370 = vst [vmem:[#allocation3 + $0x278] sm:$0xf] %v6224_v0  ;;  %v6791_v16 = vor.u32 %v6789_v29, %v14342_v40  ;;  %v6233_v18 = vrot.slane %v6231_v54, 5  ;;  %v6235_v30 = vshrl.u32 %v14316_v33, 16  ;;  %v6783_v56 = vsel %vm11842_vm8, %v6775_v45, %v6782_v36 }
 0x388   : > { %v6241_v41 = vshll.u32 %v14331_v25, 16  ;;  %v6602_v15 = vld [vmem:[#allocation2 + $0x5c] sm:$0xf]  ;;  %v11553_v47 = vld [vmem:[#allocation3 + $0x258] ss:$36 sps:$4 sm:$0xff]   ;;  %v6229_v38 = vrot.slane %v6228_v12, 4 }
 0x389   : > { %v11555_v4 = vld [vmem:[#allocation3 + $0x25c] ss:$36 sps:$4 sm:$0xff]   ;;  %v6792_v24 = vsel %vm11842_vm8, %v6784_v60, %v6791_v16  ;;  %6911 = vst [vmem:[#allocation3 + $0x2a4] sm:$0xf] %v6783_v56  ;;  %v6237_v3 = vrot.slane %v6235_v30, 4  ;;  %v6245_v50 = vshrl.u32 %v14331_v25, 16  ;;  %v14389_v16 = vpop.f32.mrf.mxu1 }
 0x38a   : > { %v14353_v9 = vld [vmem:[#allocation2 + $0x58] sm:$0xf]  ;;  %v6243_v33 = vrot.slane %v6241_v41, 5  ;;  %8875 = vmatprep.mubr.bf16.mxu0 %v11555_v4  ;;  %6912 = vst [vmem:[#allocation3 + $0x2c8] sm:$0xf] %v6792_v24  ;;  %v6234_v20 = vsel %vm11830_vm7, %v6229_v38, %v6233_v18  ;;  %v6500_v31 = vrot.slane %v6498_v63, 4 }
 0x38b   : > { %v6501_v1 = vrot.slane %v6402_v6, 7  ;;  %v6504_v34 = vrot.slane %v14344_v5, 7  ;;  %8876 = vmatmul.mubr.bf16.gmra.mxu0 %v11553_v47  ;;  %v6238_v32 = vor.u32 %v6237_v3, %v6233_v18  ;;  %6371 = vst [vmem:[#allocation3 + $0x29c] sm:$0xf] %v6234_v20  ;;  %v6793_v14 = vrot.slane %v14342_v40, 4  ;;  %v14391_v18 = vpop.f32.mrf.mxu0 }
 0x38c   : > { %v6795_v45 = vshrl.u32 %v6601_v35, 16  ;;  %v6798_v8 = vshll.u32 %v6601_v35, 16  ;;  %v14364_v49 = vld [vmem:[#allocation2 + $0x5c] sm:$0xf]  ;;  %v14369_v25 = vld [vmem:[%s15317_s4] ss:$0 sm:$0xff]  ;;  %v10599_v6 = vadd.f32 %v10598_v59, %v10597_v62 }
 0x38d   : > { %v6502_v63 = vsel %vm12266_vm11, %v6500_v31, %v6501_v1  ;;  %v6503_v46 = vrot.slane %v6501_v1, 4  ;;  %v6804_v44 = vshrl.u32 %v6602_v15, 16  ;;  %v6807_v39 = vshll.u32 %v6602_v15, 16  ;;  %v6404_v26 = vld [vmem:[#allocation2 + $0x60] sm:$0xf]  ;;  %v10704_v62 = vpop.f32.mrf.mxu0 }
 0x38e   : > { %v6239_v29 = vrot.slane %v6238_v32, 4  ;;  %6572 = vst [vmem:[#allocation3 + $0x2e8] sm:$0xf] %v6502_v63  ;;  %v6797_v61 = vrot.slane %v6795_v45, 7  ;;  %v6247_v58 = vrot.slane %v6245_v50, 4  ;;  %v6251_v13 = vshll.u32 %v14353_v9, 16 }
 0x38f   : > { %v11559_v54 = vld [vmem:[#allocation3 + $0x254] ss:$36 sps:$4 sm:$0xff]   ;;  %v6505_v7 = vsel %vm12266_vm11, %v6503_v46, %v6504_v34  ;;  %v14378_v42 = vrot.slane %v6804_v44, 7  ;;  %v14380_v43 = vld [vmem:[#allocation2 + $0x64] sm:$0xf]  ;;  %v14383_v40 = vadd.f32 %v10596_v55, %v14369_v25  ;;  %v6255_v17 = vshrl.u32 %v14353_v9, 16  ;;  %v10601_v9 = vpop.f32.mrf.mxu1 }
 0x390   : > { %v11557_v10 = vld [vmem:[#allocation3 + $0x250] ss:$36 sps:$4 sm:$0xff]   ;;  %v6244_v0 = vsel %vm11830_vm7, %v6239_v29, %v6243_v33  ;;  %6573 = vst [vmem:[#allocation3 + $0x30c] sm:$0xf] %v6505_v7  ;;  %v6800_v36 = vor.u32 %v6798_v8, %v6797_v61  ;;  %v6802_v60 = vrot.slane %v6797_v61, 4  ;;  %v6248_v12 = vor.u32 %v6247_v58, %v6243_v33  ;;  %8730 = vmatprep.mubr.bf16.mxu1 %v11559_v54  ;;  %v14422_v58 = vpop.f32.mrf.mxu0 }
 0x391   : > { %v14387_v35 = vld [vmem:[#allocation2 + $0x60] sm:$0xf]  ;;  %v6928_v30 = vld [vmem:[#allocation2 + $0x24] sm:$0xf]  ;;  %6372 = vst [vmem:[#allocation3 + $0x2c0] sm:$0xf] %v6244_v0  ;;  %v6809_v41 = vor.u32 %v6807_v39, %v14378_v42  ;;  %8731 = vmatmul.mubr.bf16.gmra.mxu1 %v11557_v10  ;;  %v14403_v33 = vadd.f32 %v10599_v6, %v14369_v25  ;;  %v14405_v50 = vadd.f32 %v10701_v2, %v10700_v22  ;;  %v10603_v63 = vpop.f32.mrf.mxu1 }
 0x392   : > { %v6253_v15 = vrot.slane %v6251_v13, 5  ;;  %v6261_v47 = vshll.u32 %v14364_v49, 16  ;;  %v14396_v4 = vld [vmem:[#allocation2 + $0x64] sm:$0xf]  ;;  %6956 = vst [vmem:[#allocation3 + $0x11c] sm:$0xf] %v6928_v30  ;;  %v6801_v55 = vsel %vm11842_vm8, %v6793_v14, %v6800_v36  ;;  %v14429_v36 = vpop.f32.mrf.mxu0 }
 0x393   : > { %v11560_v56 = vld [vmem:[#allocation3 + $0x2a0] ss:$36 sps:$4 sm:$0xff]   ;;  %v6249_v24 = vrot.slane %v6248_v12, 4  ;;  %v14400_v3 = vld [vmem:[#allocation2 + $0x60] sm:$0xf]  ;;  %v6810_v20 = vsel %vm11842_vm8, %v6802_v60, %v6809_v41  ;;  %v6257_v31 = vrot.slane %v6255_v17, 4  ;;  %v10604_v7 = vpop.f32.mrf.mxu1  ;;  %v10602_v17 = vadd.f32 %v10601_v9, %v14389_v16 }
 0x394   : > { %v11562_v38 = vld [vmem:[#allocation3 + $0x2a4] ss:$36 sps:$4 sm:$0xff]   ;;  %6913 = vst [vmem:[#allocation3 + $0x2ec] sm:$0xf] %v6801_v55  ;;  %v14409_v1 = vrot.slane %v6261_v47, 5  ;;  %v6265_v32 = vshrl.u32 %v14364_v49, 16  ;;  %v14441_v47 = vadd.f32 %v10704_v62, %v14391_v18 }
 0x395   : > { %v6929_v14 = vld [vmem:[#allocation2 + $0x28] sm:$0xf]  ;;  %8883 = vmatprep.mubr.bf16.mxu0 %v11562_v38  ;;  %6914 = vst [vmem:[#allocation3 + $0x310] sm:$0xf] %v6810_v20  ;;  %v6254_v45 = vsel %vm11830_vm7, %v6249_v24, %v6253_v15  ;;  %v6506_v8 = vrot.slane %v6504_v34, 4  ;;  %v6507_v59 = vrot.slane %v6404_v26, 7  ;;  %v6258_v44 = vor.u32 %v6257_v31, %v6253_v15  ;;  %v14447_v31 = vpop.f32.mrf.mxu1 }
 0x396   : > { %v6510_v22 = vrot.slane %v14380_v43, 7  ;;  %v6930_v46 = vld [vmem:[#allocation2 + $0x2c] sm:$0xf]  ;;  %6957 = vst [vmem:[#allocation3 + $0x140] sm:$0xf] %v6929_v14  ;;  %8884 = vmatmul.mubr.bf16.gmra.mxu0 %v11560_v56  ;;  %v6811_v49 = vrot.slane %v14378_v42, 4  ;;  %v14452_v14 = vpop.f32.mrf.mxu0 }
 0x397   : > { %6373 = vst [vmem:[#allocation3 + $0x2e4] sm:$0xf] %v6254_v45  ;;  %v6813_v39 = vshrl.u32 %v14387_v35, 16  ;;  %v6816_v29 = vshll.u32 %v14387_v35, 16  ;;  %v14420_v61 = vld [vmem:[#allocation2 + $0x64] sm:$0xf]  ;;  %v6508_v34 = vsel %vm12266_vm11, %v6506_v8, %v6507_v59 }
 0x398   : > { %6958 = vst [vmem:[#allocation3 + $0x164] sm:$0xf] %v6930_v46  ;;  %v6931_v5 = vld [vmem:[#allocation2 + $0x30] sm:$0xf]  ;;  %v6509_v13 = vrot.slane %v6507_v59, 4  ;;  %v6822_v2 = vshrl.u32 %v14396_v4, 16 }
 0x399   : > { %v6825_v54 = vshll.u32 %v14396_v4, 16  ;;  %v6932_v42 = vld [vmem:[#allocation2 + $0x34] sm:$0xf]  ;;  %6959 = vst [vmem:[#allocation3 + $0x188] sm:$0xf] %v6931_v5  ;;  %v6259_v26 = vrot.slane %v6258_v44, 4 }
 0x39a   : > { %6574 = vst [vmem:[#allocation3 + $0x330] sm:$0xf] %v6508_v34  ;;  %v6815_v6 = vrot.slane %v6813_v39, 7  ;;  %v6267_v10 = vrot.slane %v6265_v32, 4  ;;  %v6271_v0 = vshll.u32 %v14400_v3, 16  ;;  %v6511_v35 = vsel %vm12266_vm11, %v6509_v13, %v6510_v22 }
 0x39b   : > { %6960 = vst [vmem:[#allocation3 + $0x1ac] sm:$0xf] %v6932_v42  ;;  %v6933_v60 = vld [vmem:[#allocation2 + $0x38] sm:$0xf]  ;;  %v14435_v30 = vrot.slane %v6822_v2, 7  ;;  %v6264_v56 = vsel %vm11830_vm7, %v6259_v26, %v14409_v1  ;;  %v6275_v9 = vshrl.u32 %v14400_v3, 16  ;;  %v14459_v39 = vadd.f32 %v10602_v17, %v14369_v25  ;;  %v10607_v2 = vpop.f32.mrf.mxu1 }
 0x39c   : > { %v11565_v12 = vld [vmem:[#allocation3 + $0x29c] ss:$36 sps:$4 sm:$0xff]   ;;  %v6406_v41 = vld [vmem:[#allocation2 + $0x68] sm:$0xf]  ;;  %v14437_v15 = vld [vmem:[#allocation2 + $0x6c] sm:$0xf]  ;;  %v6818_v38 = vor.u32 %v6816_v29, %v6815_v6  ;;  %v6268_v24 = vor.u32 %v6267_v10, %v14409_v1  ;;  %v10605_v29 = vadd.f32 %v10604_v7, %v10603_v63 }
 0x39d   : > { %6961 = vst [vmem:[#allocation3 + $0x1d0] sm:$0xf] %v6933_v60  ;;  %v11563_v4 = vld [vmem:[#allocation3 + $0x298] ss:$36 sps:$4 sm:$0xff]   ;;  %6575 = vst [vmem:[#allocation3 + $0x354] sm:$0xf] %v6511_v35  ;;  %8738 = vmatprep.mubr.bf16.mxu1 %v11565_v12  ;;  %v6827_v16 = vor.u32 %v6825_v54, %v14435_v30 }
 0x39e   : > { %v6820_v55 = vrot.slane %v6815_v6, 4  ;;  %v6605_v20 = vld [vmem:[#allocation2 + $0x68] sm:$0xf]  ;;  %6374 = vst [vmem:[#allocation3 + $0x308] sm:$0xf] %v6264_v56  ;;  %v6273_v18 = vrot.slane %v6271_v0, 5  ;;  %8739 = vmatmul.mubr.bf16.gmra.mxu1 %v11563_v4  ;;  %v6819_v1 = vsel %vm11842_vm8, %v6811_v49, %v6818_v38  ;;  %v10710_v0 = vpop.f32.mrf.mxu0  ;;  %v14475_v4 = vpop.f32.mrf.mxu1 }
 0x39f   : > { %v6281_v62 = vshll.u32 %v14420_v61, 16  ;;  %v6606_v32 = vld [vmem:[#allocation2 + $0x6c] sm:$0xf]  ;;  %v6934_v45 = vld [vmem:[#allocation2 + $0x3c] sm:$0xf]  ;;  %v6269_v46 = vrot.slane %v6268_v24, 4 }
 0x3a0   : > { %v11567_v8 = vld [vmem:[#allocation3 + $0x2e8] ss:$36 sps:$4 sm:$0xff]   ;;  %v14456_v44 = vld [vmem:[#allocation2 + $0x68] sm:$0xf]  ;;  %6962 = vst [vmem:[#allocation3 + $0x1f4] sm:$0xf] %v6934_v45  ;;  %v6828_v3 = vsel %vm11842_vm8, %v6820_v55, %v6827_v16  ;;  %v14482_v55 = vadd.f32 %v10605_v29, %v14369_v25  ;;  %v14488_v16 = vadd.f32 %v14429_v36, %v14422_v58 }
 0x3a1   : > { %v11569_v59 = vld [vmem:[#allocation3 + $0x2ec] ss:$36 sps:$4 sm:$0xff]   ;;  %6915 = vst [vmem:[#allocation3 + $0x334] sm:$0xf] %v6819_v1  ;;  %v6277_v5 = vrot.slane %v6275_v9, 4  ;;  %v6283_v34 = vrot.slane %v6281_v62, 5  ;;  %v6274_v49 = vsel %vm11830_vm7, %v6269_v46, %v6273_v18 }
 0x3a2   : > { %v6285_v13 = vshrl.u32 %v14420_v61, 16  ;;  %8891 = vmatprep.mubr.bf16.mxu0 %v11569_v59  ;;  %6916 = vst [vmem:[#allocation3 + $0x358] sm:$0xf] %v6828_v3  ;;  %v6512_v54 = vrot.slane %v6510_v22, 4  ;;  %v6513_v42 = vrot.slane %v6406_v41, 7  ;;  %v6516_v63 = vrot.slane %v14437_v15, 7  ;;  %v14494_v59 = vpop.f32.mrf.mxu0 }
 0x3a3   : > { %8892 = vmatmul.mubr.bf16.gmra.mxu0 %v11567_v8  ;;  %v6278_v7 = vor.u32 %v6277_v5, %v6273_v18  ;;  %6375 = vst [vmem:[#allocation3 + $0x32c] sm:$0xf] %v6274_v49  ;;  %v6829_v26 = vrot.slane %v14435_v30, 4  ;;  %v6831_v6 = vshrl.u32 %v6605_v20, 16  ;;  %v6834_v10 = vshll.u32 %v6605_v20, 16 }
 0x3a4   : > { %v14470_v61 = vld [vmem:[#allocation2 + $0x6c] sm:$0xf]  ;;  %v6514_v60 = vsel %vm12266_vm11, %v6512_v54, %v6513_v42  ;;  %v6515_v12 = vrot.slane %v6513_v42, 4  ;;  %v6840_v35 = vshrl.u32 %v6606_v32, 16  ;;  %v6843_v43 = vshll.u32 %v6606_v32, 16  ;;  %v10610_v42 = vpop.f32.mrf.mxu1 }
 0x3a5   : > { %v6279_v22 = vrot.slane %v6278_v7, 4  ;;  %6576 = vst [vmem:[#allocation3 + $0x378] sm:$0xf] %v6514_v60  ;;  %v6833_v41 = vrot.slane %v6831_v6, 7  ;;  %v6287_v15 = vrot.slane %v6285_v13, 4  ;;  %v6291_v17 = vshll.u32 %v14456_v44, 16  ;;  %v14509_v7 = vpop.f32.mrf.mxu0 }
 0x3a6   : > { %v11572_v30 = vld [vmem:[#allocation3 + $0x2e4] ss:$36 sps:$4 sm:$0xff]   ;;  %v6517_v56 = vsel %vm12266_vm11, %v6515_v12, %v6516_v63  ;;  %v14479_v38 = vrot.slane %v6840_v35, 7  ;;  %v6408_v24 = vld [vmem:[#allocation2 + $0x70] sm:$0xf]  ;;  %v6295_v58 = vshrl.u32 %v14456_v44, 16  ;;  %v10608_v49 = vadd.f32 %v10607_v2, %v14447_v31 }
 0x3a7   : > { %v14484_v20 = vld [vmem:[#allocation2 + $0x74] sm:$0x7]  ;;  %v11570_v18 = vld [vmem:[#allocation3 + $0x2e0] ss:$36 sps:$4 sm:$0xff]   ;;  %v6284_v9 = vsel %vm11830_vm7, %v6279_v22, %v6283_v34  ;;  %6577 = vst [vmem:[#allocation3 + $0x39c] sm:$0xf] %v6517_v56  ;;  %v6836_v62 = vor.u32 %v6834_v10, %v6833_v41  ;;  %v6288_v45 = vor.u32 %v6287_v15, %v6283_v34  ;;  %8746 = vmatprep.mubr.bf16.mxu1 %v11572_v30  ;;  %v14519_v12 = vpop.f32.mrf.mxu0 }
 0x3a8   : > { %v6838_v32 = vrot.slane %v6833_v41, 4  ;;  %v14492_v8 = vld [vmem:[#allocation2 + $0x70] sm:$0xf]  ;;  %6376 = vst [vmem:[#allocation3 + $0x350] sm:$0xf] %v6284_v9  ;;  %v6845_v1 = vor.u32 %v6843_v43, %v14479_v38  ;;  %v6293_v46 = vrot.slane %v6291_v17, 5  ;;  %8747 = vmatmul.mubr.bf16.gmra.mxu1 %v11570_v18  ;;  %v14507_v54 = vadd.f32 %v10710_v0, %v14452_v14 }
 0x3a9   : > { %v6301_v36 = vshll.u32 %v14470_v61, 16  ;;  %v14499_v29 = vld [vmem:[#allocation2 + $0x74] sm:$0xf]  ;;  %v11575_v3 = vld [vmem:[#allocation3 + $0x334] ss:$36 sps:$4 sm:$0xff]   ;;  %v6837_v5 = vsel %vm11842_vm8, %v6829_v26, %v6836_v62  ;;  %v6289_v34 = vrot.slane %v6288_v45, 4  ;;  %v10716_v18 = vpop.f32.mrf.mxu0 }
 0x3aa   : > { %v14503_v13 = vld [vmem:[#allocation2 + $0x70] sm:$0xf]  ;;  %v11573_v44 = vld [vmem:[#allocation3 + $0x330] ss:$36 sps:$4 sm:$0xff]   ;;  %v6846_v6 = vsel %vm11842_vm8, %v6838_v32, %v6845_v1  ;;  %6917 = vst [vmem:[#allocation3 + $0x37c] sm:$0xf] %v6837_v5  ;;  %8899 = vmatprep.mubr.bf16.mxu0 %v11575_v3  ;;  %v10611_v3 = vadd.f32 %v10610_v42, %v14475_v4 }
 0x3ab   : > { %v6297_v10 = vrot.slane %v6295_v58, 4  ;;  %v14513_v60 = vrot.slane %v6301_v36, 5  ;;  %v6305_v26 = vshrl.u32 %v14470_v61, 16  ;;  %6918 = vst [vmem:[#allocation3 + $0x3a0] sm:$0xf] %v6846_v6  ;;  %v6294_v31 = vsel %vm11830_vm7, %v6289_v34, %v6293_v46  ;;  %8900 = vmatmul.mubr.bf16.gmra.mxu0 %v11573_v44 }
 0x3ac   : > { %v6518_v14 = vrot.slane %v6516_v63, 4  ;;  %v6519_v2 = vrot.slane %v6408_v24, 7  ;;  %v6522_v0 = vrot.slane %v14484_v20, 7  ;;  %v6935_v35 = vld [vmem:[#allocation2 + $0x40] sm:$0xf]  ;;  %v6847_v22 = vrot.slane %v14479_v38, 4  ;;  %v10612_v20 = vpop.f32.mrf.mxu1 }
 0x3ad   : > { %v6298_v43 = vor.u32 %v6297_v10, %v6293_v46  ;;  %6377 = vst [vmem:[#allocation3 + $0x374] sm:$0xf] %v6294_v31  ;;  %v6849_v41 = vshrl.u32 %v14492_v8, 16  ;;  %v6852_v61 = vshll.u32 %v14492_v8, 16  ;;  %v6040_v15 = vld [vmem:[#allocation2 + $0x74] sm:$0x1] }
 0x3ae   : > { %v6936_v17 = vld [vmem:[#allocation2 + $0x44] sm:$0xf]  ;;  %6963 = vst [vmem:[#allocation3 + $0x218] sm:$0xf] %v6935_v35  ;;  %v6520_v63 = vsel %vm12266_vm11, %v6518_v14, %v6519_v2  ;;  %v6521_v30 = vrot.slane %v6519_v2, 4  ;;  %v6858_v56 = vshrl.u32 %v14499_v29, 16  ;;  %v10613_v5 = vpop.f32.mrf.mxu1 }
 0x3af   : > { %v6861_v24 = vshll.u32 %v14499_v29, 16  ;;  %6964 = vst [vmem:[#allocation3 + $0x23c] sm:$0xf] %v6936_v17  ;;  %v6937_v9 = vld [vmem:[#allocation2 + $0x48] sm:$0xf]  ;;  %v6299_v38 = vrot.slane %v6298_v43, 4  ;;  %v8395_v29 = vadd.f32 %v10608_v49, %v14369_v25  ;;  %v10714_v17 = vadd.f32 %v14509_v7, %v14494_v59 }
 0x3b0   : > { %6578 = vst [vmem:[#allocation3 + $0x3c0] sm:$0xf] %v6520_v63  ;;  %v6851_v62 = vrot.slane %v6849_v41, 7  ;;  %v6307_v32 = vrot.slane %v6305_v26, 4  ;;  %v6311_v45 = vshll.u32 %v14503_v13, 16  ;;  %v6523_v58 = vsel %vm12266_vm11, %v6521_v30, %v6522_v0  ;;  %v10718_v26 = vpop.f32.mrf.mxu0  ;;  %v10615_v2 = vpop.f32.mrf.mxu1 }
 0x3b1   : > { %v6938_v8 = vld [vmem:[#allocation2 + $0x4c] sm:$0xf]  ;;  %6965 = vst [vmem:[#allocation3 + $0x260] sm:$0xf] %v6937_v9  ;;  %v11576_v1 = vld [vmem:[#allocation3 + $0x328] ss:$36 sps:$4 sm:$0xff]   ;;  %v6304_v34 = vsel %vm11830_vm7, %v6299_v38, %v14513_v60  ;;  %v10717_v9 = vadd.f32 %v10716_v18, %v14519_v12  ;;  %v14555_v12 = vadd.f32 %v14318_v21, %v14403_v33 }
 0x3b2   : > { %v11578_v46 = vld [vmem:[#allocation3 + $0x32c] ss:$36 sps:$4 sm:$0xff]   ;;  %v6860_v36 = vrot.slane %v6858_v56, 7  ;;  %6966 = vst [vmem:[#allocation3 + $0x284] sm:$0xf] %v6938_v8  ;;  %v6854_v44 = vor.u32 %v6852_v61, %v6851_v62  ;;  %v6856_v6 = vrot.slane %v6851_v62, 4  ;;  %v6308_v10 = vor.u32 %v6307_v32, %v14513_v60  ;;  %v10719_v63 = vpop.f32.mrf.mxu0 }
 0x3b3   : > { %6579 = vst [vmem:[#allocation3 + $0x3e4] sm:$0xf] %v6523_v58  ;;  %v6939_v31 = vld [vmem:[#allocation2 + $0x50] sm:$0xf]  ;;  %v6940_v19 = vld [vmem:[#allocation2 + $0x54] sm:$0xf]  ;;  %8754 = vmatprep.mubr.bf16.mxu1 %v11578_v46  ;;  %v8398_v61 = vadd.f32 %v10611_v3, %v14369_v25  ;;  %v10614_v56 = vadd.f32 %v10613_v5, %v10612_v20  ;;  %v10720_v62 = vadd.f32 %v10719_v63, %v10718_v26 }
 0x3b4   : > { %6378 = vst [vmem:[#allocation3 + $0x398] sm:$0xf] %v6304_v34  ;;  %v6863_v14 = vor.u32 %v6861_v24, %v6860_v36  ;;  %v6313_v49 = vrot.slane %v6311_v45, 5  ;;  %v6315_v4 = vshrl.u32 %v14503_v13, 16  ;;  %v6321_v42 = vshll.u32 %v6040_v15, 16  ;;  %8755 = vmatmul.mubr.bf16.gmra.mxu1 %v11576_v1  ;;  %v10616_v24 = vpop.f32.mrf.mxu1  ;;  %v10721_v59 = vpop.f32.mrf.mxu0 }
 0x3b5   : > { %6967 = vst [vmem:[#allocation3 + $0x2a8] sm:$0xf] %v6939_v31  ;;  %6968 = vst [vmem:[#allocation3 + $0x2cc] sm:$0xf] %v6940_v19  ;;  %v6941_v0 = vld [vmem:[#allocation2 + $0x58] sm:$0xf]  ;;  %v6855_v60 = vsel %vm11842_vm8, %v6847_v22, %v6854_v44  ;;  %v10617_v38 = vadd.f32 %v10616_v24, %v10615_v2  ;;  %v8403_v27 = vadd.f32 %v10614_v56, %v14369_v25 }
 0x3b6   : > { %v11580_v35 = vld [vmem:[#allocation3 + $0x378] ss:$36 sps:$4 sm:$0xff]   ;;  %v6309_v41 = vrot.slane %v6308_v10, 4  ;;  %6969 = vst [vmem:[#allocation3 + $0x2f0] sm:$0xf] %v6941_v0  ;;  %v6864_v13 = vsel %vm11842_vm8, %v6856_v6, %v6863_v14  ;;  %v6317_v15 = vrot.slane %v6315_v4, 4  ;;  %v10618_v45 = vpop.f32.mrf.mxu1  ;;  %v14551_v1 = vadd.f32 %v14303_v11, %v14383_v40  ;;  %v10722_v46 = vpop.f32.mrf.mxu0 }
 0x3b7   : > { %v11582_v43 = vld [vmem:[#allocation3 + $0x37c] ss:$36 sps:$4 sm:$0xff]   ;;  %6919 = vst [vmem:[#allocation3 + $0x3c4] sm:$0xf] %v6855_v60  ;;  %v6323_v30 = vrot.slane %v6321_v42, 5  ;;  %v8406_v18 = vadd.f32 %v10617_v38, %v14369_v25  ;;  %v14560_v36 = vadd.f32 %v14405_v50, %v14459_v39  ;;  %v14564_v3 = vadd.f32 %v14441_v47, %v14482_v55 }
 0x3b8   : > { %8907 = vmatprep.mubr.bf16.mxu0 %v11582_v43  ;;  %6920 = vst [vmem:[#allocation3 + $0x3e8] sm:$0xf] %v6864_v13  ;;  %v6314_v22 = vsel %vm11830_vm7, %v6309_v41, %v6313_v49  ;;  %v6942_v7 = vld [vmem:[#allocation2 + $0x5c] sm:$0xf]  ;;  %v6318_v32 = vor.u32 %v6317_v15, %v6313_v49  ;;  %v6943_v20 = vld [vmem:[#allocation2 + $0x60] sm:$0xf]  ;;  %v14567_v11 = vadd.f32 %v14488_v16, %v8395_v29  ;;  %v10619_v21 = vpop.f32.mrf.mxu1  ;;  %v10724_v10 = vpop.f32.mrf.mxu0 }
 0x3b9   : > { %8908 = vmatmul.mubr.bf16.gmra.mxu0 %v11580_v35  ;;  %6379 = vst [vmem:[#allocation3 + $0x3bc] sm:$0xf] %v6314_v22  ;;  %6970 = vst [vmem:[#allocation3 + $0x314] sm:$0xf] %v6942_v7  ;;  %v6944_v8 = vld [vmem:[#allocation2 + $0x64] sm:$0xf]  ;;  %v10723_v33 = vadd.f32 %v10722_v46, %v10721_v59  ;;  %v14570_v44 = vadd.f32 %v14507_v54, %v8398_v61  ;;  %v14572_v6 = vadd.f32 %v10714_v17, %v8403_v27 }
 0x3ba   : > { %6971 = vst [vmem:[#allocation3 + $0x338] sm:$0xf] %v6943_v20  ;;  %6972 = vst [vmem:[#allocation3 + $0x35c] sm:$0xf] %v6944_v8  ;;  %v6945_v58 = vld [vmem:[#allocation2 + $0x68] sm:$0xf]  ;;  %v10620_v39 = vadd.f32 %v10619_v21, %v10618_v45  ;;  %v14574_v47 = vadd.f32 %v10717_v9, %v8406_v18  ;;  %v10621_v29 = vpop.f32.mrf.mxu1  ;;  %v10725_v19 = vpop.f32.mrf.mxu0 }
 0x3bb   : > { %v6319_v40 = vrot.slane %v6318_v32, 4  ;;  %v6946_v5 = vld [vmem:[#allocation2 + $0x6c] sm:$0xf]  ;;  %6973 = vst [vmem:[#allocation3 + $0x380] sm:$0xf] %v6945_v58  ;;  %v10726_v4 = vadd.f32 %v10725_v19, %v10724_v10 }
 0x3bc   : > { %v6947_v34 = vld [vmem:[#allocation2 + $0x70] sm:$0xf]  ;;  %6974 = vst [vmem:[#allocation3 + $0x3a4] sm:$0xf] %v6946_v5  ;;  %v11583_v55 = vld [vmem:[#allocation3 + $0x370] ss:$36 sps:$4 sm:$0xff]   ;;  %v8411_v26 = vadd.f32 %v10620_v39, %v14369_v25  ;;  %v10622_v31 = vpop.f32.mrf.mxu1  ;;  %v10727_v2 = vpop.f32.mrf.mxu0 }
 0x3bd   : > { %v11585_v50 = vld [vmem:[#allocation3 + $0x374] ss:$36 sps:$4 sm:$0xff]   ;;  %6975 = vst [vmem:[#allocation3 + $0x3c8] sm:$0xf] %v6947_v34  ;;  %v6324_v16 = vsel %vm11830_vm7, %v6319_v40, %v6323_v30  ;;  %v11586_v14 = vld [vmem:[#allocation3 + $0x3c0] ss:$36 sps:$4 sm:$0xff]   ;;  %v10623_v49 = vadd.f32 %v10622_v31, %v10621_v29 }
 0x3be   : > { %8762 = vmatprep.mubr.bf16.mxu1 %v11585_v50  ;;  %6380 = vst [vmem:[#allocation3 + $0x3e0] sm:$0xf] %v6324_v16  ;;  %v14579_v42 = vadd.f32 %v10720_v62, %v8411_v26  ;;  %v10624_v0 = vpop.f32.mrf.mxu1  ;;  %v10728_v35 = vpop.f32.mrf.mxu0  ;;  %v11589_v17 = vld [vmem:[#allocation3 + $0x3b8] ss:$36 sps:$4 sm:$0xff]   ;;  %v11593_v15 = vld [vmem:[#allocation3 + $0x20] ss:$36 sps:$4 sm:$0xff]  }
 0x3bf   : > { %v11588_v54 = vld [vmem:[#allocation3 + $0x3c4] ss:$36 sps:$4 sm:$0xff]   ;;  %8763 = vmatmul.mubr.bf16.gmra.mxu1 %v11583_v55  ;;  %v8414_v28 = vadd.f32 %v10623_v49, %v14369_v25  ;;  %v10729_v43 = vadd.f32 %v10728_v35, %v10727_v2  ;;  %v11595_v40 = vld [vmem:[#allocation3 + $0xb0] ss:$36 sps:$4 sm:$0xff]   ;;  %v11596_v31 = vld [vmem:[#allocation3 + $0xf8] ss:$36 sps:$4 sm:$0xff]  }
 0x3c0   : > { %8915 = vmatprep.mubr.bf16.mxu0 %v11588_v54  ;;  %v10625_v61 = vpop.f32.mrf.mxu1  ;;  %v10730_v13 = vpop.f32.mrf.mxu0  ;;  %v11594_v8 = vld [vmem:[#allocation3 + $0x68] ss:$36 sps:$4 sm:$0xff]   ;;  %v11597_v49 = vld [vmem:[#allocation3 + $0x140] ss:$36 sps:$4 sm:$0xff]  }
 0x3c1   : > { %8916 = vmatmul.mubr.bf16.gmra.mxu0 %v11586_v14  ;;  %v14582_v60 = vadd.f32 %v10723_v33, %v8414_v28  ;;  %v10626_v63 = vadd.f32 %v10625_v61, %v10624_v0 }
 0x3c2   : > { %v10627_v30 = vpop.f32.mrf.mxu1  ;;  %v10731_v24 = vpop.f32.mrf.mxu0 }
 0x3c3   : > { %v8419_v56 = vadd.f32 %v10626_v63, %v14369_v25  ;;  %v10732_v9 = vadd.f32 %v10731_v24, %v10730_v13  ;;  %v11599_v24 = vld [vmem:[#allocation3 + $0x1d0] ss:$36 sps:$4 sm:$0xff]  }
 0x3c4   : > { %v10628_v22 = vpop.f32.mrf.mxu1  ;;  %v10733_v62 = vpop.f32.mrf.mxu0 }
 0x3c5   : > { %v11591_v41 = vld [vmem:[#allocation3 + $0x3bc] ss:$36 sps:$4 sm:$0xff]   ;;  %v10629_v38 = vadd.f32 %v10628_v22, %v10627_v30  ;;  %v14585_v59 = vadd.f32 %v10726_v4, %v8419_v56  ;;  %v11598_v30 = vld [vmem:[#allocation3 + $0x188] ss:$36 sps:$4 sm:$0xff]  }
 0x3c6   : > { %8770 = vmatprep.mubr.bf16.mxu1 %v11591_v41  ;;  %v10630_v7 = vpop.f32.mrf.mxu1  ;;  %v10734_v27 = vpop.f32.mrf.mxu0 }
 0x3c7   : > { %8771 = vmatmul.mubr.bf16.gmra.mxu1 %v11589_v17  ;;  %v8422_v32 = vadd.f32 %v10629_v38, %v14369_v25  ;;  %v10735_v20 = vadd.f32 %v10734_v27, %v10733_v62 }
 0x3c8   : > { %11060 = vmatprep.mubr.bf16.mxu1 %v11593_v15  ;;  %v10631_v45 = vpop.f32.mrf.mxu1  ;;  %v10736_v46 = vpop.f32.mrf.mxu0 }
 0x3c9   : > { %v10632_v18 = vadd.f32 %v10631_v45, %v10630_v7  ;;  %v14588_v58 = vadd.f32 %v10729_v43, %v8422_v32 }
 0x3ca   : > { %v10633_v21 = vpop.f32.mrf.mxu1  ;;  %v10737_v5 = vpop.f32.mrf.mxu0 }
 0x3cb   : > { %v8427_v33 = vadd.f32 %v10632_v18, %v14369_v25  ;;  %v10738_v50 = vadd.f32 %v10737_v5, %v10736_v46 }
 0x3cc   : > { %v10634_v34 = vpop.f32.mrf.mxu1  ;;  %v10739_v55 = vpop.f32.mrf.mxu0 }
 0x3cd   : > { %v10635_v39 = vadd.f32 %v10634_v34, %v10633_v21  ;;  %v14591_v16 = vadd.f32 %v10732_v9, %v8427_v33  ;;  %v11600_v21 = vld [vmem:[#allocation3 + $0x218] ss:$36 sps:$4 sm:$0xff]   ;;  %v11601_v34 = vld [vmem:[#allocation3 + $0x260] ss:$36 sps:$4 sm:$0xff]  }
 0x3ce   : > { %v10636_v10 = vpop.f32.mrf.mxu1  ;;  %v10740_v26 = vpop.f32.mrf.mxu0 }
 0x3cf   : > { %11061 = vmatmul.mubr.bf16.vlgmr.msra.gmra.mxu1 %v11594_v8  ;;  %v8430_v29 = vadd.f32 %v10635_v39, %v14369_v25  ;;  %v10741_v54 = vadd.f32 %v10740_v26, %v10739_v55 }
 0x3d0   : > { %11064 = vmatprep.mubr.bf16.mxu1 %v11595_v40  ;;  %v10637_v19 = vpop.f32.mrf.mxu1  ;;  %v10742_v28 = vpop.f32.mrf.mxu0 }
 0x3d1   : > { %v14594_v14 = vadd.f32 %v10735_v20, %v8430_v29  ;;  %v10638_v4 = vadd.f32 %v10637_v19, %v10636_v10 }
 0x3d2   : > { %v10639_v2 = vpop.f32.mrf.mxu1  ;;  %v10743_v43 = vpop.f32.mrf.mxu0 }
 0x3d3   : > { %v8435_v0 = vadd.f32 %v10638_v4, %v14369_v25  ;;  %v10744_v61 = vadd.f32 %v10743_v43, %v10742_v28  ;;  %v11603_v43 = vld [vmem:[#allocation3 + $0x2f0] ss:$36 sps:$4 sm:$0xff]  }
 0x3d4   : > { %v10640_v35 = vpop.f32.mrf.mxu1  ;;  %v10745_v63 = vpop.f32.mrf.mxu0 }
 0x3d5   : > { %v10641_v41 = vadd.f32 %v10640_v35, %v10639_v2  ;;  %v14597_v17 = vadd.f32 %v10738_v50, %v8435_v0  ;;  %v11602_v35 = vld [vmem:[#allocation3 + $0x2a8] ss:$36 sps:$4 sm:$0xff]  }
 0x3d6   : > { %v10642_v15 = vpop.f32.mrf.mxu1  ;;  %v10746_v56 = vpop.f32.mrf.mxu0 }
 0x3d7   : > { %11065 = vmatmul.mubr.bf16.gmra.mxu1 %v11596_v31  ;;  %v8438_v13 = vadd.f32 %v10641_v41, %v14369_v25  ;;  %v10747_v9 = vadd.f32 %v10746_v56, %v10745_v63 }
 0x3d8   : > { %11068 = vmatprep.mubr.bf16.mxu1 %v11597_v49  ;;  %v10643_v22 = vpop.f32.mrf.mxu1  ;;  %v10748_v32 = vpop.f32.mrf.mxu0 }
 0x3d9   : > { %v14600_v38 = vadd.f32 %v10741_v54, %v8438_v13  ;;  %v10644_v62 = vadd.f32 %v10643_v22, %v10642_v15 }
 0x3da   : > { %v10645_v7 = vpop.f32.mrf.mxu1  ;;  %v10749_v20 = vpop.f32.mrf.mxu0 }
 0x3db   : > { %v8443_v27 = vadd.f32 %v10644_v62, %v14369_v25  ;;  %v10750_v18 = vadd.f32 %v10749_v20, %v10748_v32 }
 0x3dc   : > { %v10646_v45 = vpop.f32.mrf.mxu1  ;;  %v10751_v40 = vpop.f32.mrf.mxu0 }
 0x3dd   : > { %v10647_v8 = vadd.f32 %v10646_v45, %v10645_v7  ;;  %v14603_v46 = vadd.f32 %v10744_v61, %v8443_v27  ;;  %v11604_v7 = vld [vmem:[#allocation3 + $0x338] ss:$36 sps:$4 sm:$0xff]   ;;  %v11605_v45 = vld [vmem:[#allocation3 + $0x380] ss:$36 sps:$4 sm:$0xff]  }
 0x3de   : > { %v10648_v5 = vpop.f32.mrf.mxu1  ;;  %v10752_v50 = vpop.f32.mrf.mxu0 }
 0x3df   : > { %11069 = vmatmul.mubr.bf16.gmra.mxu1 %v11598_v30  ;;  %v8446_v33 = vadd.f32 %v10647_v8, %v14369_v25  ;;  %v10753_v55 = vadd.f32 %v10752_v50, %v10751_v40 }
 0x3e0   : > { %11072 = vmatprep.mubr.bf16.mxu1 %v11599_v24  ;;  %v10649_v39 = vpop.f32.mrf.mxu1  ;;  %v10754_v26 = vpop.f32.mrf.mxu0 }
 0x3e1   : > { %v14606_v29 = vadd.f32 %v10747_v9, %v8446_v33  ;;  %v10650_v10 = vadd.f32 %v10649_v39, %v10648_v5 }
 0x3e2   : > { %v10651_v54 = vpop.f32.mrf.mxu1  ;;  %v10755_v19 = vpop.f32.mrf.mxu0 }
 0x3e3   : > { %v8451_v31 = vadd.f32 %v10650_v10, %v14369_v25  ;;  %v10756_v4 = vadd.f32 %v10755_v19, %v10754_v26 }
 0x3e4   : > { %v10652_v49 = vpop.f32.mrf.mxu1  ;;  %v10757_v28 = vpop.f32.mrf.mxu0 }
 0x3e5   : > { %v10653_v2 = vadd.f32 %v10652_v49, %v10651_v54  ;;  %v14609_v0 = vadd.f32 %v10750_v18, %v8451_v31  ;;  %v11606_v31 = vld [vmem:[#allocation3 + $0x3c8] ss:$36 sps:$4 sm:$0xff]  }
 0x3e6   : > { %v10758_v61 = vpop.f32.mrf.mxu0  ;;  %v10654_v63 = vpop.f32.mrf.mxu1 }
 0x3e7   : > { %11073 = vmatmul.mubr.bf16.gmra.mxu1 %v11600_v21  ;;  %v8454_v41 = vadd.f32 %v10653_v2, %v14369_v25  ;;  %v10759_v13 = vadd.f32 %v10758_v61, %v10757_v28 }
 0x3e8   : > { %11076 = vmatprep.mubr.bf16.mxu1 %v11601_v34  ;;  %v10655_v30 = vpop.f32.mrf.mxu1  ;;  %v10760_v24 = vpop.f32.mrf.mxu0 }
 0x3e9   : > { %v14612_v15 = vadd.f32 %v10753_v55, %v8454_v41  ;;  %v10656_v56 = vadd.f32 %v10655_v30, %v10654_v63 }
 0x3ea   : > { %v10657_v22 = vpop.f32.mrf.mxu1  ;;  %v10761_v62 = vpop.f32.mrf.mxu0 }
 0x3eb   : > { %v8459_v9 = vadd.f32 %v10656_v56, %v14369_v25  ;;  %v10762_v27 = vadd.f32 %v10761_v62, %v10760_v24  ;;  %v11625_v24 = vld [vmem:[%s15317_s4] ss:$0 sm:$0xff] }
 0x3ec   : > { %v10658_v32 = vpop.f32.mrf.mxu1  ;;  %v10763_v8 = vpop.f32.mrf.mxu0 }
 0x3ed   : > { %v10659_v20 = vadd.f32 %v10658_v32, %v10657_v22  ;;  %v14615_v18 = vadd.f32 %v10756_v4, %v8459_v9 }
 0x3ee   : > { %v10660_v40 = vpop.f32.mrf.mxu1  ;;  %v10764_v33 = vpop.f32.mrf.mxu0 }
 0x3ef   : > { %11077 = vmatmul.mubr.bf16.gmra.mxu1 %v11602_v35  ;;  %v8462_v21 = vadd.f32 %v10659_v20, %v14369_v25  ;;  %v10765_v34 = vadd.f32 %v10764_v33, %v10763_v8 }
 0x3f0   : > { %11080 = vmatprep.mubr.bf16.mxu1 %v11603_v43  ;;  %v10661_v5 = vpop.f32.mrf.mxu1  ;;  %v10766_v39 = vpop.f32.mrf.mxu0 }
 0x3f1   : > { %v10662_v50 = vadd.f32 %v10661_v5, %v10660_v40  ;;  %v14618_v55 = vadd.f32 %v10759_v13, %v8462_v21 }
 0x3f2   : > { %v10663_v10 = vpop.f32.mrf.mxu1  ;;  %v10767_v54 = vpop.f32.mrf.mxu0 }
 0x3f3   : > { %v8467_v26 = vadd.f32 %v10662_v50, %v14369_v25  ;;  %v10768_v49 = vadd.f32 %v10767_v54, %v10766_v39 }
 0x3f4   : > { %v10664_v19 = vpop.f32.mrf.mxu1  ;;  %v10769_v2 = vpop.f32.mrf.mxu0 }
 0x3f5   : > { %v10665_v4 = vadd.f32 %v10664_v19, %v10663_v10  ;;  %v14621_v28 = vadd.f32 %v10762_v27, %v8467_v26 }
 0x3f6   : > { %v10666_v35 = vpop.f32.mrf.mxu1  ;;  %v10770_v41 = vpop.f32.mrf.mxu0 }
 0x3f7   : > { %11081 = vmatmul.mubr.bf16.gmra.mxu1 %v11604_v7  ;;  %v8470_v43 = vadd.f32 %v10665_v4, %v14369_v25  ;;  %v10771_v63 = vadd.f32 %v10770_v41, %v10769_v2 }
 0x3f8   : > { %11084 = vmatprep.mubr.bf16.mxu1 %v11605_v45  ;;  %v10667_v61 = vpop.f32.mrf.mxu1  ;;  %v10772_v9 = vpop.f32.mrf.mxu0 }
 0x3f9   : > { %v10668_v13 = vadd.f32 %v10667_v61, %v10666_v35  ;;  %v14624_v30 = vadd.f32 %v10765_v34, %v8470_v43 }
 0x3fa   : > { %v10669_v56 = vpop.f32.mrf.mxu1  ;;  %v10773_v32 = vpop.f32.mrf.mxu0 }
 0x3fb   : > { %v8475_v22 = vadd.f32 %v11625_v24, %v10668_v13  ;;  %v10774_v25 = vadd.f32 %v10773_v32, %v10772_v9 }
 0x3fc   : > { %v10670_v62 = vpop.f32.mrf.mxu1  ;;  %v10775_v8 = vpop.f32.mrf.mxu0 }
 0x3fd   : > { %v10671_v7 = vadd.f32 %v10670_v62, %v10669_v56  ;;  %v14629_v27 = vadd.f32 %v10768_v49, %v8475_v22 }
 0x3fe   : > { %v10672_v45 = vpop.f32.mrf.mxu1  ;;  %v10776_v33 = vpop.f32.mrf.mxu0 }
 0x3ff   : > { %11085 = vmatmul.mubr.bf16.gmra.mxu1 %v11606_v31  ;;  %v8478_v20 = vadd.f32 %v11625_v24, %v10671_v7  ;;  %v10777_v50 = vadd.f32 %v10776_v33, %v10775_v8 }
 0x400   : > { %v10673_v40 = vpop.f32.mrf.mxu1  ;;  %v14633_v10 = vpop.f32.mrf.mxu0 }
 0x401   : > { %v10674_v21 = vadd.f32 %v10673_v40, %v10672_v45  ;;  %v14631_v5 = vadd.f32 %v10771_v63, %v8478_v20 }
 0x402   : > { %v10675_v34 = vpop.f32.mrf.mxu1  ;;  %v14635_v31 = vpop.f32.mrf.mxu0 }
 0x403   : > { %v8483_v39 = vadd.f32 %v11625_v24, %v10674_v21 }
 0x404   : > { %v10676_v26 = vpop.f32.mrf.mxu1  ;;  %v14639_v4 = vpop.f32.mrf.mxu0 }
 0x405   : > { %v10677_v54 = vadd.f32 %v10676_v26, %v10675_v34  ;;  %v14637_v19 = vadd.f32 %v10774_v25, %v8483_v39 }
 0x406   : > { %v10794_v2 = vpop.f32.mrf.mxu1  ;;  %v14641_v35 = vpop.f32.mrf.mxu0 }
 0x407   : > { %v8486_v49 = vadd.f32 %v11625_v24, %v10677_v54 }
 0x408   : > { %v10795_v41 = vpop.f32.mrf.mxu1  ;;  %v14648_v56 = vpop.f32.mrf.mxu0 }
 0x409   : > { %v14643_v43 = vadd.f32 %v10777_v50, %v8486_v49  ;;  %v10796_v61 = vadd.f32 %v10795_v41, %v10794_v2 }
 0x40a   : > { %v10797_v63 = vpop.f32.mrf.mxu1  ;;  %v14650_v62 = vpop.f32.mrf.mxu0 }
 0x40b   : > { %v14646_v13 = vadd.f32 %v10796_v61, %v14551_v1 }
 0x40c   : > { %v10798_v22 = vpop.f32.mrf.mxu1  ;;  %v14655_v32 = vpop.f32.mrf.mxu0 }
 0x40d   : > { %v10799_v9 = vadd.f32 %v10798_v22, %v10797_v63 }
 0x40e   : > { %v10800_v7 = vpop.f32.mrf.mxu1  ;;  %v14657_v25 = vpop.f32.mrf.mxu0 }
 0x40f   : > { %v14653_v24 = vadd.f32 %v10799_v9, %v14555_v12 }
 0x410   : > { %v10801_v45 = vpop.f32.mrf.mxu1  ;;  %v14659_v40 = vpop.f32.mrf.mxu0 }
 0x411   : > { %v10802_v20 = vadd.f32 %v10801_v45, %v10800_v7 }
 0x412   : > { %v10803_v8 = vpop.f32.mrf.mxu1  ;;  %v14664_v33 = vpop.f32.mrf.mxu0 }
 0x413   : > { %v14662_v1 = vadd.f32 %v10802_v20, %v14560_v36 }
 0x414   : > { %v10804_v21 = vpop.f32.mrf.mxu1  ;;  %v14666_v50 = vpop.f32.mrf.mxu0 }
 0x415   : > { %v10805_v34 = vadd.f32 %v10804_v21, %v10803_v8 }
 0x416   : > { %v10806_v39 = vpop.f32.mrf.mxu1  ;;  %v14671_v26 = vpop.f32.mrf.mxu0 }
 0x417   : > { %v14669_v12 = vadd.f32 %v10805_v34, %v14564_v3 }
 0x418   : > { %v10807_v54 = vpop.f32.mrf.mxu1  ;;  %v14673_v41 = vpop.f32.mrf.mxu0 }
 0x419   : > { %v10808_v49 = vadd.f32 %v10807_v54, %v10806_v39 }
 0x41a   : > { %v10809_v2 = vpop.f32.mrf.mxu1  ;;  %v14678_v63 = vpop.f32.mrf.mxu0 }
 0x41b   : > { %v14676_v36 = vadd.f32 %v10808_v49, %v14567_v11 }
 0x41c   : > { %v10810_v61 = vpop.f32.mrf.mxu1  ;;  %v14680_v9 = vpop.f32.mrf.mxu0 }
 0x41d   : > { %v10811_v22 = vadd.f32 %v10810_v61, %v10809_v2 }
 0x41e   : > { %v10812_v7 = vpop.f32.mrf.mxu1  ;;  %v14685_v45 = vpop.f32.mrf.mxu0 }
 0x41f   : > { %v14683_v3 = vadd.f32 %v10811_v22, %v14570_v44 }
 0x420   : > { %v10813_v20 = vpop.f32.mrf.mxu1  ;;  %v14687_v34 = vpop.f32.mrf.mxu0 }
 0x421   : > { %v10814_v8 = vadd.f32 %v10813_v20, %v10812_v7 }
 0x422   : > { %v10815_v21 = vpop.f32.mrf.mxu1  ;;  %v14692_v54 = vpop.f32.mrf.mxu0 }
 0x423   : > { %v14690_v11 = vadd.f32 %v10814_v8, %v14572_v6 }
 0x424   : > { %v10816_v39 = vpop.f32.mrf.mxu1  ;;  %v14694_v2 = vpop.f32.mrf.mxu0 }
 0x425   : > { %v10817_v49 = vadd.f32 %v10816_v39, %v10815_v21 }
 0x426   : > { %v10818_v61 = vpop.f32.mrf.mxu1  ;;  %v14699_v22 = vpop.f32.mrf.mxu0 }
 0x427   : > { %v14697_v44 = vadd.f32 %v10817_v49, %v14574_v47 }
 0x428   : > { %v10819_v53 = vpop.f32.mrf.mxu1  ;;  %v14701_v48 = vpop.f32.mrf.mxu0 }
 0x429   : > { %v10820_v7 = vadd.f32 %v10819_v53, %v10818_v61 }
 0x42a   : > { %v10821_v20 = vpop.f32.mrf.mxu1  ;;  %v14706_v23 = vpop.f32.mrf.mxu0 }
 0x42b   : > { %v14704_v6 = vadd.f32 %v10820_v7, %v14579_v42 }
 0x42c   : > { %v10822_v8 = vpop.f32.mrf.mxu1  ;;  %v14708_v39 = vpop.f32.mrf.mxu0 }
 0x42d   : > { %15419 = vst [vmem:[#allocation13_spill] sm:$0xff] %v14704_v6  ;;  %v10823_v21 = vadd.f32 %v10822_v8, %v10821_v20 }
 0x42e   : > { %v10824_v49 = vpop.f32.mrf.mxu1  ;;  %v14713_v37 = vpop.f32.mrf.mxu0 }
 0x42f   : > { %v14711_v47 = vadd.f32 %v10823_v21, %v14582_v60  ;;  %15421 = vst [vmem:[#allocation16_spill] sm:$0xff] %v14713_v37 }
 0x430   : > { %v10825_v57 = vpop.f32.mrf.mxu1 }
 0x431   : > { %15420 = vst [vmem:[#allocation14_spill] sm:$0xff] %v14711_v47  ;;  %v10826_v53 = vadd.f32 %v10825_v57, %v10824_v49 }
 0x432   : > { %v10827_v61 = vpop.f32.mrf.mxu1 }
 0x433   : > { %v14715_v51 = vpop.f32.mrf.mxu0  ;;  %v14718_v42 = vadd.f32 %v10826_v53, %v14585_v59 }
 0x434   : > { %15422 = vst [vmem:[#allocation15_spill] sm:$0xff] %v14715_v51  ;;  %v10828_v7 = vpop.f32.mrf.mxu1 }
 0x435   : > { %15423 = vst [vmem:[#allocation18_spill] sm:$0xff] %v14718_v42  ;;  %v14720_v6 = vpop.f32.mrf.mxu0  ;;  %v10829_v20 = vadd.f32 %v10828_v7, %v10827_v61 }
 0x437   : > { %v14722_v8 = vpop.f32.mrf.mxu0  ;;  %v14725_v60 = vadd.f32 %v10829_v20, %v14588_v58 }
 0x439   : > { %15424 = vst [vmem:[#allocation17_spill] sm:$0xff] %v14725_v60  ;;  %v10830_v21 = vpop.f32.mrf.mxu1  ;;  %v14727_v47 = vpop.f32.mrf.mxu0 }
 0x43a   : > { %15425 = vst [vmem:[#allocation23_spill] sm:$0xff] %v14727_v47 }
 0x43b   : > { %v10831_v37 = vpop.f32.mrf.mxu1 }
 0x43c   : > { %v10832_v57 = vadd.f32 %v10831_v37, %v10830_v21 }
 0x43d   : > { %v10833_v51 = vpop.f32.mrf.mxu1 }
 0x43e   : > { %v14732_v59 = vadd.f32 %v10832_v57, %v14591_v16 }
 0x43f   : > { %v14729_v49 = vpop.f32.mrf.mxu0  ;;  %v10834_v42 = vpop.f32.mrf.mxu1 }
 0x440   : > { %15426 = vst [vmem:[#allocation25_spill] sm:$0xff] %v14729_v49  ;;  %15427 = vst [vmem:[#allocation26_spill] sm:$0xff] %v14732_v59  ;;  %v10835_v61 = vadd.f32 %v10834_v42, %v10833_v51 }
 0x441   : > { %v14734_v53 = vpop.f32.mrf.mxu0 }
 0x442   : > { %15428 = vst [vmem:[#allocation28_spill] sm:$0xff] %v14734_v53  ;;  %v14739_v58 = vadd.f32 %v10835_v61, %v14594_v14 }
 0x443   : > { %v14736_v7 = vpop.f32.mrf.mxu0 }
 0x444   : > { %15429 = vst [vmem:[#allocation19_spill] sm:$0xff] %v14739_v58 }
 0x445   : > { %v14741_v60 = vpop.f32.mrf.mxu0 }
 0x446   : > { %v10836_v20 = vpop.f32.mrf.mxu1  ;;  %15430 = vst [vmem:[#allocation20_spill] sm:$0xff] %v14741_v60 }
 0x448   : > { %v10837_v47 = vpop.f32.mrf.mxu1 }
 0x449   : > { %v10838_v37 = vadd.f32 %v10837_v47, %v10836_v20 }
 0x44a   : > { %v10839_v49 = vpop.f32.mrf.mxu1 }
 0x44b   : > { %v14743_v21 = vpop.f32.mrf.mxu0  ;;  %v14746_v16 = vadd.f32 %v10838_v37, %v14597_v17 }
 0x44c   : > { %v10840_v57 = vpop.f32.mrf.mxu1 }
 0x44d   : > { %15431 = vst [vmem:[#allocation21_spill] sm:$0xff] %v14746_v16  ;;  %v10841_v59 = vadd.f32 %v10840_v57, %v10839_v49  ;;  %v14748_v53 = vpop.f32.mrf.mxu0 }
 0x44e   : > { %15432 = vst [vmem:[#allocation22_spill] sm:$0xff] %v14748_v53 }
 0x44f   : > { %v14751_v51 = vadd.f32 %v10841_v59, %v14600_v38  ;;  %v14753_v61 = vpop.f32.mrf.mxu0 }
 0x451   : > { %15433 = vst [vmem:[#allocation24_spill] sm:$0xff] %v14751_v51  ;;  %v10842_v14 = vpop.f32.mrf.mxu1  ;;  %v14758_v20 = vpop.f32.mrf.mxu0 }
 0x453   : > { %v10843_v42 = vpop.f32.mrf.mxu1 }
 0x454   : > { %v10844_v58 = vadd.f32 %v10843_v42, %v10842_v14 }
 0x455   : > { %v10845_v60 = vpop.f32.mrf.mxu1 }
 0x456   : > { %v14756_v47 = vadd.f32 %v10844_v58, %v14603_v46  ;;  %v14763_v16 = vpop.f32.mrf.mxu0 }
 0x457   : > { %v10846_v17 = vpop.f32.mrf.mxu1 }
 0x458   : > { %15434 = vst [vmem:[#allocation27_spill] sm:$0xff] %v14756_v47  ;;  %v10847_v37 = vadd.f32 %v10846_v17, %v10845_v60  ;;  %v14765_v53 = vpop.f32.mrf.mxu0 }
 0x459   : > { %15436 = vst [vmem:[#allocation11_spill] sm:$0xff] %v14765_v53 }
 0x45a   : > { %v14761_v49 = vadd.f32 %v10847_v37, %v14606_v29  ;;  %v14770_v42 = vpop.f32.mrf.mxu0 }
 0x45c   : > { %15435 = vst [vmem:[#allocation29_spill] sm:$0xff] %v14761_v49  ;;  %v14775_v49 = vpop.f32.mrf.mxu0 }
 0x45e   : > { %v10848_v57 = vpop.f32.mrf.mxu1 }
 0x460   : > { %v10849_v38 = vpop.f32.mrf.mxu1 }
 0x461   : > { %v10850_v59 = vadd.f32 %v10849_v38, %v10848_v57 }
 0x462   : > { %v10851_v51 = vpop.f32.mrf.mxu1 }
 0x463   : > { %v14768_v14 = vadd.f32 %v10850_v59, %v14609_v0  ;;  %v14780_v0 = vpop.f32.mrf.mxu0 }
 0x464   : > { %v10852_v46 = vpop.f32.mrf.mxu1 }
 0x465   : > { %15437 = vst [vmem:[#allocation4_spill] sm:$0xff] %v14768_v14  ;;  %v10853_v58 = vadd.f32 %v10852_v46, %v10851_v51 }
 0x467   : > { %v14773_v60 = vadd.f32 %v10853_v58, %v14612_v15  ;;  %v14785_v15 = vpop.f32.mrf.mxu0 }
 0x468   : > { %v10854_v29 = vpop.f32.mrf.mxu1 }
 0x469   : > { %15438 = vst [vmem:[#allocation6_spill] sm:$0xff] %v14773_v60  ;;  %v14790_v14 = vpop.f32.mrf.mxu0 }
 0x46a   : > { %v10855_v17 = vpop.f32.mrf.mxu1 }
 0x46b   : > { %v10856_v37 = vadd.f32 %v10855_v17, %v10854_v29 }
 0x46c   : > { %v10857_v47 = vpop.f32.mrf.mxu1 }
 0x46d   : > { %v14778_v57 = vadd.f32 %v10856_v37, %v14615_v18 }
 0x46e   : > { %v10858_v38 = vpop.f32.mrf.mxu1 }
 0x46f   : > { %15439 = vst [vmem:[#allocation5_spill] sm:$0xff] %v14778_v57  ;;  %v10859_v53 = vadd.f32 %v10858_v38, %v10857_v47  ;;  %v14795_v38 = vpop.f32.mrf.mxu0 }
 0x471   : > { %v14783_v51 = vadd.f32 %v10859_v53, %v14618_v55 }
 0x473   : > { %15440 = vst [vmem:[#allocation7_spill] sm:$0xff] %v14783_v51 }
 0x474   : > { %v10860_v59 = vpop.f32.mrf.mxu1 }
 0x476   : > { %v10861_v46 = vpop.f32.mrf.mxu1 }
 0x477   : > { %v10862_v58 = vadd.f32 %v10861_v46, %v10860_v59  ;;  %v14800_v59 = vpop.f32.mrf.mxu0 }
 0x478   : > { %v10863_v60 = vpop.f32.mrf.mxu1 }
 0x479   : > { %v14788_v29 = vadd.f32 %v10862_v58, %v14621_v28 }
 0x47a   : > { %v10864_v17 = vpop.f32.mrf.mxu1 }
 0x47b   : > { %15441 = vst [vmem:[#allocation32_spill] sm:$0xff] %v14788_v29  ;;  %v10865_v18 = vadd.f32 %v10864_v17, %v10863_v60  ;;  %v14805_v17 = vpop.f32.mrf.mxu0 }
 0x47d   : > { %v14793_v47 = vadd.f32 %v10865_v18, %v14624_v30  ;;  %v14807_v29 = vpop.f32.mrf.mxu0 }
 0x47f   : > { %15442 = vst [vmem:[#allocation33_spill] sm:$0xff] %v14793_v47  ;;  %v10866_v37 = vpop.f32.mrf.mxu1 }
 0x481   : > { %v10867_v55 = vpop.f32.mrf.mxu1 }
 0x482   : > { %v10868_v53 = vadd.f32 %v10867_v55, %v10866_v37  ;;  %v10896_v55 = vadd.f32 %v14635_v31, %v14633_v10  ;;  %v10908_v10 = vadd.f32 %v14664_v33, %v14659_v40  ;;  %v10911_v31 = vadd.f32 %v14671_v26, %v14666_v50 }
 0x483   : > { %v10869_v51 = vpop.f32.mrf.mxu1  ;;  %v10920_v50 = vadd.f32 %v14692_v54, %v14687_v34  ;;  %v15444_v54 = vld [vmem:[#allocation15_spill] sm:$0xff] }
 0x484   : > { %v14798_v57 = vadd.f32 %v10868_v53, %v14629_v27  ;;  %v8830_v33 = vadd.f32 %v10908_v10, %v14676_v36 }
 0x485   : > { %v10870_v28 = vpop.f32.mrf.mxu1 }
 0x486   : > { %v10871_v46 = vadd.f32 %v10870_v28, %v10869_v51  ;;  %v14816_v28 = vpop.f32.mrf.mxu0 }
 0x487   : > { %v10872_v60 = vpop.f32.mrf.mxu1 }
 0x488   : > { %v14803_v58 = vadd.f32 %v10871_v46, %v14631_v5  ;;  %v10902_v5 = vadd.f32 %v14650_v62, %v14648_v56 }
 0x489   : > { %v10873_v30 = vpop.f32.mrf.mxu1 }
 0x48a   : > { %v10874_v18 = vadd.f32 %v10873_v30, %v10872_v60  ;;  %v8814_v60 = vadd.f32 %v10896_v55, %v14646_v13  ;;  %v10905_v30 = vadd.f32 %v14657_v25, %v14655_v32  ;;  %v8822_v56 = vadd.f32 %v10902_v5, %v14662_v1  ;;  %v14839_v25 = vpop.f32.mrf.mxu0  ;;  %v15449_v5 = vld [vmem:[#allocation30_spill] sm:$0xff] }
 0x48b   : > { %v10875_v47 = vpop.f32.mrf.mxu1  ;;  %v10917_v32 = vadd.f32 %v14685_v45, %v14680_v9  ;;  %v8833_v1 = vadd.f32 %v10911_v31, %v14683_v3  ;;  %v15443_v45 = vld [vmem:[#allocation16_spill] sm:$0xff]  ;;  %v15453_v31 = vld [vmem:[#allocation17_spill] sm:$0xff] }
 0x48c   : > { %v14810_v37 = vadd.f32 %v10874_v18, %v14637_v19  ;;  %v10899_v19 = vadd.f32 %v14641_v35, %v14639_v4  ;;  %v8825_v13 = vadd.f32 %v10905_v30, %v14669_v12  ;;  %v10923_v12 = vadd.f32 %v14699_v22, %v14694_v2  ;;  %v15445_v22 = vld [vmem:[#allocation23_spill] sm:$0xff] }
 0x48d   : > { %v10876_v27 = vpop.f32.mrf.mxu1  ;;  %v8841_v3 = vadd.f32 %v10917_v32, %v14697_v44  ;;  %v10929_v34 = vadd.f32 %v15443_v45, %v14708_v39  ;;  %v10932_v2 = vadd.f32 %v14720_v6, %v15444_v54  ;;  %v15452_v6 = vld [vmem:[#allocation20_spill] sm:$0xff] }
 0x48e   : > { %v10877_v53 = vadd.f32 %v10876_v27, %v10875_v47  ;;  %v8817_v35 = vadd.f32 %v10899_v19, %v14653_v24  ;;  %v10935_v47 = vadd.f32 %v15445_v22, %v14722_v8  ;;  %v15446_v27 = vld [vmem:[#allocation25_spill] sm:$0xff]  ;;  %v15457_v22 = vld [vmem:[#allocation26_spill] sm:$0xff] }
 0x48f   : > { %v11062_v51 = vpop.f32.mrf.mxu1  ;;  %v15451_v19 = vld [vmem:[#allocation13_spill] sm:$0xff] }
 0x490   : > { %v14819_v46 = vadd.f32 %v10877_v53, %v14643_v43  ;;  %v10914_v43 = vadd.f32 %v14678_v63, %v14673_v41  ;;  %v14841_v40 = vadd.f32 %v11062_v51, %v8822_v56  ;;  %v10926_v63 = vadd.f32 %v14706_v23, %v14701_v48  ;;  %v14867_v23 = vpop.f32.mrf.mxu0  ;;  %v15448_v48 = vld [vmem:[#allocation31_spill] sm:$0xff] }
 0x491   : > { %v8958_v18 = vpop.f32.mrf.mxu1  ;;  %v8846_v30 = vadd.f32 %v10920_v50, %v15451_v19  ;;  %v8857_v56 = vadd.f32 %v10929_v34, %v15453_v31  ;;  %v15456_v50 = vld [vmem:[#allocation22_spill] sm:$0xff]  ;;  %v15458_v34 = vld [vmem:[#allocation19_spill] sm:$0xff]  ;;  %v15462_v31 = vld [vmem:[#allocation24_spill] sm:$0xff] }
 0x492   : > { %v14831_v62 = vadd.f32 %v8958_v18, %v8814_v60  ;;  %v8838_v41 = vadd.f32 %v10914_v43, %v14690_v11  ;;  %v15447_v11 = vld [vmem:[#allocation28_spill] sm:$0xff]  ;;  %v9071_v51 = vmul.f32 %v14841_v40, %v15448_v48  ;;  %v15450_v60 = vld [vmem:[#allocation18_spill] sm:$0xff]  ;;  %v10941_v18 = vadd.f32 %v15452_v6, %v14736_v7 }
 0x493   : > { %v11063_v4 = vpop.f32.mrf.mxu1  ;;  %v10938_v55 = vadd.f32 %v15447_v11, %v15446_v27  ;;  %v8854_v39 = vadd.f32 %v10926_v63, %v15450_v60  ;;  %v15454_v43 = vld [vmem:[#allocation14_spill] sm:$0xff]  ;;  %v10944_v63 = vadd.f32 %v15456_v50, %v14743_v21  ;;  %v14890_v27 = vadd.f32 %v10932_v2, %v15457_v22  ;;  %v15461_v2 = vld [vmem:[#allocation21_spill] sm:$0xff]  ;;  %v15464_v22 = vld [vmem:[#allocation27_spill] sm:$0xff] }
 0x494   : > { %v9069_v24 = vmul.f32 %v14831_v62, %v13128_v52  ;;  %v14854_v9 = vadd.f32 %v11063_v4, %v8825_v13  ;;  %v8849_v13 = vadd.f32 %v10923_v12, %v15454_v43  ;;  %v15455_v4 = vld [vmem:[#allocation9_spill] sm:$0xff]  ;;  %v14893_v11 = vadd.f32 %v10935_v47, %v15458_v34  ;;  %v10969_v12 = vpop.f32.mrf.mxu0 }
 0x495   : > { %v8961_v26 = vpop.f32.mrf.mxu1  ;;  %v9151_v60 = vmul.f32 %v9071_v51, %v14841_v40  ;;  %v10947_v21 = vadd.f32 %v14758_v20, %v14753_v61  ;;  %v14904_v47 = vadd.f32 %v10941_v18, %v15462_v31  ;;  %v15468_v31 = vld [vmem:[#allocation6_spill] sm:$0xff] }
 0x496   : > { %v14856_v36 = vadd.f32 %v8961_v26, %v8817_v35  ;;  %v9149_v8 = vmul.f32 %v9069_v24, %v14831_v62  ;;  %v9072_v35 = vmul.f32 %v14854_v9, %v15455_v4  ;;  %v10970_v18 = vpop.f32.mrf.mxu0 }
 0x497   : > { %v11066_v53 = vpop.f32.mrf.mxu1 }
 0x498   : > { %v9070_v44 = vmul.f32 %v14856_v36, %v15449_v5  ;;  %v14887_v54 = vadd.f32 %v11066_v53, %v8838_v41  ;;  %v15460_v41 = vld [vmem:[#allocation11_spill] sm:$0xff]  ;;  %v9152_v43 = vmul.f32 %v9072_v35, %v14854_v9 }
 0x499   : > { %v8974_v10 = vpop.f32.mrf.mxu1  ;;  %v10950_v53 = vadd.f32 %v15460_v41, %v14763_v16 }
 0x49a   : > { %v9097_v32 = vadd.f32 %v9070_v44, %v9069_v24  ;;  %v9150_v26 = vmul.f32 %v9070_v44, %v14856_v36  ;;  %v14883_v45 = vadd.f32 %v8974_v10, %v8830_v33  ;;  %v15459_v44 = vld [vmem:[#allocation8_spill] sm:$0xff]  ;;  %v8870_v10 = vadd.f32 %v10938_v55, %v15461_v2 }
 0x49b   : > { %v11067_v7 = vpop.f32.mrf.mxu1  ;;  %v14916_v55 = vadd.f32 %v10944_v63, %v15464_v22  ;;  %v15467_v63 = vld [vmem:[#allocation29_spill] sm:$0xff] }
 0x49c   : > { %v9098_v24 = vadd.f32 %v9097_v32, %v9071_v51  ;;  %v9177_v19 = vadd.f32 %v9150_v26, %v9149_v8  ;;  %v9073_v33 = vmul.f32 %v14883_v45, %v15459_v44  ;;  %v10953_v32 = vadd.f32 %v14775_v49, %v14770_v42  ;;  %v15463_v26 = vld [vmem:[#allocation12_spill] sm:$0xff] }
 0x49d   : > { %v8977_v6 = vpop.f32.mrf.mxu1  ;;  %v9075_v61 = vmul.f32 %v14887_v54, %v15463_v26  ;;  %v14913_v20 = vadd.f32 %v11067_v7, %v8841_v3  ;;  %v10956_v49 = vadd.f32 %v14785_v15, %v14780_v0  ;;  %v10959_v42 = vadd.f32 %v14795_v38, %v14790_v14  ;;  %v15466_v7 = vld [vmem:[#allocation4_spill] sm:$0xff] }
 0x49e   : > { %v9178_v50 = vadd.f32 %v9177_v19, %v9151_v60  ;;  %v9099_v51 = vadd.f32 %v9098_v24, %v9072_v35  ;;  %v14907_v8 = vadd.f32 %v8977_v6, %v8833_v1  ;;  %v9153_v41 = vmul.f32 %v9073_v33, %v14883_v45  ;;  %v15465_v35 = vld [vmem:[#allocation10_spill] sm:$0xff] }
 0x49f   : > { %v11070_v16 = vpop.f32.mrf.mxu1  ;;  %v14926_v24 = vadd.f32 %v10950_v53, %v15466_v7  ;;  %v14929_v19 = vadd.f32 %v10947_v21, %v15467_v63  ;;  %v10962_v0 = vadd.f32 %v14805_v17, %v14800_v59  ;;  %v9076_v14 = vmul.f32 %v14913_v20, %v13128_v52  ;;  %v10972_v21 = vpop.f32.mrf.mxu0 }
 0x4a0   : > { %v9100_v34 = vadd.f32 %v9099_v51, %v9073_v33  ;;  %v9179_v60 = vadd.f32 %v9178_v50, %v9152_v43  ;;  %v9074_v1 = vmul.f32 %v14907_v8, %v15465_v35  ;;  %v14933_v43 = vadd.f32 %v10953_v32, %v15468_v31 }
 0x4a1   : > { %v8990_v3 = vpop.f32.mrf.mxu1  ;;  %v14939_v15 = vadd.f32 %v11070_v16, %v8854_v39  ;;  %v9155_v50 = vmul.f32 %v9075_v61, %v14887_v54  ;;  %v10965_v32 = vadd.f32 %v14816_v28, %v14807_v29  ;;  %v10973_v63 = vpop.f32.mrf.mxu0 }
 0x4a2   : > { %v9180_v6 = vadd.f32 %v9179_v60, %v9153_v41  ;;  %v9101_v2 = vadd.f32 %v9100_v34, %v9074_v1  ;;  %v9154_v33 = vmul.f32 %v9074_v1, %v14907_v8  ;;  %v14941_v38 = vadd.f32 %v8990_v3, %v8846_v30  ;;  %v15469_v34 = vld [vmem:[#allocation5_spill] sm:$0xff]  ;;  %v15470_v30 = vld [vmem:[#allocation7_spill] sm:$0xff] }
 0x4a3   : > { %v11071_v53 = vpop.f32.mrf.mxu1  ;;  %v14945_v41 = vadd.f32 %v10956_v49, %v15469_v34  ;;  %v14954_v16 = vadd.f32 %v10959_v42, %v15470_v30  ;;  %v10968_v60 = vadd.f32 %v14867_v23, %v14839_v25  ;;  %v9156_v49 = vmul.f32 %v9076_v14, %v14913_v20  ;;  %v15471_v25 = vld [vmem:[#allocation32_spill] sm:$0xff] }
 0x4a4   : > { %v9102_v51 = vadd.f32 %v9101_v2, %v9075_v61  ;;  %v9181_v22 = vadd.f32 %v9180_v6, %v9154_v33  ;;  %v9077_v59 = vmul.f32 %v14941_v38, %v15449_v5  ;;  %v14951_v17 = vadd.f32 %v11071_v53, %v8857_v56 }
 0x4a5   : > { %v8993_v39 = vpop.f32.mrf.mxu1  ;;  %v9079_v29 = vmul.f32 %v14939_v15, %v15455_v4  ;;  %v14967_v23 = vadd.f32 %v10962_v0, %v15471_v25 }
 0x4a6   : > { %v9103_v61 = vrot.slane %v9102_v51, 4  ;;  %v9182_v1 = vadd.f32 %v9181_v22, %v9155_v50  ;;  %v14958_v3 = vadd.f32 %v8993_v39, %v8849_v13  ;;  %v9109_v28 = vadd.f32 %v9077_v59, %v9076_v14 }
 0x4a7   : > { %v9157_v56 = vmul.f32 %v9077_v59, %v14941_v38  ;;  %v11074_v7 = vpop.f32.mrf.mxu1  ;;  %v14969_v13 = vadd.f32 %v10970_v18, %v10969_v12  ;;  %v9080_v31 = vmul.f32 %v14951_v17, %v15459_v44  ;;  %v14976_v59 = vadd.f32 %v10973_v63, %v10972_v21  ;;  %v15472_v18 = vld [vmem:[#allocation33_spill] sm:$0xff] }
 0x4a8   : > { %v9104_v6 = vadd.f32 %v9103_v61, %v9102_v51  ;;  %v9183_v42 = vrot.slane %v9182_v1, 4  ;;  %v9078_v2 = vmul.f32 %v14958_v3, %v15448_v48  ;;  %v14973_v53 = vadd.f32 %v11074_v7, %v8870_v10 }
 0x4a9   : > { %v9189_v33 = vadd.f32 %v9157_v56, %v9156_v49  ;;  %v9006_v14 = vpop.f32.mrf.mxu1  ;;  %v9159_v39 = vmul.f32 %v9079_v29, %v14939_v15  ;;  %v14983_v30 = vadd.f32 %v10965_v32, %v15472_v18 }
 0x4aa   : > { %v9105_v50 = vrot.slane %v9104_v6, 2  ;;  %v9184_v22 = vadd.f32 %v9183_v42, %v9182_v1  ;;  %v9110_v34 = vadd.f32 %v9109_v28, %v9078_v2  ;;  %v9158_v51 = vmul.f32 %v9078_v2, %v14958_v3 }
 0x4ab   : > { %v14980_v0 = vadd.f32 %v9006_v14, %v14890_v27  ;;  %v11075_v12 = vpop.f32.mrf.mxu1  ;;  %v9160_v1 = vmul.f32 %v9080_v31, %v14951_v17  ;;  %v9083_v28 = vmul.f32 %v14973_v53, %v13128_v52 }
 0x4ac   : > { %v9106_v61 = vadd.f32 %v9105_v50, %v9104_v6  ;;  %v9185_v10 = vrot.slane %v9184_v22, 2  ;;  %v9111_v49 = vadd.f32 %v9110_v34, %v9079_v29  ;;  %v9190_v56 = vadd.f32 %v9189_v33, %v9158_v51  ;;  %v10975_v6 = vpop.f32.mrf.mxu0 }
 0x4ad   : > { %v9081_v21 = vmul.f32 %v14980_v0, %v15465_v35  ;;  %v14991_v7 = vadd.f32 %v11075_v12, %v14904_v47  ;;  %v9009_v27 = vpop.f32.mrf.mxu1  ;;  %v15000_v50 = vadd.f32 %v10968_v60, %v14798_v57 }
 0x4ae   : > { %v9107_v63 = vrot.slane %v9106_v61, 1  ;;  %v9186_v42 = vadd.f32 %v9185_v10, %v9184_v22  ;;  %v9191_v32 = vadd.f32 %v9190_v56, %v9159_v39  ;;  %v9112_v2 = vadd.f32 %v9111_v49, %v9080_v31  ;;  %v10976_v60 = vpop.f32.mrf.mxu0 }
 0x4af   : > { %v9161_v29 = vmul.f32 %v9081_v21, %v14980_v0  ;;  %v9084_v25 = vmul.f32 %v14991_v7, %v15449_v5  ;;  %v14997_v33 = vadd.f32 %v9009_v27, %v14893_v11  ;;  %v11078_v14 = vpop.f32.mrf.mxu1  ;;  %v9163_v22 = vmul.f32 %v9083_v28, %v14973_v53 }
 0x4b0   : > { %v9108_v47 = vadd.f32 %v9107_v63, %v9106_v61  ;;  %v9187_v34 = vrot.slane %v9186_v42, 1  ;;  %v9113_v51 = vadd.f32 %v9112_v2, %v9081_v21  ;;  %v9192_v12 = vadd.f32 %v9191_v32, %v9160_v1 }
 0x4b1   : > { %v9121_v31 = vadd.f32 %v9084_v25, %v9083_v28  ;;  %v9164_v39 = vmul.f32 %v9084_v25, %v14991_v7  ;;  %v9082_v18 = vmul.f32 %v14997_v33, %v15463_v26  ;;  %v9022_v10 = vpop.f32.mrf.mxu1  ;;  %v15009_v57 = vadd.f32 %v11078_v14, %v14926_v24 }
 0x4b2   : > { %v15006_v49 = vmul.f32 0.04, %v9108_v47  ;;  %v9188_v11 = vadd.f32 %v9187_v34, %v9186_v42  ;;  %v9193_v56 = vadd.f32 %v9192_v12, %v9161_v29  ;;  %v15013_v28 = vadd.f32 %v9022_v10, %v14916_v55 }
 0x4b3   : > { %v9201_v61 = vadd.f32 %v9164_v39, %v9163_v22  ;;  %v9114_v21 = vadd.f32 %v9113_v51, %v9082_v18  ;;  %v9162_v1 = vmul.f32 %v9082_v18, %v14997_v33  ;;  %v11079_v27 = vpop.f32.mrf.mxu1  ;;  %v10977_v47 = vadd.f32 %v10976_v60, %v10975_v6 }
 0x4b4   : > { %v9225_v63 = vmul.f32 0.04, %v9188_v11  ;;  %v9229_v32 = vmul.f32 %v15006_v49, %v15006_v49  ;;  %v9085_v39 = vmul.f32 %v15013_v28, %v15448_v48  ;;  %v15032_v18 = vadd.f32 %v11079_v27, %v14933_v43 }
 0x4b5   : > { %v9115_v25 = vrot.slane %v9114_v21, 4  ;;  %v9025_v14 = vpop.f32.mrf.mxu1  ;;  %v9194_v51 = vadd.f32 %v9193_v56, %v9162_v1  ;;  %v9087_v6 = vmul.f32 %v15009_v57, %v15459_v44  ;;  %v8918_v56 = vadd.f32 %v14976_v59, %v14810_v37 }
 0x4b6   : > { %v9233_v34 = vsub.f32 %v9225_v63, %v9229_v32  ;;  %v15035_v10 = vadd.f32 %v9025_v14, %v14929_v19  ;;  %v9165_v1 = vmul.f32 %v9085_v39, %v15013_v28  ;;  %v15049_v32 = vadd.f32 %v14969_v13, %v14803_v58 }
 0x4b7   : > { %v9116_v22 = vadd.f32 %v9115_v25, %v9114_v21  ;;  %v11082_v11 = vpop.f32.mrf.mxu1  ;;  %v9195_v29 = vrot.slane %v9194_v51, 4  ;;  %v9122_v21 = vadd.f32 %v9121_v31, %v9085_v39  ;;  %v9088_v31 = vmul.f32 %v15032_v18, %v15465_v35 }
 0x4b8   : > { %v9237_v55 = vadd.f32 1e-05, %v9233_v34  ;;  %v15043_v63 = vadd.f32 %v11082_v11, %v14967_v23  ;;  %v9086_v27 = vmul.f32 %v15035_v10, %v15455_v4  ;;  %v9202_v14 = vadd.f32 %v9201_v61, %v9165_v1 }
 0x4b9   : > { %v9117_v60 = vrot.slane %v9116_v22, 2  ;;  %v9038_v43 = vpop.f32.mrf.mxu1  ;;  %v9196_v19 = vadd.f32 %v9195_v29, %v9194_v51  ;;  %v8921_v2 = vadd.f32 %v10977_v47, %v14819_v46 }
 0x4ba   : > { %11615 = vrsqrt.f32 %v9237_v55  ;;  %v15054_v34 = vadd.f32 %v9038_v43, %v14945_v41  ;;  %v9167_v55 = vmul.f32 %v9087_v6, %v15009_v57  ;;  %v9123_v29 = vadd.f32 %v9122_v21, %v9086_v27 }
 0x4bb   : > { %v9118_v25 = vadd.f32 %v9117_v60, %v9116_v22  ;;  %v11083_v23 = vpop.f32.mrf.mxu1  ;;  %v9197_v39 = vrot.slane %v9196_v19, 2  ;;  %v9166_v51 = vmul.f32 %v9086_v27, %v15035_v10  ;;  %v9091_v58 = vmul.f32 %v15043_v63, %v15449_v5 }
 0x4bc   : > { %v9089_v13 = vmul.f32 %v15054_v34, %v15463_v26  ;;  %v15063_v61 = vadd.f32 %v11083_v23, %v14983_v30  ;;  %v9124_v60 = vadd.f32 %v9123_v29, %v9087_v6  ;;  %v9168_v27 = vmul.f32 %v9088_v31, %v15032_v18 }
 0x4bd   : > { %v9119_v11 = vrot.slane %v9118_v25, 1  ;;  %v9041_v22 = vpop.f32.mrf.mxu1  ;;  %v9198_v41 = vadd.f32 %v9197_v39, %v9196_v19  ;;  %v9203_v1 = vadd.f32 %v9202_v14, %v9166_v51 }
 0x4be   : > { %v15066_v43 = vadd.f32 %v9041_v22, %v14954_v16  ;;  %v9125_v30 = vadd.f32 %v9124_v60, %v9088_v31  ;;  %v9171_v16 = vmul.f32 %v9091_v58, %v15043_v63  ;;  %v9092_v14 = vmul.f32 %v15063_v61, %v15448_v48 }
 0x4bf   : > { %v9120_v21 = vadd.f32 %v9119_v11, %v9118_v25  ;;  %v11086_v12 = vpop.f32.mrf.mxu1  ;;  %v9199_v24 = vrot.slane %v9198_v41, 1  ;;  %v9204_v42 = vadd.f32 %v9203_v1, %v9167_v55  ;;  %v9169_v25 = vmul.f32 %v9089_v13, %v15054_v34 }
 0x4c0   : > { %v9090_v19 = vmul.f32 %v15066_v43, %v13128_v52  ;;  %v9126_v59 = vadd.f32 %v9125_v30, %v9089_v13 }
 0x4c1   : > { %v15074_v6 = vmul.f32 0.04, %v9120_v21  ;;  %v9054_v23 = vpop.f32.mrf.mxu1  ;;  %v9200_v37 = vadd.f32 %v9199_v24, %v9198_v41  ;;  %v9205_v39 = vadd.f32 %v9204_v42, %v9168_v27  ;;  %v9172_v41 = vmul.f32 %v9092_v14, %v15063_v61 }
 0x4c2   : > { %v9133_v46 = vadd.f32 %v9091_v58, %v9090_v19  ;;  %v9127_v13 = vrot.slane %v9126_v59, 4  ;;  %v9170_v60 = vmul.f32 %v9090_v19, %v15066_v43  ;;  %v15096_v21 = vadd.f32 %v11086_v12, %v8918_v56 }
 0x4c3   : > { %v9230_v47 = vmul.f32 %v15074_v6, %v15074_v6  ;;  %v9252_v31 = vsub.f32 %v14913_v20, %v15074_v6  ;;  %v9226_v51 = vmul.f32 0.04, %v9200_v37  ;;  %v11087_v58 = vpop.f32.mrf.mxu1  ;;  %v9206_v22 = vadd.f32 %v9205_v39, %v9169_v25 }
 0x4c4   : > { %v15099_v27 = vadd.f32 %v9054_v23, %v15000_v50  ;;  %v9134_v30 = vadd.f32 %v9133_v46, %v9092_v14  ;;  %v9128_v42 = vadd.f32 %v9127_v13, %v9126_v59  ;;  %v9213_v11 = vadd.f32 %v9171_v16, %v9170_v60  ;;  %v11627_v13 = vld [vmem:[%s11803_s16 + $0x8] sm:$0xff]  ;;  %v11628_v60 = vld [vmem:[%s11803_s16 + $0x10] sm:$0xff] }
 0x4c5   : > { %v9234_v1 = vsub.f32 %v9226_v51, %v9230_v47  ;;  %v9207_v24 = vrot.slane %v9206_v22, 4  ;;  %v15101_v25 = vadd.f32 %v11087_v58, %v8921_v2  ;;  %v15473_v19 = vsub.f32 %v14831_v62, %v15006_v49  ;;  %v11626_v51 = vld [vmem:[%s11803_s16] sm:$0xff] }
 0x4c6   : > { %v15474_v12 = vsub.f32 %v14856_v36, %v15006_v49  ;;  %v15475_v56 = vsub.f32 %v14841_v40, %v15006_v49  ;;  %v15476_v23 = vsub.f32 %v14854_v9, %v15006_v49  ;;  %v15477_v2 = vsub.f32 %v14907_v8, %v15006_v49  ;;  %v11629_v9 = vld [vmem:[%s11803_s16 + $0x18] sm:$0xff]  ;;  %v11631_v8 = vld [vmem:[%s11803_s16 + $0x30] sm:$0xff] }
 0x4c7   : > { %v11616_v37 = vpop.eup %11615  ;;  %v9238_v62 = vadd.f32 1e-05, %v9234_v1  ;;  %v15478_v46 = vsub.f32 %v14887_v54, %v15006_v49  ;;  %v9129_v47 = vrot.slane %v9128_v42, 2  ;;  %v15484_v20 = vsub.f32 %v14997_v33, %v15074_v6 }
 0x4c8   : > { %v9273_v39 = vmul.f32 %v11616_v37, %v15473_v19  ;;  %v9274_v50 = vmul.f32 %v11616_v37, %v15474_v12  ;;  %v9275_v14 = vmul.f32 %v11616_v37, %v15475_v56  ;;  %v9276_v16 = vmul.f32 %v11616_v37, %v15476_v23  ;;  %v11630_v56 = vld [vmem:[%s11803_s16 + $0x28] sm:$0xff] }
 0x4c9   : > { %v9278_v59 = vmul.f32 %v11616_v37, %v15477_v2  ;;  %v9279_v36 = vmul.f32 %v11616_v37, %v15478_v46  ;;  %11617 = vrsqrt.f32 %v9238_v62  ;;  %v9130_v1 = vadd.f32 %v9129_v47, %v9128_v42 }
 0x4ca   : > { %v9301_v58 = vadd.f32 %v11626_v51, %v9273_v39  ;;  %v9302_v40 = vadd.f32 %v11627_v13, %v9274_v50  ;;  %v9303_v19 = vadd.f32 %v11628_v60, %v9275_v14  ;;  %v9304_v12 = vadd.f32 %v11629_v9, %v9276_v16 }
 0x4cb   : > { %v9306_v23 = vadd.f32 %v11630_v56, %v9278_v59  ;;  %v9307_v2 = vadd.f32 %v11631_v8, %v9279_v36  ;;  %v9131_v14 = vrot.slane %v9130_v1, 1  ;;  %v9208_v16 = vadd.f32 %v9207_v24, %v9206_v22  ;;  %v9057_v59 = vpop.f32.mrf.mxu1 }
 0x4cc   : > { %v9329_v29 = vmax.f32 %v9301_v58, 0.0  ;;  %v9330_v55 = vmax.f32 %v9302_v40, 0.0  ;;  %v9331_v54 = vmax.f32 %v9303_v19, 0.0  ;;  %v9332_v46 = vmax.f32 %v9304_v12, 0.0 }
 0x4cd   : > { %v9334_v39 = vmax.f32 %v9306_v23, 0.0  ;;  %v9335_v50 = vmax.f32 %v9307_v2, 0.0  ;;  %v9132_v13 = vadd.f32 %v9131_v14, %v9130_v1  ;;  %v9209_v40 = vrot.slane %v9208_v16, 2 }
 0x4ce   : > { %v9357_v42 = vmul.f32 %v9329_v29, %v13128_v52  ;;  %v9358_v62 = vmul.f32 %v9330_v55, %v15449_v5  ;;  %v9359_v36 = vmul.f32 %v9331_v54, %v15448_v48  ;;  %v9360_v47 = vmul.f32 %v9332_v46, %v15455_v4 }
 0x4cf   : > { %v9362_v51 = vmul.f32 %v9334_v39, %v15465_v35  ;;  %v9363_v58 = vmul.f32 %v9335_v50, %v15463_v26  ;;  %v9093_v29 = vmul.f32 %v15099_v27, %v15455_v4  ;;  %v9214_v24 = vadd.f32 %v9213_v11, %v9172_v41 }
 0x4d0   : > { %9385 = vst [vmem:[%s15132_s13] sm:$0xff] %v9357_v42  ;;  %9386 = vst [vmem:[%s15132_s13 + $0x8] sm:$0xff] %v9358_v62  ;;  %v15147_v55 = vadd.f32 %v9057_v59, %v15049_v32  ;;  %v15151_v22 = vmul.f32 0.04, %v9132_v13  ;;  %v9210_v60 = vadd.f32 %v9209_v40, %v9208_v16  ;;  %v9256_v19 = vsub.f32 %v14951_v17, %v15074_v6  ;;  %v11632_v59 = vld [vmem:[%s11803_s16 + $0x20] sm:$0xff] }
 0x4d1   : > { %9387 = vst [vmem:[%s15132_s13 + $0x10] sm:$0xff] %v9359_v36  ;;  %9388 = vst [vmem:[%s15132_s13 + $0x18] sm:$0xff] %v9360_v47  ;;  %v15479_v9 = vsub.f32 %v14883_v45, %v15006_v49  ;;  %v9095_v56 = vmul.f32 %v15096_v21, %v15465_v35  ;;  %v9135_v23 = vadd.f32 %v9134_v30, %v9093_v29 }
 0x4d2   : > { %9390 = vst [vmem:[%s15132_s13 + $0x28] sm:$0xff] %v9362_v51  ;;  %9391 = vst [vmem:[%s15132_s13 + $0x30] sm:$0xff] %v9363_v58  ;;  %v9173_v11 = vmul.f32 %v9093_v29, %v15099_v27  ;;  %v9094_v32 = vmul.f32 %v15147_v55, %v15459_v44  ;;  %v9211_v41 = vrot.slane %v9210_v60, 1  ;;  %v9259_v8 = vsub.f32 %v14973_v53, %v15151_v22 }
 0x4d3   : > { %v9277_v12 = vmul.f32 %v11616_v37, %v15479_v9  ;;  %v9260_v2 = vsub.f32 %v14991_v7, %v15151_v22  ;;  %v9096_v45 = vmul.f32 %v15101_v25, %v15463_v26  ;;  %v9261_v49 = vsub.f32 %v15013_v28, %v15151_v22 }
 0x4d4   : > { %v9262_v30 = vsub.f32 %v15035_v10, %v15151_v22  ;;  %v9264_v37 = vsub.f32 %v15032_v18, %v15151_v22  ;;  %v9212_v54 = vadd.f32 %v9211_v41, %v9210_v60  ;;  %v9215_v46 = vadd.f32 %v9214_v24, %v9173_v11 }
 0x4d5   : > { %v9136_v39 = vadd.f32 %v9135_v23, %v9094_v32  ;;  %v9174_v50 = vmul.f32 %v9094_v32, %v15147_v55  ;;  %v9231_v14 = vmul.f32 %v15151_v22, %v15151_v22  ;;  %v9305_v42 = vadd.f32 %v11632_v59, %v9277_v12 }
 0x4d6   : > { %v9227_v62 = vmul.f32 0.04, %v9212_v54  ;;  %v11618_v51 = vpop.eup %11617  ;;  %v9175_v58 = vmul.f32 %v9095_v56, %v15096_v21  ;;  %v9176_v13 = vmul.f32 %v9096_v45, %v15101_v25  ;;  %v15480_v24 = vsub.f32 %v14941_v38, %v15074_v6  ;;  %v11633_v54 = vld [vmem:[%s11803_s16 + $0x38] sm:$0xff] }
 0x4d7   : > { %v9137_v36 = vadd.f32 %v9136_v39, %v9095_v56  ;;  %v9216_v47 = vadd.f32 %v9215_v46, %v9174_v50  ;;  %v9333_v40 = vmax.f32 %v9305_v42, 0.0  ;;  %v9280_v29 = vmul.f32 %v11618_v51, %v9252_v31  ;;  %v11634_v39 = vld [vmem:[%s11803_s16 + $0x40] sm:$0xff]  ;;  %v11635_v50 = vld [vmem:[%s11803_s16 + $0x48] sm:$0xff]  ;;  %v11636_v42 = vld [vmem:[%s11803_s16 + $0x50] sm:$0xff] }
 0x4d8   : > { %v9281_v60 = vmul.f32 %v11618_v51, %v15480_v24  ;;  %v15481_v9 = vsub.f32 %v14958_v3, %v15074_v6  ;;  %v15482_v56 = vsub.f32 %v14939_v15, %v15074_v6  ;;  %v15483_v11 = vsub.f32 %v14980_v0, %v15074_v6  ;;  %v11637_v24 = vld [vmem:[%s11803_s16 + $0x60] sm:$0xff] }
 0x4d9   : > { %v9286_v31 = vmul.f32 %v11618_v51, %v15484_v20  ;;  %v9235_v38 = vsub.f32 %v9227_v62, %v9231_v14  ;;  %v9138_v41 = vadd.f32 %v9137_v36, %v9096_v45  ;;  %v9308_v46 = vadd.f32 %v11633_v54, %v9280_v29 }
 0x4da   : > { %v9282_v12 = vmul.f32 %v11618_v51, %v15481_v9  ;;  %v9283_v23 = vmul.f32 %v11618_v51, %v15482_v56  ;;  %v9285_v32 = vmul.f32 %v11618_v51, %v15483_v11  ;;  %v9309_v3 = vadd.f32 %v11634_v39, %v9281_v60  ;;  %v11638_v56 = vld [vmem:[%s11803_s16 + $0x68] sm:$0xff]  ;;  %v11639_v39 = vld [vmem:[%s11803_s16 + $0x58] sm:$0xff] }
 0x4db   : > { %v9314_v16 = vadd.f32 %v11638_v56, %v9286_v31  ;;  %v9239_v0 = vadd.f32 1e-05, %v9235_v38  ;;  %v9139_v11 = vrot.slane %v9138_v41, 4  ;;  %v9336_v1 = vmax.f32 %v9308_v46, 0.0 }
 0x4dc   : > { %v9310_v59 = vadd.f32 %v11635_v50, %v9282_v12  ;;  %v9311_v15 = vadd.f32 %v11636_v42, %v9283_v23  ;;  %v9313_v9 = vadd.f32 %v11637_v24, %v9285_v32  ;;  %v9337_v33 = vmax.f32 %v9309_v3, 0.0 }
 0x4dd   : > { %v9342_v36 = vmax.f32 %v9314_v16, 0.0  ;;  %11619 = vrsqrt.f32 %v9239_v0  ;;  %v9140_v29 = vadd.f32 %v9139_v11, %v9138_v41  ;;  %v9364_v60 = vmul.f32 %v9336_v1, %v13128_v52 }
 0x4de   : > { %v9338_v14 = vmax.f32 %v9310_v59, 0.0  ;;  %v9339_v45 = vmax.f32 %v9311_v15, 0.0  ;;  %v9341_v62 = vmax.f32 %v9313_v9, 0.0  ;;  %v9365_v12 = vmul.f32 %v9337_v33, %v15449_v5 }
 0x4df   : > { %v9370_v31 = vmul.f32 %v9342_v36, %v15463_v26  ;;  %v9141_v38 = vrot.slane %v9140_v29, 2  ;;  %v9217_v16 = vadd.f32 %v9216_v47, %v9175_v58  ;;  %9392 = vst [vmem:[%s15132_s13 + $0x38] sm:$0xff] %v9364_v60  ;;  %v9284_v1 = vmul.f32 %v11618_v51, %v9256_v19 }
 0x4e0   : > { %v9366_v23 = vmul.f32 %v9338_v14, %v15448_v48  ;;  %v9367_v32 = vmul.f32 %v9339_v45, %v15455_v4  ;;  %v9369_v20 = vmul.f32 %v9341_v62, %v15465_v35  ;;  %9393 = vst [vmem:[%s15132_s13 + $0x40] sm:$0xff] %v9365_v12  ;;  %v9361_v41 = vmul.f32 %v9333_v40, %v15459_v44  ;;  %v11642_v14 = vld [vmem:[%s11803_s16 + $0x80] sm:$0xff]  ;;  %v11644_v62 = vld [vmem:[%s11803_s16 + $0x98] sm:$0xff] }
 0x4e1   : > { %9398 = vst [vmem:[%s15132_s13 + $0x68] sm:$0xff] %v9370_v31  ;;  %v9142_v54 = vadd.f32 %v9141_v38, %v9140_v29  ;;  %v9218_v46 = vadd.f32 %v9217_v16, %v9176_v13  ;;  %v9312_v3 = vadd.f32 %v11639_v39, %v9284_v1  ;;  %v15485_v53 = vsub.f32 %v15054_v34, %v15151_v22  ;;  %v11646_v16 = vld [vmem:[%s11803_s16 + $0x90] sm:$0xff] }
 0x4e2   : > { %9394 = vst [vmem:[%s15132_s13 + $0x48] sm:$0xff] %v9366_v23  ;;  %9395 = vst [vmem:[%s15132_s13 + $0x50] sm:$0xff] %v9367_v32  ;;  %v15486_v34 = vsub.f32 %v15009_v57, %v15151_v22 }
 0x4e3   : > { %9397 = vst [vmem:[%s15132_s13 + $0x60] sm:$0xff] %v9369_v20  ;;  %9389 = vst [vmem:[%s15132_s13 + $0x20] sm:$0xff] %v9361_v41  ;;  %v9143_v50 = vrot.slane %v9142_v54, 1  ;;  %v9219_v47 = vrot.slane %v9218_v46, 4  ;;  %v9340_v58 = vmax.f32 %v9312_v3, 0.0 }
 0x4e5   : > { %v9144_v59 = vadd.f32 %v9143_v50, %v9142_v54  ;;  %v9220_v42 = vadd.f32 %v9219_v47, %v9218_v46  ;;  %v9368_v15 = vmul.f32 %v9340_v58, %v15459_v44 }
 0x4e7   : > { %v15228_v24 = vmul.f32 0.04, %v9144_v59  ;;  %v9221_v17 = vrot.slane %v9220_v42, 2  ;;  %9396 = vst [vmem:[%s15132_s13 + $0x58] sm:$0xff] %v9368_v15 }
 0x4e9   : > { %v9222_v6 = vadd.f32 %v9221_v17, %v9220_v42  ;;  %v9232_v19 = vmul.f32 %v15228_v24, %v15228_v24  ;;  %v9266_v51 = vsub.f32 %v15066_v43, %v15228_v24  ;;  %v9267_v13 = vsub.f32 %v15043_v63, %v15228_v24 }
 0x4ea   : > { %v11620_v40 = vpop.eup %11619  ;;  %v9268_v9 = vsub.f32 %v15063_v61, %v15228_v24  ;;  %v9269_v56 = vsub.f32 %v15099_v27, %v15228_v24  ;;  %v9270_v0 = vsub.f32 %v15147_v55, %v15228_v24  ;;  %v9271_v11 = vsub.f32 %v15096_v21, %v15228_v24 }
 0x4eb   : > { %v9287_v63 = vmul.f32 %v11620_v40, %v9259_v8  ;;  %v9288_v61 = vmul.f32 %v11620_v40, %v9260_v2  ;;  %v9289_v43 = vmul.f32 %v11620_v40, %v9261_v49  ;;  %v9290_v27 = vmul.f32 %v11620_v40, %v9262_v30  ;;  %v11640_v2 = vld [vmem:[%s11803_s16 + $0x70] sm:$0xff]  ;;  %v11641_v49 = vld [vmem:[%s11803_s16 + $0x78] sm:$0xff]  ;;  %v11643_v30 = vld [vmem:[%s11803_s16 + $0x88] sm:$0xff] }
 0x4ec   : > { %v9292_v21 = vmul.f32 %v11620_v40, %v9264_v37  ;;  %v9293_v55 = vmul.f32 %v11620_v40, %v15485_v53  ;;  %v9223_v7 = vrot.slane %v9222_v6, 1  ;;  %v9272_v8 = vsub.f32 %v15101_v25, %v15228_v24  ;;  %v11645_v37 = vld [vmem:[%s11803_s16 + $0xa0] sm:$0xff] }
 0x4ed   : > { %v9315_v28 = vadd.f32 %v11640_v2, %v9287_v63  ;;  %v9316_v33 = vadd.f32 %v11641_v49, %v9288_v61  ;;  %v9317_v10 = vadd.f32 %v11642_v14, %v9289_v43  ;;  %v9318_v45 = vadd.f32 %v11643_v30, %v9290_v27  ;;  %v11647_v63 = vld [vmem:[%s11803_s16 + $0xa8] sm:$0xff]  ;;  %v11648_v43 = vld [vmem:[%s11803_s16 + $0xb0] sm:$0xff] }
 0x4ee   : > { %v9320_v18 = vadd.f32 %v11644_v62, %v9292_v21  ;;  %v9321_v36 = vadd.f32 %v11645_v37, %v9293_v55  ;;  %v9224_v29 = vadd.f32 %v9223_v7, %v9222_v6  ;;  %v9291_v60 = vmul.f32 %v11620_v40, %v15486_v34  ;;  %v11649_v21 = vld [vmem:[%s11803_s16 + $0xb8] sm:$0xff]  ;;  %v11650_v55 = vld [vmem:[%s11803_s16 + $0xc0] sm:$0xff]  ;;  %v11651_v2 = vld [vmem:[%s11803_s16 + $0xc8] sm:$0xff] }
 0x4ef   : > { %v9343_v12 = vmax.f32 %v9315_v28, 0.0  ;;  %v9344_v25 = vmax.f32 %v9316_v33, 0.0  ;;  %v9345_v23 = vmax.f32 %v9317_v10, 0.0  ;;  %v9346_v32 = vmax.f32 %v9318_v45, 0.0  ;;  %v11652_v49 = vld [vmem:[%s11803_s16 + $0xd0] sm:$0xff] }
 0x4f0   : > { %v9348_v20 = vmax.f32 %v9320_v18, 0.0  ;;  %v9349_v31 = vmax.f32 %v9321_v36, 0.0  ;;  %v9228_v38 = vmul.f32 0.04, %v9224_v29  ;;  %v9319_v1 = vadd.f32 %v11646_v16, %v9291_v60 }
 0x4f1   : > { %v9371_v41 = vmul.f32 %v9343_v12, %v13128_v52  ;;  %v9372_v57 = vmul.f32 %v9344_v25, %v15449_v5  ;;  %v9373_v22 = vmul.f32 %v9345_v23, %v15448_v48  ;;  %v9374_v54 = vmul.f32 %v9346_v32, %v15455_v4 }
 0x4f2   : > { %v9376_v46 = vmul.f32 %v9348_v20, %v15465_v35  ;;  %v9377_v39 = vmul.f32 %v9349_v31, %v15463_v26  ;;  %v9236_v3 = vsub.f32 %v9228_v38, %v9232_v19  ;;  %v9347_v50 = vmax.f32 %v9319_v1, 0.0 }
 0x4f3   : > { %9399 = vst [vmem:[%s15132_s13 + $0x70] sm:$0xff] %v9371_v41  ;;  %9400 = vst [vmem:[%s15132_s13 + $0x78] sm:$0xff] %v9372_v57 }
 0x4f4   : > { %9401 = vst [vmem:[%s15132_s13 + $0x80] sm:$0xff] %v9373_v22  ;;  %9402 = vst [vmem:[%s15132_s13 + $0x88] sm:$0xff] %v9374_v54  ;;  %v9240_v47 = vadd.f32 1e-05, %v9236_v3  ;;  %v9375_v58 = vmul.f32 %v9347_v50, %v15459_v44 }
 0x4f5   : > { %9404 = vst [vmem:[%s15132_s13 + $0x98] sm:$0xff] %v9376_v46  ;;  %9405 = vst [vmem:[%s15132_s13 + $0xa0] sm:$0xff] %v9377_v39 }
 0x4f6   : > { %11621 = vrsqrt.f32 %v9240_v47  ;;  %9403 = vst [vmem:[%s15132_s13 + $0x90] sm:$0xff] %v9375_v58 }
 0x503   : > { %v11622_v59 = vpop.eup %11621 }
 0x504   : > { %v9294_v42 = vmul.f32 %v11622_v59, %v9266_v51  ;;  %v9295_v15 = vmul.f32 %v11622_v59, %v9267_v13  ;;  %v9296_v24 = vmul.f32 %v11622_v59, %v9268_v9  ;;  %v9297_v17 = vmul.f32 %v11622_v59, %v9269_v56  ;;  %v11653_v13 = vld [vmem:[%s11803_s16 + $0xd8] sm:$0xff] }
 0x505   : > { %v9298_v6 = vmul.f32 %v11622_v59, %v9270_v0  ;;  %v9299_v19 = vmul.f32 %v11622_v59, %v9271_v11  ;;  %v9300_v40 = vmul.f32 %v11622_v59, %v9272_v8 }
 0x506   : > { %v9322_v61 = vadd.f32 %v11647_v63, %v9294_v42  ;;  %v9323_v27 = vadd.f32 %v11648_v43, %v9295_v15  ;;  %v9324_v53 = vadd.f32 %v11649_v21, %v9296_v24  ;;  %v9325_v7 = vadd.f32 %v11650_v55, %v9297_v17 }
 0x507   : > { %v9326_v28 = vadd.f32 %v11651_v2, %v9298_v6  ;;  %v9327_v51 = vadd.f32 %v11652_v49, %v9299_v19  ;;  %v9328_v9 = vadd.f32 %v11653_v13, %v9300_v40 }
 0x508   : > { %v9350_v56 = vmax.f32 %v9322_v61, 0.0  ;;  %v9351_v0 = vmax.f32 %v9323_v27, 0.0  ;;  %v9352_v11 = vmax.f32 %v9324_v53, 0.0  ;;  %v9353_v8 = vmax.f32 %v9325_v7, 0.0 }
 0x509   : > { %v9354_v33 = vmax.f32 %v9326_v28, 0.0  ;;  %v9355_v14 = vmax.f32 %v9327_v51, 0.0  ;;  %v9356_v10 = vmax.f32 %v9328_v9, 0.0 }
 0x50a   : > { %v9378_v30 = vmul.f32 %v9350_v56, %v13128_v52  ;;  %v9379_v45 = vmul.f32 %v9351_v0, %v15449_v5  ;;  %v9380_v62 = vmul.f32 %v9352_v11, %v15448_v48  ;;  %v9381_v18 = vmul.f32 %v9353_v8, %v15455_v4 }
 0x50b   : > { %v9382_v37 = vmul.f32 %v9354_v33, %v15459_v44  ;;  %v9383_v36 = vmul.f32 %v9355_v14, %v15465_v35  ;;  %v9384_v29 = vmul.f32 %v9356_v10, %v15463_v26 }
 0x50c   : > { %9406 = vst [vmem:[%s15132_s13 + $0xa8] sm:$0xff] %v9378_v30  ;;  %9407 = vst [vmem:[%s15132_s13 + $0xb0] sm:$0xff] %v9379_v45 }
 0x50d   : > { %9408 = vst [vmem:[%s15132_s13 + $0xb8] sm:$0xff] %v9380_v62  ;;  %9409 = vst [vmem:[%s15132_s13 + $0xc0] sm:$0xff] %v9381_v18 }
 0x50e   : > { %9410 = vst [vmem:[%s15132_s13 + $0xc8] sm:$0xff] %v9382_v37  ;;  %9411 = vst [vmem:[%s15132_s13 + $0xd0] sm:$0xff] %v9383_v36 }
 0x50f   : > { %9412 = vst [vmem:[%s15132_s13 + $0xd8] sm:$0xff] %v9384_v29 }
 0x510 PF: > { %s16_s21 = sadd.s32 1, %s11660_s21  }
 0x511   : > { %p13_p4 = scmp.ge.s32.totalorder %s16_s21, 4  }
 0x513   :  { %15 = sbr.rel (!%p13_p4) target bundleno = 1 (0x1), region = 74 }

</bundles_post_ra>
